<compile_context>
chip_gen: v7x
topology: tpu7x:2x2x1
jax: 0.10.0
libtpu: 0.0.40
codegen_flags: <defaults>
</compile_context>

<pallas_src>
import math
import numpy as np

import jax
import jax.numpy as jnp
from jax.experimental import pallas as pl
from jax.experimental.pallas import tpu as pltpu

# ----------------------------- model config ---------------------------------
IMG = 16
PATCH = 8
CHANS = 3
EMBED = 32            # encoder embed_dim
DEPTH = 2             # encoder depth
HEADS = 4             # encoder num_heads
MLP_RATIO = 4.0
DEC_EMBED = 16        # decoder_embed_dim
DEC_DEPTH = 2
DEC_HEADS = 4
DEC_DIM_HEAD = EMBED // 12          # matches `embed_dim // 12` (= 2)
DEC_INNER = DEC_HEADS * DEC_DIM_HEAD
NUM_PATCHES = (IMG // PATCH) ** 2   # = 4
MASK_RATIO = 0.75
ENTROPY_WEIGHT = 15
INFONCE_TEMP = 0.05
PATCH_DIM = PATCH * PATCH * CHANS
NEG_INF = -1e9


# --------------------------- pallas_call plumbing ----------------------------
def _full_block(shape):
    nd = len(shape)
    return pl.BlockSpec(shape, lambda i, _nd=nd: (0,) * _nd)


def pallas_apply(kernel, out_shape, *args):
    """Single-step pallas_call: every array is one full-size VMEM block.

    Work is flattened into the token axis instead of a parallel batch grid:
    splitting the 24-row slab across 2 TCs (v7x) would require padding to
    multiples of 8 rows per block; at these sizes dispatch dominates, so we
    keep grid=(1,)."""
    return pl.pallas_call(
        kernel,
        grid=(1,),
        out_shape=out_shape,
        in_specs=[_full_block(a.shape) for a in args],
        out_specs=_full_block(out_shape.shape),
        compiler_params=pltpu.CompilerParams(dimension_semantics=("arbitrary",)),
    )(*args)


# --------------------------- in-kernel math helpers ---------------------------
def _bf16(x):
    return x.astype(jnp.bfloat16)


def _dot(a, b):
    # MXU-native bf16 operands, f32 accumulation (avoids f32 matmul emulation).
    return jnp.dot(_bf16(a), _bf16(b), preferred_element_type=jnp.float32)


def _dot_t(a, b):
    # a (M, K) x b (N, K) contracting last axes -> (M, N); avoids an explicit b.T.
    return jax.lax.dot_general(
        _bf16(a), _bf16(b),
        dimension_numbers=(((1,), (1,)), ((), ())),
        preferred_element_type=jnp.float32)


def _ln(x, g, b, eps=1e-5):
    mu = jnp.mean(x, axis=-1, keepdims=True)
    xc = x - mu
    var = jnp.mean(xc * xc, axis=-1, keepdims=True)
    return xc * jax.lax.rsqrt(var + eps) * g + b


def _erf(x):
    # Abramowitz & Stegun 7.1.26 polynomial (~1.5e-7 abs err): exp/mul/add only.
    # TODO(synk): replace with lax.erf if/when Mosaic gains an erf lowering.
    a1, a2, a3, a4, a5 = 0.254829592, -0.284496736, 1.421413741, -1.453152027, 1.061405429
    p = 0.3275911
    s = jnp.where(x >= 0, 1.0, -1.0)
    ax = jnp.abs(x)
    t = 1.0 / (1.0 + p * ax)
    poly = ((((a5 * t + a4) * t + a3) * t + a2) * t + a1) * t
    return s * (1.0 - poly * jnp.exp(-ax * ax))


def _gelu(x):
    # exact-erf GELU (nn.GELU default), erf via the polynomial above
    return 0.5 * x * (1.0 + _erf(x * 0.7071067811865475))


def _mha_masked(q, k, v, heads, bias):
    """Multi-head attention on flattened slabs.

    q: (Tq, inner) already scaled; k, v: (Tk, inner); bias: (Tq, Tk) additive
    (0 for same-sample pairs, -1e9 otherwise -> block-diagonal attention).
    Heads are separated with lane masks on full-width operands instead of
    narrow lane slices + concat, so there is no XLU relayout traffic; per-head
    outputs occupy disjoint lanes and summing them reproduces the usual
    concat-of-heads layout."""
    inner = q.shape[-1]
    d = inner // heads
    lane = jax.lax.broadcasted_iota(jnp.int32, (1, inner), 1)
    out = None
    for h in range(heads):
        hm = ((lane >= h * d) & (lane < (h + 1) * d)).astype(jnp.float32)
        s = _dot_t(q * hm, k) + bias                  # only head-h dims contribute
        m = jnp.max(s, axis=-1, keepdims=True)
        e = jnp.exp(s - m)
        p = e * pl.reciprocal(jnp.sum(e, axis=-1, keepdims=True), approx=True)
        oh = _dot(p, v * hm)                          # lands in head-h lanes only
        out = oh if out is None else out + oh
    return out


# ------------------------------- fused kernels --------------------------------
def _encoder_kernel(x_ref, bias_ref,
                    ln1_g, ln1_b, q_w, q_b, k_w, k_b, v_w, v_b,
                    proj_w, proj_b, ln2_g, ln2_b,
                    fc1_w, fc1_b, fc2_w, fc2_b,
                    norm_g, norm_b, o_ref):
    """All ViT encoder blocks + final LayerNorm on a flattened (T, D) token slab.

    Both encoder branches (scene views and masked target) share this slab; the
    block-diagonal attention bias keeps samples independent, so every matmul
    runs at full slab height (T rows instead of 5)."""
    D = x_ref.shape[-1]
    scale = (D // HEADS) ** -0.5
    x = x_ref[...]
    bias = bias_ref[...]
    for i in range(DEPTH):
        xn = _ln(x, ln1_g[i], ln1_b[i])
        q = (_dot(xn, q_w[i]) + q_b[i]) * scale
        k = _dot(xn, k_w[i]) + k_b[i]
        v = _dot(xn, v_w[i]) + v_b[i]
        att = _mha_masked(q, k, v, HEADS, bias)
        x = x + _dot(att, proj_w[i]) + proj_b[i]
        xn = _ln(x, ln2_g[i], ln2_b[i])
        h = _gelu(_dot(xn, fc1_w[i]) + fc1_b[i])
        x = x + _dot(h, fc2_w[i]) + fc2_b[i]
    o_ref[...] = _ln(x, norm_g[...], norm_b[...])


def _scene_kernel(x_ref, bias_ref,
                  a_ln_g, a_ln_b, q_w, k_w, v_w, out_w, out_b,
                  f_ln_g, f_ln_b, fc1_w, fc1_b, fc2_w, fc2_b, e_ref):
    """Scene self-attention layer + FFN + L2-normalised scene-token embedding."""
    T = x_ref.shape[0]
    D = x_ref.shape[-1]
    B = e_ref.shape[0]
    L = T // B
    scale = (D // HEADS) ** -0.5
    x = x_ref[...]
    bias = bias_ref[...]
    xn = _ln(x, a_ln_g[...], a_ln_b[...])
    q = _dot(xn, q_w[...]) * scale                 # to_qkv has no bias
    k = _dot(xn, k_w[...])
    v = _dot(xn, v_w[...])
    att = _mha_masked(q, k, v, HEADS, bias)
    x = x + _dot(att, out_w[...]) + out_b[...]
    xn = _ln(x, f_ln_g[...], f_ln_b[...])
    h = _gelu(_dot(xn, fc1_w[...]) + fc1_b[...])
    x = x + _dot(h, fc2_w[...]) + fc2_b[...]
    for b in range(B):                             # F.normalize of the scene token
        tok = x[b * L:b * L + 1, :]                # (1, D), static slice
        ssq = jnp.sum(tok * tok, axis=-1, keepdims=True)
        e_ref[pl.ds(b, 1), :] = tok * jax.lax.rsqrt(jnp.maximum(ssq, 1e-24))


def _decoder_kernel(y_ref, z_ref, bias_ref,
                    a_ln_g, a_ln_b, q_w, k_w, v_w, out_w, out_b,
                    f_ln_g, f_ln_b, fc1_w, fc1_b, fc2_w, fc2_b,
                    pred_w, pred_b, o_ref):
    """Cross-attention decoder (DEC_DEPTH layers) + decoder_pred on flattened slabs."""
    scale = DEC_DIM_HEAD ** -0.5
    y = y_ref[...]            # (B*L, DEC_EMBED) queries
    z = z_ref[...]            # (B, EMBED) context -- PreNorm only norms the queries
    bias = bias_ref[...]
    for i in range(DEC_DEPTH):
        yn = _ln(y, a_ln_g[i], a_ln_b[i])
        q = _dot(yn, q_w[i]) * scale               # to_q / to_kv have no bias
        k = _dot(z, k_w[i])
        v = _dot(z, v_w[i])
        att = _mha_masked(q, k, v, DEC_HEADS, bias)
        y = y + _dot(att, out_w[i]) + out_b[i]
        yn = _ln(y, f_ln_g[i], f_ln_b[i])
        h = _gelu(_dot(yn, fc1_w[i]) + fc1_b[i])
        y = y + _dot(h, fc2_w[i]) + fc2_b[i]
    o_ref[...] = _dot(y, pred_w[...]) + pred_b[...]


# ------------------------------ kernel wrappers -------------------------------
def run_encoder(params, tokens, bias):
    e = params["enc"]
    return pallas_apply(
        _encoder_kernel,
        jax.ShapeDtypeStruct(tokens.shape, jnp.float32),
        tokens, bias,
        e["ln1_g"], e["ln1_b"], e["q_w"], e["q_b"], e["k_w"], e["k_b"],
        e["v_w"], e["v_b"], e["proj_w"], e["proj_b"],
        e["ln2_g"], e["ln2_b"], e["fc1_w"], e["fc1_b"], e["fc2_w"], e["fc2_b"],
        params["norm_g"], params["norm_b"])


def run_scene(params, x_flat, bias, batch):
    s = params["scene"]
    return pallas_apply(
        _scene_kernel,
        jax.ShapeDtypeStruct((batch, EMBED), jnp.float32),
        x_flat, bias,
        s["a_ln_g"], s["a_ln_b"], s["q_w"], s["k_w"], s["v_w"],
        s["out_w"], s["out_b"],
        s["f_ln_g"], s["f_ln_b"], s["fc1_w"], s["fc1_b"], s["fc2_w"], s["fc2_b"])


def run_decoder(params, y_flat, z_flat, bias):
    d = params["dec"]
    return pallas_apply(
        _decoder_kernel,
        jax.ShapeDtypeStruct((y_flat.shape[0], PATCH_DIM), jnp.float32),
        y_flat, z_flat, bias,
        d["a_ln_g"], d["a_ln_b"], d["q_w"], d["k_w"], d["v_w"],
        d["out_w"], d["out_b"],
        d["f_ln_g"], d["f_ln_b"], d["fc1_w"], d["fc1_b"], d["fc2_w"], d["fc2_b"],
        params["dec_pred_w"], params["dec_pred_b"])


# ------------------------- attention sample-bias builders ---------------------
def _block_bias(sizes):
    """Additive block-diagonal attention bias for samples of the given lengths."""
    ids = np.concatenate([np.full((s,), i, np.int32) for i, s in enumerate(sizes)])
    return jnp.asarray(
        np.where(ids[:, None] == ids[None, :], 0.0, NEG_INF).astype(np.float32))


def _cross_bias(q_ids, k_ids):
    q_ids = np.asarray(q_ids)[:, None]
    k_ids = np.asarray(k_ids)[None, :]
    return jnp.asarray(np.where(q_ids == k_ids, 0.0, NEG_INF).astype(np.float32))


# --------------------------- sincos positional embed --------------------------
def get_1d_sincos_pos_embed_from_grid(embed_dim, pos):
    omega = np.arange(embed_dim // 2, dtype=np.float64)
    omega /= embed_dim / 2.0
    omega = 1.0 / 10000 ** omega
    pos = pos.reshape(-1)
    out = np.einsum("m,d->md", pos, omega)
    return np.concatenate([np.sin(out), np.cos(out)], axis=1)


def get_2d_sincos_pos_embed(embed_dim, grid_size, cls_token=False):
    grid_h = np.arange(grid_size, dtype=np.float32)
    grid_w = np.arange(grid_size, dtype=np.float32)
    grid = np.meshgrid(grid_w, grid_h)
    grid = np.stack(grid, axis=0).reshape([2, 1, grid_size, grid_size])
    emb_h = get_1d_sincos_pos_embed_from_grid(embed_dim // 2, grid[0])
    emb_w = get_1d_sincos_pos_embed_from_grid(embed_dim // 2, grid[1])
    pos = np.concatenate([emb_h, emb_w], axis=1)
    if cls_token:
        pos = np.concatenate([np.zeros([1, embed_dim]), pos], axis=0)
    return pos.astype(np.float32)


# ------------------------------- parameters -----------------------------------
def init_params(key):
    keys = iter(jax.random.split(key, 256))

    def nrm(shape, std=0.02):
        return (std * jax.random.normal(next(keys), shape)).astype(jnp.float32)

    def xav(shape):
        fan_in, fan_out = shape[-2], shape[-1]
        std = math.sqrt(2.0 / (fan_in + fan_out))
        return (std * jax.random.normal(next(keys), shape)).astype(jnp.float32)

    zeros = lambda s: jnp.zeros(s, jnp.float32)
    ones = lambda s: jnp.ones(s, jnp.float32)
    H = int(EMBED * MLP_RATIO)

    enc = dict(
        ln1_g=ones((DEPTH, 1, EMBED)), ln1_b=zeros((DEPTH, 1, EMBED)),
        # qkv Linear(D, 3D, bias=True) split into per-projection chunks (same math,
        # avoids in-kernel lane slicing of the 96-wide qkv activation).
        q_w=xav((DEPTH, EMBED, EMBED)), q_b=zeros((DEPTH, 1, EMBED)),
        k_w=xav((DEPTH, EMBED, EMBED)), k_b=zeros((DEPTH, 1, EMBED)),
        v_w=xav((DEPTH, EMBED, EMBED)), v_b=zeros((DEPTH, 1, EMBED)),
        proj_w=xav((DEPTH, EMBED, EMBED)), proj_b=zeros((DEPTH, 1, EMBED)),
        ln2_g=ones((DEPTH, 1, EMBED)), ln2_b=zeros((DEPTH, 1, EMBED)),
        fc1_w=xav((DEPTH, EMBED, H)), fc1_b=zeros((DEPTH, 1, H)),
        fc2_w=xav((DEPTH, H, EMBED)), fc2_b=zeros((DEPTH, 1, EMBED)),
    )
    scene = dict(  # Transformer(embed, depth=1, heads, dim_head=embed//heads, mlp=2*embed, selfatt)
        a_ln_g=ones((1, EMBED)), a_ln_b=zeros((1, EMBED)),
        q_w=xav((EMBED, EMBED)), k_w=xav((EMBED, EMBED)), v_w=xav((EMBED, EMBED)),
        out_w=xav((EMBED, EMBED)), out_b=zeros((1, EMBED)),
        f_ln_g=ones((1, EMBED)), f_ln_b=zeros((1, EMBED)),
        fc1_w=xav((EMBED, 2 * EMBED)), fc1_b=zeros((1, 2 * EMBED)),
        fc2_w=xav((2 * EMBED, EMBED)), fc2_b=zeros((1, EMBED)),
    )
    dec = dict(  # Transformer(dec_embed, depth=2, heads, dim_head=embed//12, mlp=2*embed, cross-attn)
        a_ln_g=ones((DEC_DEPTH, 1, DEC_EMBED)), a_ln_b=zeros((DEC_DEPTH, 1, DEC_EMBED)),
        q_w=xav((DEC_DEPTH, DEC_EMBED, DEC_INNER)),
        k_w=xav((DEC_DEPTH, EMBED, DEC_INNER)),
        v_w=xav((DEC_DEPTH, EMBED, DEC_INNER)),
        out_w=xav((DEC_DEPTH, DEC_INNER, DEC_EMBED)), out_b=zeros((DEC_DEPTH, 1, DEC_EMBED)),
        f_ln_g=ones((DEC_DEPTH, 1, DEC_EMBED)), f_ln_b=zeros((DEC_DEPTH, 1, DEC_EMBED)),
        fc1_w=xav((DEC_DEPTH, DEC_EMBED, 2 * EMBED)), fc1_b=zeros((DEC_DEPTH, 1, 2 * EMBED)),
        fc2_w=xav((DEC_DEPTH, 2 * EMBED, DEC_EMBED)), fc2_b=zeros((DEC_DEPTH, 1, DEC_EMBED)),
    )

    params = dict(
        patch_w=xav((CHANS * PATCH * PATCH, EMBED)),   # Conv2d(k=p, s=p) as matmul
        patch_b=zeros((1, EMBED)),
        cls_token=nrm((1, 1, EMBED)),
        scene_token=nrm((1, 1, EMBED)),
        mask_token=nrm((1, 1, DEC_EMBED)),
        pos_embed=jnp.asarray(
            get_2d_sincos_pos_embed(EMBED, int(NUM_PATCHES ** 0.5), True))[None],
        decoder_pos_embed=jnp.asarray(
            get_2d_sincos_pos_embed(DEC_EMBED, int(NUM_PATCHES ** 0.5), True))[None],
        enc=enc,
        norm_g=ones((1, EMBED)), norm_b=zeros((1, EMBED)),
        scene=scene,
        dec_embed_w=xav((EMBED, DEC_EMBED)), dec_embed_b=zeros((1, DEC_EMBED)),
        dec=dec,
        dec_pred_w=xav((DEC_EMBED, PATCH_DIM)), dec_pred_b=zeros((1, PATCH_DIM)),
    )
    return params


# ------------------------------- model glue (XLA) ------------------------------
def _im2col(x):
    Bc, C, H, W = x.shape
    p = PATCH
    h, w = H // p, W // p
    cols = x.reshape(Bc, C, h, p, w, p)
    return jnp.transpose(cols, (0, 2, 4, 1, 3, 5)).reshape(Bc, h * w, C * p * p)


def patch_embed(params, imgs):
    """Conv2d(k=p, s=p) as im2col + matmul (plain XLA: fuses with the transpose glue)."""
    cols = _im2col(imgs)
    Bc, Lp, Cd = cols.shape
    out = cols.reshape(Bc * Lp, Cd) @ params["patch_w"] + params["patch_b"]
    return out.reshape(Bc, Lp, EMBED)


def random_masking(x, mask_ratio, key):
    N, L, D = x.shape
    len_keep = int(L * (1 - mask_ratio))
    noise = jax.random.uniform(key, (N, L))            # stands in for torch.rand
    ids_shuffle = jnp.argsort(noise, axis=1)
    ids_restore = jnp.argsort(ids_shuffle, axis=1)
    ids_keep = ids_shuffle[:, :len_keep]
    idx = jnp.broadcast_to(ids_keep[:, :, None], (N, len_keep, D))
    x_masked = jnp.take_along_axis(x, idx, axis=1)
    mask = jnp.ones((N, L), jnp.float32)
    mask = mask.at[:, :len_keep].set(0.0)
    mask = jnp.take_along_axis(mask, ids_restore, axis=1)
    return x_masked, mask, ids_restore


def patchify(imgs):
    B = imgs.shape[0]
    p = PATCH
    h = w = imgs.shape[2] // p
    x = imgs.reshape(B, 3, h, p, w, p)
    x = jnp.einsum("nchpwq->nhwpqc", x)
    return x.reshape(B, h * w, p * p * 3)


def forward_mse_loss(target_imgs, pred, mask):
    # Plain XLA per review (few-KB tensors; fuses with patchify glue).
    imgs = target_imgs.reshape((-1,) + target_imgs.shape[2:])
    tgt = patchify(imgs)                               # norm_pix_loss=False
    per_patch = jnp.mean((pred - tgt) ** 2, axis=-1)
    return jnp.sum(per_patch * mask) / jnp.sum(mask)   # mask.sum()>0 for mask_ratio>0


def forward_sscd_loss(embeddings, instance_labels,
                      entropy_weight=ENTROPY_WEIGHT, infonce_temperature=INFONCE_TEMP):
    # Plain XLA: a (B, B) matmul + scalar bookkeeping, kept in f32 (exp(sim/0.05)
    # only stays finite because the embeddings are L2-normalised).
    N = embeddings.shape[0]
    similarity = embeddings @ embeddings.T
    match_matrix = instance_labels[:, None] == instance_labels[None, :]
    identity = jnp.zeros_like(match_matrix)
    identity = identity.at[:, :N].set(jnp.eye(N, dtype=bool))
    non_matches = match_matrix == 0
    nontrivial_matches = match_matrix & (~identity)
    small_value = jnp.float32(-100.0)
    max_non_match_sim = jnp.max(jnp.where(non_matches, similarity, small_value),
                                axis=1, keepdims=True)
    logits = jnp.exp(similarity / infonce_temperature)
    partitions = logits + (jnp.sum(non_matches * logits, axis=1) + 1e-6)[:, None]
    probabilities = logits / partitions
    infonce_loss = jnp.sum(-jnp.log(probabilities) * nontrivial_matches) / N
    loss = infonce_loss
    if entropy_weight:
        closest_distance = jnp.sqrt(jnp.maximum(2.0 - 2.0 * max_non_match_sim, 1e-6))
        entropy_loss = -jnp.mean(jnp.log(closest_distance)) * entropy_weight
        loss = infonce_loss + entropy_loss
    else:
        entropy_loss = infonce_loss
    stats = {
        "positive_sim": jnp.sum(similarity * nontrivial_matches) / jnp.sum(nontrivial_matches),
        "negative_sim": jnp.sum(similarity * non_matches) / jnp.sum(non_matches),
        "nearest_negative_sim": jnp.mean(max_non_match_sim),
        "center_l2_norm": jnp.sqrt(jnp.sum(jnp.mean(embeddings, axis=0) ** 2)),
        "InfoNCE": infonce_loss,
        "entropy": entropy_loss,
        "sscd_loss": loss,
    }
    return loss, stats


# --------------------------------- forward ------------------------------------
def forward(params, inputs, target, instance_ids, mask_key,
            mask_ratio=MASK_RATIO, entropy_weight=ENTROPY_WEIGHT):
    B, NV = inputs.shape[:2]
    D = EMBED
    pos = params["pos_embed"]

    # ---- patch embedding for both branches (XLA glue, one fused region) ----
    x_imgs = inputs.reshape((B * NV,) + inputs.shape[2:])
    y_imgs = target.reshape((-1,) + target.shape[2:])
    Bt = y_imgs.shape[0]
    x_tok = patch_embed(params, x_imgs) + pos[:, 1:, :]        # (B*NV, Lp, D)
    y_tok = patch_embed(params, y_imgs) + pos[:, 1:, :]        # (Bt,   Lp, D)
    Lp = x_tok.shape[1]

    # ---- random masking of the target branch (argsort/gather glue) ----
    y_masked, mask, ids_restore = random_masking(y_tok, mask_ratio, mask_key)
    len_keep = y_masked.shape[1]

    # ---- merged encoder: ONE pallas_call for both branches ----
    cls = params["cls_token"] + pos[:, :1, :]
    x_full = jnp.concatenate([jnp.broadcast_to(cls, (B * NV, 1, D)), x_tok], axis=1)
    y_full = jnp.concatenate([jnp.broadcast_to(cls, (Bt, 1, D)), y_masked], axis=1)
    Ls, Lt = 1 + Lp, 1 + len_keep
    tokens = jnp.concatenate(
        [x_full.reshape(B * NV * Ls, D), y_full.reshape(Bt * Lt, D)], axis=0)
    enc_bias = _block_bias([Ls] * (B * NV) + [Lt] * Bt)
    enc_out = run_encoder(params, tokens, enc_bias)            # (T, D)

    latent_x = enc_out[:B * NV * Ls].reshape(B * NV, Ls, D)[:, 0, :].reshape(B, NV, D)
    latent_y = enc_out[B * NV * Ls:].reshape(Bt, Lt, D)

    # ---- scene transformer + L2-normalised scene-token embedding ----
    scene_in = jnp.concatenate(
        [jnp.broadcast_to(params["scene_token"], (B, 1, D)), latent_x], axis=1)
    scene_bias = _block_bias([NV + 1] * B)
    embedding = run_scene(params, scene_in.reshape(B * (NV + 1), D), scene_bias, B)

    # ---- decoder input assembly (dec_embed + mask-token fill + restore gather) ----
    y = latent_y.reshape(Bt * Lt, D) @ params["dec_embed_w"] + params["dec_embed_b"]
    y = y.reshape(Bt, Lt, DEC_EMBED)
    n_mask = ids_restore.shape[1] + 1 - y.shape[1]
    mask_tokens = jnp.broadcast_to(params["mask_token"], (Bt, n_mask, DEC_EMBED))
    y_ = jnp.concatenate([y[:, 1:, :], mask_tokens], axis=1)
    idx = jnp.broadcast_to(ids_restore[:, :, None], (Bt, ids_restore.shape[1], DEC_EMBED))
    y_ = jnp.take_along_axis(y_, idx, axis=1)
    y = jnp.concatenate([y[:, :1, :], y_], axis=1) + params["decoder_pos_embed"]
    y = y[:, 1:, :]                                            # (Bt, Lp, DEC_EMBED)

    dec_bias = _cross_bias(np.repeat(np.arange(Bt), Lp), np.arange(Bt))
    pred = run_decoder(params, y.reshape(Bt * Lp, DEC_EMBED), embedding, dec_bias)
    pred = pred.reshape(Bt, Lp, PATCH_DIM)

    # ---- losses (plain XLA post-processing) ----
    loss = forward_mse_loss(target, pred, mask)
    sscd_loss, stats = forward_sscd_loss(embedding, instance_ids,
                                         entropy_weight=entropy_weight)
    return loss, pred, mask, sscd_loss, stats


# ------------------------------------ main -------------------------------------
if __name__ == "__main__":
    root = jax.random.PRNGKey(0)
    pkey, ikey, tkey, mkey = jax.random.split(root, 4)

    params = init_params(pkey)

    B, NVIEW = 2, 2
    inputs = jax.random.normal(ikey, (B, NVIEW, CHANS, IMG, IMG), jnp.float32)
    target = jax.random.normal(tkey, (B, 1, CHANS, IMG, IMG), jnp.float32)
    instance_ids = jnp.array([0, 0], dtype=jnp.int32)

    fwd = jax.jit(forward)
    loss, pred, mask, sscd_loss, stats = fwd(params, inputs, target, instance_ids, mkey)
    jax.block_until_ready((loss, pred, mask, sscd_loss, stats))

    assert pred.shape == (B, NUM_PATCHES, PATCH * PATCH * CHANS)
    assert mask.shape == (B, NUM_PATCHES)
    print("KERNEL_OK")
</pallas_src>

<mosaic_0001>
module attributes {stable_mosaic.version = 11 : i64} {
  func.func @_encoder_kernel(%arg0: i32, %arg1: memref<24x32xf32, #tpu.memory_space<vmem>>, %arg2: memref<24x24xf32, #tpu.memory_space<vmem>>, %arg3: memref<2x1x32xf32, #tpu.memory_space<vmem>>, %arg4: memref<2x1x32xf32, #tpu.memory_space<vmem>>, %arg5: memref<2x32x32xf32, #tpu.memory_space<vmem>>, %arg6: memref<2x1x32xf32, #tpu.memory_space<vmem>>, %arg7: memref<2x32x32xf32, #tpu.memory_space<vmem>>, %arg8: memref<2x1x32xf32, #tpu.memory_space<vmem>>, %arg9: memref<2x32x32xf32, #tpu.memory_space<vmem>>, %arg10: memref<2x1x32xf32, #tpu.memory_space<vmem>>, %arg11: memref<2x32x32xf32, #tpu.memory_space<vmem>>, %arg12: memref<2x1x32xf32, #tpu.memory_space<vmem>>, %arg13: memref<2x1x32xf32, #tpu.memory_space<vmem>>, %arg14: memref<2x1x32xf32, #tpu.memory_space<vmem>>, %arg15: memref<2x32x128xf32, #tpu.memory_space<vmem>>, %arg16: memref<2x1x128xf32, #tpu.memory_space<vmem>>, %arg17: memref<2x128x32xf32, #tpu.memory_space<vmem>>, %arg18: memref<2x1x32xf32, #tpu.memory_space<vmem>>, %arg19: memref<1x32xf32, #tpu.memory_space<vmem>>, %arg20: memref<1x32xf32, #tpu.memory_space<vmem>>, %arg21: memref<24x32xf32, #tpu.memory_space<vmem>>) attributes {dimension_semantics = [#tpu.dimension_semantics<arbitrary>], iteration_bounds = array<i64: 1>, scalar_prefetch = 0 : i64, scratch_operands = 0 : i64, tpu.core_type = #tpu.core_type<tc>, window_params = [{pipeline_mode = #tpu.pipeline_mode<synchronous>, transform_indices = @transform_0, window_bounds = array<i64: 24, 32>}, {pipeline_mode = #tpu.pipeline_mode<synchronous>, transform_indices = @transform_1, window_bounds = array<i64: 24, 24>}, {pipeline_mode = #tpu.pipeline_mode<synchronous>, transform_indices = @transform_2, window_bounds = array<i64: 2, 1, 32>}, {pipeline_mode = #tpu.pipeline_mode<synchronous>, transform_indices = @transform_3, window_bounds = array<i64: 2, 1, 32>}, {pipeline_mode = #tpu.pipeline_mode<synchronous>, transform_indices = @transform_4, window_bounds = array<i64: 2, 32, 32>}, {pipeline_mode = #tpu.pipeline_mode<synchronous>, transform_indices = @transform_5, window_bounds = array<i64: 2, 1, 32>}, {pipeline_mode = #tpu.pipeline_mode<synchronous>, transform_indices = @transform_6, window_bounds = array<i64: 2, 32, 32>}, {pipeline_mode = #tpu.pipeline_mode<synchronous>, transform_indices = @transform_7, window_bounds = array<i64: 2, 1, 32>}, {pipeline_mode = #tpu.pipeline_mode<synchronous>, transform_indices = @transform_8, window_bounds = array<i64: 2, 32, 32>}, {pipeline_mode = #tpu.pipeline_mode<synchronous>, transform_indices = @transform_9, window_bounds = array<i64: 2, 1, 32>}, {pipeline_mode = #tpu.pipeline_mode<synchronous>, transform_indices = @transform_10, window_bounds = array<i64: 2, 32, 32>}, {pipeline_mode = #tpu.pipeline_mode<synchronous>, transform_indices = @transform_11, window_bounds = array<i64: 2, 1, 32>}, {pipeline_mode = #tpu.pipeline_mode<synchronous>, transform_indices = @transform_12, window_bounds = array<i64: 2, 1, 32>}, {pipeline_mode = #tpu.pipeline_mode<synchronous>, transform_indices = @transform_13, window_bounds = array<i64: 2, 1, 32>}, {pipeline_mode = #tpu.pipeline_mode<synchronous>, transform_indices = @transform_14, window_bounds = array<i64: 2, 32, 128>}, {pipeline_mode = #tpu.pipeline_mode<synchronous>, transform_indices = @transform_15, window_bounds = array<i64: 2, 1, 128>}, {pipeline_mode = #tpu.pipeline_mode<synchronous>, transform_indices = @transform_16, window_bounds = array<i64: 2, 128, 32>}, {pipeline_mode = #tpu.pipeline_mode<synchronous>, transform_indices = @transform_17, window_bounds = array<i64: 2, 1, 32>}, {pipeline_mode = #tpu.pipeline_mode<synchronous>, transform_indices = @transform_18, window_bounds = array<i64: 1, 32>}, {pipeline_mode = #tpu.pipeline_mode<synchronous>, transform_indices = @transform_19, window_bounds = array<i64: 1, 32>}, {pipeline_mode = #tpu.pipeline_mode<synchronous>, transform_indices = @transform_20, window_bounds = array<i64: 24, 32>}]} {
    %c0 = arith.constant 0 : index
    %c0_0 = arith.constant 0 : index
    %0 = vector.load %arg1[%c0, %c0_0] : memref<24x32xf32, #tpu.memory_space<vmem>>, vector<24x32xf32>
    %c0_1 = arith.constant 0 : index
    %c0_2 = arith.constant 0 : index
    %1 = vector.load %arg2[%c0_1, %c0_2] : memref<24x24xf32, #tpu.memory_space<vmem>>, vector<24x24xf32>
    %c0_3 = arith.constant 0 : index
    %c0_4 = arith.constant 0 : index
    %c0_5 = arith.constant 0 : index
    %2 = vector.load %arg3[%c0_3, %c0_4, %c0_5] : memref<2x1x32xf32, #tpu.memory_space<vmem>>, vector<1x1x32xf32>
    %3 = vector.shape_cast %2 : vector<1x1x32xf32> to vector<1x32xf32>
    %c0_6 = arith.constant 0 : index
    %c0_7 = arith.constant 0 : index
    %c0_8 = arith.constant 0 : index
    %4 = vector.load %arg4[%c0_6, %c0_7, %c0_8] : memref<2x1x32xf32, #tpu.memory_space<vmem>>, vector<1x1x32xf32>
    %5 = vector.shape_cast %4 : vector<1x1x32xf32> to vector<1x32xf32>
    %cst = arith.constant dense<0.000000e+00> : vector<24xf32>
    %6 = vector.multi_reduction <add>, %0, %cst [1] : vector<24x32xf32> to vector<24xf32>
    %7 = vector.shape_cast %6 : vector<24xf32> to vector<24x1xf32>
    %cst_9 = arith.constant 3.200000e+01 : f32
    %8 = vector.broadcast %cst_9 : f32 to vector<24x1xf32>
    %9 = arith.divf %7, %8 : vector<24x1xf32>
    %10 = vector.broadcast %9 : vector<24x1xf32> to vector<24x32xf32>
    %11 = arith.subf %0, %10 : vector<24x32xf32>
    %12 = arith.mulf %11, %11 : vector<24x32xf32>
    %cst_10 = arith.constant dense<0.000000e+00> : vector<24xf32>
    %13 = vector.multi_reduction <add>, %12, %cst_10 [1] : vector<24x32xf32> to vector<24xf32>
    %14 = vector.shape_cast %13 : vector<24xf32> to vector<24x1xf32>
    %cst_11 = arith.constant 3.200000e+01 : f32
    %15 = vector.broadcast %cst_11 : f32 to vector<24x1xf32>
    %16 = arith.divf %14, %15 : vector<24x1xf32>
    %cst_12 = arith.constant 9.99999974E-6 : f32
    %17 = vector.broadcast %cst_12 : f32 to vector<24x1xf32>
    %18 = arith.addf %16, %17 : vector<24x1xf32>
    %19 = math.rsqrt %18 : vector<24x1xf32>
    %20 = vector.broadcast %19 : vector<24x1xf32> to vector<24x32xf32>
    %21 = arith.mulf %11, %20 : vector<24x32xf32>
    %22 = vector.broadcast %3 : vector<1x32xf32> to vector<24x32xf32>
    %23 = arith.mulf %21, %22 : vector<24x32xf32>
    %24 = vector.broadcast %5 : vector<1x32xf32> to vector<24x32xf32>
    %25 = arith.addf %23, %24 : vector<24x32xf32>
    %c0_13 = arith.constant 0 : index
    %c0_14 = arith.constant 0 : index
    %c0_15 = arith.constant 0 : index
    %26 = vector.load %arg5[%c0_13, %c0_14, %c0_15] : memref<2x32x32xf32, #tpu.memory_space<vmem>>, vector<1x32x32xf32>
    %27 = vector.shape_cast %26 : vector<1x32x32xf32> to vector<32x32xf32>
    %28 = arith.truncf %25 : vector<24x32xf32> to vector<24x32xbf16>
    %29 = arith.truncf %27 : vector<32x32xf32> to vector<32x32xbf16>
    %cst_16 = arith.constant dense<0.000000e+00> : vector<24x32xf32>
    %30 = tpu.matmul %28, %29, %cst_16 {dimension_numbers = #tpu.dot_dimension_numbers<[1], [0], [0], [1], [0, 0, 1, 1], [], []>} : vector<24x32xbf16>, vector<32x32xbf16>, vector<24x32xf32> -> vector<24x32xf32>
    %c0_17 = arith.constant 0 : index
    %c0_18 = arith.constant 0 : index
    %c0_19 = arith.constant 0 : index
    %31 = vector.load %arg6[%c0_17, %c0_18, %c0_19] : memref<2x1x32xf32, #tpu.memory_space<vmem>>, vector<1x1x32xf32>
    %32 = vector.shape_cast %31 : vector<1x1x32xf32> to vector<1x32xf32>
    %33 = vector.broadcast %32 : vector<1x32xf32> to vector<24x32xf32>
    %34 = arith.addf %30, %33 : vector<24x32xf32>
    %cst_20 = arith.constant 0.353553385 : f32
    %35 = vector.broadcast %cst_20 : f32 to vector<24x32xf32>
    %36 = arith.mulf %34, %35 : vector<24x32xf32>
    %c0_21 = arith.constant 0 : index
    %c0_22 = arith.constant 0 : index
    %c0_23 = arith.constant 0 : index
    %37 = vector.load %arg7[%c0_21, %c0_22, %c0_23] : memref<2x32x32xf32, #tpu.memory_space<vmem>>, vector<1x32x32xf32>
    %38 = vector.shape_cast %37 : vector<1x32x32xf32> to vector<32x32xf32>
    %39 = arith.truncf %25 : vector<24x32xf32> to vector<24x32xbf16>
    %40 = arith.truncf %38 : vector<32x32xf32> to vector<32x32xbf16>
    %cst_24 = arith.constant dense<0.000000e+00> : vector<24x32xf32>
    %41 = tpu.matmul %39, %40, %cst_24 {dimension_numbers = #tpu.dot_dimension_numbers<[1], [0], [0], [1], [0, 0, 1, 1], [], []>} : vector<24x32xbf16>, vector<32x32xbf16>, vector<24x32xf32> -> vector<24x32xf32>
    %c0_25 = arith.constant 0 : index
    %c0_26 = arith.constant 0 : index
    %c0_27 = arith.constant 0 : index
    %42 = vector.load %arg8[%c0_25, %c0_26, %c0_27] : memref<2x1x32xf32, #tpu.memory_space<vmem>>, vector<1x1x32xf32>
    %43 = vector.shape_cast %42 : vector<1x1x32xf32> to vector<1x32xf32>
    %44 = vector.broadcast %43 : vector<1x32xf32> to vector<24x32xf32>
    %45 = arith.addf %41, %44 : vector<24x32xf32>
    %c0_28 = arith.constant 0 : index
    %c0_29 = arith.constant 0 : index
    %c0_30 = arith.constant 0 : index
    %46 = vector.load %arg9[%c0_28, %c0_29, %c0_30] : memref<2x32x32xf32, #tpu.memory_space<vmem>>, vector<1x32x32xf32>
    %47 = vector.shape_cast %46 : vector<1x32x32xf32> to vector<32x32xf32>
    %48 = arith.truncf %25 : vector<24x32xf32> to vector<24x32xbf16>
    %49 = arith.truncf %47 : vector<32x32xf32> to vector<32x32xbf16>
    %cst_31 = arith.constant dense<0.000000e+00> : vector<24x32xf32>
    %50 = tpu.matmul %48, %49, %cst_31 {dimension_numbers = #tpu.dot_dimension_numbers<[1], [0], [0], [1], [0, 0, 1, 1], [], []>} : vector<24x32xbf16>, vector<32x32xbf16>, vector<24x32xf32> -> vector<24x32xf32>
    %c0_32 = arith.constant 0 : index
    %c0_33 = arith.constant 0 : index
    %c0_34 = arith.constant 0 : index
    %51 = vector.load %arg10[%c0_32, %c0_33, %c0_34] : memref<2x1x32xf32, #tpu.memory_space<vmem>>, vector<1x1x32xf32>
    %52 = vector.shape_cast %51 : vector<1x1x32xf32> to vector<1x32xf32>
    %53 = vector.broadcast %52 : vector<1x32xf32> to vector<24x32xf32>
    %54 = arith.addf %50, %53 : vector<24x32xf32>
    %55 = tpu.iota {dimensions = array<i32: 1>} : vector<1x32xi32>
    %c0_i32 = arith.constant 0 : i32
    %56 = vector.broadcast %c0_i32 : i32 to vector<1x32xi32>
    %57 = arith.cmpi sge, %55, %56 : vector<1x32xi32>
    %c8_i32 = arith.constant 8 : i32
    %58 = vector.broadcast %c8_i32 : i32 to vector<1x32xi32>
    %59 = arith.cmpi slt, %55, %58 : vector<1x32xi32>
    %60 = arith.andi %57, %59 : vector<1x32xi1>
    %61 = arith.extui %60 : vector<1x32xi1> to vector<1x32xi32>
    %62 = arith.sitofp %61 : vector<1x32xi32> to vector<1x32xf32>
    %63 = vector.broadcast %62 : vector<1x32xf32> to vector<24x32xf32>
    %64 = arith.mulf %36, %63 : vector<24x32xf32>
    %65 = arith.truncf %64 : vector<24x32xf32> to vector<24x32xbf16>
    %66 = arith.truncf %45 : vector<24x32xf32> to vector<24x32xbf16>
    %cst_35 = arith.constant dense<0.000000e+00> : vector<24x24xf32>
    %67 = tpu.matmul %65, %66, %cst_35 {dimension_numbers = #tpu.dot_dimension_numbers<[1], [1], [0], [0], [0, 0, 1, 0], [], []>} : vector<24x32xbf16>, vector<24x32xbf16>, vector<24x24xf32> -> vector<24x24xf32>
    %68 = arith.addf %67, %1 : vector<24x24xf32>
    %cst_36 = arith.constant dense<0xFF800000> : vector<24xf32>
    %69 = vector.multi_reduction <maximumf>, %68, %cst_36 [1] : vector<24x24xf32> to vector<24xf32>
    %70 = vector.shape_cast %69 : vector<24xf32> to vector<24x1xf32>
    %71 = vector.broadcast %70 : vector<24x1xf32> to vector<24x24xf32>
    %72 = arith.subf %68, %71 : vector<24x24xf32>
    %73 = math.exp %72 : vector<24x24xf32>
    %cst_37 = arith.constant dense<0.000000e+00> : vector<24xf32>
    %74 = vector.multi_reduction <add>, %73, %cst_37 [1] : vector<24x24xf32> to vector<24xf32>
    %75 = vector.shape_cast %74 : vector<24xf32> to vector<24x1xf32>
    %76 = tpu.reciprocal %75 {approx = true} : vector<24x1xf32> -> vector<24x1xf32>
    %77 = vector.broadcast %76 : vector<24x1xf32> to vector<24x24xf32>
    %78 = arith.mulf %73, %77 : vector<24x24xf32>
    %79 = vector.broadcast %62 : vector<1x32xf32> to vector<24x32xf32>
    %80 = arith.mulf %54, %79 : vector<24x32xf32>
    %81 = arith.truncf %78 : vector<24x24xf32> to vector<24x24xbf16>
    %82 = arith.truncf %80 : vector<24x32xf32> to vector<24x32xbf16>
    %cst_38 = arith.constant dense<0.000000e+00> : vector<24x32xf32>
    %83 = tpu.matmul %81, %82, %cst_38 {dimension_numbers = #tpu.dot_dimension_numbers<[1], [0], [0], [1], [0, 0, 1, 1], [], []>} : vector<24x24xbf16>, vector<24x32xbf16>, vector<24x32xf32> -> vector<24x32xf32>
    %c8_i32_39 = arith.constant 8 : i32
    %84 = vector.broadcast %c8_i32_39 : i32 to vector<1x32xi32>
    %85 = arith.cmpi sge, %55, %84 : vector<1x32xi32>
    %c16_i32 = arith.constant 16 : i32
    %86 = vector.broadcast %c16_i32 : i32 to vector<1x32xi32>
    %87 = arith.cmpi slt, %55, %86 : vector<1x32xi32>
    %88 = arith.andi %85, %87 : vector<1x32xi1>
    %89 = arith.extui %88 : vector<1x32xi1> to vector<1x32xi32>
    %90 = arith.sitofp %89 : vector<1x32xi32> to vector<1x32xf32>
    %91 = vector.broadcast %90 : vector<1x32xf32> to vector<24x32xf32>
    %92 = arith.mulf %36, %91 : vector<24x32xf32>
    %93 = arith.truncf %92 : vector<24x32xf32> to vector<24x32xbf16>
    %94 = arith.truncf %45 : vector<24x32xf32> to vector<24x32xbf16>
    %cst_40 = arith.constant dense<0.000000e+00> : vector<24x24xf32>
    %95 = tpu.matmul %93, %94, %cst_40 {dimension_numbers = #tpu.dot_dimension_numbers<[1], [1], [0], [0], [0, 0, 1, 0], [], []>} : vector<24x32xbf16>, vector<24x32xbf16>, vector<24x24xf32> -> vector<24x24xf32>
    %96 = arith.addf %95, %1 : vector<24x24xf32>
    %cst_41 = arith.constant dense<0xFF800000> : vector<24xf32>
    %97 = vector.multi_reduction <maximumf>, %96, %cst_41 [1] : vector<24x24xf32> to vector<24xf32>
    %98 = vector.shape_cast %97 : vector<24xf32> to vector<24x1xf32>
    %99 = vector.broadcast %98 : vector<24x1xf32> to vector<24x24xf32>
    %100 = arith.subf %96, %99 : vector<24x24xf32>
    %101 = math.exp %100 : vector<24x24xf32>
    %cst_42 = arith.constant dense<0.000000e+00> : vector<24xf32>
    %102 = vector.multi_reduction <add>, %101, %cst_42 [1] : vector<24x24xf32> to vector<24xf32>
    %103 = vector.shape_cast %102 : vector<24xf32> to vector<24x1xf32>
    %104 = tpu.reciprocal %103 {approx = true} : vector<24x1xf32> -> vector<24x1xf32>
    %105 = vector.broadcast %104 : vector<24x1xf32> to vector<24x24xf32>
    %106 = arith.mulf %101, %105 : vector<24x24xf32>
    %107 = vector.broadcast %90 : vector<1x32xf32> to vector<24x32xf32>
    %108 = arith.mulf %54, %107 : vector<24x32xf32>
    %109 = arith.truncf %106 : vector<24x24xf32> to vector<24x24xbf16>
    %110 = arith.truncf %108 : vector<24x32xf32> to vector<24x32xbf16>
    %cst_43 = arith.constant dense<0.000000e+00> : vector<24x32xf32>
    %111 = tpu.matmul %109, %110, %cst_43 {dimension_numbers = #tpu.dot_dimension_numbers<[1], [0], [0], [1], [0, 0, 1, 1], [], []>} : vector<24x24xbf16>, vector<24x32xbf16>, vector<24x32xf32> -> vector<24x32xf32>
    %112 = arith.addf %83, %111 : vector<24x32xf32>
    %c16_i32_44 = arith.constant 16 : i32
    %113 = vector.broadcast %c16_i32_44 : i32 to vector<1x32xi32>
    %114 = arith.cmpi sge, %55, %113 : vector<1x32xi32>
    %c24_i32 = arith.constant 24 : i32
    %115 = vector.broadcast %c24_i32 : i32 to vector<1x32xi32>
    %116 = arith.cmpi slt, %55, %115 : vector<1x32xi32>
    %117 = arith.andi %114, %116 : vector<1x32xi1>
    %118 = arith.extui %117 : vector<1x32xi1> to vector<1x32xi32>
    %119 = arith.sitofp %118 : vector<1x32xi32> to vector<1x32xf32>
    %120 = vector.broadcast %119 : vector<1x32xf32> to vector<24x32xf32>
    %121 = arith.mulf %36, %120 : vector<24x32xf32>
    %122 = arith.truncf %121 : vector<24x32xf32> to vector<24x32xbf16>
    %123 = arith.truncf %45 : vector<24x32xf32> to vector<24x32xbf16>
    %cst_45 = arith.constant dense<0.000000e+00> : vector<24x24xf32>
    %124 = tpu.matmul %122, %123, %cst_45 {dimension_numbers = #tpu.dot_dimension_numbers<[1], [1], [0], [0], [0, 0, 1, 0], [], []>} : vector<24x32xbf16>, vector<24x32xbf16>, vector<24x24xf32> -> vector<24x24xf32>
    %125 = arith.addf %124, %1 : vector<24x24xf32>
    %cst_46 = arith.constant dense<0xFF800000> : vector<24xf32>
    %126 = vector.multi_reduction <maximumf>, %125, %cst_46 [1] : vector<24x24xf32> to vector<24xf32>
    %127 = vector.shape_cast %126 : vector<24xf32> to vector<24x1xf32>
    %128 = vector.broadcast %127 : vector<24x1xf32> to vector<24x24xf32>
    %129 = arith.subf %125, %128 : vector<24x24xf32>
    %130 = math.exp %129 : vector<24x24xf32>
    %cst_47 = arith.constant dense<0.000000e+00> : vector<24xf32>
    %131 = vector.multi_reduction <add>, %130, %cst_47 [1] : vector<24x24xf32> to vector<24xf32>
    %132 = vector.shape_cast %131 : vector<24xf32> to vector<24x1xf32>
    %133 = tpu.reciprocal %132 {approx = true} : vector<24x1xf32> -> vector<24x1xf32>
    %134 = vector.broadcast %133 : vector<24x1xf32> to vector<24x24xf32>
    %135 = arith.mulf %130, %134 : vector<24x24xf32>
    %136 = vector.broadcast %119 : vector<1x32xf32> to vector<24x32xf32>
    %137 = arith.mulf %54, %136 : vector<24x32xf32>
    %138 = arith.truncf %135 : vector<24x24xf32> to vector<24x24xbf16>
    %139 = arith.truncf %137 : vector<24x32xf32> to vector<24x32xbf16>
    %cst_48 = arith.constant dense<0.000000e+00> : vector<24x32xf32>
    %140 = tpu.matmul %138, %139, %cst_48 {dimension_numbers = #tpu.dot_dimension_numbers<[1], [0], [0], [1], [0, 0, 1, 1], [], []>} : vector<24x24xbf16>, vector<24x32xbf16>, vector<24x32xf32> -> vector<24x32xf32>
    %141 = arith.addf %112, %140 : vector<24x32xf32>
    %c24_i32_49 = arith.constant 24 : i32
    %142 = vector.broadcast %c24_i32_49 : i32 to vector<1x32xi32>
    %143 = arith.cmpi sge, %55, %142 : vector<1x32xi32>
    %c32_i32 = arith.constant 32 : i32
    %144 = vector.broadcast %c32_i32 : i32 to vector<1x32xi32>
    %145 = arith.cmpi slt, %55, %144 : vector<1x32xi32>
    %146 = arith.andi %143, %145 : vector<1x32xi1>
    %147 = arith.extui %146 : vector<1x32xi1> to vector<1x32xi32>
    %148 = arith.sitofp %147 : vector<1x32xi32> to vector<1x32xf32>
    %149 = vector.broadcast %148 : vector<1x32xf32> to vector<24x32xf32>
    %150 = arith.mulf %36, %149 : vector<24x32xf32>
    %151 = arith.truncf %150 : vector<24x32xf32> to vector<24x32xbf16>
    %152 = arith.truncf %45 : vector<24x32xf32> to vector<24x32xbf16>
    %cst_50 = arith.constant dense<0.000000e+00> : vector<24x24xf32>
    %153 = tpu.matmul %151, %152, %cst_50 {dimension_numbers = #tpu.dot_dimension_numbers<[1], [1], [0], [0], [0, 0, 1, 0], [], []>} : vector<24x32xbf16>, vector<24x32xbf16>, vector<24x24xf32> -> vector<24x24xf32>
    %154 = arith.addf %153, %1 : vector<24x24xf32>
    %cst_51 = arith.constant dense<0xFF800000> : vector<24xf32>
    %155 = vector.multi_reduction <maximumf>, %154, %cst_51 [1] : vector<24x24xf32> to vector<24xf32>
    %156 = vector.shape_cast %155 : vector<24xf32> to vector<24x1xf32>
    %157 = vector.broadcast %156 : vector<24x1xf32> to vector<24x24xf32>
    %158 = arith.subf %154, %157 : vector<24x24xf32>
    %159 = math.exp %158 : vector<24x24xf32>
    %cst_52 = arith.constant dense<0.000000e+00> : vector<24xf32>
    %160 = vector.multi_reduction <add>, %159, %cst_52 [1] : vector<24x24xf32> to vector<24xf32>
    %161 = vector.shape_cast %160 : vector<24xf32> to vector<24x1xf32>
    %162 = tpu.reciprocal %161 {approx = true} : vector<24x1xf32> -> vector<24x1xf32>
    %163 = vector.broadcast %162 : vector<24x1xf32> to vector<24x24xf32>
    %164 = arith.mulf %159, %163 : vector<24x24xf32>
    %165 = vector.broadcast %148 : vector<1x32xf32> to vector<24x32xf32>
    %166 = arith.mulf %54, %165 : vector<24x32xf32>
    %167 = arith.truncf %164 : vector<24x24xf32> to vector<24x24xbf16>
    %168 = arith.truncf %166 : vector<24x32xf32> to vector<24x32xbf16>
    %cst_53 = arith.constant dense<0.000000e+00> : vector<24x32xf32>
    %169 = tpu.matmul %167, %168, %cst_53 {dimension_numbers = #tpu.dot_dimension_numbers<[1], [0], [0], [1], [0, 0, 1, 1], [], []>} : vector<24x24xbf16>, vector<24x32xbf16>, vector<24x32xf32> -> vector<24x32xf32>
    %170 = arith.addf %141, %169 : vector<24x32xf32>
    %c0_54 = arith.constant 0 : index
    %c0_55 = arith.constant 0 : index
    %c0_56 = arith.constant 0 : index
    %171 = vector.load %arg11[%c0_54, %c0_55, %c0_56] : memref<2x32x32xf32, #tpu.memory_space<vmem>>, vector<1x32x32xf32>
    %172 = vector.shape_cast %171 : vector<1x32x32xf32> to vector<32x32xf32>
    %173 = arith.truncf %170 : vector<24x32xf32> to vector<24x32xbf16>
    %174 = arith.truncf %172 : vector<32x32xf32> to vector<32x32xbf16>
    %cst_57 = arith.constant dense<0.000000e+00> : vector<24x32xf32>
    %175 = tpu.matmul %173, %174, %cst_57 {dimension_numbers = #tpu.dot_dimension_numbers<[1], [0], [0], [1], [0, 0, 1, 1], [], []>} : vector<24x32xbf16>, vector<32x32xbf16>, vector<24x32xf32> -> vector<24x32xf32>
    %176 = arith.addf %0, %175 : vector<24x32xf32>
    %c0_58 = arith.constant 0 : index
    %c0_59 = arith.constant 0 : index
    %c0_60 = arith.constant 0 : index
    %177 = vector.load %arg12[%c0_58, %c0_59, %c0_60] : memref<2x1x32xf32, #tpu.memory_space<vmem>>, vector<1x1x32xf32>
    %178 = vector.shape_cast %177 : vector<1x1x32xf32> to vector<1x32xf32>
    %179 = vector.broadcast %178 : vector<1x32xf32> to vector<24x32xf32>
    %180 = arith.addf %176, %179 : vector<24x32xf32>
    %c0_61 = arith.constant 0 : index
    %c0_62 = arith.constant 0 : index
    %c0_63 = arith.constant 0 : index
    %181 = vector.load %arg13[%c0_61, %c0_62, %c0_63] : memref<2x1x32xf32, #tpu.memory_space<vmem>>, vector<1x1x32xf32>
    %182 = vector.shape_cast %181 : vector<1x1x32xf32> to vector<1x32xf32>
    %c0_64 = arith.constant 0 : index
    %c0_65 = arith.constant 0 : index
    %c0_66 = arith.constant 0 : index
    %183 = vector.load %arg14[%c0_64, %c0_65, %c0_66] : memref<2x1x32xf32, #tpu.memory_space<vmem>>, vector<1x1x32xf32>
    %184 = vector.shape_cast %183 : vector<1x1x32xf32> to vector<1x32xf32>
    %cst_67 = arith.constant dense<0.000000e+00> : vector<24xf32>
    %185 = vector.multi_reduction <add>, %180, %cst_67 [1] : vector<24x32xf32> to vector<24xf32>
    %186 = vector.shape_cast %185 : vector<24xf32> to vector<24x1xf32>
    %cst_68 = arith.constant 3.200000e+01 : f32
    %187 = vector.broadcast %cst_68 : f32 to vector<24x1xf32>
    %188 = arith.divf %186, %187 : vector<24x1xf32>
    %189 = vector.broadcast %188 : vector<24x1xf32> to vector<24x32xf32>
    %190 = arith.subf %180, %189 : vector<24x32xf32>
    %191 = arith.mulf %190, %190 : vector<24x32xf32>
    %cst_69 = arith.constant dense<0.000000e+00> : vector<24xf32>
    %192 = vector.multi_reduction <add>, %191, %cst_69 [1] : vector<24x32xf32> to vector<24xf32>
    %193 = vector.shape_cast %192 : vector<24xf32> to vector<24x1xf32>
    %cst_70 = arith.constant 3.200000e+01 : f32
    %194 = vector.broadcast %cst_70 : f32 to vector<24x1xf32>
    %195 = arith.divf %193, %194 : vector<24x1xf32>
    %cst_71 = arith.constant 9.99999974E-6 : f32
    %196 = vector.broadcast %cst_71 : f32 to vector<24x1xf32>
    %197 = arith.addf %195, %196 : vector<24x1xf32>
    %198 = math.rsqrt %197 : vector<24x1xf32>
    %199 = vector.broadcast %198 : vector<24x1xf32> to vector<24x32xf32>
    %200 = arith.mulf %190, %199 : vector<24x32xf32>
    %201 = vector.broadcast %182 : vector<1x32xf32> to vector<24x32xf32>
    %202 = arith.mulf %200, %201 : vector<24x32xf32>
    %203 = vector.broadcast %184 : vector<1x32xf32> to vector<24x32xf32>
    %204 = arith.addf %202, %203 : vector<24x32xf32>
    %c0_72 = arith.constant 0 : index
    %c0_73 = arith.constant 0 : index
    %c0_74 = arith.constant 0 : index
    %205 = vector.load %arg15[%c0_72, %c0_73, %c0_74] : memref<2x32x128xf32, #tpu.memory_space<vmem>>, vector<1x32x128xf32>
    %206 = vector.shape_cast %205 : vector<1x32x128xf32> to vector<32x128xf32>
    %207 = arith.truncf %204 : vector<24x32xf32> to vector<24x32xbf16>
    %208 = arith.truncf %206 : vector<32x128xf32> to vector<32x128xbf16>
    %cst_75 = arith.constant dense<0.000000e+00> : vector<24x128xf32>
    %209 = tpu.matmul %207, %208, %cst_75 {dimension_numbers = #tpu.dot_dimension_numbers<[1], [0], [0], [1], [0, 0, 1, 1], [], []>} : vector<24x32xbf16>, vector<32x128xbf16>, vector<24x128xf32> -> vector<24x128xf32>
    %c0_76 = arith.constant 0 : index
    %c0_77 = arith.constant 0 : index
    %c0_78 = arith.constant 0 : index
    %210 = vector.load %arg16[%c0_76, %c0_77, %c0_78] : memref<2x1x128xf32, #tpu.memory_space<vmem>>, vector<1x1x128xf32>
    %211 = vector.shape_cast %210 : vector<1x1x128xf32> to vector<1x128xf32>
    %212 = vector.broadcast %211 : vector<1x128xf32> to vector<24x128xf32>
    %213 = arith.addf %209, %212 : vector<24x128xf32>
    %cst_79 = arith.constant 5.000000e-01 : f32
    %214 = vector.broadcast %cst_79 : f32 to vector<24x128xf32>
    %215 = arith.mulf %214, %213 : vector<24x128xf32>
    %cst_80 = arith.constant 0.707106769 : f32
    %216 = vector.broadcast %cst_80 : f32 to vector<24x128xf32>
    %217 = arith.mulf %213, %216 : vector<24x128xf32>
    %cst_81 = arith.constant 0.000000e+00 : f32
    %218 = vector.broadcast %cst_81 : f32 to vector<24x128xf32>
    %219 = arith.cmpf oge, %217, %218 : vector<24x128xf32>
    %cst_82 = arith.constant 1.000000e+00 : f32
    %cst_83 = arith.constant -1.000000e+00 : f32
    %220 = vector.broadcast %cst_82 : f32 to vector<24x128xf32>
    %221 = vector.broadcast %cst_83 : f32 to vector<24x128xf32>
    %222 = arith.select %219, %220, %221 : vector<24x128xi1>, vector<24x128xf32>
    %223 = math.absf %217 : vector<24x128xf32>
    %cst_84 = arith.constant 0.327591091 : f32
    %224 = vector.broadcast %cst_84 : f32 to vector<24x128xf32>
    %225 = arith.mulf %224, %223 : vector<24x128xf32>
    %cst_85 = arith.constant 1.000000e+00 : f32
    %226 = vector.broadcast %cst_85 : f32 to vector<24x128xf32>
    %227 = arith.addf %226, %225 : vector<24x128xf32>
    %cst_86 = arith.constant 1.000000e+00 : f32
    %228 = vector.broadcast %cst_86 : f32 to vector<24x128xf32>
    %229 = arith.divf %228, %227 : vector<24x128xf32>
    %cst_87 = arith.constant 1.06140542 : f32
    %230 = vector.broadcast %cst_87 : f32 to vector<24x128xf32>
    %231 = arith.mulf %230, %229 : vector<24x128xf32>
    %cst_88 = arith.constant -1.45315206 : f32
    %232 = vector.broadcast %cst_88 : f32 to vector<24x128xf32>
    %233 = arith.addf %231, %232 : vector<24x128xf32>
    %234 = arith.mulf %233, %229 : vector<24x128xf32>
    %cst_89 = arith.constant 1.42141378 : f32
    %235 = vector.broadcast %cst_89 : f32 to vector<24x128xf32>
    %236 = arith.addf %234, %235 : vector<24x128xf32>
    %237 = arith.mulf %236, %229 : vector<24x128xf32>
    %cst_90 = arith.constant -0.284496725 : f32
    %238 = vector.broadcast %cst_90 : f32 to vector<24x128xf32>
    %239 = arith.addf %237, %238 : vector<24x128xf32>
    %240 = arith.mulf %239, %229 : vector<24x128xf32>
    %cst_91 = arith.constant 0.254829586 : f32
    %241 = vector.broadcast %cst_91 : f32 to vector<24x128xf32>
    %242 = arith.addf %240, %241 : vector<24x128xf32>
    %243 = arith.mulf %242, %229 : vector<24x128xf32>
    %cst_92 = arith.constant 0.000000e+00 : f32
    %244 = vector.broadcast %cst_92 : f32 to vector<24x128xf32>
    %245 = arith.subf %244, %223 : vector<24x128xf32>
    %246 = arith.mulf %245, %223 : vector<24x128xf32>
    %247 = math.exp %246 : vector<24x128xf32>
    %248 = arith.mulf %243, %247 : vector<24x128xf32>
    %cst_93 = arith.constant 1.000000e+00 : f32
    %249 = vector.broadcast %cst_93 : f32 to vector<24x128xf32>
    %250 = arith.subf %249, %248 : vector<24x128xf32>
    %251 = arith.mulf %222, %250 : vector<24x128xf32>
    %cst_94 = arith.constant 1.000000e+00 : f32
    %252 = vector.broadcast %cst_94 : f32 to vector<24x128xf32>
    %253 = arith.addf %252, %251 : vector<24x128xf32>
    %254 = arith.mulf %215, %253 : vector<24x128xf32>
    %c0_95 = arith.constant 0 : index
    %c0_96 = arith.constant 0 : index
    %c0_97 = arith.constant 0 : index
    %255 = vector.load %arg17[%c0_95, %c0_96, %c0_97] : memref<2x128x32xf32, #tpu.memory_space<vmem>>, vector<1x128x32xf32>
    %256 = vector.shape_cast %255 : vector<1x128x32xf32> to vector<128x32xf32>
    %257 = arith.truncf %254 : vector<24x128xf32> to vector<24x128xbf16>
    %258 = arith.truncf %256 : vector<128x32xf32> to vector<128x32xbf16>
    %cst_98 = arith.constant dense<0.000000e+00> : vector<24x32xf32>
    %259 = tpu.matmul %257, %258, %cst_98 {dimension_numbers = #tpu.dot_dimension_numbers<[1], [0], [0], [1], [0, 0, 1, 1], [], []>} : vector<24x128xbf16>, vector<128x32xbf16>, vector<24x32xf32> -> vector<24x32xf32>
    %260 = arith.addf %180, %259 : vector<24x32xf32>
    %c0_99 = arith.constant 0 : index
    %c0_100 = arith.constant 0 : index
    %c0_101 = arith.constant 0 : index
    %261 = vector.load %arg18[%c0_99, %c0_100, %c0_101] : memref<2x1x32xf32, #tpu.memory_space<vmem>>, vector<1x1x32xf32>
    %262 = vector.shape_cast %261 : vector<1x1x32xf32> to vector<1x32xf32>
    %263 = vector.broadcast %262 : vector<1x32xf32> to vector<24x32xf32>
    %264 = arith.addf %260, %263 : vector<24x32xf32>
    %c1 = arith.constant 1 : index
    %c0_102 = arith.constant 0 : index
    %c0_103 = arith.constant 0 : index
    %265 = vector.load %arg3[%c1, %c0_102, %c0_103] : memref<2x1x32xf32, #tpu.memory_space<vmem>>, vector<1x1x32xf32>
    %266 = vector.shape_cast %265 : vector<1x1x32xf32> to vector<1x32xf32>
    %c1_104 = arith.constant 1 : index
    %c0_105 = arith.constant 0 : index
    %c0_106 = arith.constant 0 : index
    %267 = vector.load %arg4[%c1_104, %c0_105, %c0_106] : memref<2x1x32xf32, #tpu.memory_space<vmem>>, vector<1x1x32xf32>
    %268 = vector.shape_cast %267 : vector<1x1x32xf32> to vector<1x32xf32>
    %cst_107 = arith.constant dense<0.000000e+00> : vector<24xf32>
    %269 = vector.multi_reduction <add>, %264, %cst_107 [1] : vector<24x32xf32> to vector<24xf32>
    %270 = vector.shape_cast %269 : vector<24xf32> to vector<24x1xf32>
    %cst_108 = arith.constant 3.200000e+01 : f32
    %271 = vector.broadcast %cst_108 : f32 to vector<24x1xf32>
    %272 = arith.divf %270, %271 : vector<24x1xf32>
    %273 = vector.broadcast %272 : vector<24x1xf32> to vector<24x32xf32>
    %274 = arith.subf %264, %273 : vector<24x32xf32>
    %275 = arith.mulf %274, %274 : vector<24x32xf32>
    %cst_109 = arith.constant dense<0.000000e+00> : vector<24xf32>
    %276 = vector.multi_reduction <add>, %275, %cst_109 [1] : vector<24x32xf32> to vector<24xf32>
    %277 = vector.shape_cast %276 : vector<24xf32> to vector<24x1xf32>
    %cst_110 = arith.constant 3.200000e+01 : f32
    %278 = vector.broadcast %cst_110 : f32 to vector<24x1xf32>
    %279 = arith.divf %277, %278 : vector<24x1xf32>
    %cst_111 = arith.constant 9.99999974E-6 : f32
    %280 = vector.broadcast %cst_111 : f32 to vector<24x1xf32>
    %281 = arith.addf %279, %280 : vector<24x1xf32>
    %282 = math.rsqrt %281 : vector<24x1xf32>
    %283 = vector.broadcast %282 : vector<24x1xf32> to vector<24x32xf32>
    %284 = arith.mulf %274, %283 : vector<24x32xf32>
    %285 = vector.broadcast %266 : vector<1x32xf32> to vector<24x32xf32>
    %286 = arith.mulf %284, %285 : vector<24x32xf32>
    %287 = vector.broadcast %268 : vector<1x32xf32> to vector<24x32xf32>
    %288 = arith.addf %286, %287 : vector<24x32xf32>
    %c1_112 = arith.constant 1 : index
    %c0_113 = arith.constant 0 : index
    %c0_114 = arith.constant 0 : index
    %289 = vector.load %arg5[%c1_112, %c0_113, %c0_114] : memref<2x32x32xf32, #tpu.memory_space<vmem>>, vector<1x32x32xf32>
    %290 = vector.shape_cast %289 : vector<1x32x32xf32> to vector<32x32xf32>
    %291 = arith.truncf %288 : vector<24x32xf32> to vector<24x32xbf16>
    %292 = arith.truncf %290 : vector<32x32xf32> to vector<32x32xbf16>
    %cst_115 = arith.constant dense<0.000000e+00> : vector<24x32xf32>
    %293 = tpu.matmul %291, %292, %cst_115 {dimension_numbers = #tpu.dot_dimension_numbers<[1], [0], [0], [1], [0, 0, 1, 1], [], []>} : vector<24x32xbf16>, vector<32x32xbf16>, vector<24x32xf32> -> vector<24x32xf32>
    %c1_116 = arith.constant 1 : index
    %c0_117 = arith.constant 0 : index
    %c0_118 = arith.constant 0 : index
    %294 = vector.load %arg6[%c1_116, %c0_117, %c0_118] : memref<2x1x32xf32, #tpu.memory_space<vmem>>, vector<1x1x32xf32>
    %295 = vector.shape_cast %294 : vector<1x1x32xf32> to vector<1x32xf32>
    %296 = vector.broadcast %295 : vector<1x32xf32> to vector<24x32xf32>
    %297 = arith.addf %293, %296 : vector<24x32xf32>
    %cst_119 = arith.constant 0.353553385 : f32
    %298 = vector.broadcast %cst_119 : f32 to vector<24x32xf32>
    %299 = arith.mulf %297, %298 : vector<24x32xf32>
    %c1_120 = arith.constant 1 : index
    %c0_121 = arith.constant 0 : index
    %c0_122 = arith.constant 0 : index
    %300 = vector.load %arg7[%c1_120, %c0_121, %c0_122] : memref<2x32x32xf32, #tpu.memory_space<vmem>>, vector<1x32x32xf32>
    %301 = vector.shape_cast %300 : vector<1x32x32xf32> to vector<32x32xf32>
    %302 = arith.truncf %288 : vector<24x32xf32> to vector<24x32xbf16>
    %303 = arith.truncf %301 : vector<32x32xf32> to vector<32x32xbf16>
    %cst_123 = arith.constant dense<0.000000e+00> : vector<24x32xf32>
    %304 = tpu.matmul %302, %303, %cst_123 {dimension_numbers = #tpu.dot_dimension_numbers<[1], [0], [0], [1], [0, 0, 1, 1], [], []>} : vector<24x32xbf16>, vector<32x32xbf16>, vector<24x32xf32> -> vector<24x32xf32>
    %c1_124 = arith.constant 1 : index
    %c0_125 = arith.constant 0 : index
    %c0_126 = arith.constant 0 : index
    %305 = vector.load %arg8[%c1_124, %c0_125, %c0_126] : memref<2x1x32xf32, #tpu.memory_space<vmem>>, vector<1x1x32xf32>
    %306 = vector.shape_cast %305 : vector<1x1x32xf32> to vector<1x32xf32>
    %307 = vector.broadcast %306 : vector<1x32xf32> to vector<24x32xf32>
    %308 = arith.addf %304, %307 : vector<24x32xf32>
    %c1_127 = arith.constant 1 : index
    %c0_128 = arith.constant 0 : index
    %c0_129 = arith.constant 0 : index
    %309 = vector.load %arg9[%c1_127, %c0_128, %c0_129] : memref<2x32x32xf32, #tpu.memory_space<vmem>>, vector<1x32x32xf32>
    %310 = vector.shape_cast %309 : vector<1x32x32xf32> to vector<32x32xf32>
    %311 = arith.truncf %288 : vector<24x32xf32> to vector<24x32xbf16>
    %312 = arith.truncf %310 : vector<32x32xf32> to vector<32x32xbf16>
    %cst_130 = arith.constant dense<0.000000e+00> : vector<24x32xf32>
    %313 = tpu.matmul %311, %312, %cst_130 {dimension_numbers = #tpu.dot_dimension_numbers<[1], [0], [0], [1], [0, 0, 1, 1], [], []>} : vector<24x32xbf16>, vector<32x32xbf16>, vector<24x32xf32> -> vector<24x32xf32>
    %c1_131 = arith.constant 1 : index
    %c0_132 = arith.constant 0 : index
    %c0_133 = arith.constant 0 : index
    %314 = vector.load %arg10[%c1_131, %c0_132, %c0_133] : memref<2x1x32xf32, #tpu.memory_space<vmem>>, vector<1x1x32xf32>
    %315 = vector.shape_cast %314 : vector<1x1x32xf32> to vector<1x32xf32>
    %316 = vector.broadcast %315 : vector<1x32xf32> to vector<24x32xf32>
    %317 = arith.addf %313, %316 : vector<24x32xf32>
    %318 = tpu.iota {dimensions = array<i32: 1>} : vector<1x32xi32>
    %c0_i32_134 = arith.constant 0 : i32
    %319 = vector.broadcast %c0_i32_134 : i32 to vector<1x32xi32>
    %320 = arith.cmpi sge, %318, %319 : vector<1x32xi32>
    %c8_i32_135 = arith.constant 8 : i32
    %321 = vector.broadcast %c8_i32_135 : i32 to vector<1x32xi32>
    %322 = arith.cmpi slt, %318, %321 : vector<1x32xi32>
    %323 = arith.andi %320, %322 : vector<1x32xi1>
    %324 = arith.extui %323 : vector<1x32xi1> to vector<1x32xi32>
    %325 = arith.sitofp %324 : vector<1x32xi32> to vector<1x32xf32>
    %326 = vector.broadcast %325 : vector<1x32xf32> to vector<24x32xf32>
    %327 = arith.mulf %299, %326 : vector<24x32xf32>
    %328 = arith.truncf %327 : vector<24x32xf32> to vector<24x32xbf16>
    %329 = arith.truncf %308 : vector<24x32xf32> to vector<24x32xbf16>
    %cst_136 = arith.constant dense<0.000000e+00> : vector<24x24xf32>
    %330 = tpu.matmul %328, %329, %cst_136 {dimension_numbers = #tpu.dot_dimension_numbers<[1], [1], [0], [0], [0, 0, 1, 0], [], []>} : vector<24x32xbf16>, vector<24x32xbf16>, vector<24x24xf32> -> vector<24x24xf32>
    %331 = arith.addf %330, %1 : vector<24x24xf32>
    %cst_137 = arith.constant dense<0xFF800000> : vector<24xf32>
    %332 = vector.multi_reduction <maximumf>, %331, %cst_137 [1] : vector<24x24xf32> to vector<24xf32>
    %333 = vector.shape_cast %332 : vector<24xf32> to vector<24x1xf32>
    %334 = vector.broadcast %333 : vector<24x1xf32> to vector<24x24xf32>
    %335 = arith.subf %331, %334 : vector<24x24xf32>
    %336 = math.exp %335 : vector<24x24xf32>
    %cst_138 = arith.constant dense<0.000000e+00> : vector<24xf32>
    %337 = vector.multi_reduction <add>, %336, %cst_138 [1] : vector<24x24xf32> to vector<24xf32>
    %338 = vector.shape_cast %337 : vector<24xf32> to vector<24x1xf32>
    %339 = tpu.reciprocal %338 {approx = true} : vector<24x1xf32> -> vector<24x1xf32>
    %340 = vector.broadcast %339 : vector<24x1xf32> to vector<24x24xf32>
    %341 = arith.mulf %336, %340 : vector<24x24xf32>
    %342 = vector.broadcast %325 : vector<1x32xf32> to vector<24x32xf32>
    %343 = arith.mulf %317, %342 : vector<24x32xf32>
    %344 = arith.truncf %341 : vector<24x24xf32> to vector<24x24xbf16>
    %345 = arith.truncf %343 : vector<24x32xf32> to vector<24x32xbf16>
    %cst_139 = arith.constant dense<0.000000e+00> : vector<24x32xf32>
    %346 = tpu.matmul %344, %345, %cst_139 {dimension_numbers = #tpu.dot_dimension_numbers<[1], [0], [0], [1], [0, 0, 1, 1], [], []>} : vector<24x24xbf16>, vector<24x32xbf16>, vector<24x32xf32> -> vector<24x32xf32>
    %c8_i32_140 = arith.constant 8 : i32
    %347 = vector.broadcast %c8_i32_140 : i32 to vector<1x32xi32>
    %348 = arith.cmpi sge, %318, %347 : vector<1x32xi32>
    %c16_i32_141 = arith.constant 16 : i32
    %349 = vector.broadcast %c16_i32_141 : i32 to vector<1x32xi32>
    %350 = arith.cmpi slt, %318, %349 : vector<1x32xi32>
    %351 = arith.andi %348, %350 : vector<1x32xi1>
    %352 = arith.extui %351 : vector<1x32xi1> to vector<1x32xi32>
    %353 = arith.sitofp %352 : vector<1x32xi32> to vector<1x32xf32>
    %354 = vector.broadcast %353 : vector<1x32xf32> to vector<24x32xf32>
    %355 = arith.mulf %299, %354 : vector<24x32xf32>
    %356 = arith.truncf %355 : vector<24x32xf32> to vector<24x32xbf16>
    %357 = arith.truncf %308 : vector<24x32xf32> to vector<24x32xbf16>
    %cst_142 = arith.constant dense<0.000000e+00> : vector<24x24xf32>
    %358 = tpu.matmul %356, %357, %cst_142 {dimension_numbers = #tpu.dot_dimension_numbers<[1], [1], [0], [0], [0, 0, 1, 0], [], []>} : vector<24x32xbf16>, vector<24x32xbf16>, vector<24x24xf32> -> vector<24x24xf32>
    %359 = arith.addf %358, %1 : vector<24x24xf32>
    %cst_143 = arith.constant dense<0xFF800000> : vector<24xf32>
    %360 = vector.multi_reduction <maximumf>, %359, %cst_143 [1] : vector<24x24xf32> to vector<24xf32>
    %361 = vector.shape_cast %360 : vector<24xf32> to vector<24x1xf32>
    %362 = vector.broadcast %361 : vector<24x1xf32> to vector<24x24xf32>
    %363 = arith.subf %359, %362 : vector<24x24xf32>
    %364 = math.exp %363 : vector<24x24xf32>
    %cst_144 = arith.constant dense<0.000000e+00> : vector<24xf32>
    %365 = vector.multi_reduction <add>, %364, %cst_144 [1] : vector<24x24xf32> to vector<24xf32>
    %366 = vector.shape_cast %365 : vector<24xf32> to vector<24x1xf32>
    %367 = tpu.reciprocal %366 {approx = true} : vector<24x1xf32> -> vector<24x1xf32>
    %368 = vector.broadcast %367 : vector<24x1xf32> to vector<24x24xf32>
    %369 = arith.mulf %364, %368 : vector<24x24xf32>
    %370 = vector.broadcast %353 : vector<1x32xf32> to vector<24x32xf32>
    %371 = arith.mulf %317, %370 : vector<24x32xf32>
    %372 = arith.truncf %369 : vector<24x24xf32> to vector<24x24xbf16>
    %373 = arith.truncf %371 : vector<24x32xf32> to vector<24x32xbf16>
    %cst_145 = arith.constant dense<0.000000e+00> : vector<24x32xf32>
    %374 = tpu.matmul %372, %373, %cst_145 {dimension_numbers = #tpu.dot_dimension_numbers<[1], [0], [0], [1], [0, 0, 1, 1], [], []>} : vector<24x24xbf16>, vector<24x32xbf16>, vector<24x32xf32> -> vector<24x32xf32>
    %375 = arith.addf %346, %374 : vector<24x32xf32>
    %c16_i32_146 = arith.constant 16 : i32
    %376 = vector.broadcast %c16_i32_146 : i32 to vector<1x32xi32>
    %377 = arith.cmpi sge, %318, %376 : vector<1x32xi32>
    %c24_i32_147 = arith.constant 24 : i32
    %378 = vector.broadcast %c24_i32_147 : i32 to vector<1x32xi32>
    %379 = arith.cmpi slt, %318, %378 : vector<1x32xi32>
    %380 = arith.andi %377, %379 : vector<1x32xi1>
    %381 = arith.extui %380 : vector<1x32xi1> to vector<1x32xi32>
    %382 = arith.sitofp %381 : vector<1x32xi32> to vector<1x32xf32>
    %383 = vector.broadcast %382 : vector<1x32xf32> to vector<24x32xf32>
    %384 = arith.mulf %299, %383 : vector<24x32xf32>
    %385 = arith.truncf %384 : vector<24x32xf32> to vector<24x32xbf16>
    %386 = arith.truncf %308 : vector<24x32xf32> to vector<24x32xbf16>
    %cst_148 = arith.constant dense<0.000000e+00> : vector<24x24xf32>
    %387 = tpu.matmul %385, %386, %cst_148 {dimension_numbers = #tpu.dot_dimension_numbers<[1], [1], [0], [0], [0, 0, 1, 0], [], []>} : vector<24x32xbf16>, vector<24x32xbf16>, vector<24x24xf32> -> vector<24x24xf32>
    %388 = arith.addf %387, %1 : vector<24x24xf32>
    %cst_149 = arith.constant dense<0xFF800000> : vector<24xf32>
    %389 = vector.multi_reduction <maximumf>, %388, %cst_149 [1] : vector<24x24xf32> to vector<24xf32>
    %390 = vector.shape_cast %389 : vector<24xf32> to vector<24x1xf32>
    %391 = vector.broadcast %390 : vector<24x1xf32> to vector<24x24xf32>
    %392 = arith.subf %388, %391 : vector<24x24xf32>
    %393 = math.exp %392 : vector<24x24xf32>
    %cst_150 = arith.constant dense<0.000000e+00> : vector<24xf32>
    %394 = vector.multi_reduction <add>, %393, %cst_150 [1] : vector<24x24xf32> to vector<24xf32>
    %395 = vector.shape_cast %394 : vector<24xf32> to vector<24x1xf32>
    %396 = tpu.reciprocal %395 {approx = true} : vector<24x1xf32> -> vector<24x1xf32>
    %397 = vector.broadcast %396 : vector<24x1xf32> to vector<24x24xf32>
    %398 = arith.mulf %393, %397 : vector<24x24xf32>
    %399 = vector.broadcast %382 : vector<1x32xf32> to vector<24x32xf32>
    %400 = arith.mulf %317, %399 : vector<24x32xf32>
    %401 = arith.truncf %398 : vector<24x24xf32> to vector<24x24xbf16>
    %402 = arith.truncf %400 : vector<24x32xf32> to vector<24x32xbf16>
    %cst_151 = arith.constant dense<0.000000e+00> : vector<24x32xf32>
    %403 = tpu.matmul %401, %402, %cst_151 {dimension_numbers = #tpu.dot_dimension_numbers<[1], [0], [0], [1], [0, 0, 1, 1], [], []>} : vector<24x24xbf16>, vector<24x32xbf16>, vector<24x32xf32> -> vector<24x32xf32>
    %404 = arith.addf %375, %403 : vector<24x32xf32>
    %c24_i32_152 = arith.constant 24 : i32
    %405 = vector.broadcast %c24_i32_152 : i32 to vector<1x32xi32>
    %406 = arith.cmpi sge, %318, %405 : vector<1x32xi32>
    %c32_i32_153 = arith.constant 32 : i32
    %407 = vector.broadcast %c32_i32_153 : i32 to vector<1x32xi32>
    %408 = arith.cmpi slt, %318, %407 : vector<1x32xi32>
    %409 = arith.andi %406, %408 : vector<1x32xi1>
    %410 = arith.extui %409 : vector<1x32xi1> to vector<1x32xi32>
    %411 = arith.sitofp %410 : vector<1x32xi32> to vector<1x32xf32>
    %412 = vector.broadcast %411 : vector<1x32xf32> to vector<24x32xf32>
    %413 = arith.mulf %299, %412 : vector<24x32xf32>
    %414 = arith.truncf %413 : vector<24x32xf32> to vector<24x32xbf16>
    %415 = arith.truncf %308 : vector<24x32xf32> to vector<24x32xbf16>
    %cst_154 = arith.constant dense<0.000000e+00> : vector<24x24xf32>
    %416 = tpu.matmul %414, %415, %cst_154 {dimension_numbers = #tpu.dot_dimension_numbers<[1], [1], [0], [0], [0, 0, 1, 0], [], []>} : vector<24x32xbf16>, vector<24x32xbf16>, vector<24x24xf32> -> vector<24x24xf32>
    %417 = arith.addf %416, %1 : vector<24x24xf32>
    %cst_155 = arith.constant dense<0xFF800000> : vector<24xf32>
    %418 = vector.multi_reduction <maximumf>, %417, %cst_155 [1] : vector<24x24xf32> to vector<24xf32>
    %419 = vector.shape_cast %418 : vector<24xf32> to vector<24x1xf32>
    %420 = vector.broadcast %419 : vector<24x1xf32> to vector<24x24xf32>
    %421 = arith.subf %417, %420 : vector<24x24xf32>
    %422 = math.exp %421 : vector<24x24xf32>
    %cst_156 = arith.constant dense<0.000000e+00> : vector<24xf32>
    %423 = vector.multi_reduction <add>, %422, %cst_156 [1] : vector<24x24xf32> to vector<24xf32>
    %424 = vector.shape_cast %423 : vector<24xf32> to vector<24x1xf32>
    %425 = tpu.reciprocal %424 {approx = true} : vector<24x1xf32> -> vector<24x1xf32>
    %426 = vector.broadcast %425 : vector<24x1xf32> to vector<24x24xf32>
    %427 = arith.mulf %422, %426 : vector<24x24xf32>
    %428 = vector.broadcast %411 : vector<1x32xf32> to vector<24x32xf32>
    %429 = arith.mulf %317, %428 : vector<24x32xf32>
    %430 = arith.truncf %427 : vector<24x24xf32> to vector<24x24xbf16>
    %431 = arith.truncf %429 : vector<24x32xf32> to vector<24x32xbf16>
    %cst_157 = arith.constant dense<0.000000e+00> : vector<24x32xf32>
    %432 = tpu.matmul %430, %431, %cst_157 {dimension_numbers = #tpu.dot_dimension_numbers<[1], [0], [0], [1], [0, 0, 1, 1], [], []>} : vector<24x24xbf16>, vector<24x32xbf16>, vector<24x32xf32> -> vector<24x32xf32>
    %433 = arith.addf %404, %432 : vector<24x32xf32>
    %c1_158 = arith.constant 1 : index
    %c0_159 = arith.constant 0 : index
    %c0_160 = arith.constant 0 : index
    %434 = vector.load %arg11[%c1_158, %c0_159, %c0_160] : memref<2x32x32xf32, #tpu.memory_space<vmem>>, vector<1x32x32xf32>
    %435 = vector.shape_cast %434 : vector<1x32x32xf32> to vector<32x32xf32>
    %436 = arith.truncf %433 : vector<24x32xf32> to vector<24x32xbf16>
    %437 = arith.truncf %435 : vector<32x32xf32> to vector<32x32xbf16>
    %cst_161 = arith.constant dense<0.000000e+00> : vector<24x32xf32>
    %438 = tpu.matmul %436, %437, %cst_161 {dimension_numbers = #tpu.dot_dimension_numbers<[1], [0], [0], [1], [0, 0, 1, 1], [], []>} : vector<24x32xbf16>, vector<32x32xbf16>, vector<24x32xf32> -> vector<24x32xf32>
    %439 = arith.addf %264, %438 : vector<24x32xf32>
    %c1_162 = arith.constant 1 : index
    %c0_163 = arith.constant 0 : index
    %c0_164 = arith.constant 0 : index
    %440 = vector.load %arg12[%c1_162, %c0_163, %c0_164] : memref<2x1x32xf32, #tpu.memory_space<vmem>>, vector<1x1x32xf32>
    %441 = vector.shape_cast %440 : vector<1x1x32xf32> to vector<1x32xf32>
    %442 = vector.broadcast %441 : vector<1x32xf32> to vector<24x32xf32>
    %443 = arith.addf %439, %442 : vector<24x32xf32>
    %c1_165 = arith.constant 1 : index
    %c0_166 = arith.constant 0 : index
    %c0_167 = arith.constant 0 : index
    %444 = vector.load %arg13[%c1_165, %c0_166, %c0_167] : memref<2x1x32xf32, #tpu.memory_space<vmem>>, vector<1x1x32xf32>
    %445 = vector.shape_cast %444 : vector<1x1x32xf32> to vector<1x32xf32>
    %c1_168 = arith.constant 1 : index
    %c0_169 = arith.constant 0 : index
    %c0_170 = arith.constant 0 : index
    %446 = vector.load %arg14[%c1_168, %c0_169, %c0_170] : memref<2x1x32xf32, #tpu.memory_space<vmem>>, vector<1x1x32xf32>
    %447 = vector.shape_cast %446 : vector<1x1x32xf32> to vector<1x32xf32>
    %cst_171 = arith.constant dense<0.000000e+00> : vector<24xf32>
    %448 = vector.multi_reduction <add>, %443, %cst_171 [1] : vector<24x32xf32> to vector<24xf32>
    %449 = vector.shape_cast %448 : vector<24xf32> to vector<24x1xf32>
    %cst_172 = arith.constant 3.200000e+01 : f32
    %450 = vector.broadcast %cst_172 : f32 to vector<24x1xf32>
    %451 = arith.divf %449, %450 : vector<24x1xf32>
    %452 = vector.broadcast %451 : vector<24x1xf32> to vector<24x32xf32>
    %453 = arith.subf %443, %452 : vector<24x32xf32>
    %454 = arith.mulf %453, %453 : vector<24x32xf32>
    %cst_173 = arith.constant dense<0.000000e+00> : vector<24xf32>
    %455 = vector.multi_reduction <add>, %454, %cst_173 [1] : vector<24x32xf32> to vector<24xf32>
    %456 = vector.shape_cast %455 : vector<24xf32> to vector<24x1xf32>
    %cst_174 = arith.constant 3.200000e+01 : f32
    %457 = vector.broadcast %cst_174 : f32 to vector<24x1xf32>
    %458 = arith.divf %456, %457 : vector<24x1xf32>
    %cst_175 = arith.constant 9.99999974E-6 : f32
    %459 = vector.broadcast %cst_175 : f32 to vector<24x1xf32>
    %460 = arith.addf %458, %459 : vector<24x1xf32>
    %461 = math.rsqrt %460 : vector<24x1xf32>
    %462 = vector.broadcast %461 : vector<24x1xf32> to vector<24x32xf32>
    %463 = arith.mulf %453, %462 : vector<24x32xf32>
    %464 = vector.broadcast %445 : vector<1x32xf32> to vector<24x32xf32>
    %465 = arith.mulf %463, %464 : vector<24x32xf32>
    %466 = vector.broadcast %447 : vector<1x32xf32> to vector<24x32xf32>
    %467 = arith.addf %465, %466 : vector<24x32xf32>
    %c1_176 = arith.constant 1 : index
    %c0_177 = arith.constant 0 : index
    %c0_178 = arith.constant 0 : index
    %468 = vector.load %arg15[%c1_176, %c0_177, %c0_178] : memref<2x32x128xf32, #tpu.memory_space<vmem>>, vector<1x32x128xf32>
    %469 = vector.shape_cast %468 : vector<1x32x128xf32> to vector<32x128xf32>
    %470 = arith.truncf %467 : vector<24x32xf32> to vector<24x32xbf16>
    %471 = arith.truncf %469 : vector<32x128xf32> to vector<32x128xbf16>
    %cst_179 = arith.constant dense<0.000000e+00> : vector<24x128xf32>
    %472 = tpu.matmul %470, %471, %cst_179 {dimension_numbers = #tpu.dot_dimension_numbers<[1], [0], [0], [1], [0, 0, 1, 1], [], []>} : vector<24x32xbf16>, vector<32x128xbf16>, vector<24x128xf32> -> vector<24x128xf32>
    %c1_180 = arith.constant 1 : index
    %c0_181 = arith.constant 0 : index
    %c0_182 = arith.constant 0 : index
    %473 = vector.load %arg16[%c1_180, %c0_181, %c0_182] : memref<2x1x128xf32, #tpu.memory_space<vmem>>, vector<1x1x128xf32>
    %474 = vector.shape_cast %473 : vector<1x1x128xf32> to vector<1x128xf32>
    %475 = vector.broadcast %474 : vector<1x128xf32> to vector<24x128xf32>
    %476 = arith.addf %472, %475 : vector<24x128xf32>
    %cst_183 = arith.constant 5.000000e-01 : f32
    %477 = vector.broadcast %cst_183 : f32 to vector<24x128xf32>
    %478 = arith.mulf %477, %476 : vector<24x128xf32>
    %cst_184 = arith.constant 0.707106769 : f32
    %479 = vector.broadcast %cst_184 : f32 to vector<24x128xf32>
    %480 = arith.mulf %476, %479 : vector<24x128xf32>
    %cst_185 = arith.constant 0.000000e+00 : f32
    %481 = vector.broadcast %cst_185 : f32 to vector<24x128xf32>
    %482 = arith.cmpf oge, %480, %481 : vector<24x128xf32>
    %cst_186 = arith.constant 1.000000e+00 : f32
    %cst_187 = arith.constant -1.000000e+00 : f32
    %483 = vector.broadcast %cst_186 : f32 to vector<24x128xf32>
    %484 = vector.broadcast %cst_187 : f32 to vector<24x128xf32>
    %485 = arith.select %482, %483, %484 : vector<24x128xi1>, vector<24x128xf32>
    %486 = math.absf %480 : vector<24x128xf32>
    %cst_188 = arith.constant 0.327591091 : f32
    %487 = vector.broadcast %cst_188 : f32 to vector<24x128xf32>
    %488 = arith.mulf %487, %486 : vector<24x128xf32>
    %cst_189 = arith.constant 1.000000e+00 : f32
    %489 = vector.broadcast %cst_189 : f32 to vector<24x128xf32>
    %490 = arith.addf %489, %488 : vector<24x128xf32>
    %cst_190 = arith.constant 1.000000e+00 : f32
    %491 = vector.broadcast %cst_190 : f32 to vector<24x128xf32>
    %492 = arith.divf %491, %490 : vector<24x128xf32>
    %cst_191 = arith.constant 1.06140542 : f32
    %493 = vector.broadcast %cst_191 : f32 to vector<24x128xf32>
    %494 = arith.mulf %493, %492 : vector<24x128xf32>
    %cst_192 = arith.constant -1.45315206 : f32
    %495 = vector.broadcast %cst_192 : f32 to vector<24x128xf32>
    %496 = arith.addf %494, %495 : vector<24x128xf32>
    %497 = arith.mulf %496, %492 : vector<24x128xf32>
    %cst_193 = arith.constant 1.42141378 : f32
    %498 = vector.broadcast %cst_193 : f32 to vector<24x128xf32>
    %499 = arith.addf %497, %498 : vector<24x128xf32>
    %500 = arith.mulf %499, %492 : vector<24x128xf32>
    %cst_194 = arith.constant -0.284496725 : f32
    %501 = vector.broadcast %cst_194 : f32 to vector<24x128xf32>
    %502 = arith.addf %500, %501 : vector<24x128xf32>
    %503 = arith.mulf %502, %492 : vector<24x128xf32>
    %cst_195 = arith.constant 0.254829586 : f32
    %504 = vector.broadcast %cst_195 : f32 to vector<24x128xf32>
    %505 = arith.addf %503, %504 : vector<24x128xf32>
    %506 = arith.mulf %505, %492 : vector<24x128xf32>
    %cst_196 = arith.constant 0.000000e+00 : f32
    %507 = vector.broadcast %cst_196 : f32 to vector<24x128xf32>
    %508 = arith.subf %507, %486 : vector<24x128xf32>
    %509 = arith.mulf %508, %486 : vector<24x128xf32>
    %510 = math.exp %509 : vector<24x128xf32>
    %511 = arith.mulf %506, %510 : vector<24x128xf32>
    %cst_197 = arith.constant 1.000000e+00 : f32
    %512 = vector.broadcast %cst_197 : f32 to vector<24x128xf32>
    %513 = arith.subf %512, %511 : vector<24x128xf32>
    %514 = arith.mulf %485, %513 : vector<24x128xf32>
    %cst_198 = arith.constant 1.000000e+00 : f32
    %515 = vector.broadcast %cst_198 : f32 to vector<24x128xf32>
    %516 = arith.addf %515, %514 : vector<24x128xf32>
    %517 = arith.mulf %478, %516 : vector<24x128xf32>
    %c1_199 = arith.constant 1 : index
    %c0_200 = arith.constant 0 : index
    %c0_201 = arith.constant 0 : index
    %518 = vector.load %arg17[%c1_199, %c0_200, %c0_201] : memref<2x128x32xf32, #tpu.memory_space<vmem>>, vector<1x128x32xf32>
    %519 = vector.shape_cast %518 : vector<1x128x32xf32> to vector<128x32xf32>
    %520 = arith.truncf %517 : vector<24x128xf32> to vector<24x128xbf16>
    %521 = arith.truncf %519 : vector<128x32xf32> to vector<128x32xbf16>
    %cst_202 = arith.constant dense<0.000000e+00> : vector<24x32xf32>
    %522 = tpu.matmul %520, %521, %cst_202 {dimension_numbers = #tpu.dot_dimension_numbers<[1], [0], [0], [1], [0, 0, 1, 1], [], []>} : vector<24x128xbf16>, vector<128x32xbf16>, vector<24x32xf32> -> vector<24x32xf32>
    %523 = arith.addf %443, %522 : vector<24x32xf32>
    %c1_203 = arith.constant 1 : index
    %c0_204 = arith.constant 0 : index
    %c0_205 = arith.constant 0 : index
    %524 = vector.load %arg18[%c1_203, %c0_204, %c0_205] : memref<2x1x32xf32, #tpu.memory_space<vmem>>, vector<1x1x32xf32>
    %525 = vector.shape_cast %524 : vector<1x1x32xf32> to vector<1x32xf32>
    %526 = vector.broadcast %525 : vector<1x32xf32> to vector<24x32xf32>
    %527 = arith.addf %523, %526 : vector<24x32xf32>
    %c0_206 = arith.constant 0 : index
    %c0_207 = arith.constant 0 : index
    %528 = vector.load %arg19[%c0_206, %c0_207] : memref<1x32xf32, #tpu.memory_space<vmem>>, vector<1x32xf32>
    %c0_208 = arith.constant 0 : index
    %c0_209 = arith.constant 0 : index
    %529 = vector.load %arg20[%c0_208, %c0_209] : memref<1x32xf32, #tpu.memory_space<vmem>>, vector<1x32xf32>
    %cst_210 = arith.constant dense<0.000000e+00> : vector<24xf32>
    %530 = vector.multi_reduction <add>, %527, %cst_210 [1] : vector<24x32xf32> to vector<24xf32>
    %531 = vector.shape_cast %530 : vector<24xf32> to vector<24x1xf32>
    %cst_211 = arith.constant 3.200000e+01 : f32
    %532 = vector.broadcast %cst_211 : f32 to vector<24x1xf32>
    %533 = arith.divf %531, %532 : vector<24x1xf32>
    %534 = vector.broadcast %533 : vector<24x1xf32> to vector<24x32xf32>
    %535 = arith.subf %527, %534 : vector<24x32xf32>
    %536 = arith.mulf %535, %535 : vector<24x32xf32>
    %cst_212 = arith.constant dense<0.000000e+00> : vector<24xf32>
    %537 = vector.multi_reduction <add>, %536, %cst_212 [1] : vector<24x32xf32> to vector<24xf32>
    %538 = vector.shape_cast %537 : vector<24xf32> to vector<24x1xf32>
    %cst_213 = arith.constant 3.200000e+01 : f32
    %539 = vector.broadcast %cst_213 : f32 to vector<24x1xf32>
    %540 = arith.divf %538, %539 : vector<24x1xf32>
    %cst_214 = arith.constant 9.99999974E-6 : f32
    %541 = vector.broadcast %cst_214 : f32 to vector<24x1xf32>
    %542 = arith.addf %540, %541 : vector<24x1xf32>
    %543 = math.rsqrt %542 : vector<24x1xf32>
    %544 = vector.broadcast %543 : vector<24x1xf32> to vector<24x32xf32>
    %545 = arith.mulf %535, %544 : vector<24x32xf32>
    %546 = vector.broadcast %528 : vector<1x32xf32> to vector<24x32xf32>
    %547 = arith.mulf %545, %546 : vector<24x32xf32>
    %548 = vector.broadcast %529 : vector<1x32xf32> to vector<24x32xf32>
    %549 = arith.addf %547, %548 : vector<24x32xf32>
    %c0_215 = arith.constant 0 : index
    %c0_216 = arith.constant 0 : index
    %550 = vector.load %arg21[%c0_215, %c0_216] : memref<24x32xf32, #tpu.memory_space<vmem>>, vector<24x32xf32>
    tpu.vector_store %arg21[%c0_215, %c0_216], %549 {strides = array<i32>} : memref<24x32xf32, #tpu.memory_space<vmem>>, vector<24x32xf32>,
    return
  }
  func.func @transform_0(%arg0: i32) -> (i32, i32) {
    %c0_i32 = arith.constant 0 : i32
    %c0_i32_0 = arith.constant 0 : i32
    %c0_i32_1 = arith.constant 0 : i32
    return %c0_i32, %c0_i32_0 : i32, i32
  }
  func.func @transform_1(%arg0: i32) -> (i32, i32) {
    %c0_i32 = arith.constant 0 : i32
    %c0_i32_0 = arith.constant 0 : i32
    %c0_i32_1 = arith.constant 0 : i32
    return %c0_i32, %c0_i32_0 : i32, i32
  }
  func.func @transform_2(%arg0: i32) -> (i32, i32, i32) {
    %c0_i32 = arith.constant 0 : i32
    %c0_i32_0 = arith.constant 0 : i32
    %c0_i32_1 = arith.constant 0 : i32
    %c0_i32_2 = arith.constant 0 : i32
    return %c0_i32, %c0_i32_0, %c0_i32_1 : i32, i32, i32
  }
  func.func @transform_3(%arg0: i32) -> (i32, i32, i32) {
    %c0_i32 = arith.constant 0 : i32
    %c0_i32_0 = arith.constant 0 : i32
    %c0_i32_1 = arith.constant 0 : i32
    %c0_i32_2 = arith.constant 0 : i32
    return %c0_i32, %c0_i32_0, %c0_i32_1 : i32, i32, i32
  }
  func.func @transform_4(%arg0: i32) -> (i32, i32, i32) {
    %c0_i32 = arith.constant 0 : i32
    %c0_i32_0 = arith.constant 0 : i32
    %c0_i32_1 = arith.constant 0 : i32
    %c0_i32_2 = arith.constant 0 : i32
    return %c0_i32, %c0_i32_0, %c0_i32_1 : i32, i32, i32
  }
  func.func @transform_5(%arg0: i32) -> (i32, i32, i32) {
    %c0_i32 = arith.constant 0 : i32
    %c0_i32_0 = arith.constant 0 : i32
    %c0_i32_1 = arith.constant 0 : i32
    %c0_i32_2 = arith.constant 0 : i32
    return %c0_i32, %c0_i32_0, %c0_i32_1 : i32, i32, i32
  }
  func.func @transform_6(%arg0: i32) -> (i32, i32, i32) {
    %c0_i32 = arith.constant 0 : i32
    %c0_i32_0 = arith.constant 0 : i32
    %c0_i32_1 = arith.constant 0 : i32
    %c0_i32_2 = arith.constant 0 : i32
    return %c0_i32, %c0_i32_0, %c0_i32_1 : i32, i32, i32
  }
  func.func @transform_7(%arg0: i32) -> (i32, i32, i32) {
    %c0_i32 = arith.constant 0 : i32
    %c0_i32_0 = arith.constant 0 : i32
    %c0_i32_1 = arith.constant 0 : i32
    %c0_i32_2 = arith.constant 0 : i32
    return %c0_i32, %c0_i32_0, %c0_i32_1 : i32, i32, i32
  }
  func.func @transform_8(%arg0: i32) -> (i32, i32, i32) {
    %c0_i32 = arith.constant 0 : i32
    %c0_i32_0 = arith.constant 0 : i32
    %c0_i32_1 = arith.constant 0 : i32
    %c0_i32_2 = arith.constant 0 : i32
    return %c0_i32, %c0_i32_0, %c0_i32_1 : i32, i32, i32
  }
  func.func @transform_9(%arg0: i32) -> (i32, i32, i32) {
    %c0_i32 = arith.constant 0 : i32
    %c0_i32_0 = arith.constant 0 : i32
    %c0_i32_1 = arith.constant 0 : i32
    %c0_i32_2 = arith.constant 0 : i32
    return %c0_i32, %c0_i32_0, %c0_i32_1 : i32, i32, i32
  }
  func.func @transform_10(%arg0: i32) -> (i32, i32, i32) {
    %c0_i32 = arith.constant 0 : i32
    %c0_i32_0 = arith.constant 0 : i32
    %c0_i32_1 = arith.constant 0 : i32
    %c0_i32_2 = arith.constant 0 : i32
    return %c0_i32, %c0_i32_0, %c0_i32_1 : i32, i32, i32
  }
  func.func @transform_11(%arg0: i32) -> (i32, i32, i32) {
    %c0_i32 = arith.constant 0 : i32
    %c0_i32_0 = arith.constant 0 : i32
    %c0_i32_1 = arith.constant 0 : i32
    %c0_i32_2 = arith.constant 0 : i32
    return %c0_i32, %c0_i32_0, %c0_i32_1 : i32, i32, i32
  }
  func.func @transform_12(%arg0: i32) -> (i32, i32, i32) {
    %c0_i32 = arith.constant 0 : i32
    %c0_i32_0 = arith.constant 0 : i32
    %c0_i32_1 = arith.constant 0 : i32
    %c0_i32_2 = arith.constant 0 : i32
    return %c0_i32, %c0_i32_0, %c0_i32_1 : i32, i32, i32
  }
  func.func @transform_13(%arg0: i32) -> (i32, i32, i32) {
    %c0_i32 = arith.constant 0 : i32
    %c0_i32_0 = arith.constant 0 : i32
    %c0_i32_1 = arith.constant 0 : i32
    %c0_i32_2 = arith.constant 0 : i32
    return %c0_i32, %c0_i32_0, %c0_i32_1 : i32, i32, i32
  }
  func.func @transform_14(%arg0: i32) -> (i32, i32, i32) {
    %c0_i32 = arith.constant 0 : i32
    %c0_i32_0 = arith.constant 0 : i32
    %c0_i32_1 = arith.constant 0 : i32
    %c0_i32_2 = arith.constant 0 : i32
    return %c0_i32, %c0_i32_0, %c0_i32_1 : i32, i32, i32
  }
  func.func @transform_15(%arg0: i32) -> (i32, i32, i32) {
    %c0_i32 = arith.constant 0 : i32
    %c0_i32_0 = arith.constant 0 : i32
    %c0_i32_1 = arith.constant 0 : i32
    %c0_i32_2 = arith.constant 0 : i32
    return %c0_i32, %c0_i32_0, %c0_i32_1 : i32, i32, i32
  }
  func.func @transform_16(%arg0: i32) -> (i32, i32, i32) {
    %c0_i32 = arith.constant 0 : i32
    %c0_i32_0 = arith.constant 0 : i32
    %c0_i32_1 = arith.constant 0 : i32
    %c0_i32_2 = arith.constant 0 : i32
    return %c0_i32, %c0_i32_0, %c0_i32_1 : i32, i32, i32
  }
  func.func @transform_17(%arg0: i32) -> (i32, i32, i32) {
    %c0_i32 = arith.constant 0 : i32
    %c0_i32_0 = arith.constant 0 : i32
    %c0_i32_1 = arith.constant 0 : i32
    %c0_i32_2 = arith.constant 0 : i32
    return %c0_i32, %c0_i32_0, %c0_i32_1 : i32, i32, i32
  }
  func.func @transform_18(%arg0: i32) -> (i32, i32) {
    %c0_i32 = arith.constant 0 : i32
    %c0_i32_0 = arith.constant 0 : i32
    %c0_i32_1 = arith.constant 0 : i32
    return %c0_i32, %c0_i32_0 : i32, i32
  }
  func.func @transform_19(%arg0: i32) -> (i32, i32) {
    %c0_i32 = arith.constant 0 : i32
    %c0_i32_0 = arith.constant 0 : i32
    %c0_i32_1 = arith.constant 0 : i32
    return %c0_i32, %c0_i32_0 : i32, i32
  }
  func.func @transform_20(%arg0: i32) -> (i32, i32) {
    %c0_i32 = arith.constant 0 : i32
    %c0_i32_0 = arith.constant 0 : i32
    %c0_i32_1 = arith.constant 0 : i32
    return %c0_i32, %c0_i32_0 : i32, i32
  }
}

module attributes {stable_mosaic.version = 11 : i64} {
  func.func @_scene_kernel(%arg0: i32, %arg1: memref<6x32xf32, #tpu.memory_space<vmem>>, %arg2: memref<6x6xf32, #tpu.memory_space<vmem>>, %arg3: memref<1x32xf32, #tpu.memory_space<vmem>>, %arg4: memref<1x32xf32, #tpu.memory_space<vmem>>, %arg5: memref<32x32xf32, #tpu.memory_space<vmem>>, %arg6: memref<32x32xf32, #tpu.memory_space<vmem>>, %arg7: memref<32x32xf32, #tpu.memory_space<vmem>>, %arg8: memref<32x32xf32, #tpu.memory_space<vmem>>, %arg9: memref<1x32xf32, #tpu.memory_space<vmem>>, %arg10: memref<1x32xf32, #tpu.memory_space<vmem>>, %arg11: memref<1x32xf32, #tpu.memory_space<vmem>>, %arg12: memref<32x64xf32, #tpu.memory_space<vmem>>, %arg13: memref<1x64xf32, #tpu.memory_space<vmem>>, %arg14: memref<64x32xf32, #tpu.memory_space<vmem>>, %arg15: memref<1x32xf32, #tpu.memory_space<vmem>>, %arg16: memref<2x32xf32, #tpu.memory_space<vmem>>) attributes {dimension_semantics = [#tpu.dimension_semantics<arbitrary>], iteration_bounds = array<i64: 1>, scalar_prefetch = 0 : i64, scratch_operands = 0 : i64, tpu.core_type = #tpu.core_type<tc>, window_params = [{pipeline_mode = #tpu.pipeline_mode<synchronous>, transform_indices = @transform_0, window_bounds = array<i64: 6, 32>}, {pipeline_mode = #tpu.pipeline_mode<synchronous>, transform_indices = @transform_1, window_bounds = array<i64: 6, 6>}, {pipeline_mode = #tpu.pipeline_mode<synchronous>, transform_indices = @transform_2, window_bounds = array<i64: 1, 32>}, {pipeline_mode = #tpu.pipeline_mode<synchronous>, transform_indices = @transform_3, window_bounds = array<i64: 1, 32>}, {pipeline_mode = #tpu.pipeline_mode<synchronous>, transform_indices = @transform_4, window_bounds = array<i64: 32, 32>}, {pipeline_mode = #tpu.pipeline_mode<synchronous>, transform_indices = @transform_5, window_bounds = array<i64: 32, 32>}, {pipeline_mode = #tpu.pipeline_mode<synchronous>, transform_indices = @transform_6, window_bounds = array<i64: 32, 32>}, {pipeline_mode = #tpu.pipeline_mode<synchronous>, transform_indices = @transform_7, window_bounds = array<i64: 32, 32>}, {pipeline_mode = #tpu.pipeline_mode<synchronous>, transform_indices = @transform_8, window_bounds = array<i64: 1, 32>}, {pipeline_mode = #tpu.pipeline_mode<synchronous>, transform_indices = @transform_9, window_bounds = array<i64: 1, 32>}, {pipeline_mode = #tpu.pipeline_mode<synchronous>, transform_indices = @transform_10, window_bounds = array<i64: 1, 32>}, {pipeline_mode = #tpu.pipeline_mode<synchronous>, transform_indices = @transform_11, window_bounds = array<i64: 32, 64>}, {pipeline_mode = #tpu.pipeline_mode<synchronous>, transform_indices = @transform_12, window_bounds = array<i64: 1, 64>}, {pipeline_mode = #tpu.pipeline_mode<synchronous>, transform_indices = @transform_13, window_bounds = array<i64: 64, 32>}, {pipeline_mode = #tpu.pipeline_mode<synchronous>, transform_indices = @transform_14, window_bounds = array<i64: 1, 32>}, {pipeline_mode = #tpu.pipeline_mode<synchronous>, transform_indices = @transform_15, window_bounds = array<i64: 2, 32>}]} {
    %c0 = arith.constant 0 : index
    %c0_0 = arith.constant 0 : index
    %0 = vector.load %arg1[%c0, %c0_0] : memref<6x32xf32, #tpu.memory_space<vmem>>, vector<6x32xf32>
    %c0_1 = arith.constant 0 : index
    %c0_2 = arith.constant 0 : index
    %1 = vector.load %arg2[%c0_1, %c0_2] : memref<6x6xf32, #tpu.memory_space<vmem>>, vector<6x6xf32>
    %c0_3 = arith.constant 0 : index
    %c0_4 = arith.constant 0 : index
    %2 = vector.load %arg3[%c0_3, %c0_4] : memref<1x32xf32, #tpu.memory_space<vmem>>, vector<1x32xf32>
    %c0_5 = arith.constant 0 : index
    %c0_6 = arith.constant 0 : index
    %3 = vector.load %arg4[%c0_5, %c0_6] : memref<1x32xf32, #tpu.memory_space<vmem>>, vector<1x32xf32>
    %cst = arith.constant dense<0.000000e+00> : vector<6xf32>
    %4 = vector.multi_reduction <add>, %0, %cst [1] : vector<6x32xf32> to vector<6xf32>
    %5 = vector.shape_cast %4 : vector<6xf32> to vector<6x1xf32>
    %cst_7 = arith.constant 3.200000e+01 : f32
    %6 = vector.broadcast %cst_7 : f32 to vector<6x1xf32>
    %7 = arith.divf %5, %6 : vector<6x1xf32>
    %8 = vector.broadcast %7 : vector<6x1xf32> to vector<6x32xf32>
    %9 = arith.subf %0, %8 : vector<6x32xf32>
    %10 = arith.mulf %9, %9 : vector<6x32xf32>
    %cst_8 = arith.constant dense<0.000000e+00> : vector<6xf32>
    %11 = vector.multi_reduction <add>, %10, %cst_8 [1] : vector<6x32xf32> to vector<6xf32>
    %12 = vector.shape_cast %11 : vector<6xf32> to vector<6x1xf32>
    %cst_9 = arith.constant 3.200000e+01 : f32
    %13 = vector.broadcast %cst_9 : f32 to vector<6x1xf32>
    %14 = arith.divf %12, %13 : vector<6x1xf32>
    %cst_10 = arith.constant 9.99999974E-6 : f32
    %15 = vector.broadcast %cst_10 : f32 to vector<6x1xf32>
    %16 = arith.addf %14, %15 : vector<6x1xf32>
    %17 = math.rsqrt %16 : vector<6x1xf32>
    %18 = vector.broadcast %17 : vector<6x1xf32> to vector<6x32xf32>
    %19 = arith.mulf %9, %18 : vector<6x32xf32>
    %20 = vector.broadcast %2 : vector<1x32xf32> to vector<6x32xf32>
    %21 = arith.mulf %19, %20 : vector<6x32xf32>
    %22 = vector.broadcast %3 : vector<1x32xf32> to vector<6x32xf32>
    %23 = arith.addf %21, %22 : vector<6x32xf32>
    %c0_11 = arith.constant 0 : index
    %c0_12 = arith.constant 0 : index
    %24 = vector.load %arg5[%c0_11, %c0_12] : memref<32x32xf32, #tpu.memory_space<vmem>>, vector<32x32xf32>
    %25 = arith.truncf %23 : vector<6x32xf32> to vector<6x32xbf16>
    %26 = arith.truncf %24 : vector<32x32xf32> to vector<32x32xbf16>
    %cst_13 = arith.constant dense<0.000000e+00> : vector<6x32xf32>
    %27 = tpu.matmul %25, %26, %cst_13 {dimension_numbers = #tpu.dot_dimension_numbers<[1], [0], [0], [1], [0, 0, 1, 1], [], []>} : vector<6x32xbf16>, vector<32x32xbf16>, vector<6x32xf32> -> vector<6x32xf32>
    %cst_14 = arith.constant 0.353553385 : f32
    %28 = vector.broadcast %cst_14 : f32 to vector<6x32xf32>
    %29 = arith.mulf %27, %28 : vector<6x32xf32>
    %c0_15 = arith.constant 0 : index
    %c0_16 = arith.constant 0 : index
    %30 = vector.load %arg6[%c0_15, %c0_16] : memref<32x32xf32, #tpu.memory_space<vmem>>, vector<32x32xf32>
    %31 = arith.truncf %23 : vector<6x32xf32> to vector<6x32xbf16>
    %32 = arith.truncf %30 : vector<32x32xf32> to vector<32x32xbf16>
    %cst_17 = arith.constant dense<0.000000e+00> : vector<6x32xf32>
    %33 = tpu.matmul %31, %32, %cst_17 {dimension_numbers = #tpu.dot_dimension_numbers<[1], [0], [0], [1], [0, 0, 1, 1], [], []>} : vector<6x32xbf16>, vector<32x32xbf16>, vector<6x32xf32> -> vector<6x32xf32>
    %c0_18 = arith.constant 0 : index
    %c0_19 = arith.constant 0 : index
    %34 = vector.load %arg7[%c0_18, %c0_19] : memref<32x32xf32, #tpu.memory_space<vmem>>, vector<32x32xf32>
    %35 = arith.truncf %23 : vector<6x32xf32> to vector<6x32xbf16>
    %36 = arith.truncf %34 : vector<32x32xf32> to vector<32x32xbf16>
    %cst_20 = arith.constant dense<0.000000e+00> : vector<6x32xf32>
    %37 = tpu.matmul %35, %36, %cst_20 {dimension_numbers = #tpu.dot_dimension_numbers<[1], [0], [0], [1], [0, 0, 1, 1], [], []>} : vector<6x32xbf16>, vector<32x32xbf16>, vector<6x32xf32> -> vector<6x32xf32>
    %38 = tpu.iota {dimensions = array<i32: 1>} : vector<1x32xi32>
    %c0_i32 = arith.constant 0 : i32
    %39 = vector.broadcast %c0_i32 : i32 to vector<1x32xi32>
    %40 = arith.cmpi sge, %38, %39 : vector<1x32xi32>
    %c8_i32 = arith.constant 8 : i32
    %41 = vector.broadcast %c8_i32 : i32 to vector<1x32xi32>
    %42 = arith.cmpi slt, %38, %41 : vector<1x32xi32>
    %43 = arith.andi %40, %42 : vector<1x32xi1>
    %44 = arith.extui %43 : vector<1x32xi1> to vector<1x32xi32>
    %45 = arith.sitofp %44 : vector<1x32xi32> to vector<1x32xf32>
    %46 = vector.broadcast %45 : vector<1x32xf32> to vector<6x32xf32>
    %47 = arith.mulf %29, %46 : vector<6x32xf32>
    %48 = arith.truncf %47 : vector<6x32xf32> to vector<6x32xbf16>
    %49 = arith.truncf %33 : vector<6x32xf32> to vector<6x32xbf16>
    %cst_21 = arith.constant dense<0.000000e+00> : vector<6x6xf32>
    %50 = tpu.matmul %48, %49, %cst_21 {dimension_numbers = #tpu.dot_dimension_numbers<[1], [1], [0], [0], [0, 0, 1, 0], [], []>} : vector<6x32xbf16>, vector<6x32xbf16>, vector<6x6xf32> -> vector<6x6xf32>
    %51 = arith.addf %50, %1 : vector<6x6xf32>
    %cst_22 = arith.constant dense<0xFF800000> : vector<6xf32>
    %52 = vector.multi_reduction <maximumf>, %51, %cst_22 [1] : vector<6x6xf32> to vector<6xf32>
    %53 = vector.shape_cast %52 : vector<6xf32> to vector<6x1xf32>
    %54 = vector.broadcast %53 : vector<6x1xf32> to vector<6x6xf32>
    %55 = arith.subf %51, %54 : vector<6x6xf32>
    %56 = math.exp %55 : vector<6x6xf32>
    %cst_23 = arith.constant dense<0.000000e+00> : vector<6xf32>
    %57 = vector.multi_reduction <add>, %56, %cst_23 [1] : vector<6x6xf32> to vector<6xf32>
    %58 = vector.shape_cast %57 : vector<6xf32> to vector<6x1xf32>
    %59 = tpu.reciprocal %58 {approx = true} : vector<6x1xf32> -> vector<6x1xf32>
    %60 = vector.broadcast %59 : vector<6x1xf32> to vector<6x6xf32>
    %61 = arith.mulf %56, %60 : vector<6x6xf32>
    %62 = vector.broadcast %45 : vector<1x32xf32> to vector<6x32xf32>
    %63 = arith.mulf %37, %62 : vector<6x32xf32>
    %64 = arith.truncf %61 : vector<6x6xf32> to vector<6x6xbf16>
    %65 = arith.truncf %63 : vector<6x32xf32> to vector<6x32xbf16>
    %cst_24 = arith.constant dense<0.000000e+00> : vector<6x32xf32>
    %66 = tpu.matmul %64, %65, %cst_24 {dimension_numbers = #tpu.dot_dimension_numbers<[1], [0], [0], [1], [0, 0, 1, 1], [], []>} : vector<6x6xbf16>, vector<6x32xbf16>, vector<6x32xf32> -> vector<6x32xf32>
    %c8_i32_25 = arith.constant 8 : i32
    %67 = vector.broadcast %c8_i32_25 : i32 to vector<1x32xi32>
    %68 = arith.cmpi sge, %38, %67 : vector<1x32xi32>
    %c16_i32 = arith.constant 16 : i32
    %69 = vector.broadcast %c16_i32 : i32 to vector<1x32xi32>
    %70 = arith.cmpi slt, %38, %69 : vector<1x32xi32>
    %71 = arith.andi %68, %70 : vector<1x32xi1>
    %72 = arith.extui %71 : vector<1x32xi1> to vector<1x32xi32>
    %73 = arith.sitofp %72 : vector<1x32xi32> to vector<1x32xf32>
    %74 = vector.broadcast %73 : vector<1x32xf32> to vector<6x32xf32>
    %75 = arith.mulf %29, %74 : vector<6x32xf32>
    %76 = arith.truncf %75 : vector<6x32xf32> to vector<6x32xbf16>
    %77 = arith.truncf %33 : vector<6x32xf32> to vector<6x32xbf16>
    %cst_26 = arith.constant dense<0.000000e+00> : vector<6x6xf32>
    %78 = tpu.matmul %76, %77, %cst_26 {dimension_numbers = #tpu.dot_dimension_numbers<[1], [1], [0], [0], [0, 0, 1, 0], [], []>} : vector<6x32xbf16>, vector<6x32xbf16>, vector<6x6xf32> -> vector<6x6xf32>
    %79 = arith.addf %78, %1 : vector<6x6xf32>
    %cst_27 = arith.constant dense<0xFF800000> : vector<6xf32>
    %80 = vector.multi_reduction <maximumf>, %79, %cst_27 [1] : vector<6x6xf32> to vector<6xf32>
    %81 = vector.shape_cast %80 : vector<6xf32> to vector<6x1xf32>
    %82 = vector.broadcast %81 : vector<6x1xf32> to vector<6x6xf32>
    %83 = arith.subf %79, %82 : vector<6x6xf32>
    %84 = math.exp %83 : vector<6x6xf32>
    %cst_28 = arith.constant dense<0.000000e+00> : vector<6xf32>
    %85 = vector.multi_reduction <add>, %84, %cst_28 [1] : vector<6x6xf32> to vector<6xf32>
    %86 = vector.shape_cast %85 : vector<6xf32> to vector<6x1xf32>
    %87 = tpu.reciprocal %86 {approx = true} : vector<6x1xf32> -> vector<6x1xf32>
    %88 = vector.broadcast %87 : vector<6x1xf32> to vector<6x6xf32>
    %89 = arith.mulf %84, %88 : vector<6x6xf32>
    %90 = vector.broadcast %73 : vector<1x32xf32> to vector<6x32xf32>
    %91 = arith.mulf %37, %90 : vector<6x32xf32>
    %92 = arith.truncf %89 : vector<6x6xf32> to vector<6x6xbf16>
    %93 = arith.truncf %91 : vector<6x32xf32> to vector<6x32xbf16>
    %cst_29 = arith.constant dense<0.000000e+00> : vector<6x32xf32>
    %94 = tpu.matmul %92, %93, %cst_29 {dimension_numbers = #tpu.dot_dimension_numbers<[1], [0], [0], [1], [0, 0, 1, 1], [], []>} : vector<6x6xbf16>, vector<6x32xbf16>, vector<6x32xf32> -> vector<6x32xf32>
    %95 = arith.addf %66, %94 : vector<6x32xf32>
    %c16_i32_30 = arith.constant 16 : i32
    %96 = vector.broadcast %c16_i32_30 : i32 to vector<1x32xi32>
    %97 = arith.cmpi sge, %38, %96 : vector<1x32xi32>
    %c24_i32 = arith.constant 24 : i32
    %98 = vector.broadcast %c24_i32 : i32 to vector<1x32xi32>
    %99 = arith.cmpi slt, %38, %98 : vector<1x32xi32>
    %100 = arith.andi %97, %99 : vector<1x32xi1>
    %101 = arith.extui %100 : vector<1x32xi1> to vector<1x32xi32>
    %102 = arith.sitofp %101 : vector<1x32xi32> to vector<1x32xf32>
    %103 = vector.broadcast %102 : vector<1x32xf32> to vector<6x32xf32>
    %104 = arith.mulf %29, %103 : vector<6x32xf32>
    %105 = arith.truncf %104 : vector<6x32xf32> to vector<6x32xbf16>
    %106 = arith.truncf %33 : vector<6x32xf32> to vector<6x32xbf16>
    %cst_31 = arith.constant dense<0.000000e+00> : vector<6x6xf32>
    %107 = tpu.matmul %105, %106, %cst_31 {dimension_numbers = #tpu.dot_dimension_numbers<[1], [1], [0], [0], [0, 0, 1, 0], [], []>} : vector<6x32xbf16>, vector<6x32xbf16>, vector<6x6xf32> -> vector<6x6xf32>
    %108 = arith.addf %107, %1 : vector<6x6xf32>
    %cst_32 = arith.constant dense<0xFF800000> : vector<6xf32>
    %109 = vector.multi_reduction <maximumf>, %108, %cst_32 [1] : vector<6x6xf32> to vector<6xf32>
    %110 = vector.shape_cast %109 : vector<6xf32> to vector<6x1xf32>
    %111 = vector.broadcast %110 : vector<6x1xf32> to vector<6x6xf32>
    %112 = arith.subf %108, %111 : vector<6x6xf32>
    %113 = math.exp %112 : vector<6x6xf32>
    %cst_33 = arith.constant dense<0.000000e+00> : vector<6xf32>
    %114 = vector.multi_reduction <add>, %113, %cst_33 [1] : vector<6x6xf32> to vector<6xf32>
    %115 = vector.shape_cast %114 : vector<6xf32> to vector<6x1xf32>
    %116 = tpu.reciprocal %115 {approx = true} : vector<6x1xf32> -> vector<6x1xf32>
    %117 = vector.broadcast %116 : vector<6x1xf32> to vector<6x6xf32>
    %118 = arith.mulf %113, %117 : vector<6x6xf32>
    %119 = vector.broadcast %102 : vector<1x32xf32> to vector<6x32xf32>
    %120 = arith.mulf %37, %119 : vector<6x32xf32>
    %121 = arith.truncf %118 : vector<6x6xf32> to vector<6x6xbf16>
    %122 = arith.truncf %120 : vector<6x32xf32> to vector<6x32xbf16>
    %cst_34 = arith.constant dense<0.000000e+00> : vector<6x32xf32>
    %123 = tpu.matmul %121, %122, %cst_34 {dimension_numbers = #tpu.dot_dimension_numbers<[1], [0], [0], [1], [0, 0, 1, 1], [], []>} : vector<6x6xbf16>, vector<6x32xbf16>, vector<6x32xf32> -> vector<6x32xf32>
    %124 = arith.addf %95, %123 : vector<6x32xf32>
    %c24_i32_35 = arith.constant 24 : i32
    %125 = vector.broadcast %c24_i32_35 : i32 to vector<1x32xi32>
    %126 = arith.cmpi sge, %38, %125 : vector<1x32xi32>
    %c32_i32 = arith.constant 32 : i32
    %127 = vector.broadcast %c32_i32 : i32 to vector<1x32xi32>
    %128 = arith.cmpi slt, %38, %127 : vector<1x32xi32>
    %129 = arith.andi %126, %128 : vector<1x32xi1>
    %130 = arith.extui %129 : vector<1x32xi1> to vector<1x32xi32>
    %131 = arith.sitofp %130 : vector<1x32xi32> to vector<1x32xf32>
    %132 = vector.broadcast %131 : vector<1x32xf32> to vector<6x32xf32>
    %133 = arith.mulf %29, %132 : vector<6x32xf32>
    %134 = arith.truncf %133 : vector<6x32xf32> to vector<6x32xbf16>
    %135 = arith.truncf %33 : vector<6x32xf32> to vector<6x32xbf16>
    %cst_36 = arith.constant dense<0.000000e+00> : vector<6x6xf32>
    %136 = tpu.matmul %134, %135, %cst_36 {dimension_numbers = #tpu.dot_dimension_numbers<[1], [1], [0], [0], [0, 0, 1, 0], [], []>} : vector<6x32xbf16>, vector<6x32xbf16>, vector<6x6xf32> -> vector<6x6xf32>
    %137 = arith.addf %136, %1 : vector<6x6xf32>
    %cst_37 = arith.constant dense<0xFF800000> : vector<6xf32>
    %138 = vector.multi_reduction <maximumf>, %137, %cst_37 [1] : vector<6x6xf32> to vector<6xf32>
    %139 = vector.shape_cast %138 : vector<6xf32> to vector<6x1xf32>
    %140 = vector.broadcast %139 : vector<6x1xf32> to vector<6x6xf32>
    %141 = arith.subf %137, %140 : vector<6x6xf32>
    %142 = math.exp %141 : vector<6x6xf32>
    %cst_38 = arith.constant dense<0.000000e+00> : vector<6xf32>
    %143 = vector.multi_reduction <add>, %142, %cst_38 [1] : vector<6x6xf32> to vector<6xf32>
    %144 = vector.shape_cast %143 : vector<6xf32> to vector<6x1xf32>
    %145 = tpu.reciprocal %144 {approx = true} : vector<6x1xf32> -> vector<6x1xf32>
    %146 = vector.broadcast %145 : vector<6x1xf32> to vector<6x6xf32>
    %147 = arith.mulf %142, %146 : vector<6x6xf32>
    %148 = vector.broadcast %131 : vector<1x32xf32> to vector<6x32xf32>
    %149 = arith.mulf %37, %148 : vector<6x32xf32>
    %150 = arith.truncf %147 : vector<6x6xf32> to vector<6x6xbf16>
    %151 = arith.truncf %149 : vector<6x32xf32> to vector<6x32xbf16>
    %cst_39 = arith.constant dense<0.000000e+00> : vector<6x32xf32>
    %152 = tpu.matmul %150, %151, %cst_39 {dimension_numbers = #tpu.dot_dimension_numbers<[1], [0], [0], [1], [0, 0, 1, 1], [], []>} : vector<6x6xbf16>, vector<6x32xbf16>, vector<6x32xf32> -> vector<6x32xf32>
    %153 = arith.addf %124, %152 : vector<6x32xf32>
    %c0_40 = arith.constant 0 : index
    %c0_41 = arith.constant 0 : index
    %154 = vector.load %arg8[%c0_40, %c0_41] : memref<32x32xf32, #tpu.memory_space<vmem>>, vector<32x32xf32>
    %155 = arith.truncf %153 : vector<6x32xf32> to vector<6x32xbf16>
    %156 = arith.truncf %154 : vector<32x32xf32> to vector<32x32xbf16>
    %cst_42 = arith.constant dense<0.000000e+00> : vector<6x32xf32>
    %157 = tpu.matmul %155, %156, %cst_42 {dimension_numbers = #tpu.dot_dimension_numbers<[1], [0], [0], [1], [0, 0, 1, 1], [], []>} : vector<6x32xbf16>, vector<32x32xbf16>, vector<6x32xf32> -> vector<6x32xf32>
    %158 = arith.addf %0, %157 : vector<6x32xf32>
    %c0_43 = arith.constant 0 : index
    %c0_44 = arith.constant 0 : index
    %159 = vector.load %arg9[%c0_43, %c0_44] : memref<1x32xf32, #tpu.memory_space<vmem>>, vector<1x32xf32>
    %160 = vector.broadcast %159 : vector<1x32xf32> to vector<6x32xf32>
    %161 = arith.addf %158, %160 : vector<6x32xf32>
    %c0_45 = arith.constant 0 : index
    %c0_46 = arith.constant 0 : index
    %162 = vector.load %arg10[%c0_45, %c0_46] : memref<1x32xf32, #tpu.memory_space<vmem>>, vector<1x32xf32>
    %c0_47 = arith.constant 0 : index
    %c0_48 = arith.constant 0 : index
    %163 = vector.load %arg11[%c0_47, %c0_48] : memref<1x32xf32, #tpu.memory_space<vmem>>, vector<1x32xf32>
    %cst_49 = arith.constant dense<0.000000e+00> : vector<6xf32>
    %164 = vector.multi_reduction <add>, %161, %cst_49 [1] : vector<6x32xf32> to vector<6xf32>
    %165 = vector.shape_cast %164 : vector<6xf32> to vector<6x1xf32>
    %cst_50 = arith.constant 3.200000e+01 : f32
    %166 = vector.broadcast %cst_50 : f32 to vector<6x1xf32>
    %167 = arith.divf %165, %166 : vector<6x1xf32>
    %168 = vector.broadcast %167 : vector<6x1xf32> to vector<6x32xf32>
    %169 = arith.subf %161, %168 : vector<6x32xf32>
    %170 = arith.mulf %169, %169 : vector<6x32xf32>
    %cst_51 = arith.constant dense<0.000000e+00> : vector<6xf32>
    %171 = vector.multi_reduction <add>, %170, %cst_51 [1] : vector<6x32xf32> to vector<6xf32>
    %172 = vector.shape_cast %171 : vector<6xf32> to vector<6x1xf32>
    %cst_52 = arith.constant 3.200000e+01 : f32
    %173 = vector.broadcast %cst_52 : f32 to vector<6x1xf32>
    %174 = arith.divf %172, %173 : vector<6x1xf32>
    %cst_53 = arith.constant 9.99999974E-6 : f32
    %175 = vector.broadcast %cst_53 : f32 to vector<6x1xf32>
    %176 = arith.addf %174, %175 : vector<6x1xf32>
    %177 = math.rsqrt %176 : vector<6x1xf32>
    %178 = vector.broadcast %177 : vector<6x1xf32> to vector<6x32xf32>
    %179 = arith.mulf %169, %178 : vector<6x32xf32>
    %180 = vector.broadcast %162 : vector<1x32xf32> to vector<6x32xf32>
    %181 = arith.mulf %179, %180 : vector<6x32xf32>
    %182 = vector.broadcast %163 : vector<1x32xf32> to vector<6x32xf32>
    %183 = arith.addf %181, %182 : vector<6x32xf32>
    %c0_54 = arith.constant 0 : index
    %c0_55 = arith.constant 0 : index
    %184 = vector.load %arg12[%c0_54, %c0_55] : memref<32x64xf32, #tpu.memory_space<vmem>>, vector<32x64xf32>
    %185 = arith.truncf %183 : vector<6x32xf32> to vector<6x32xbf16>
    %186 = arith.truncf %184 : vector<32x64xf32> to vector<32x64xbf16>
    %cst_56 = arith.constant dense<0.000000e+00> : vector<6x64xf32>
    %187 = tpu.matmul %185, %186, %cst_56 {dimension_numbers = #tpu.dot_dimension_numbers<[1], [0], [0], [1], [0, 0, 1, 1], [], []>} : vector<6x32xbf16>, vector<32x64xbf16>, vector<6x64xf32> -> vector<6x64xf32>
    %c0_57 = arith.constant 0 : index
    %c0_58 = arith.constant 0 : index
    %188 = vector.load %arg13[%c0_57, %c0_58] : memref<1x64xf32, #tpu.memory_space<vmem>>, vector<1x64xf32>
    %189 = vector.broadcast %188 : vector<1x64xf32> to vector<6x64xf32>
    %190 = arith.addf %187, %189 : vector<6x64xf32>
    %cst_59 = arith.constant 5.000000e-01 : f32
    %191 = vector.broadcast %cst_59 : f32 to vector<6x64xf32>
    %192 = arith.mulf %191, %190 : vector<6x64xf32>
    %cst_60 = arith.constant 0.707106769 : f32
    %193 = vector.broadcast %cst_60 : f32 to vector<6x64xf32>
    %194 = arith.mulf %190, %193 : vector<6x64xf32>
    %cst_61 = arith.constant 0.000000e+00 : f32
    %195 = vector.broadcast %cst_61 : f32 to vector<6x64xf32>
    %196 = arith.cmpf oge, %194, %195 : vector<6x64xf32>
    %cst_62 = arith.constant 1.000000e+00 : f32
    %cst_63 = arith.constant -1.000000e+00 : f32
    %197 = vector.broadcast %cst_62 : f32 to vector<6x64xf32>
    %198 = vector.broadcast %cst_63 : f32 to vector<6x64xf32>
    %199 = arith.select %196, %197, %198 : vector<6x64xi1>, vector<6x64xf32>
    %200 = math.absf %194 : vector<6x64xf32>
    %cst_64 = arith.constant 0.327591091 : f32
    %201 = vector.broadcast %cst_64 : f32 to vector<6x64xf32>
    %202 = arith.mulf %201, %200 : vector<6x64xf32>
    %cst_65 = arith.constant 1.000000e+00 : f32
    %203 = vector.broadcast %cst_65 : f32 to vector<6x64xf32>
    %204 = arith.addf %203, %202 : vector<6x64xf32>
    %cst_66 = arith.constant 1.000000e+00 : f32
    %205 = vector.broadcast %cst_66 : f32 to vector<6x64xf32>
    %206 = arith.divf %205, %204 : vector<6x64xf32>
    %cst_67 = arith.constant 1.06140542 : f32
    %207 = vector.broadcast %cst_67 : f32 to vector<6x64xf32>
    %208 = arith.mulf %207, %206 : vector<6x64xf32>
    %cst_68 = arith.constant -1.45315206 : f32
    %209 = vector.broadcast %cst_68 : f32 to vector<6x64xf32>
    %210 = arith.addf %208, %209 : vector<6x64xf32>
    %211 = arith.mulf %210, %206 : vector<6x64xf32>
    %cst_69 = arith.constant 1.42141378 : f32
    %212 = vector.broadcast %cst_69 : f32 to vector<6x64xf32>
    %213 = arith.addf %211, %212 : vector<6x64xf32>
    %214 = arith.mulf %213, %206 : vector<6x64xf32>
    %cst_70 = arith.constant -0.284496725 : f32
    %215 = vector.broadcast %cst_70 : f32 to vector<6x64xf32>
    %216 = arith.addf %214, %215 : vector<6x64xf32>
    %217 = arith.mulf %216, %206 : vector<6x64xf32>
    %cst_71 = arith.constant 0.254829586 : f32
    %218 = vector.broadcast %cst_71 : f32 to vector<6x64xf32>
    %219 = arith.addf %217, %218 : vector<6x64xf32>
    %220 = arith.mulf %219, %206 : vector<6x64xf32>
    %cst_72 = arith.constant 0.000000e+00 : f32
    %221 = vector.broadcast %cst_72 : f32 to vector<6x64xf32>
    %222 = arith.subf %221, %200 : vector<6x64xf32>
    %223 = arith.mulf %222, %200 : vector<6x64xf32>
    %224 = math.exp %223 : vector<6x64xf32>
    %225 = arith.mulf %220, %224 : vector<6x64xf32>
    %cst_73 = arith.constant 1.000000e+00 : f32
    %226 = vector.broadcast %cst_73 : f32 to vector<6x64xf32>
    %227 = arith.subf %226, %225 : vector<6x64xf32>
    %228 = arith.mulf %199, %227 : vector<6x64xf32>
    %cst_74 = arith.constant 1.000000e+00 : f32
    %229 = vector.broadcast %cst_74 : f32 to vector<6x64xf32>
    %230 = arith.addf %229, %228 : vector<6x64xf32>
    %231 = arith.mulf %192, %230 : vector<6x64xf32>
    %c0_75 = arith.constant 0 : index
    %c0_76 = arith.constant 0 : index
    %232 = vector.load %arg14[%c0_75, %c0_76] : memref<64x32xf32, #tpu.memory_space<vmem>>, vector<64x32xf32>
    %233 = arith.truncf %231 : vector<6x64xf32> to vector<6x64xbf16>
    %234 = arith.truncf %232 : vector<64x32xf32> to vector<64x32xbf16>
    %cst_77 = arith.constant dense<0.000000e+00> : vector<6x32xf32>
    %235 = tpu.matmul %233, %234, %cst_77 {dimension_numbers = #tpu.dot_dimension_numbers<[1], [0], [0], [1], [0, 0, 1, 1], [], []>} : vector<6x64xbf16>, vector<64x32xbf16>, vector<6x32xf32> -> vector<6x32xf32>
    %236 = arith.addf %161, %235 : vector<6x32xf32>
    %c0_78 = arith.constant 0 : index
    %c0_79 = arith.constant 0 : index
    %237 = vector.load %arg15[%c0_78, %c0_79] : memref<1x32xf32, #tpu.memory_space<vmem>>, vector<1x32xf32>
    %238 = vector.broadcast %237 : vector<1x32xf32> to vector<6x32xf32>
    %239 = arith.addf %236, %238 : vector<6x32xf32>
    %240 = vector.extract_strided_slice %239 {offsets = [0, 0], sizes = [1, 32], strides = [1, 1]} : vector<6x32xf32> to vector<1x32xf32>
    %241 = arith.mulf %240, %240 : vector<1x32xf32>
    %cst_80 = arith.constant dense<0.000000e+00> : vector<1xf32>
    %242 = vector.multi_reduction <add>, %241, %cst_80 [1] : vector<1x32xf32> to vector<1xf32>
    %243 = vector.shape_cast %242 : vector<1xf32> to vector<1x1xf32>
    %cst_81 = arith.constant 1.000000e-24 : f32
    %244 = vector.broadcast %cst_81 : f32 to vector<1x1xf32>
    %245 = arith.maximumf %243, %244 : vector<1x1xf32>
    %246 = math.rsqrt %245 : vector<1x1xf32>
    %247 = vector.broadcast %246 : vector<1x1xf32> to vector<1x32xf32>
    %248 = arith.mulf %240, %247 : vector<1x32xf32>
    %c0_82 = arith.constant 0 : index
    %c0_83 = arith.constant 0 : index
    %249 = vector.load %arg16[%c0_82, %c0_83] : memref<2x32xf32, #tpu.memory_space<vmem>>, vector<1x32xf32>
    tpu.vector_store %arg16[%c0_82, %c0_83], %248 {strides = array<i32>} : memref<2x32xf32, #tpu.memory_space<vmem>>, vector<1x32xf32>,
    %250 = vector.extract_strided_slice %239 {offsets = [3, 0], sizes = [1, 32], strides = [1, 1]} : vector<6x32xf32> to vector<1x32xf32>
    %251 = arith.mulf %250, %250 : vector<1x32xf32>
    %cst_84 = arith.constant dense<0.000000e+00> : vector<1xf32>
    %252 = vector.multi_reduction <add>, %251, %cst_84 [1] : vector<1x32xf32> to vector<1xf32>
    %253 = vector.shape_cast %252 : vector<1xf32> to vector<1x1xf32>
    %cst_85 = arith.constant 1.000000e-24 : f32
    %254 = vector.broadcast %cst_85 : f32 to vector<1x1xf32>
    %255 = arith.maximumf %253, %254 : vector<1x1xf32>
    %256 = math.rsqrt %255 : vector<1x1xf32>
    %257 = vector.broadcast %256 : vector<1x1xf32> to vector<1x32xf32>
    %258 = arith.mulf %250, %257 : vector<1x32xf32>
    %c1 = arith.constant 1 : index
    %c0_86 = arith.constant 0 : index
    %259 = vector.load %arg16[%c1, %c0_86] : memref<2x32xf32, #tpu.memory_space<vmem>>, vector<1x32xf32>
    tpu.vector_store %arg16[%c1, %c0_86], %258 {strides = array<i32>} : memref<2x32xf32, #tpu.memory_space<vmem>>, vector<1x32xf32>,
    return
  }
  func.func @transform_0(%arg0: i32) -> (i32, i32) {
    %c0_i32 = arith.constant 0 : i32
    %c0_i32_0 = arith.constant 0 : i32
    %c0_i32_1 = arith.constant 0 : i32
    return %c0_i32, %c0_i32_0 : i32, i32
  }
  func.func @transform_1(%arg0: i32) -> (i32, i32) {
    %c0_i32 = arith.constant 0 : i32
    %c0_i32_0 = arith.constant 0 : i32
    %c0_i32_1 = arith.constant 0 : i32
    return %c0_i32, %c0_i32_0 : i32, i32
  }
  func.func @transform_2(%arg0: i32) -> (i32, i32) {
    %c0_i32 = arith.constant 0 : i32
    %c0_i32_0 = arith.constant 0 : i32
    %c0_i32_1 = arith.constant 0 : i32
    return %c0_i32, %c0_i32_0 : i32, i32
  }
  func.func @transform_3(%arg0: i32) -> (i32, i32) {
    %c0_i32 = arith.constant 0 : i32
    %c0_i32_0 = arith.constant 0 : i32
    %c0_i32_1 = arith.constant 0 : i32
    return %c0_i32, %c0_i32_0 : i32, i32
  }
  func.func @transform_4(%arg0: i32) -> (i32, i32) {
    %c0_i32 = arith.constant 0 : i32
    %c0_i32_0 = arith.constant 0 : i32
    %c0_i32_1 = arith.constant 0 : i32
    return %c0_i32, %c0_i32_0 : i32, i32
  }
  func.func @transform_5(%arg0: i32) -> (i32, i32) {
    %c0_i32 = arith.constant 0 : i32
    %c0_i32_0 = arith.constant 0 : i32
    %c0_i32_1 = arith.constant 0 : i32
    return %c0_i32, %c0_i32_0 : i32, i32
  }
  func.func @transform_6(%arg0: i32) -> (i32, i32) {
    %c0_i32 = arith.constant 0 : i32
    %c0_i32_0 = arith.constant 0 : i32
    %c0_i32_1 = arith.constant 0 : i32
    return %c0_i32, %c0_i32_0 : i32, i32
  }
  func.func @transform_7(%arg0: i32) -> (i32, i32) {
    %c0_i32 = arith.constant 0 : i32
    %c0_i32_0 = arith.constant 0 : i32
    %c0_i32_1 = arith.constant 0 : i32
    return %c0_i32, %c0_i32_0 : i32, i32
  }
  func.func @transform_8(%arg0: i32) -> (i32, i32) {
    %c0_i32 = arith.constant 0 : i32
    %c0_i32_0 = arith.constant 0 : i32
    %c0_i32_1 = arith.constant 0 : i32
    return %c0_i32, %c0_i32_0 : i32, i32
  }
  func.func @transform_9(%arg0: i32) -> (i32, i32) {
    %c0_i32 = arith.constant 0 : i32
    %c0_i32_0 = arith.constant 0 : i32
    %c0_i32_1 = arith.constant 0 : i32
    return %c0_i32, %c0_i32_0 : i32, i32
  }
  func.func @transform_10(%arg0: i32) -> (i32, i32) {
    %c0_i32 = arith.constant 0 : i32
    %c0_i32_0 = arith.constant 0 : i32
    %c0_i32_1 = arith.constant 0 : i32
    return %c0_i32, %c0_i32_0 : i32, i32
  }
  func.func @transform_11(%arg0: i32) -> (i32, i32) {
    %c0_i32 = arith.constant 0 : i32
    %c0_i32_0 = arith.constant 0 : i32
    %c0_i32_1 = arith.constant 0 : i32
    return %c0_i32, %c0_i32_0 : i32, i32
  }
  func.func @transform_12(%arg0: i32) -> (i32, i32) {
    %c0_i32 = arith.constant 0 : i32
    %c0_i32_0 = arith.constant 0 : i32
    %c0_i32_1 = arith.constant 0 : i32
    return %c0_i32, %c0_i32_0 : i32, i32
  }
  func.func @transform_13(%arg0: i32) -> (i32, i32) {
    %c0_i32 = arith.constant 0 : i32
    %c0_i32_0 = arith.constant 0 : i32
    %c0_i32_1 = arith.constant 0 : i32
    return %c0_i32, %c0_i32_0 : i32, i32
  }
  func.func @transform_14(%arg0: i32) -> (i32, i32) {
    %c0_i32 = arith.constant 0 : i32
    %c0_i32_0 = arith.constant 0 : i32
    %c0_i32_1 = arith.constant 0 : i32
    return %c0_i32, %c0_i32_0 : i32, i32
  }
  func.func @transform_15(%arg0: i32) -> (i32, i32) {
    %c0_i32 = arith.constant 0 : i32
    %c0_i32_0 = arith.constant 0 : i32
    %c0_i32_1 = arith.constant 0 : i32
    return %c0_i32, %c0_i32_0 : i32, i32
  }
}

module attributes {stable_mosaic.version = 11 : i64} {
  func.func @_decoder_kernel(%arg0: i32, %arg1: memref<8x16xf32, #tpu.memory_space<vmem>>, %arg2: memref<2x32xf32, #tpu.memory_space<vmem>>, %arg3: memref<8x2xf32, #tpu.memory_space<vmem>>, %arg4: memref<2x1x16xf32, #tpu.memory_space<vmem>>, %arg5: memref<2x1x16xf32, #tpu.memory_space<vmem>>, %arg6: memref<2x16x8xf32, #tpu.memory_space<vmem>>, %arg7: memref<2x32x8xf32, #tpu.memory_space<vmem>>, %arg8: memref<2x32x8xf32, #tpu.memory_space<vmem>>, %arg9: memref<2x8x16xf32, #tpu.memory_space<vmem>>, %arg10: memref<2x1x16xf32, #tpu.memory_space<vmem>>, %arg11: memref<2x1x16xf32, #tpu.memory_space<vmem>>, %arg12: memref<2x1x16xf32, #tpu.memory_space<vmem>>, %arg13: memref<2x16x64xf32, #tpu.memory_space<vmem>>, %arg14: memref<2x1x64xf32, #tpu.memory_space<vmem>>, %arg15: memref<2x64x16xf32, #tpu.memory_space<vmem>>, %arg16: memref<2x1x16xf32, #tpu.memory_space<vmem>>, %arg17: memref<16x192xf32, #tpu.memory_space<vmem>>, %arg18: memref<1x192xf32, #tpu.memory_space<vmem>>, %arg19: memref<8x192xf32, #tpu.memory_space<vmem>>) attributes {dimension_semantics = [#tpu.dimension_semantics<arbitrary>], iteration_bounds = array<i64: 1>, scalar_prefetch = 0 : i64, scratch_operands = 0 : i64, tpu.core_type = #tpu.core_type<tc>, window_params = [{pipeline_mode = #tpu.pipeline_mode<synchronous>, transform_indices = @transform_0, window_bounds = array<i64: 8, 16>}, {pipeline_mode = #tpu.pipeline_mode<synchronous>, transform_indices = @transform_1, window_bounds = array<i64: 2, 32>}, {pipeline_mode = #tpu.pipeline_mode<synchronous>, transform_indices = @transform_2, window_bounds = array<i64: 8, 2>}, {pipeline_mode = #tpu.pipeline_mode<synchronous>, transform_indices = @transform_3, window_bounds = array<i64: 2, 1, 16>}, {pipeline_mode = #tpu.pipeline_mode<synchronous>, transform_indices = @transform_4, window_bounds = array<i64: 2, 1, 16>}, {pipeline_mode = #tpu.pipeline_mode<synchronous>, transform_indices = @transform_5, window_bounds = array<i64: 2, 16, 8>}, {pipeline_mode = #tpu.pipeline_mode<synchronous>, transform_indices = @transform_6, window_bounds = array<i64: 2, 32, 8>}, {pipeline_mode = #tpu.pipeline_mode<synchronous>, transform_indices = @transform_7, window_bounds = array<i64: 2, 32, 8>}, {pipeline_mode = #tpu.pipeline_mode<synchronous>, transform_indices = @transform_8, window_bounds = array<i64: 2, 8, 16>}, {pipeline_mode = #tpu.pipeline_mode<synchronous>, transform_indices = @transform_9, window_bounds = array<i64: 2, 1, 16>}, {pipeline_mode = #tpu.pipeline_mode<synchronous>, transform_indices = @transform_10, window_bounds = array<i64: 2, 1, 16>}, {pipeline_mode = #tpu.pipeline_mode<synchronous>, transform_indices = @transform_11, window_bounds = array<i64: 2, 1, 16>}, {pipeline_mode = #tpu.pipeline_mode<synchronous>, transform_indices = @transform_12, window_bounds = array<i64: 2, 16, 64>}, {pipeline_mode = #tpu.pipeline_mode<synchronous>, transform_indices = @transform_13, window_bounds = array<i64: 2, 1, 64>}, {pipeline_mode = #tpu.pipeline_mode<synchronous>, transform_indices = @transform_14, window_bounds = array<i64: 2, 64, 16>}, {pipeline_mode = #tpu.pipeline_mode<synchronous>, transform_indices = @transform_15, window_bounds = array<i64: 2, 1, 16>}, {pipeline_mode = #tpu.pipeline_mode<synchronous>, transform_indices = @transform_16, window_bounds = array<i64: 16, 192>}, {pipeline_mode = #tpu.pipeline_mode<synchronous>, transform_indices = @transform_17, window_bounds = array<i64: 1, 192>}, {pipeline_mode = #tpu.pipeline_mode<synchronous>, transform_indices = @transform_18, window_bounds = array<i64: 8, 192>}]} {
    %c0 = arith.constant 0 : index
    %c0_0 = arith.constant 0 : index
    %0 = vector.load %arg1[%c0, %c0_0] : memref<8x16xf32, #tpu.memory_space<vmem>>, vector<8x16xf32>
    %c0_1 = arith.constant 0 : index
    %c0_2 = arith.constant 0 : index
    %1 = vector.load %arg2[%c0_1, %c0_2] : memref<2x32xf32, #tpu.memory_space<vmem>>, vector<2x32xf32>
    %c0_3 = arith.constant 0 : index
    %c0_4 = arith.constant 0 : index
    %2 = vector.load %arg3[%c0_3, %c0_4] : memref<8x2xf32, #tpu.memory_space<vmem>>, vector<8x2xf32>
    %c0_5 = arith.constant 0 : index
    %c0_6 = arith.constant 0 : index
    %c0_7 = arith.constant 0 : index
    %3 = vector.load %arg4[%c0_5, %c0_6, %c0_7] : memref<2x1x16xf32, #tpu.memory_space<vmem>>, vector<1x1x16xf32>
    %4 = vector.shape_cast %3 : vector<1x1x16xf32> to vector<1x16xf32>
    %c0_8 = arith.constant 0 : index
    %c0_9 = arith.constant 0 : index
    %c0_10 = arith.constant 0 : index
    %5 = vector.load %arg5[%c0_8, %c0_9, %c0_10] : memref<2x1x16xf32, #tpu.memory_space<vmem>>, vector<1x1x16xf32>
    %6 = vector.shape_cast %5 : vector<1x1x16xf32> to vector<1x16xf32>
    %cst = arith.constant dense<0.000000e+00> : vector<8xf32>
    %7 = vector.multi_reduction <add>, %0, %cst [1] : vector<8x16xf32> to vector<8xf32>
    %8 = vector.shape_cast %7 : vector<8xf32> to vector<8x1xf32>
    %cst_11 = arith.constant 1.600000e+01 : f32
    %9 = vector.broadcast %cst_11 : f32 to vector<8x1xf32>
    %10 = arith.divf %8, %9 : vector<8x1xf32>
    %11 = vector.broadcast %10 : vector<8x1xf32> to vector<8x16xf32>
    %12 = arith.subf %0, %11 : vector<8x16xf32>
    %13 = arith.mulf %12, %12 : vector<8x16xf32>
    %cst_12 = arith.constant dense<0.000000e+00> : vector<8xf32>
    %14 = vector.multi_reduction <add>, %13, %cst_12 [1] : vector<8x16xf32> to vector<8xf32>
    %15 = vector.shape_cast %14 : vector<8xf32> to vector<8x1xf32>
    %cst_13 = arith.constant 1.600000e+01 : f32
    %16 = vector.broadcast %cst_13 : f32 to vector<8x1xf32>
    %17 = arith.divf %15, %16 : vector<8x1xf32>
    %cst_14 = arith.constant 9.99999974E-6 : f32
    %18 = vector.broadcast %cst_14 : f32 to vector<8x1xf32>
    %19 = arith.addf %17, %18 : vector<8x1xf32>
    %20 = math.rsqrt %19 : vector<8x1xf32>
    %21 = vector.broadcast %20 : vector<8x1xf32> to vector<8x16xf32>
    %22 = arith.mulf %12, %21 : vector<8x16xf32>
    %23 = vector.broadcast %4 : vector<1x16xf32> to vector<8x16xf32>
    %24 = arith.mulf %22, %23 : vector<8x16xf32>
    %25 = vector.broadcast %6 : vector<1x16xf32> to vector<8x16xf32>
    %26 = arith.addf %24, %25 : vector<8x16xf32>
    %c0_15 = arith.constant 0 : index
    %c0_16 = arith.constant 0 : index
    %c0_17 = arith.constant 0 : index
    %27 = vector.load %arg6[%c0_15, %c0_16, %c0_17] : memref<2x16x8xf32, #tpu.memory_space<vmem>>, vector<1x16x8xf32>
    %28 = vector.shape_cast %27 : vector<1x16x8xf32> to vector<16x8xf32>
    %29 = arith.truncf %26 : vector<8x16xf32> to vector<8x16xbf16>
    %30 = arith.truncf %28 : vector<16x8xf32> to vector<16x8xbf16>
    %cst_18 = arith.constant dense<0.000000e+00> : vector<8x8xf32>
    %31 = tpu.matmul %29, %30, %cst_18 {dimension_numbers = #tpu.dot_dimension_numbers<[1], [0], [0], [1], [0, 0, 1, 1], [], []>} : vector<8x16xbf16>, vector<16x8xbf16>, vector<8x8xf32> -> vector<8x8xf32>
    %cst_19 = arith.constant 0.707106769 : f32
    %32 = vector.broadcast %cst_19 : f32 to vector<8x8xf32>
    %33 = arith.mulf %31, %32 : vector<8x8xf32>
    %c0_20 = arith.constant 0 : index
    %c0_21 = arith.constant 0 : index
    %c0_22 = arith.constant 0 : index
    %34 = vector.load %arg7[%c0_20, %c0_21, %c0_22] : memref<2x32x8xf32, #tpu.memory_space<vmem>>, vector<1x32x8xf32>
    %35 = vector.shape_cast %34 : vector<1x32x8xf32> to vector<32x8xf32>
    %36 = arith.truncf %1 : vector<2x32xf32> to vector<2x32xbf16>
    %37 = arith.truncf %35 : vector<32x8xf32> to vector<32x8xbf16>
    %cst_23 = arith.constant dense<0.000000e+00> : vector<2x8xf32>
    %38 = tpu.matmul %36, %37, %cst_23 {dimension_numbers = #tpu.dot_dimension_numbers<[1], [0], [0], [1], [0, 0, 1, 1], [], []>} : vector<2x32xbf16>, vector<32x8xbf16>, vector<2x8xf32> -> vector<2x8xf32>
    %c0_24 = arith.constant 0 : index
    %c0_25 = arith.constant 0 : index
    %c0_26 = arith.constant 0 : index
    %39 = vector.load %arg8[%c0_24, %c0_25, %c0_26] : memref<2x32x8xf32, #tpu.memory_space<vmem>>, vector<1x32x8xf32>
    %40 = vector.shape_cast %39 : vector<1x32x8xf32> to vector<32x8xf32>
    %41 = arith.truncf %1 : vector<2x32xf32> to vector<2x32xbf16>
    %42 = arith.truncf %40 : vector<32x8xf32> to vector<32x8xbf16>
    %cst_27 = arith.constant dense<0.000000e+00> : vector<2x8xf32>
    %43 = tpu.matmul %41, %42, %cst_27 {dimension_numbers = #tpu.dot_dimension_numbers<[1], [0], [0], [1], [0, 0, 1, 1], [], []>} : vector<2x32xbf16>, vector<32x8xbf16>, vector<2x8xf32> -> vector<2x8xf32>
    %44 = tpu.iota {dimensions = array<i32: 1>} : vector<1x8xi32>
    %c0_i32 = arith.constant 0 : i32
    %45 = vector.broadcast %c0_i32 : i32 to vector<1x8xi32>
    %46 = arith.cmpi sge, %44, %45 : vector<1x8xi32>
    %c2_i32 = arith.constant 2 : i32
    %47 = vector.broadcast %c2_i32 : i32 to vector<1x8xi32>
    %48 = arith.cmpi slt, %44, %47 : vector<1x8xi32>
    %49 = arith.andi %46, %48 : vector<1x8xi1>
    %50 = arith.extui %49 : vector<1x8xi1> to vector<1x8xi32>
    %51 = arith.sitofp %50 : vector<1x8xi32> to vector<1x8xf32>
    %52 = vector.broadcast %51 : vector<1x8xf32> to vector<8x8xf32>
    %53 = arith.mulf %33, %52 : vector<8x8xf32>
    %54 = arith.truncf %53 : vector<8x8xf32> to vector<8x8xbf16>
    %55 = arith.truncf %38 : vector<2x8xf32> to vector<2x8xbf16>
    %cst_28 = arith.constant dense<0.000000e+00> : vector<8x2xf32>
    %56 = tpu.matmul %54, %55, %cst_28 {dimension_numbers = #tpu.dot_dimension_numbers<[1], [1], [0], [0], [0, 0, 1, 0], [], []>} : vector<8x8xbf16>, vector<2x8xbf16>, vector<8x2xf32> -> vector<8x2xf32>
    %57 = arith.addf %56, %2 : vector<8x2xf32>
    %cst_29 = arith.constant dense<0xFF800000> : vector<8xf32>
    %58 = vector.multi_reduction <maximumf>, %57, %cst_29 [1] : vector<8x2xf32> to vector<8xf32>
    %59 = vector.shape_cast %58 : vector<8xf32> to vector<8x1xf32>
    %60 = vector.broadcast %59 : vector<8x1xf32> to vector<8x2xf32>
    %61 = arith.subf %57, %60 : vector<8x2xf32>
    %62 = math.exp %61 : vector<8x2xf32>
    %cst_30 = arith.constant dense<0.000000e+00> : vector<8xf32>
    %63 = vector.multi_reduction <add>, %62, %cst_30 [1] : vector<8x2xf32> to vector<8xf32>
    %64 = vector.shape_cast %63 : vector<8xf32> to vector<8x1xf32>
    %65 = tpu.reciprocal %64 {approx = true} : vector<8x1xf32> -> vector<8x1xf32>
    %66 = vector.broadcast %65 : vector<8x1xf32> to vector<8x2xf32>
    %67 = arith.mulf %62, %66 : vector<8x2xf32>
    %68 = vector.broadcast %51 : vector<1x8xf32> to vector<2x8xf32>
    %69 = arith.mulf %43, %68 : vector<2x8xf32>
    %70 = arith.truncf %67 : vector<8x2xf32> to vector<8x2xbf16>
    %71 = arith.truncf %69 : vector<2x8xf32> to vector<2x8xbf16>
    %cst_31 = arith.constant dense<0.000000e+00> : vector<8x8xf32>
    %72 = tpu.matmul %70, %71, %cst_31 {dimension_numbers = #tpu.dot_dimension_numbers<[1], [0], [0], [1], [0, 0, 1, 1], [], []>} : vector<8x2xbf16>, vector<2x8xbf16>, vector<8x8xf32> -> vector<8x8xf32>
    %c2_i32_32 = arith.constant 2 : i32
    %73 = vector.broadcast %c2_i32_32 : i32 to vector<1x8xi32>
    %74 = arith.cmpi sge, %44, %73 : vector<1x8xi32>
    %c4_i32 = arith.constant 4 : i32
    %75 = vector.broadcast %c4_i32 : i32 to vector<1x8xi32>
    %76 = arith.cmpi slt, %44, %75 : vector<1x8xi32>
    %77 = arith.andi %74, %76 : vector<1x8xi1>
    %78 = arith.extui %77 : vector<1x8xi1> to vector<1x8xi32>
    %79 = arith.sitofp %78 : vector<1x8xi32> to vector<1x8xf32>
    %80 = vector.broadcast %79 : vector<1x8xf32> to vector<8x8xf32>
    %81 = arith.mulf %33, %80 : vector<8x8xf32>
    %82 = arith.truncf %81 : vector<8x8xf32> to vector<8x8xbf16>
    %83 = arith.truncf %38 : vector<2x8xf32> to vector<2x8xbf16>
    %cst_33 = arith.constant dense<0.000000e+00> : vector<8x2xf32>
    %84 = tpu.matmul %82, %83, %cst_33 {dimension_numbers = #tpu.dot_dimension_numbers<[1], [1], [0], [0], [0, 0, 1, 0], [], []>} : vector<8x8xbf16>, vector<2x8xbf16>, vector<8x2xf32> -> vector<8x2xf32>
    %85 = arith.addf %84, %2 : vector<8x2xf32>
    %cst_34 = arith.constant dense<0xFF800000> : vector<8xf32>
    %86 = vector.multi_reduction <maximumf>, %85, %cst_34 [1] : vector<8x2xf32> to vector<8xf32>
    %87 = vector.shape_cast %86 : vector<8xf32> to vector<8x1xf32>
    %88 = vector.broadcast %87 : vector<8x1xf32> to vector<8x2xf32>
    %89 = arith.subf %85, %88 : vector<8x2xf32>
    %90 = math.exp %89 : vector<8x2xf32>
    %cst_35 = arith.constant dense<0.000000e+00> : vector<8xf32>
    %91 = vector.multi_reduction <add>, %90, %cst_35 [1] : vector<8x2xf32> to vector<8xf32>
    %92 = vector.shape_cast %91 : vector<8xf32> to vector<8x1xf32>
    %93 = tpu.reciprocal %92 {approx = true} : vector<8x1xf32> -> vector<8x1xf32>
    %94 = vector.broadcast %93 : vector<8x1xf32> to vector<8x2xf32>
    %95 = arith.mulf %90, %94 : vector<8x2xf32>
    %96 = vector.broadcast %79 : vector<1x8xf32> to vector<2x8xf32>
    %97 = arith.mulf %43, %96 : vector<2x8xf32>
    %98 = arith.truncf %95 : vector<8x2xf32> to vector<8x2xbf16>
    %99 = arith.truncf %97 : vector<2x8xf32> to vector<2x8xbf16>
    %cst_36 = arith.constant dense<0.000000e+00> : vector<8x8xf32>
    %100 = tpu.matmul %98, %99, %cst_36 {dimension_numbers = #tpu.dot_dimension_numbers<[1], [0], [0], [1], [0, 0, 1, 1], [], []>} : vector<8x2xbf16>, vector<2x8xbf16>, vector<8x8xf32> -> vector<8x8xf32>
    %101 = arith.addf %72, %100 : vector<8x8xf32>
    %c4_i32_37 = arith.constant 4 : i32
    %102 = vector.broadcast %c4_i32_37 : i32 to vector<1x8xi32>
    %103 = arith.cmpi sge, %44, %102 : vector<1x8xi32>
    %c6_i32 = arith.constant 6 : i32
    %104 = vector.broadcast %c6_i32 : i32 to vector<1x8xi32>
    %105 = arith.cmpi slt, %44, %104 : vector<1x8xi32>
    %106 = arith.andi %103, %105 : vector<1x8xi1>
    %107 = arith.extui %106 : vector<1x8xi1> to vector<1x8xi32>
    %108 = arith.sitofp %107 : vector<1x8xi32> to vector<1x8xf32>
    %109 = vector.broadcast %108 : vector<1x8xf32> to vector<8x8xf32>
    %110 = arith.mulf %33, %109 : vector<8x8xf32>
    %111 = arith.truncf %110 : vector<8x8xf32> to vector<8x8xbf16>
    %112 = arith.truncf %38 : vector<2x8xf32> to vector<2x8xbf16>
    %cst_38 = arith.constant dense<0.000000e+00> : vector<8x2xf32>
    %113 = tpu.matmul %111, %112, %cst_38 {dimension_numbers = #tpu.dot_dimension_numbers<[1], [1], [0], [0], [0, 0, 1, 0], [], []>} : vector<8x8xbf16>, vector<2x8xbf16>, vector<8x2xf32> -> vector<8x2xf32>
    %114 = arith.addf %113, %2 : vector<8x2xf32>
    %cst_39 = arith.constant dense<0xFF800000> : vector<8xf32>
    %115 = vector.multi_reduction <maximumf>, %114, %cst_39 [1] : vector<8x2xf32> to vector<8xf32>
    %116 = vector.shape_cast %115 : vector<8xf32> to vector<8x1xf32>
    %117 = vector.broadcast %116 : vector<8x1xf32> to vector<8x2xf32>
    %118 = arith.subf %114, %117 : vector<8x2xf32>
    %119 = math.exp %118 : vector<8x2xf32>
    %cst_40 = arith.constant dense<0.000000e+00> : vector<8xf32>
    %120 = vector.multi_reduction <add>, %119, %cst_40 [1] : vector<8x2xf32> to vector<8xf32>
    %121 = vector.shape_cast %120 : vector<8xf32> to vector<8x1xf32>
    %122 = tpu.reciprocal %121 {approx = true} : vector<8x1xf32> -> vector<8x1xf32>
    %123 = vector.broadcast %122 : vector<8x1xf32> to vector<8x2xf32>
    %124 = arith.mulf %119, %123 : vector<8x2xf32>
    %125 = vector.broadcast %108 : vector<1x8xf32> to vector<2x8xf32>
    %126 = arith.mulf %43, %125 : vector<2x8xf32>
    %127 = arith.truncf %124 : vector<8x2xf32> to vector<8x2xbf16>
    %128 = arith.truncf %126 : vector<2x8xf32> to vector<2x8xbf16>
    %cst_41 = arith.constant dense<0.000000e+00> : vector<8x8xf32>
    %129 = tpu.matmul %127, %128, %cst_41 {dimension_numbers = #tpu.dot_dimension_numbers<[1], [0], [0], [1], [0, 0, 1, 1], [], []>} : vector<8x2xbf16>, vector<2x8xbf16>, vector<8x8xf32> -> vector<8x8xf32>
    %130 = arith.addf %101, %129 : vector<8x8xf32>
    %c6_i32_42 = arith.constant 6 : i32
    %131 = vector.broadcast %c6_i32_42 : i32 to vector<1x8xi32>
    %132 = arith.cmpi sge, %44, %131 : vector<1x8xi32>
    %c8_i32 = arith.constant 8 : i32
    %133 = vector.broadcast %c8_i32 : i32 to vector<1x8xi32>
    %134 = arith.cmpi slt, %44, %133 : vector<1x8xi32>
    %135 = arith.andi %132, %134 : vector<1x8xi1>
    %136 = arith.extui %135 : vector<1x8xi1> to vector<1x8xi32>
    %137 = arith.sitofp %136 : vector<1x8xi32> to vector<1x8xf32>
    %138 = vector.broadcast %137 : vector<1x8xf32> to vector<8x8xf32>
    %139 = arith.mulf %33, %138 : vector<8x8xf32>
    %140 = arith.truncf %139 : vector<8x8xf32> to vector<8x8xbf16>
    %141 = arith.truncf %38 : vector<2x8xf32> to vector<2x8xbf16>
    %cst_43 = arith.constant dense<0.000000e+00> : vector<8x2xf32>
    %142 = tpu.matmul %140, %141, %cst_43 {dimension_numbers = #tpu.dot_dimension_numbers<[1], [1], [0], [0], [0, 0, 1, 0], [], []>} : vector<8x8xbf16>, vector<2x8xbf16>, vector<8x2xf32> -> vector<8x2xf32>
    %143 = arith.addf %142, %2 : vector<8x2xf32>
    %cst_44 = arith.constant dense<0xFF800000> : vector<8xf32>
    %144 = vector.multi_reduction <maximumf>, %143, %cst_44 [1] : vector<8x2xf32> to vector<8xf32>
    %145 = vector.shape_cast %144 : vector<8xf32> to vector<8x1xf32>
    %146 = vector.broadcast %145 : vector<8x1xf32> to vector<8x2xf32>
    %147 = arith.subf %143, %146 : vector<8x2xf32>
    %148 = math.exp %147 : vector<8x2xf32>
    %cst_45 = arith.constant dense<0.000000e+00> : vector<8xf32>
    %149 = vector.multi_reduction <add>, %148, %cst_45 [1] : vector<8x2xf32> to vector<8xf32>
    %150 = vector.shape_cast %149 : vector<8xf32> to vector<8x1xf32>
    %151 = tpu.reciprocal %150 {approx = true} : vector<8x1xf32> -> vector<8x1xf32>
    %152 = vector.broadcast %151 : vector<8x1xf32> to vector<8x2xf32>
    %153 = arith.mulf %148, %152 : vector<8x2xf32>
    %154 = vector.broadcast %137 : vector<1x8xf32> to vector<2x8xf32>
    %155 = arith.mulf %43, %154 : vector<2x8xf32>
    %156 = arith.truncf %153 : vector<8x2xf32> to vector<8x2xbf16>
    %157 = arith.truncf %155 : vector<2x8xf32> to vector<2x8xbf16>
    %cst_46 = arith.constant dense<0.000000e+00> : vector<8x8xf32>
    %158 = tpu.matmul %156, %157, %cst_46 {dimension_numbers = #tpu.dot_dimension_numbers<[1], [0], [0], [1], [0, 0, 1, 1], [], []>} : vector<8x2xbf16>, vector<2x8xbf16>, vector<8x8xf32> -> vector<8x8xf32>
    %159 = arith.addf %130, %158 : vector<8x8xf32>
    %c0_47 = arith.constant 0 : index
    %c0_48 = arith.constant 0 : index
    %c0_49 = arith.constant 0 : index
    %160 = vector.load %arg9[%c0_47, %c0_48, %c0_49] : memref<2x8x16xf32, #tpu.memory_space<vmem>>, vector<1x8x16xf32>
    %161 = vector.shape_cast %160 : vector<1x8x16xf32> to vector<8x16xf32>
    %162 = arith.truncf %159 : vector<8x8xf32> to vector<8x8xbf16>
    %163 = arith.truncf %161 : vector<8x16xf32> to vector<8x16xbf16>
    %cst_50 = arith.constant dense<0.000000e+00> : vector<8x16xf32>
    %164 = tpu.matmul %162, %163, %cst_50 {dimension_numbers = #tpu.dot_dimension_numbers<[1], [0], [0], [1], [0, 0, 1, 1], [], []>} : vector<8x8xbf16>, vector<8x16xbf16>, vector<8x16xf32> -> vector<8x16xf32>
    %165 = arith.addf %0, %164 : vector<8x16xf32>
    %c0_51 = arith.constant 0 : index
    %c0_52 = arith.constant 0 : index
    %c0_53 = arith.constant 0 : index
    %166 = vector.load %arg10[%c0_51, %c0_52, %c0_53] : memref<2x1x16xf32, #tpu.memory_space<vmem>>, vector<1x1x16xf32>
    %167 = vector.shape_cast %166 : vector<1x1x16xf32> to vector<1x16xf32>
    %168 = vector.broadcast %167 : vector<1x16xf32> to vector<8x16xf32>
    %169 = arith.addf %165, %168 : vector<8x16xf32>
    %c0_54 = arith.constant 0 : index
    %c0_55 = arith.constant 0 : index
    %c0_56 = arith.constant 0 : index
    %170 = vector.load %arg11[%c0_54, %c0_55, %c0_56] : memref<2x1x16xf32, #tpu.memory_space<vmem>>, vector<1x1x16xf32>
    %171 = vector.shape_cast %170 : vector<1x1x16xf32> to vector<1x16xf32>
    %c0_57 = arith.constant 0 : index
    %c0_58 = arith.constant 0 : index
    %c0_59 = arith.constant 0 : index
    %172 = vector.load %arg12[%c0_57, %c0_58, %c0_59] : memref<2x1x16xf32, #tpu.memory_space<vmem>>, vector<1x1x16xf32>
    %173 = vector.shape_cast %172 : vector<1x1x16xf32> to vector<1x16xf32>
    %cst_60 = arith.constant dense<0.000000e+00> : vector<8xf32>
    %174 = vector.multi_reduction <add>, %169, %cst_60 [1] : vector<8x16xf32> to vector<8xf32>
    %175 = vector.shape_cast %174 : vector<8xf32> to vector<8x1xf32>
    %cst_61 = arith.constant 1.600000e+01 : f32
    %176 = vector.broadcast %cst_61 : f32 to vector<8x1xf32>
    %177 = arith.divf %175, %176 : vector<8x1xf32>
    %178 = vector.broadcast %177 : vector<8x1xf32> to vector<8x16xf32>
    %179 = arith.subf %169, %178 : vector<8x16xf32>
    %180 = arith.mulf %179, %179 : vector<8x16xf32>
    %cst_62 = arith.constant dense<0.000000e+00> : vector<8xf32>
    %181 = vector.multi_reduction <add>, %180, %cst_62 [1] : vector<8x16xf32> to vector<8xf32>
    %182 = vector.shape_cast %181 : vector<8xf32> to vector<8x1xf32>
    %cst_63 = arith.constant 1.600000e+01 : f32
    %183 = vector.broadcast %cst_63 : f32 to vector<8x1xf32>
    %184 = arith.divf %182, %183 : vector<8x1xf32>
    %cst_64 = arith.constant 9.99999974E-6 : f32
    %185 = vector.broadcast %cst_64 : f32 to vector<8x1xf32>
    %186 = arith.addf %184, %185 : vector<8x1xf32>
    %187 = math.rsqrt %186 : vector<8x1xf32>
    %188 = vector.broadcast %187 : vector<8x1xf32> to vector<8x16xf32>
    %189 = arith.mulf %179, %188 : vector<8x16xf32>
    %190 = vector.broadcast %171 : vector<1x16xf32> to vector<8x16xf32>
    %191 = arith.mulf %189, %190 : vector<8x16xf32>
    %192 = vector.broadcast %173 : vector<1x16xf32> to vector<8x16xf32>
    %193 = arith.addf %191, %192 : vector<8x16xf32>
    %c0_65 = arith.constant 0 : index
    %c0_66 = arith.constant 0 : index
    %c0_67 = arith.constant 0 : index
    %194 = vector.load %arg13[%c0_65, %c0_66, %c0_67] : memref<2x16x64xf32, #tpu.memory_space<vmem>>, vector<1x16x64xf32>
    %195 = vector.shape_cast %194 : vector<1x16x64xf32> to vector<16x64xf32>
    %196 = arith.truncf %193 : vector<8x16xf32> to vector<8x16xbf16>
    %197 = arith.truncf %195 : vector<16x64xf32> to vector<16x64xbf16>
    %cst_68 = arith.constant dense<0.000000e+00> : vector<8x64xf32>
    %198 = tpu.matmul %196, %197, %cst_68 {dimension_numbers = #tpu.dot_dimension_numbers<[1], [0], [0], [1], [0, 0, 1, 1], [], []>} : vector<8x16xbf16>, vector<16x64xbf16>, vector<8x64xf32> -> vector<8x64xf32>
    %c0_69 = arith.constant 0 : index
    %c0_70 = arith.constant 0 : index
    %c0_71 = arith.constant 0 : index
    %199 = vector.load %arg14[%c0_69, %c0_70, %c0_71] : memref<2x1x64xf32, #tpu.memory_space<vmem>>, vector<1x1x64xf32>
    %200 = vector.shape_cast %199 : vector<1x1x64xf32> to vector<1x64xf32>
    %201 = vector.broadcast %200 : vector<1x64xf32> to vector<8x64xf32>
    %202 = arith.addf %198, %201 : vector<8x64xf32>
    %cst_72 = arith.constant 5.000000e-01 : f32
    %203 = vector.broadcast %cst_72 : f32 to vector<8x64xf32>
    %204 = arith.mulf %203, %202 : vector<8x64xf32>
    %cst_73 = arith.constant 0.707106769 : f32
    %205 = vector.broadcast %cst_73 : f32 to vector<8x64xf32>
    %206 = arith.mulf %202, %205 : vector<8x64xf32>
    %cst_74 = arith.constant 0.000000e+00 : f32
    %207 = vector.broadcast %cst_74 : f32 to vector<8x64xf32>
    %208 = arith.cmpf oge, %206, %207 : vector<8x64xf32>
    %cst_75 = arith.constant 1.000000e+00 : f32
    %cst_76 = arith.constant -1.000000e+00 : f32
    %209 = vector.broadcast %cst_75 : f32 to vector<8x64xf32>
    %210 = vector.broadcast %cst_76 : f32 to vector<8x64xf32>
    %211 = arith.select %208, %209, %210 : vector<8x64xi1>, vector<8x64xf32>
    %212 = math.absf %206 : vector<8x64xf32>
    %cst_77 = arith.constant 0.327591091 : f32
    %213 = vector.broadcast %cst_77 : f32 to vector<8x64xf32>
    %214 = arith.mulf %213, %212 : vector<8x64xf32>
    %cst_78 = arith.constant 1.000000e+00 : f32
    %215 = vector.broadcast %cst_78 : f32 to vector<8x64xf32>
    %216 = arith.addf %215, %214 : vector<8x64xf32>
    %cst_79 = arith.constant 1.000000e+00 : f32
    %217 = vector.broadcast %cst_79 : f32 to vector<8x64xf32>
    %218 = arith.divf %217, %216 : vector<8x64xf32>
    %cst_80 = arith.constant 1.06140542 : f32
    %219 = vector.broadcast %cst_80 : f32 to vector<8x64xf32>
    %220 = arith.mulf %219, %218 : vector<8x64xf32>
    %cst_81 = arith.constant -1.45315206 : f32
    %221 = vector.broadcast %cst_81 : f32 to vector<8x64xf32>
    %222 = arith.addf %220, %221 : vector<8x64xf32>
    %223 = arith.mulf %222, %218 : vector<8x64xf32>
    %cst_82 = arith.constant 1.42141378 : f32
    %224 = vector.broadcast %cst_82 : f32 to vector<8x64xf32>
    %225 = arith.addf %223, %224 : vector<8x64xf32>
    %226 = arith.mulf %225, %218 : vector<8x64xf32>
    %cst_83 = arith.constant -0.284496725 : f32
    %227 = vector.broadcast %cst_83 : f32 to vector<8x64xf32>
    %228 = arith.addf %226, %227 : vector<8x64xf32>
    %229 = arith.mulf %228, %218 : vector<8x64xf32>
    %cst_84 = arith.constant 0.254829586 : f32
    %230 = vector.broadcast %cst_84 : f32 to vector<8x64xf32>
    %231 = arith.addf %229, %230 : vector<8x64xf32>
    %232 = arith.mulf %231, %218 : vector<8x64xf32>
    %cst_85 = arith.constant 0.000000e+00 : f32
    %233 = vector.broadcast %cst_85 : f32 to vector<8x64xf32>
    %234 = arith.subf %233, %212 : vector<8x64xf32>
    %235 = arith.mulf %234, %212 : vector<8x64xf32>
    %236 = math.exp %235 : vector<8x64xf32>
    %237 = arith.mulf %232, %236 : vector<8x64xf32>
    %cst_86 = arith.constant 1.000000e+00 : f32
    %238 = vector.broadcast %cst_86 : f32 to vector<8x64xf32>
    %239 = arith.subf %238, %237 : vector<8x64xf32>
    %240 = arith.mulf %211, %239 : vector<8x64xf32>
    %cst_87 = arith.constant 1.000000e+00 : f32
    %241 = vector.broadcast %cst_87 : f32 to vector<8x64xf32>
    %242 = arith.addf %241, %240 : vector<8x64xf32>
    %243 = arith.mulf %204, %242 : vector<8x64xf32>
    %c0_88 = arith.constant 0 : index
    %c0_89 = arith.constant 0 : index
    %c0_90 = arith.constant 0 : index
    %244 = vector.load %arg15[%c0_88, %c0_89, %c0_90] : memref<2x64x16xf32, #tpu.memory_space<vmem>>, vector<1x64x16xf32>
    %245 = vector.shape_cast %244 : vector<1x64x16xf32> to vector<64x16xf32>
    %246 = arith.truncf %243 : vector<8x64xf32> to vector<8x64xbf16>
    %247 = arith.truncf %245 : vector<64x16xf32> to vector<64x16xbf16>
    %cst_91 = arith.constant dense<0.000000e+00> : vector<8x16xf32>
    %248 = tpu.matmul %246, %247, %cst_91 {dimension_numbers = #tpu.dot_dimension_numbers<[1], [0], [0], [1], [0, 0, 1, 1], [], []>} : vector<8x64xbf16>, vector<64x16xbf16>, vector<8x16xf32> -> vector<8x16xf32>
    %249 = arith.addf %169, %248 : vector<8x16xf32>
    %c0_92 = arith.constant 0 : index
    %c0_93 = arith.constant 0 : index
    %c0_94 = arith.constant 0 : index
    %250 = vector.load %arg16[%c0_92, %c0_93, %c0_94] : memref<2x1x16xf32, #tpu.memory_space<vmem>>, vector<1x1x16xf32>
    %251 = vector.shape_cast %250 : vector<1x1x16xf32> to vector<1x16xf32>
    %252 = vector.broadcast %251 : vector<1x16xf32> to vector<8x16xf32>
    %253 = arith.addf %249, %252 : vector<8x16xf32>
    %c1 = arith.constant 1 : index
    %c0_95 = arith.constant 0 : index
    %c0_96 = arith.constant 0 : index
    %254 = vector.load %arg4[%c1, %c0_95, %c0_96] : memref<2x1x16xf32, #tpu.memory_space<vmem>>, vector<1x1x16xf32>
    %255 = vector.shape_cast %254 : vector<1x1x16xf32> to vector<1x16xf32>
    %c1_97 = arith.constant 1 : index
    %c0_98 = arith.constant 0 : index
    %c0_99 = arith.constant 0 : index
    %256 = vector.load %arg5[%c1_97, %c0_98, %c0_99] : memref<2x1x16xf32, #tpu.memory_space<vmem>>, vector<1x1x16xf32>
    %257 = vector.shape_cast %256 : vector<1x1x16xf32> to vector<1x16xf32>
    %cst_100 = arith.constant dense<0.000000e+00> : vector<8xf32>
    %258 = vector.multi_reduction <add>, %253, %cst_100 [1] : vector<8x16xf32> to vector<8xf32>
    %259 = vector.shape_cast %258 : vector<8xf32> to vector<8x1xf32>
    %cst_101 = arith.constant 1.600000e+01 : f32
    %260 = vector.broadcast %cst_101 : f32 to vector<8x1xf32>
    %261 = arith.divf %259, %260 : vector<8x1xf32>
    %262 = vector.broadcast %261 : vector<8x1xf32> to vector<8x16xf32>
    %263 = arith.subf %253, %262 : vector<8x16xf32>
    %264 = arith.mulf %263, %263 : vector<8x16xf32>
    %cst_102 = arith.constant dense<0.000000e+00> : vector<8xf32>
    %265 = vector.multi_reduction <add>, %264, %cst_102 [1] : vector<8x16xf32> to vector<8xf32>
    %266 = vector.shape_cast %265 : vector<8xf32> to vector<8x1xf32>
    %cst_103 = arith.constant 1.600000e+01 : f32
    %267 = vector.broadcast %cst_103 : f32 to vector<8x1xf32>
    %268 = arith.divf %266, %267 : vector<8x1xf32>
    %cst_104 = arith.constant 9.99999974E-6 : f32
    %269 = vector.broadcast %cst_104 : f32 to vector<8x1xf32>
    %270 = arith.addf %268, %269 : vector<8x1xf32>
    %271 = math.rsqrt %270 : vector<8x1xf32>
    %272 = vector.broadcast %271 : vector<8x1xf32> to vector<8x16xf32>
    %273 = arith.mulf %263, %272 : vector<8x16xf32>
    %274 = vector.broadcast %255 : vector<1x16xf32> to vector<8x16xf32>
    %275 = arith.mulf %273, %274 : vector<8x16xf32>
    %276 = vector.broadcast %257 : vector<1x16xf32> to vector<8x16xf32>
    %277 = arith.addf %275, %276 : vector<8x16xf32>
    %c1_105 = arith.constant 1 : index
    %c0_106 = arith.constant 0 : index
    %c0_107 = arith.constant 0 : index
    %278 = vector.load %arg6[%c1_105, %c0_106, %c0_107] : memref<2x16x8xf32, #tpu.memory_space<vmem>>, vector<1x16x8xf32>
    %279 = vector.shape_cast %278 : vector<1x16x8xf32> to vector<16x8xf32>
    %280 = arith.truncf %277 : vector<8x16xf32> to vector<8x16xbf16>
    %281 = arith.truncf %279 : vector<16x8xf32> to vector<16x8xbf16>
    %cst_108 = arith.constant dense<0.000000e+00> : vector<8x8xf32>
    %282 = tpu.matmul %280, %281, %cst_108 {dimension_numbers = #tpu.dot_dimension_numbers<[1], [0], [0], [1], [0, 0, 1, 1], [], []>} : vector<8x16xbf16>, vector<16x8xbf16>, vector<8x8xf32> -> vector<8x8xf32>
    %cst_109 = arith.constant 0.707106769 : f32
    %283 = vector.broadcast %cst_109 : f32 to vector<8x8xf32>
    %284 = arith.mulf %282, %283 : vector<8x8xf32>
    %c1_110 = arith.constant 1 : index
    %c0_111 = arith.constant 0 : index
    %c0_112 = arith.constant 0 : index
    %285 = vector.load %arg7[%c1_110, %c0_111, %c0_112] : memref<2x32x8xf32, #tpu.memory_space<vmem>>, vector<1x32x8xf32>
    %286 = vector.shape_cast %285 : vector<1x32x8xf32> to vector<32x8xf32>
    %287 = arith.truncf %1 : vector<2x32xf32> to vector<2x32xbf16>
    %288 = arith.truncf %286 : vector<32x8xf32> to vector<32x8xbf16>
    %cst_113 = arith.constant dense<0.000000e+00> : vector<2x8xf32>
    %289 = tpu.matmul %287, %288, %cst_113 {dimension_numbers = #tpu.dot_dimension_numbers<[1], [0], [0], [1], [0, 0, 1, 1], [], []>} : vector<2x32xbf16>, vector<32x8xbf16>, vector<2x8xf32> -> vector<2x8xf32>
    %c1_114 = arith.constant 1 : index
    %c0_115 = arith.constant 0 : index
    %c0_116 = arith.constant 0 : index
    %290 = vector.load %arg8[%c1_114, %c0_115, %c0_116] : memref<2x32x8xf32, #tpu.memory_space<vmem>>, vector<1x32x8xf32>
    %291 = vector.shape_cast %290 : vector<1x32x8xf32> to vector<32x8xf32>
    %292 = arith.truncf %1 : vector<2x32xf32> to vector<2x32xbf16>
    %293 = arith.truncf %291 : vector<32x8xf32> to vector<32x8xbf16>
    %cst_117 = arith.constant dense<0.000000e+00> : vector<2x8xf32>
    %294 = tpu.matmul %292, %293, %cst_117 {dimension_numbers = #tpu.dot_dimension_numbers<[1], [0], [0], [1], [0, 0, 1, 1], [], []>} : vector<2x32xbf16>, vector<32x8xbf16>, vector<2x8xf32> -> vector<2x8xf32>
    %295 = tpu.iota {dimensions = array<i32: 1>} : vector<1x8xi32>
    %c0_i32_118 = arith.constant 0 : i32
    %296 = vector.broadcast %c0_i32_118 : i32 to vector<1x8xi32>
    %297 = arith.cmpi sge, %295, %296 : vector<1x8xi32>
    %c2_i32_119 = arith.constant 2 : i32
    %298 = vector.broadcast %c2_i32_119 : i32 to vector<1x8xi32>
    %299 = arith.cmpi slt, %295, %298 : vector<1x8xi32>
    %300 = arith.andi %297, %299 : vector<1x8xi1>
    %301 = arith.extui %300 : vector<1x8xi1> to vector<1x8xi32>
    %302 = arith.sitofp %301 : vector<1x8xi32> to vector<1x8xf32>
    %303 = vector.broadcast %302 : vector<1x8xf32> to vector<8x8xf32>
    %304 = arith.mulf %284, %303 : vector<8x8xf32>
    %305 = arith.truncf %304 : vector<8x8xf32> to vector<8x8xbf16>
    %306 = arith.truncf %289 : vector<2x8xf32> to vector<2x8xbf16>
    %cst_120 = arith.constant dense<0.000000e+00> : vector<8x2xf32>
    %307 = tpu.matmul %305, %306, %cst_120 {dimension_numbers = #tpu.dot_dimension_numbers<[1], [1], [0], [0], [0, 0, 1, 0], [], []>} : vector<8x8xbf16>, vector<2x8xbf16>, vector<8x2xf32> -> vector<8x2xf32>
    %308 = arith.addf %307, %2 : vector<8x2xf32>
    %cst_121 = arith.constant dense<0xFF800000> : vector<8xf32>
    %309 = vector.multi_reduction <maximumf>, %308, %cst_121 [1] : vector<8x2xf32> to vector<8xf32>
    %310 = vector.shape_cast %309 : vector<8xf32> to vector<8x1xf32>
    %311 = vector.broadcast %310 : vector<8x1xf32> to vector<8x2xf32>
    %312 = arith.subf %308, %311 : vector<8x2xf32>
    %313 = math.exp %312 : vector<8x2xf32>
    %cst_122 = arith.constant dense<0.000000e+00> : vector<8xf32>
    %314 = vector.multi_reduction <add>, %313, %cst_122 [1] : vector<8x2xf32> to vector<8xf32>
    %315 = vector.shape_cast %314 : vector<8xf32> to vector<8x1xf32>
    %316 = tpu.reciprocal %315 {approx = true} : vector<8x1xf32> -> vector<8x1xf32>
    %317 = vector.broadcast %316 : vector<8x1xf32> to vector<8x2xf32>
    %318 = arith.mulf %313, %317 : vector<8x2xf32>
    %319 = vector.broadcast %302 : vector<1x8xf32> to vector<2x8xf32>
    %320 = arith.mulf %294, %319 : vector<2x8xf32>
    %321 = arith.truncf %318 : vector<8x2xf32> to vector<8x2xbf16>
    %322 = arith.truncf %320 : vector<2x8xf32> to vector<2x8xbf16>
    %cst_123 = arith.constant dense<0.000000e+00> : vector<8x8xf32>
    %323 = tpu.matmul %321, %322, %cst_123 {dimension_numbers = #tpu.dot_dimension_numbers<[1], [0], [0], [1], [0, 0, 1, 1], [], []>} : vector<8x2xbf16>, vector<2x8xbf16>, vector<8x8xf32> -> vector<8x8xf32>
    %c2_i32_124 = arith.constant 2 : i32
    %324 = vector.broadcast %c2_i32_124 : i32 to vector<1x8xi32>
    %325 = arith.cmpi sge, %295, %324 : vector<1x8xi32>
    %c4_i32_125 = arith.constant 4 : i32
    %326 = vector.broadcast %c4_i32_125 : i32 to vector<1x8xi32>
    %327 = arith.cmpi slt, %295, %326 : vector<1x8xi32>
    %328 = arith.andi %325, %327 : vector<1x8xi1>
    %329 = arith.extui %328 : vector<1x8xi1> to vector<1x8xi32>
    %330 = arith.sitofp %329 : vector<1x8xi32> to vector<1x8xf32>
    %331 = vector.broadcast %330 : vector<1x8xf32> to vector<8x8xf32>
    %332 = arith.mulf %284, %331 : vector<8x8xf32>
    %333 = arith.truncf %332 : vector<8x8xf32> to vector<8x8xbf16>
    %334 = arith.truncf %289 : vector<2x8xf32> to vector<2x8xbf16>
    %cst_126 = arith.constant dense<0.000000e+00> : vector<8x2xf32>
    %335 = tpu.matmul %333, %334, %cst_126 {dimension_numbers = #tpu.dot_dimension_numbers<[1], [1], [0], [0], [0, 0, 1, 0], [], []>} : vector<8x8xbf16>, vector<2x8xbf16>, vector<8x2xf32> -> vector<8x2xf32>
    %336 = arith.addf %335, %2 : vector<8x2xf32>
    %cst_127 = arith.constant dense<0xFF800000> : vector<8xf32>
    %337 = vector.multi_reduction <maximumf>, %336, %cst_127 [1] : vector<8x2xf32> to vector<8xf32>
    %338 = vector.shape_cast %337 : vector<8xf32> to vector<8x1xf32>
    %339 = vector.broadcast %338 : vector<8x1xf32> to vector<8x2xf32>
    %340 = arith.subf %336, %339 : vector<8x2xf32>
    %341 = math.exp %340 : vector<8x2xf32>
    %cst_128 = arith.constant dense<0.000000e+00> : vector<8xf32>
    %342 = vector.multi_reduction <add>, %341, %cst_128 [1] : vector<8x2xf32> to vector<8xf32>
    %343 = vector.shape_cast %342 : vector<8xf32> to vector<8x1xf32>
    %344 = tpu.reciprocal %343 {approx = true} : vector<8x1xf32> -> vector<8x1xf32>
    %345 = vector.broadcast %344 : vector<8x1xf32> to vector<8x2xf32>
    %346 = arith.mulf %341, %345 : vector<8x2xf32>
    %347 = vector.broadcast %330 : vector<1x8xf32> to vector<2x8xf32>
    %348 = arith.mulf %294, %347 : vector<2x8xf32>
    %349 = arith.truncf %346 : vector<8x2xf32> to vector<8x2xbf16>
    %350 = arith.truncf %348 : vector<2x8xf32> to vector<2x8xbf16>
    %cst_129 = arith.constant dense<0.000000e+00> : vector<8x8xf32>
    %351 = tpu.matmul %349, %350, %cst_129 {dimension_numbers = #tpu.dot_dimension_numbers<[1], [0], [0], [1], [0, 0, 1, 1], [], []>} : vector<8x2xbf16>, vector<2x8xbf16>, vector<8x8xf32> -> vector<8x8xf32>
    %352 = arith.addf %323, %351 : vector<8x8xf32>
    %c4_i32_130 = arith.constant 4 : i32
    %353 = vector.broadcast %c4_i32_130 : i32 to vector<1x8xi32>
    %354 = arith.cmpi sge, %295, %353 : vector<1x8xi32>
    %c6_i32_131 = arith.constant 6 : i32
    %355 = vector.broadcast %c6_i32_131 : i32 to vector<1x8xi32>
    %356 = arith.cmpi slt, %295, %355 : vector<1x8xi32>
    %357 = arith.andi %354, %356 : vector<1x8xi1>
    %358 = arith.extui %357 : vector<1x8xi1> to vector<1x8xi32>
    %359 = arith.sitofp %358 : vector<1x8xi32> to vector<1x8xf32>
    %360 = vector.broadcast %359 : vector<1x8xf32> to vector<8x8xf32>
    %361 = arith.mulf %284, %360 : vector<8x8xf32>
    %362 = arith.truncf %361 : vector<8x8xf32> to vector<8x8xbf16>
    %363 = arith.truncf %289 : vector<2x8xf32> to vector<2x8xbf16>
    %cst_132 = arith.constant dense<0.000000e+00> : vector<8x2xf32>
    %364 = tpu.matmul %362, %363, %cst_132 {dimension_numbers = #tpu.dot_dimension_numbers<[1], [1], [0], [0], [0, 0, 1, 0], [], []>} : vector<8x8xbf16>, vector<2x8xbf16>, vector<8x2xf32> -> vector<8x2xf32>
    %365 = arith.addf %364, %2 : vector<8x2xf32>
    %cst_133 = arith.constant dense<0xFF800000> : vector<8xf32>
    %366 = vector.multi_reduction <maximumf>, %365, %cst_133 [1] : vector<8x2xf32> to vector<8xf32>
    %367 = vector.shape_cast %366 : vector<8xf32> to vector<8x1xf32>
    %368 = vector.broadcast %367 : vector<8x1xf32> to vector<8x2xf32>
    %369 = arith.subf %365, %368 : vector<8x2xf32>
    %370 = math.exp %369 : vector<8x2xf32>
    %cst_134 = arith.constant dense<0.000000e+00> : vector<8xf32>
    %371 = vector.multi_reduction <add>, %370, %cst_134 [1] : vector<8x2xf32> to vector<8xf32>
    %372 = vector.shape_cast %371 : vector<8xf32> to vector<8x1xf32>
    %373 = tpu.reciprocal %372 {approx = true} : vector<8x1xf32> -> vector<8x1xf32>
    %374 = vector.broadcast %373 : vector<8x1xf32> to vector<8x2xf32>
    %375 = arith.mulf %370, %374 : vector<8x2xf32>
    %376 = vector.broadcast %359 : vector<1x8xf32> to vector<2x8xf32>
    %377 = arith.mulf %294, %376 : vector<2x8xf32>
    %378 = arith.truncf %375 : vector<8x2xf32> to vector<8x2xbf16>
    %379 = arith.truncf %377 : vector<2x8xf32> to vector<2x8xbf16>
    %cst_135 = arith.constant dense<0.000000e+00> : vector<8x8xf32>
    %380 = tpu.matmul %378, %379, %cst_135 {dimension_numbers = #tpu.dot_dimension_numbers<[1], [0], [0], [1], [0, 0, 1, 1], [], []>} : vector<8x2xbf16>, vector<2x8xbf16>, vector<8x8xf32> -> vector<8x8xf32>
    %381 = arith.addf %352, %380 : vector<8x8xf32>
    %c6_i32_136 = arith.constant 6 : i32
    %382 = vector.broadcast %c6_i32_136 : i32 to vector<1x8xi32>
    %383 = arith.cmpi sge, %295, %382 : vector<1x8xi32>
    %c8_i32_137 = arith.constant 8 : i32
    %384 = vector.broadcast %c8_i32_137 : i32 to vector<1x8xi32>
    %385 = arith.cmpi slt, %295, %384 : vector<1x8xi32>
    %386 = arith.andi %383, %385 : vector<1x8xi1>
    %387 = arith.extui %386 : vector<1x8xi1> to vector<1x8xi32>
    %388 = arith.sitofp %387 : vector<1x8xi32> to vector<1x8xf32>
    %389 = vector.broadcast %388 : vector<1x8xf32> to vector<8x8xf32>
    %390 = arith.mulf %284, %389 : vector<8x8xf32>
    %391 = arith.truncf %390 : vector<8x8xf32> to vector<8x8xbf16>
    %392 = arith.truncf %289 : vector<2x8xf32> to vector<2x8xbf16>
    %cst_138 = arith.constant dense<0.000000e+00> : vector<8x2xf32>
    %393 = tpu.matmul %391, %392, %cst_138 {dimension_numbers = #tpu.dot_dimension_numbers<[1], [1], [0], [0], [0, 0, 1, 0], [], []>} : vector<8x8xbf16>, vector<2x8xbf16>, vector<8x2xf32> -> vector<8x2xf32>
    %394 = arith.addf %393, %2 : vector<8x2xf32>
    %cst_139 = arith.constant dense<0xFF800000> : vector<8xf32>
    %395 = vector.multi_reduction <maximumf>, %394, %cst_139 [1] : vector<8x2xf32> to vector<8xf32>
    %396 = vector.shape_cast %395 : vector<8xf32> to vector<8x1xf32>
    %397 = vector.broadcast %396 : vector<8x1xf32> to vector<8x2xf32>
    %398 = arith.subf %394, %397 : vector<8x2xf32>
    %399 = math.exp %398 : vector<8x2xf32>
    %cst_140 = arith.constant dense<0.000000e+00> : vector<8xf32>
    %400 = vector.multi_reduction <add>, %399, %cst_140 [1] : vector<8x2xf32> to vector<8xf32>
    %401 = vector.shape_cast %400 : vector<8xf32> to vector<8x1xf32>
    %402 = tpu.reciprocal %401 {approx = true} : vector<8x1xf32> -> vector<8x1xf32>
    %403 = vector.broadcast %402 : vector<8x1xf32> to vector<8x2xf32>
    %404 = arith.mulf %399, %403 : vector<8x2xf32>
    %405 = vector.broadcast %388 : vector<1x8xf32> to vector<2x8xf32>
    %406 = arith.mulf %294, %405 : vector<2x8xf32>
    %407 = arith.truncf %404 : vector<8x2xf32> to vector<8x2xbf16>
    %408 = arith.truncf %406 : vector<2x8xf32> to vector<2x8xbf16>
    %cst_141 = arith.constant dense<0.000000e+00> : vector<8x8xf32>
    %409 = tpu.matmul %407, %408, %cst_141 {dimension_numbers = #tpu.dot_dimension_numbers<[1], [0], [0], [1], [0, 0, 1, 1], [], []>} : vector<8x2xbf16>, vector<2x8xbf16>, vector<8x8xf32> -> vector<8x8xf32>
    %410 = arith.addf %381, %409 : vector<8x8xf32>
    %c1_142 = arith.constant 1 : index
    %c0_143 = arith.constant 0 : index
    %c0_144 = arith.constant 0 : index
    %411 = vector.load %arg9[%c1_142, %c0_143, %c0_144] : memref<2x8x16xf32, #tpu.memory_space<vmem>>, vector<1x8x16xf32>
    %412 = vector.shape_cast %411 : vector<1x8x16xf32> to vector<8x16xf32>
    %413 = arith.truncf %410 : vector<8x8xf32> to vector<8x8xbf16>
    %414 = arith.truncf %412 : vector<8x16xf32> to vector<8x16xbf16>
    %cst_145 = arith.constant dense<0.000000e+00> : vector<8x16xf32>
    %415 = tpu.matmul %413, %414, %cst_145 {dimension_numbers = #tpu.dot_dimension_numbers<[1], [0], [0], [1], [0, 0, 1, 1], [], []>} : vector<8x8xbf16>, vector<8x16xbf16>, vector<8x16xf32> -> vector<8x16xf32>
    %416 = arith.addf %253, %415 : vector<8x16xf32>
    %c1_146 = arith.constant 1 : index
    %c0_147 = arith.constant 0 : index
    %c0_148 = arith.constant 0 : index
    %417 = vector.load %arg10[%c1_146, %c0_147, %c0_148] : memref<2x1x16xf32, #tpu.memory_space<vmem>>, vector<1x1x16xf32>
    %418 = vector.shape_cast %417 : vector<1x1x16xf32> to vector<1x16xf32>
    %419 = vector.broadcast %418 : vector<1x16xf32> to vector<8x16xf32>
    %420 = arith.addf %416, %419 : vector<8x16xf32>
    %c1_149 = arith.constant 1 : index
    %c0_150 = arith.constant 0 : index
    %c0_151 = arith.constant 0 : index
    %421 = vector.load %arg11[%c1_149, %c0_150, %c0_151] : memref<2x1x16xf32, #tpu.memory_space<vmem>>, vector<1x1x16xf32>
    %422 = vector.shape_cast %421 : vector<1x1x16xf32> to vector<1x16xf32>
    %c1_152 = arith.constant 1 : index
    %c0_153 = arith.constant 0 : index
    %c0_154 = arith.constant 0 : index
    %423 = vector.load %arg12[%c1_152, %c0_153, %c0_154] : memref<2x1x16xf32, #tpu.memory_space<vmem>>, vector<1x1x16xf32>
    %424 = vector.shape_cast %423 : vector<1x1x16xf32> to vector<1x16xf32>
    %cst_155 = arith.constant dense<0.000000e+00> : vector<8xf32>
    %425 = vector.multi_reduction <add>, %420, %cst_155 [1] : vector<8x16xf32> to vector<8xf32>
    %426 = vector.shape_cast %425 : vector<8xf32> to vector<8x1xf32>
    %cst_156 = arith.constant 1.600000e+01 : f32
    %427 = vector.broadcast %cst_156 : f32 to vector<8x1xf32>
    %428 = arith.divf %426, %427 : vector<8x1xf32>
    %429 = vector.broadcast %428 : vector<8x1xf32> to vector<8x16xf32>
    %430 = arith.subf %420, %429 : vector<8x16xf32>
    %431 = arith.mulf %430, %430 : vector<8x16xf32>
    %cst_157 = arith.constant dense<0.000000e+00> : vector<8xf32>
    %432 = vector.multi_reduction <add>, %431, %cst_157 [1] : vector<8x16xf32> to vector<8xf32>
    %433 = vector.shape_cast %432 : vector<8xf32> to vector<8x1xf32>
    %cst_158 = arith.constant 1.600000e+01 : f32
    %434 = vector.broadcast %cst_158 : f32 to vector<8x1xf32>
    %435 = arith.divf %433, %434 : vector<8x1xf32>
    %cst_159 = arith.constant 9.99999974E-6 : f32
    %436 = vector.broadcast %cst_159 : f32 to vector<8x1xf32>
    %437 = arith.addf %435, %436 : vector<8x1xf32>
    %438 = math.rsqrt %437 : vector<8x1xf32>
    %439 = vector.broadcast %438 : vector<8x1xf32> to vector<8x16xf32>
    %440 = arith.mulf %430, %439 : vector<8x16xf32>
    %441 = vector.broadcast %422 : vector<1x16xf32> to vector<8x16xf32>
    %442 = arith.mulf %440, %441 : vector<8x16xf32>
    %443 = vector.broadcast %424 : vector<1x16xf32> to vector<8x16xf32>
    %444 = arith.addf %442, %443 : vector<8x16xf32>
    %c1_160 = arith.constant 1 : index
    %c0_161 = arith.constant 0 : index
    %c0_162 = arith.constant 0 : index
    %445 = vector.load %arg13[%c1_160, %c0_161, %c0_162] : memref<2x16x64xf32, #tpu.memory_space<vmem>>, vector<1x16x64xf32>
    %446 = vector.shape_cast %445 : vector<1x16x64xf32> to vector<16x64xf32>
    %447 = arith.truncf %444 : vector<8x16xf32> to vector<8x16xbf16>
    %448 = arith.truncf %446 : vector<16x64xf32> to vector<16x64xbf16>
    %cst_163 = arith.constant dense<0.000000e+00> : vector<8x64xf32>
    %449 = tpu.matmul %447, %448, %cst_163 {dimension_numbers = #tpu.dot_dimension_numbers<[1], [0], [0], [1], [0, 0, 1, 1], [], []>} : vector<8x16xbf16>, vector<16x64xbf16>, vector<8x64xf32> -> vector<8x64xf32>
    %c1_164 = arith.constant 1 : index
    %c0_165 = arith.constant 0 : index
    %c0_166 = arith.constant 0 : index
    %450 = vector.load %arg14[%c1_164, %c0_165, %c0_166] : memref<2x1x64xf32, #tpu.memory_space<vmem>>, vector<1x1x64xf32>
    %451 = vector.shape_cast %450 : vector<1x1x64xf32> to vector<1x64xf32>
    %452 = vector.broadcast %451 : vector<1x64xf32> to vector<8x64xf32>
    %453 = arith.addf %449, %452 : vector<8x64xf32>
    %cst_167 = arith.constant 5.000000e-01 : f32
    %454 = vector.broadcast %cst_167 : f32 to vector<8x64xf32>
    %455 = arith.mulf %454, %453 : vector<8x64xf32>
    %cst_168 = arith.constant 0.707106769 : f32
    %456 = vector.broadcast %cst_168 : f32 to vector<8x64xf32>
    %457 = arith.mulf %453, %456 : vector<8x64xf32>
    %cst_169 = arith.constant 0.000000e+00 : f32
    %458 = vector.broadcast %cst_169 : f32 to vector<8x64xf32>
    %459 = arith.cmpf oge, %457, %458 : vector<8x64xf32>
    %cst_170 = arith.constant 1.000000e+00 : f32
    %cst_171 = arith.constant -1.000000e+00 : f32
    %460 = vector.broadcast %cst_170 : f32 to vector<8x64xf32>
    %461 = vector.broadcast %cst_171 : f32 to vector<8x64xf32>
    %462 = arith.select %459, %460, %461 : vector<8x64xi1>, vector<8x64xf32>
    %463 = math.absf %457 : vector<8x64xf32>
    %cst_172 = arith.constant 0.327591091 : f32
    %464 = vector.broadcast %cst_172 : f32 to vector<8x64xf32>
    %465 = arith.mulf %464, %463 : vector<8x64xf32>
    %cst_173 = arith.constant 1.000000e+00 : f32
    %466 = vector.broadcast %cst_173 : f32 to vector<8x64xf32>
    %467 = arith.addf %466, %465 : vector<8x64xf32>
    %cst_174 = arith.constant 1.000000e+00 : f32
    %468 = vector.broadcast %cst_174 : f32 to vector<8x64xf32>
    %469 = arith.divf %468, %467 : vector<8x64xf32>
    %cst_175 = arith.constant 1.06140542 : f32
    %470 = vector.broadcast %cst_175 : f32 to vector<8x64xf32>
    %471 = arith.mulf %470, %469 : vector<8x64xf32>
    %cst_176 = arith.constant -1.45315206 : f32
    %472 = vector.broadcast %cst_176 : f32 to vector<8x64xf32>
    %473 = arith.addf %471, %472 : vector<8x64xf32>
    %474 = arith.mulf %473, %469 : vector<8x64xf32>
    %cst_177 = arith.constant 1.42141378 : f32
    %475 = vector.broadcast %cst_177 : f32 to vector<8x64xf32>
    %476 = arith.addf %474, %475 : vector<8x64xf32>
    %477 = arith.mulf %476, %469 : vector<8x64xf32>
    %cst_178 = arith.constant -0.284496725 : f32
    %478 = vector.broadcast %cst_178 : f32 to vector<8x64xf32>
    %479 = arith.addf %477, %478 : vector<8x64xf32>
    %480 = arith.mulf %479, %469 : vector<8x64xf32>
    %cst_179 = arith.constant 0.254829586 : f32
    %481 = vector.broadcast %cst_179 : f32 to vector<8x64xf32>
    %482 = arith.addf %480, %481 : vector<8x64xf32>
    %483 = arith.mulf %482, %469 : vector<8x64xf32>
    %cst_180 = arith.constant 0.000000e+00 : f32
    %484 = vector.broadcast %cst_180 : f32 to vector<8x64xf32>
    %485 = arith.subf %484, %463 : vector<8x64xf32>
    %486 = arith.mulf %485, %463 : vector<8x64xf32>
    %487 = math.exp %486 : vector<8x64xf32>
    %488 = arith.mulf %483, %487 : vector<8x64xf32>
    %cst_181 = arith.constant 1.000000e+00 : f32
    %489 = vector.broadcast %cst_181 : f32 to vector<8x64xf32>
    %490 = arith.subf %489, %488 : vector<8x64xf32>
    %491 = arith.mulf %462, %490 : vector<8x64xf32>
    %cst_182 = arith.constant 1.000000e+00 : f32
    %492 = vector.broadcast %cst_182 : f32 to vector<8x64xf32>
    %493 = arith.addf %492, %491 : vector<8x64xf32>
    %494 = arith.mulf %455, %493 : vector<8x64xf32>
    %c1_183 = arith.constant 1 : index
    %c0_184 = arith.constant 0 : index
    %c0_185 = arith.constant 0 : index
    %495 = vector.load %arg15[%c1_183, %c0_184, %c0_185] : memref<2x64x16xf32, #tpu.memory_space<vmem>>, vector<1x64x16xf32>
    %496 = vector.shape_cast %495 : vector<1x64x16xf32> to vector<64x16xf32>
    %497 = arith.truncf %494 : vector<8x64xf32> to vector<8x64xbf16>
    %498 = arith.truncf %496 : vector<64x16xf32> to vector<64x16xbf16>
    %cst_186 = arith.constant dense<0.000000e+00> : vector<8x16xf32>
    %499 = tpu.matmul %497, %498, %cst_186 {dimension_numbers = #tpu.dot_dimension_numbers<[1], [0], [0], [1], [0, 0, 1, 1], [], []>} : vector<8x64xbf16>, vector<64x16xbf16>, vector<8x16xf32> -> vector<8x16xf32>
    %500 = arith.addf %420, %499 : vector<8x16xf32>
    %c1_187 = arith.constant 1 : index
    %c0_188 = arith.constant 0 : index
    %c0_189 = arith.constant 0 : index
    %501 = vector.load %arg16[%c1_187, %c0_188, %c0_189] : memref<2x1x16xf32, #tpu.memory_space<vmem>>, vector<1x1x16xf32>
    %502 = vector.shape_cast %501 : vector<1x1x16xf32> to vector<1x16xf32>
    %503 = vector.broadcast %502 : vector<1x16xf32> to vector<8x16xf32>
    %504 = arith.addf %500, %503 : vector<8x16xf32>
    %c0_190 = arith.constant 0 : index
    %c0_191 = arith.constant 0 : index
    %505 = vector.load %arg17[%c0_190, %c0_191] : memref<16x192xf32, #tpu.memory_space<vmem>>, vector<16x192xf32>
    %506 = arith.truncf %504 : vector<8x16xf32> to vector<8x16xbf16>
    %507 = arith.truncf %505 : vector<16x192xf32> to vector<16x192xbf16>
    %cst_192 = arith.constant dense<0.000000e+00> : vector<8x192xf32>
    %508 = tpu.matmul %506, %507, %cst_192 {dimension_numbers = #tpu.dot_dimension_numbers<[1], [0], [0], [1], [0, 0, 1, 1], [], []>} : vector<8x16xbf16>, vector<16x192xbf16>, vector<8x192xf32> -> vector<8x192xf32>
    %c0_193 = arith.constant 0 : index
    %c0_194 = arith.constant 0 : index
    %509 = vector.load %arg18[%c0_193, %c0_194] : memref<1x192xf32, #tpu.memory_space<vmem>>, vector<1x192xf32>
    %510 = vector.broadcast %509 : vector<1x192xf32> to vector<8x192xf32>
    %511 = arith.addf %508, %510 : vector<8x192xf32>
    %c0_195 = arith.constant 0 : index
    %c0_196 = arith.constant 0 : index
    %512 = vector.load %arg19[%c0_195, %c0_196] : memref<8x192xf32, #tpu.memory_space<vmem>>, vector<8x192xf32>
    tpu.vector_store %arg19[%c0_195, %c0_196], %511 {strides = array<i32>} : memref<8x192xf32, #tpu.memory_space<vmem>>, vector<8x192xf32>,
    return
  }
  func.func @transform_0(%arg0: i32) -> (i32, i32) {
    %c0_i32 = arith.constant 0 : i32
    %c0_i32_0 = arith.constant 0 : i32
    %c0_i32_1 = arith.constant 0 : i32
    return %c0_i32, %c0_i32_0 : i32, i32
  }
  func.func @transform_1(%arg0: i32) -> (i32, i32) {
    %c0_i32 = arith.constant 0 : i32
    %c0_i32_0 = arith.constant 0 : i32
    %c0_i32_1 = arith.constant 0 : i32
    return %c0_i32, %c0_i32_0 : i32, i32
  }
  func.func @transform_2(%arg0: i32) -> (i32, i32) {
    %c0_i32 = arith.constant 0 : i32
    %c0_i32_0 = arith.constant 0 : i32
    %c0_i32_1 = arith.constant 0 : i32
    return %c0_i32, %c0_i32_0 : i32, i32
  }
  func.func @transform_3(%arg0: i32) -> (i32, i32, i32) {
    %c0_i32 = arith.constant 0 : i32
    %c0_i32_0 = arith.constant 0 : i32
    %c0_i32_1 = arith.constant 0 : i32
    %c0_i32_2 = arith.constant 0 : i32
    return %c0_i32, %c0_i32_0, %c0_i32_1 : i32, i32, i32
  }
  func.func @transform_4(%arg0: i32) -> (i32, i32, i32) {
    %c0_i32 = arith.constant 0 : i32
    %c0_i32_0 = arith.constant 0 : i32
    %c0_i32_1 = arith.constant 0 : i32
    %c0_i32_2 = arith.constant 0 : i32
    return %c0_i32, %c0_i32_0, %c0_i32_1 : i32, i32, i32
  }
  func.func @transform_5(%arg0: i32) -> (i32, i32, i32) {
    %c0_i32 = arith.constant 0 : i32
    %c0_i32_0 = arith.constant 0 : i32
    %c0_i32_1 = arith.constant 0 : i32
    %c0_i32_2 = arith.constant 0 : i32
    return %c0_i32, %c0_i32_0, %c0_i32_1 : i32, i32, i32
  }
  func.func @transform_6(%arg0: i32) -> (i32, i32, i32) {
    %c0_i32 = arith.constant 0 : i32
    %c0_i32_0 = arith.constant 0 : i32
    %c0_i32_1 = arith.constant 0 : i32
    %c0_i32_2 = arith.constant 0 : i32
    return %c0_i32, %c0_i32_0, %c0_i32_1 : i32, i32, i32
  }
  func.func @transform_7(%arg0: i32) -> (i32, i32, i32) {
    %c0_i32 = arith.constant 0 : i32
    %c0_i32_0 = arith.constant 0 : i32
    %c0_i32_1 = arith.constant 0 : i32
    %c0_i32_2 = arith.constant 0 : i32
    return %c0_i32, %c0_i32_0, %c0_i32_1 : i32, i32, i32
  }
  func.func @transform_8(%arg0: i32) -> (i32, i32, i32) {
    %c0_i32 = arith.constant 0 : i32
    %c0_i32_0 = arith.constant 0 : i32
    %c0_i32_1 = arith.constant 0 : i32
    %c0_i32_2 = arith.constant 0 : i32
    return %c0_i32, %c0_i32_0, %c0_i32_1 : i32, i32, i32
  }
  func.func @transform_9(%arg0: i32) -> (i32, i32, i32) {
    %c0_i32 = arith.constant 0 : i32
    %c0_i32_0 = arith.constant 0 : i32
    %c0_i32_1 = arith.constant 0 : i32
    %c0_i32_2 = arith.constant 0 : i32
    return %c0_i32, %c0_i32_0, %c0_i32_1 : i32, i32, i32
  }
  func.func @transform_10(%arg0: i32) -> (i32, i32, i32) {
    %c0_i32 = arith.constant 0 : i32
    %c0_i32_0 = arith.constant 0 : i32
    %c0_i32_1 = arith.constant 0 : i32
    %c0_i32_2 = arith.constant 0 : i32
    return %c0_i32, %c0_i32_0, %c0_i32_1 : i32, i32, i32
  }
  func.func @transform_11(%arg0: i32) -> (i32, i32, i32) {
    %c0_i32 = arith.constant 0 : i32
    %c0_i32_0 = arith.constant 0 : i32
    %c0_i32_1 = arith.constant 0 : i32
    %c0_i32_2 = arith.constant 0 : i32
    return %c0_i32, %c0_i32_0, %c0_i32_1 : i32, i32, i32
  }
  func.func @transform_12(%arg0: i32) -> (i32, i32, i32) {
    %c0_i32 = arith.constant 0 : i32
    %c0_i32_0 = arith.constant 0 : i32
    %c0_i32_1 = arith.constant 0 : i32
    %c0_i32_2 = arith.constant 0 : i32
    return %c0_i32, %c0_i32_0, %c0_i32_1 : i32, i32, i32
  }
  func.func @transform_13(%arg0: i32) -> (i32, i32, i32) {
    %c0_i32 = arith.constant 0 : i32
    %c0_i32_0 = arith.constant 0 : i32
    %c0_i32_1 = arith.constant 0 : i32
    %c0_i32_2 = arith.constant 0 : i32
    return %c0_i32, %c0_i32_0, %c0_i32_1 : i32, i32, i32
  }
  func.func @transform_14(%arg0: i32) -> (i32, i32, i32) {
    %c0_i32 = arith.constant 0 : i32
    %c0_i32_0 = arith.constant 0 : i32
    %c0_i32_1 = arith.constant 0 : i32
    %c0_i32_2 = arith.constant 0 : i32
    return %c0_i32, %c0_i32_0, %c0_i32_1 : i32, i32, i32
  }
  func.func @transform_15(%arg0: i32) -> (i32, i32, i32) {
    %c0_i32 = arith.constant 0 : i32
    %c0_i32_0 = arith.constant 0 : i32
    %c0_i32_1 = arith.constant 0 : i32
    %c0_i32_2 = arith.constant 0 : i32
    return %c0_i32, %c0_i32_0, %c0_i32_1 : i32, i32, i32
  }
  func.func @transform_16(%arg0: i32) -> (i32, i32) {
    %c0_i32 = arith.constant 0 : i32
    %c0_i32_0 = arith.constant 0 : i32
    %c0_i32_1 = arith.constant 0 : i32
    return %c0_i32, %c0_i32_0 : i32, i32
  }
  func.func @transform_17(%arg0: i32) -> (i32, i32) {
    %c0_i32 = arith.constant 0 : i32
    %c0_i32_0 = arith.constant 0 : i32
    %c0_i32_1 = arith.constant 0 : i32
    return %c0_i32, %c0_i32_0 : i32, i32
  }
  func.func @transform_18(%arg0: i32) -> (i32, i32) {
    %c0_i32 = arith.constant 0 : i32
    %c0_i32_0 = arith.constant 0 : i32
    %c0_i32_1 = arith.constant 0 : i32
    return %c0_i32, %c0_i32_0 : i32, i32
  }
}

</mosaic_0001>

<bundles_post_ra>
// kernel: forward.3
= control target key start
LH: loop header
LB: loop body
LE: loop exit
PB: predicated region body
PF: predicated region fallthrough
CT: control target
= control target key end

     0   :  { %vm74_vm0 = vcmask 261120   ;;  %vm552_vm11 = vcmask 1043456   ;;  %vm401_vm12 = vcmask 195584   ;;  %s4332_s0 = inlined_call_operand.vmem [shape: f32[24,32], index: 0, kind: input, shape index: {}]   ;;  %s4333_s4 = inlined_call_operand.vmem [shape: f32[2,32,32], index: 4, kind: input, shape index: {}]   ;;  %s4334_s6 = inlined_call_operand.vmem [shape: f32[2,32,32], index: 6, kind: input, shape index: {}]   ;;  %s4335_s8 = inlined_call_operand.vmem [shape: f32[2,32,32], index: 8, kind: input, shape index: {}]   ;;  %s4336_s2 = inlined_call_operand.vmem [shape: f32[2,1,32], index: 2, kind: input, shape index: {}]   ;;  %s4337_s3 = inlined_call_operand.vmem [shape: f32[2,1,32], index: 3, kind: input, shape index: {}]   ;;  %s4338_s5 = inlined_call_operand.vmem [shape: f32[2,1,32], index: 5, kind: input, shape index: {}]   ;;  %s4339_s7 = inlined_call_operand.vmem [shape: f32[2,1,32], index: 7, kind: input, shape index: {}]   ;;  %s4340_s9 = inlined_call_operand.vmem [shape: f32[2,1,32], index: 9, kind: input, shape index: {}]   ;;  %s4341_s1 = inlined_call_operand.vmem [shape: f32[24,24], index: 1, kind: input, shape index: {}]   ;;  %s4342_s10 = inlined_call_operand.vmem [shape: f32[2,32,32], index: 10, kind: input, shape index: {}]   ;;  %s4343_s11 = inlined_call_operand.vmem [shape: f32[2,1,32], index: 11, kind: input, shape index: {}]   ;;  %s4344_s14 = inlined_call_operand.vmem [shape: f32[2,32,128], index: 14, kind: input, shape index: {}]   ;;  %s4345_s12 = inlined_call_operand.vmem [shape: f32[2,1,32], index: 12, kind: input, shape index: {}]   ;;  %s4346_s13 = inlined_call_operand.vmem [shape: f32[2,1,32], index: 13, kind: input, shape index: {}]   ;;  %s4347_s16 = inlined_call_operand.vmem [shape: f32[2,128,32], index: 16, kind: input, shape index: {}]   ;;  %s4348_s15 = inlined_call_operand.vmem [shape: f32[2,1,128], index: 15, kind: input, shape index: {}]   ;;  %s4349_s17 = inlined_call_operand.vmem [shape: f32[2,1,32], index: 17, kind: input, shape index: {}]   ;;  %s4350_s18 = inlined_call_operand.vmem [shape: f32[1,32], index: 18, kind: input, shape index: {}]   ;;  %s4351_s19 = inlined_call_operand.vmem [shape: f32[1,32], index: 19, kind: input, shape index: {}]   ;;  %s4352_s20 = inlined_call_operand.vmem [shape: f32[24,32], index: 20, kind: output, shape index: {}]  }
   0x1   :  { %4358 = sst [smem:[#allocation2_spill]] %s4332_s0  ;;  %v2705_v53 = vld [vmem:[%s4337_s3] ss:$0 sm:$0xff] }
   0x2   :  { %4359 = sst [smem:[#allocation3_spill]] %s4333_s4  ;;  %s4363_s23 = sld [smem:[#allocation2_spill]] }
   0x3   :  { %4360 = sst [smem:[#allocation4_spill]] %s4334_s6  ;;  %s4364_s28 = sld [smem:[#allocation3_spill]] }
   0x4   :  { %4361 = sst [smem:[#allocation5_spill]] %s4335_s8  ;;  %s4365_s21 = sld [smem:[#allocation4_spill]] }
   0x5   :  { %4362 = sst [smem:[#allocation6_spill]] %s4336_s2  ;;  %s4366_s0 = sld [smem:[#allocation5_spill]] }
   0x6   :  { %s4367_s6 = sld [smem:[#allocation6_spill]] }
   0x8   :  { %v3513_v0 = vld [vmem:[%s4363_s23] sm:$0xff]  ;;  %v3518_v1 = vld [vmem:[%s4363_s23 + $0x10] sm:$0xff]  ;;  %v3523_v2 = vld [vmem:[%s4363_s23 + $0x8] sm:$0xff] }
   0x9   :  { %v75_v3 = vsel %vm74_vm0, %v3513_v0, 0.0  ;;  %v81_v4 = vsel %vm74_vm0, %v3518_v1, 0.0  ;;  %v78_v5 = vsel %vm74_vm0, %v3523_v2, 0.0  ;;  %v133_v21 = vld [vmem:[%s4364_s28] sm:$0xff]  ;;  %v134_v22 = vld [vmem:[%s4364_s28 + $0x8] sm:$0xff]  ;;  %v135_v26 = vld [vmem:[%s4364_s28 + $0x10] sm:$0xff] }
   0xa   :  { %76 = vadd.xlane.f32.xlu0 %v75_v3  ;;  %82 = vadd.xlane.f32.xlu1 %v81_v4  ;;  %v205_v23 = vld [vmem:[%s4365_s21] sm:$0xff]  ;;  %v139_v24 = vpack.c.bf16 %v134_v22, %v133_v21  ;;  %v206_v25 = vld [vmem:[%s4365_s21 + $0x8] sm:$0xff]  ;;  %v136_v27 = vld [vmem:[%s4364_s28 + $0x18] sm:$0xff]  ;;  %v327_v3 = vlaneseq }
   0xb   :  { %v209_v28 = vpack.c.bf16 %v206_v25, %v205_v23  ;;  %v140_v29 = vpack.c.bf16 %v136_v27, %v135_v26  ;;  %v207_v30 = vld [vmem:[%s4365_s21 + $0x10] sm:$0xff]  ;;  %v208_v31 = vld [vmem:[%s4365_s21 + $0x18] sm:$0xff]  ;;  %v266_v33 = vld [vmem:[%s4366_s0] sm:$0xff] }
   0xc   :  { %2952 = vmatprep.subr.bf16.mxu0 %v139_v24  ;;  %v210_v32 = vpack.c.bf16 %v208_v31, %v207_v30  ;;  %v267_v34 = vld [vmem:[%s4366_s0 + $0x8] sm:$0xff]  ;;  %v2704_v47 = vld [vmem:[%s4367_s6] ss:$0 sm:$0xff]  ;;  %v268_v59 = vld [vmem:[%s4366_s0 + $0x10] sm:$0xff]  ;;  %v328_v4 = vand.u32 127, %v327_v3 }
   0xd   :  { %2960 = vmatprep.subr.bf16.mxu1 %v209_v28  ;;  %2953 = vmatpush3.bf16.msra.mxu0 %v139_v24  ;;  %v270_v35 = vpack.c.bf16 %v267_v34, %v266_v33  ;;  %v269_v60 = vld [vmem:[%s4366_s0 + $0x18] sm:$0xff] }
   0xe   :  { %79 = vadd.xlane.f32.xlu0 %v78_v5  ;;  %2961 = vmatpush3.bf16.msra.mxu1 %v209_v28  ;;  %v271_v63 = vpack.c.bf16 %v269_v60, %v268_v59  ;;  %v2706_v5 = vld [vmem:[%s4338_s5] ss:$0 sm:$0xff]  ;;  %vm661_vm1 = vcmp.ge.s32.totalorder %v328_v4, 16  ;;  %vm662_vm2 = vcmp.lt.s32.totalorder %v328_v4, 24  ;;  %vm442_vm3 = vcmp.ge.s32.totalorder %v328_v4, 8 }
   0xf   :  { %2954 = vmatprep.subr.bf16.mxu0 %v140_v29  ;;  %2962 = vmatprep.subr.bf16.mxu1 %v210_v32  ;;  %vm443_vm4 = vcmp.lt.s32.totalorder %v328_v4, 16  ;;  %vm825_vm5 = vcmp.ge.s32.totalorder %v328_v4, 24  ;;  %vm826_vm6 = vcmp.lt.s32.totalorder %v328_v4, 32  ;;  %vm330_vm7 = vcmp.lt.s32.totalorder %v328_v4, 8  ;;  %vm663_vm8 = vmand %vm661_vm1, %vm662_vm2 }
  0x10   :  { %vm444_vm9 = vmand %vm442_vm3, %vm443_vm4 }
  0x11   :  { %2955 = vmatpush3.bf16.msra.mxu0 %v140_v29  ;;  %vm827_vm10 = vmand %vm825_vm5, %vm826_vm6  ;;  %v2712_v29 = vld [vmem:[%s4340_s9] ss:$0 sm:$0xff] }
  0x12   :  { %2963 = vmatpush3.bf16.msra.mxu1 %v210_v32  ;;  %2968 = vmatprep.subr.bf16.mxu0 %v270_v35 }
  0x97   :  { %v77_v6 = vpop.xlane.xlu0 %76  ;;  %v83_v7 = vpop.xlane.xlu1 %82 }
  0x98   :  { %v85_v8 = vmul.f32 0.03125, %v77_v6  ;;  %v87_v9 = vmul.f32 0.03125, %v83_v7 }
  0x9a   :  { %v88_v10 = vsub.f32 %v3513_v0, %v85_v8  ;;  %v90_v11 = vsub.f32 %v3518_v1, %v87_v9 }
  0x9b   :  { %v80_v12 = vpop.xlane.xlu0 %79 }
  0x9c   :  { %v86_v13 = vmul.f32 0.03125, %v80_v12  ;;  %v91_v14 = vmul.f32 %v88_v10, %v88_v10  ;;  %v93_v15 = vmul.f32 %v90_v11, %v90_v11 }
  0x9e   :  { %v89_v16 = vsub.f32 %v3523_v2, %v86_v13  ;;  %v94_v17 = vsel %vm74_vm0, %v91_v14, 0.0  ;;  %v100_v18 = vsel %vm74_vm0, %v93_v15, 0.0 }
  0x9f   :  { %95 = vadd.xlane.f32.xlu1 %v94_v17 }
  0xa0   :  { %v92_v19 = vmul.f32 %v89_v16, %v89_v16 }
  0xa2   :  { %v97_v20 = vsel %vm74_vm0, %v92_v19, 0.0 }
  0xa3   :  { %101 = vadd.xlane.f32.xlu1 %v100_v18  ;;  %98 = vadd.xlane.f32.xlu0 %v97_v20  ;;  %v3403_v20 = vmov 0.0  }
  0xa4   :  { %v3591_v21 = vsel %vm330_vm7, 1.0, %v3403_v20  ;;  %v3593_v22 = vsel %vm663_vm8, 1.0, %v3403_v20  ;;  %v3595_v24 = vsel %vm444_vm9, 1.0, %v3403_v20  ;;  %v3597_v25 = vsel %vm827_vm10, 1.0, %v3403_v20 }
 0x12c   :  { %v96_v36 = vpop.xlane.xlu1 %95 }
 0x12d   :  { %v103_v37 = vmul.f32 0.03125, %v96_v36 }
 0x12f   :  { %v106_v38 = vadd.f32 1e-05, %v103_v37 }
 0x130   :  { %v102_v39 = vpop.xlane.xlu1 %101  ;;  %v99_v40 = vpop.xlane.xlu0 %98 }
 0x131   :  { %3250 = vrsqrt.f32 %v106_v38  ;;  %v105_v41 = vmul.f32 0.03125, %v102_v39  ;;  %v104_v42 = vmul.f32 0.03125, %v99_v40 }
 0x133   :  { %v108_v43 = vadd.f32 1e-05, %v105_v41  ;;  %v107_v44 = vadd.f32 1e-05, %v104_v42 }
 0x135   :  { %3252 = vrsqrt.f32 %v108_v43 }
 0x136   :  { %3254 = vrsqrt.f32 %v107_v44 }
 0x13b   :  { %v3251_v45 = vpop.eup %3250 }
 0x13c   :  { %v112_v46 = vmul.f32 %v3251_v45, %v88_v10  ;;  %v2709_v10 = vld [vmem:[%s4339_s7] ss:$0 sm:$0xff] }
 0x13e   :  { %v121_v52 = vmul.f32 %v2704_v47, %v112_v46 }
 0x13f   :  { %v3253_v48 = vpop.eup %3252 }
 0x140   :  { %v3255_v49 = vpop.eup %3254  ;;  %v114_v50 = vmul.f32 %v3253_v48, %v90_v11  ;;  %v130_v57 = vadd.f32 %v2705_v53, %v121_v52 }
 0x141   :  { %v113_v51 = vmul.f32 %v3255_v49, %v89_v16 }
 0x142   :  { %v123_v54 = vmul.f32 %v2704_v47, %v114_v50 }
 0x143   :  { %v122_v55 = vmul.f32 %v2704_v47, %v113_v51 }
 0x144   :  { %v132_v56 = vadd.f32 %v2705_v53, %v123_v54 }
 0x145   :  { %v131_v58 = vadd.f32 %v2705_v53, %v122_v55 }
 0x146   :  { %v138_v61 = vpack.c.bf16 %v132_v56, %v132_v56 }
 0x147   :  { %v137_v62 = vpack.c.bf16 %v131_v58, %v130_v57 }
 0x149   :  { %2956 = vmatprep.mubr.msk.bf16.mxu0 %vm74_vm0, %v137_v62  ;;  %2964 = vmatprep.mubr.msk.bf16.mxu1 %vm74_vm0, %v137_v62 }
 0x14a   :  { %2957 = vmatmul.mubr.msk.bf16.vlgmr.msra.gmra.mrb[0].mxu0 %vm74_vm0, %v138_v61  ;;  %2965 = vmatmul.mubr.msk.bf16.vlgmr.msra.gmra.mrb[0].mxu1 %vm74_vm0, %v138_v61 }
 0x14b   :  { %2969 = vmatpush3.bf16.msra.mxu0 %v270_v35  ;;  %2972 = vmatprep.mubr.msk.bf16.mxu0 %vm74_vm0, %v137_v62 }
 0x14c   :  { %2970 = vmatprep.subr.bf16.mxu0 %v271_v63 }
 0x14f   :  { %2971 = vmatpush3.bf16.msra.mxu0 %v271_v63 }
 0x152   :  { %2973 = vmatmul.mubr.msk.bf16.vlgmr.msra.gmra.mrb[4].mxu0 %vm74_vm0, %v138_v61 }
 0x21d   :  { %v2958_v6 = vpop.f32.mrb[0].mxu0  ;;  %v2966_v7 = vpop.f32.mrb[0].mxu1 }
 0x21e   :  { %v188_v8 = vpop.f32.mrb[1].mxu0  ;;  %v252_v9 = vpop.f32.mrb[1].mxu1  ;;  %v261_v18 = vadd.f32 %v2966_v7, %v2709_v10  ;;  %v197_v30 = vadd.f32 %v2958_v6, %v2706_v5 }
 0x21f   :  { %v189_v11 = vadd.f32 %v2706_v5, %v188_v8  ;;  %v2959_v12 = vpop.f32.mrb[2].mxu0  ;;  %v2967_v13 = vpop.f32.mrb[2].mxu1  ;;  %v253_v23 = vadd.f32 %v2709_v10, %v252_v9 }
 0x220   :  { %v191_v14 = vpop.f32.mrb[3].mxu0  ;;  %v255_v15 = vpop.f32.mrb[3].mxu1  ;;  %v340_v31 = vpack.c.bf16 %v261_v18, %v261_v18  ;;  %v204_v56 = vmul.f32 0.35355338, %v197_v30 }
 0x221   :  { %v192_v16 = vadd.f32 %v2706_v5, %v191_v14  ;;  %v256_v17 = vadd.f32 %v2709_v10, %v255_v15  ;;  %v202_v19 = vmul.f32 0.35355338, %v189_v11 }
 0x222   :  { %v351_v62 = vsel %vm74_vm0, %v340_v31, 0  ;;  %v336_v3 = vmul.f32 %v3591_v21, %v204_v56  ;;  %v668_v4 = vmul.f32 %v3593_v22, %v204_v56  ;;  %v449_v8 = vmul.f32 %v3595_v24, %v204_v56 }
 0x223   :  { %v203_v26 = vmul.f32 0.35355338, %v192_v16  ;;  %v339_v27 = vpack.c.bf16 %v256_v17, %v253_v23  ;;  %v334_v32 = vmul.f32 %v3591_v21, %v202_v19  ;;  %v666_v33 = vmul.f32 %v3593_v22, %v202_v19 }
 0x224   :  { %v447_v40 = vmul.f32 %v3595_v24, %v202_v19  ;;  %v830_v41 = vmul.f32 %v3597_v25, %v202_v19  ;;  %v338_v5 = vpack.c.bf16 %v336_v3, %v336_v3  ;;  %v670_v6 = vpack.c.bf16 %v668_v4, %v668_v4 }
 0x225   :  { %v2974_v28 = vpop.f32.mrb[4].mxu0  ;;  %v335_v35 = vmul.f32 %v3591_v21, %v203_v26  ;;  %v448_v36 = vmul.f32 %v3595_v24, %v203_v26  ;;  %v667_v37 = vmul.f32 %v3593_v22, %v203_v26  ;;  %v831_v38 = vmul.f32 %v3597_v25, %v203_v26  ;;  %3224 = vmatprep.subr.msk.bf16.mxu1 %vm74_vm0, %v339_v27 }
 0x226   :  { %v313_v34 = vpop.f32.mrb[5].mxu0  ;;  %3230 = vmatprep.subr.msk.bf16.mxu0 %vm74_vm0, %v339_v27  ;;  %v348_v43 = vsel %vm74_vm0, %v339_v27, 0  ;;  %v3642_v7 = vadd.f32 %v2974_v28, %v2712_v29  ;;  %v832_v9 = vmul.f32 %v3597_v25, %v204_v56  ;;  %v451_v11 = vpack.c.bf16 %v449_v8, %v449_v8  ;;  %v69_v28 = vld [vmem:[%s4341_s1] sm:$0xff] }
 0x227   :  { %v2975_v39 = vpop.f32.mrb[6].mxu0  ;;  %v314_v42 = vadd.f32 %v2712_v29, %v313_v34  ;;  %2977 = vmatpush3.bf16.xpose.msra.mxu1 %v348_v43  ;;  %3009 = vmatpush3.bf16.xpose.msra.mxu0 %v348_v43  ;;  %v337_v46 = vpack.c.bf16 %v335_v35, %v334_v32  ;;  %v669_v47 = vpack.c.bf16 %v667_v37, %v666_v33  ;;  %v71_v34 = vld [vmem:[%s4341_s1 + $0x10] sm:$0xff]  ;;  %v70_v35 = vld [vmem:[%s4341_s1 + $0x8] sm:$0xff] }
 0x228   :  { %v316_v44 = vpop.f32.mrb[7].mxu0  ;;  %3225 = vmatprep.subr.msk.bf16.mxu1 %vm74_vm0, %v340_v31  ;;  %3231 = vmatprep.subr.msk.bf16.mxu0 %vm74_vm0, %v340_v31  ;;  %v450_v48 = vpack.c.bf16 %v448_v36, %v447_v40  ;;  %v833_v49 = vpack.c.bf16 %v831_v38, %v830_v41  ;;  %v541_v10 = vmul.f32 %v3595_v24, %v3642_v7 }
 0x229   :  { %v317_v45 = vadd.f32 %v2712_v29, %v316_v44  ;;  %2980 = vmatprep.mubr.msk.bf16.mxu1 %vm74_vm0, %v337_v46  ;;  %3012 = vmatprep.mubr.msk.bf16.mxu0 %vm74_vm0, %v669_v47  ;;  %v539_v50 = vmul.f32 %v3595_v24, %v314_v42  ;;  %v435_v52 = vmul.f32 %v3591_v21, %v314_v42 }
 0x22a   :  { %v758_v54 = vmul.f32 %v3593_v22, %v314_v42  ;;  %v922_v60 = vmul.f32 %v3597_v25, %v314_v42  ;;  %v834_v12 = vpack.c.bf16 %v832_v9, %v832_v9  ;;  %v545_v13 = vpack.c.bf16 %v541_v10, %v541_v10 }
 0x22b   :  { %v540_v51 = vmul.f32 %v3595_v24, %v317_v45  ;;  %v436_v53 = vmul.f32 %v3591_v21, %v317_v45  ;;  %v759_v55 = vmul.f32 %v3593_v22, %v317_v45  ;;  %v923_v61 = vmul.f32 %v3597_v25, %v317_v45 }
 0x22c   :  { %v554_v14 = vsel %vm552_vm11, %v545_v13, 0 }
 0x22d   :  { %v544_v57 = vpack.c.bf16 %v540_v51, %v539_v50  ;;  %v3623_v58 = vpack.c.bf16 %v436_v53, %v435_v52  ;;  %v3625_v59 = vpack.c.bf16 %v759_v55, %v758_v54  ;;  %v3630_v63 = vpack.c.bf16 %v923_v61, %v922_v60 }
 0x22f   :  { %2979 = vmatpush3.bf16.xpose.msra.mxu1 %v351_v62  ;;  %3011 = vmatpush3.bf16.xpose.msra.mxu0 %v351_v62 }
 0x230   :  { %3226 = vmatprep.subr.msk.bf16.mxu1 %vm74_vm0, %v339_v27  ;;  %3233 = vmatprep.subr.msk.bf16.mxu0 %vm74_vm0, %v339_v27 }
 0x236   :  { %2981 = vmatmul.mubr.msk.bf16.vlgmr.msra.gmra.mrb[4].mxu1 %vm74_vm0, %v338_v5  ;;  %3013 = vmatmul.mubr.msk.bf16.vlgmr.msra.gmra.mrb[8].mxu0 %vm74_vm0, %v670_v6 }
 0x237   :  { %2985 = vmatpush3.bf16.xpose.msra.mxu1 %v348_v43  ;;  %2988 = vmatprep.mubr.msk.bf16.mxu1 %vm74_vm0, %v450_v48 }
 0x238   :  { %3025 = vmatpush3.bf16.xpose.msra.mxu0 %v348_v43  ;;  %3028 = vmatprep.mubr.msk.bf16.mxu0 %vm74_vm0, %v833_v49 }
 0x239   :  { %3227 = vmatprep.subr.msk.bf16.mxu1 %vm74_vm0, %v340_v31  ;;  %3234 = vmatprep.subr.msk.bf16.mxu0 %vm74_vm0, %v340_v31 }
 0x23f   :  { %2987 = vmatpush3.bf16.xpose.msra.mxu1 %v351_v62 }
 0x240   :  { %3027 = vmatpush3.bf16.xpose.msra.mxu0 %v351_v62  ;;  %2992 = vmatprep.subr.bf16.mxu1 %v544_v57 }
 0x246   :  { %2989 = vmatmul.mubr.msk.bf16.vlgmr.msra.gmra.mrb[8].mxu1 %vm74_vm0, %v451_v11 }
 0x247   :  { %3029 = vmatmul.mubr.msk.bf16.vlgmr.msra.gmra.mrb[12].mxu0 %vm74_vm0, %v834_v12  ;;  %2993 = vmatpush3.bf16.msra.mxu1 %v544_v57 }
 0x248   :  { %3228 = vmatprep.subr.msk.bf16.mxu1 %vm552_vm11, %v545_v13 }
 0x24b   :  { %2995 = vmatpush3.bf16.msra.mxu1 %v554_v14 }
 0x24c   :  { %3000 = vmatprep.subr.bf16.mxu1 %v3623_v58 }
 0x309   :  { %v2982_v15 = vpop.f32.mrb[4].mxu1  ;;  %v3014_v16 = vpop.f32.mrb[8].mxu0 }
 0x30a   :  { %v387_v17 = vpop.f32.mrb[5].mxu1  ;;  %v711_v18 = vpop.f32.mrb[9].mxu0  ;;  %v396_v46 = vadd.f32 %v2982_v15, %v71_v34  ;;  %v720_v52 = vadd.f32 %v3014_v16, %v71_v34 }
 0x30b   :  { %v2983_v19 = vpop.f32.mrb[6].mxu1  ;;  %v3015_v20 = vpop.f32.mrb[10].mxu0  ;;  %v388_v42 = vadd.f32 %v387_v17, %v69_v28  ;;  %v712_v48 = vadd.f32 %v711_v18, %v69_v28 }
 0x30c   :  { %v390_v23 = vpop.f32.mrb[7].mxu1  ;;  %v714_v26 = vpop.f32.mrb[11].mxu0  ;;  %v408_v51 = vsel %vm401_vm12, %v396_v46, -inf  ;;  %v731_v57 = vsel %vm401_vm12, %v720_v52, -inf }
 0x30d   :  { %v391_v44 = vadd.f32 %v390_v23, %v70_v35  ;;  %v402_v47 = vsel %vm401_vm12, %v388_v42, -inf  ;;  %v715_v50 = vadd.f32 %v714_v26, %v70_v35  ;;  %v725_v53 = vsel %vm401_vm12, %v712_v48, -inf }
 0x30f   :  { %v405_v49 = vsel %vm401_vm12, %v391_v44, -inf  ;;  %v728_v55 = vsel %vm401_vm12, %v715_v50, -inf }
 0x319   :  { %v2990_v27 = vpop.f32.mrb[8].mxu1 }
 0x31a   :  { %v3030_v29 = vpop.f32.mrb[12].mxu0  ;;  %v492_v30 = vpop.f32.mrb[9].mxu1  ;;  %v501_v38 = vadd.f32 %v2990_v27, %v71_v34 }
 0x31b   :  { %v493_v31 = vadd.f32 %v492_v30, %v69_v28  ;;  %v875_v32 = vpop.f32.mrb[13].mxu0  ;;  %v2991_v33 = vpop.f32.mrb[10].mxu1  ;;  %v3673_v60 = vadd.f32 %v3030_v29, %v71_v34 }
 0x31c   :  { %v3031_v36 = vpop.f32.mrb[14].mxu0  ;;  %v495_v37 = vpop.f32.mrb[11].mxu1  ;;  %v512_v45 = vsel %vm401_vm12, %v501_v38, -inf  ;;  %v876_v54 = vadd.f32 %v875_v32, %v69_v28 }
 0x31d   :  { %v496_v39 = vadd.f32 %v495_v37, %v70_v35  ;;  %v878_v40 = vpop.f32.mrb[15].mxu0  ;;  %v506_v41 = vsel %vm401_vm12, %v493_v31, -inf  ;;  %v895_v3 = vsel %vm401_vm12, %v3673_v60, -inf }
 0x31e   :  { %507 = vmax.xlane.f32.xlu0 %v506_v41  ;;  %v3670_v56 = vadd.f32 %v878_v40, %v70_v35  ;;  %v889_v61 = vsel %vm401_vm12, %v876_v54, -inf }
 0x31f   :  { %v509_v43 = vsel %vm401_vm12, %v496_v39, -inf }
 0x320   :  { %510 = vmax.xlane.f32.xlu1 %v509_v43  ;;  %v892_v62 = vsel %vm401_vm12, %v3670_v56, -inf }
 0x322   :  { %513 = vmax.xlane.f32.xlu0 %v512_v45 }
 0x324   :  { %403 = vmax.xlane.f32.xlu1 %v402_v47 }
 0x326   :  { %406 = vmax.xlane.f32.xlu0 %v405_v49 }
 0x328   :  { %409 = vmax.xlane.f32.xlu1 %v408_v51 }
 0x32a   :  { %726 = vmax.xlane.f32.xlu0 %v725_v53 }
 0x32c   :  { %729 = vmax.xlane.f32.xlu1 %v728_v55 }
 0x32e   :  { %732 = vmax.xlane.f32.xlu0 %v731_v57 }
 0x330   :  { %890 = vmax.xlane.f32.xlu1 %v889_v61 }
 0x332   :  { %893 = vmax.xlane.f32.xlu0 %v892_v62 }
 0x334   :  { %896 = vmax.xlane.f32.xlu1 %v895_v3 }
 0x3ab   :  { %v508_v4 = vpop.xlane.xlu0 %507 }
 0x3ac   :  { %v515_v5 = vsub.f32 %v493_v31, %v508_v4 }
 0x3ad   :  { %v511_v6 = vpop.xlane.xlu1 %510 }
 0x3ae   :  { %v518_v8 = vmul.f32 1.442695, %v515_v5  ;;  %v516_v9 = vsub.f32 %v496_v39, %v511_v6 }
 0x3af   :  { %v514_v10 = vpop.xlane.xlu0 %513 }
 0x3b0   :  { %3256 = vpow2.f32 %v518_v8  ;;  %v520_v11 = vmul.f32 1.442695, %v516_v9  ;;  %v517_v12 = vsub.f32 %v501_v38, %v514_v10 }
 0x3b1   :  { %v404_v13 = vpop.xlane.xlu1 %403 }
 0x3b2   :  { %3258 = vpow2.f32 %v520_v11  ;;  %v522_v14 = vmul.f32 1.442695, %v517_v12  ;;  %v411_v15 = vsub.f32 %v388_v42, %v404_v13 }
 0x3b3   :  { %v407_v16 = vpop.xlane.xlu0 %406 }
 0x3b4   :  { %3260 = vpow2.f32 %v522_v14  ;;  %v414_v17 = vmul.f32 1.442695, %v411_v15  ;;  %v412_v18 = vsub.f32 %v391_v44, %v407_v16 }
 0x3b5   :  { %v410_v19 = vpop.xlane.xlu1 %409 }
 0x3b6   :  { %3262 = vpow2.f32 %v414_v17  ;;  %v416_v20 = vmul.f32 1.442695, %v412_v18  ;;  %v413_v23 = vsub.f32 %v396_v46, %v410_v19 }
 0x3b7   :  { %v727_v26 = vpop.xlane.xlu0 %726 }
 0x3b8   :  { %3264 = vpow2.f32 %v416_v20  ;;  %v418_v27 = vmul.f32 1.442695, %v413_v23  ;;  %v734_v28 = vsub.f32 %v712_v48, %v727_v26 }
 0x3b9   :  { %v730_v29 = vpop.xlane.xlu1 %729 }
 0x3ba   :  { %v3680_v30 = vpop.eup %3256  ;;  %3266 = vpow2.f32 %v418_v27  ;;  %v737_v31 = vmul.f32 1.442695, %v734_v28  ;;  %v735_v32 = vsub.f32 %v715_v50, %v730_v29 }
 0x3bb   :  { %v733_v33 = vpop.xlane.xlu0 %732  ;;  %v524_v34 = vsel %vm401_vm12, %v3680_v30, 0.0 }
 0x3bc   :  { %v3684_v35 = vpop.eup %3258  ;;  %3268 = vpow2.f32 %v737_v31  ;;  %v739_v36 = vmul.f32 1.442695, %v735_v32  ;;  %v736_v37 = vsub.f32 %v720_v52, %v733_v33  ;;  %525 = vadd.xlane.f32.xlu0 %v524_v34  ;;  %v437_v32 = vmul.f32 %v3591_v21, %v3642_v7 }
 0x3bd   :  { %v891_v38 = vpop.xlane.xlu1 %890  ;;  %v527_v39 = vsel %vm401_vm12, %v3684_v35, 0.0 }
 0x3be   :  { %v3688_v40 = vpop.eup %3260  ;;  %3270 = vpow2.f32 %v739_v36  ;;  %v741_v41 = vmul.f32 1.442695, %v736_v37  ;;  %v898_v42 = vsub.f32 %v876_v54, %v891_v38  ;;  %528 = vadd.xlane.f32.xlu1 %v527_v39 }
 0x3bf   :  { %v894_v43 = vpop.xlane.xlu0 %893  ;;  %v530_v44 = vsel %vm401_vm12, %v3688_v40, 0.0 }
 0x3c0   :  { %v3692_v45 = vpop.eup %3262  ;;  %3272 = vpow2.f32 %v741_v41  ;;  %v901_v46 = vmul.f32 1.442695, %v898_v42  ;;  %v899_v47 = vsub.f32 %v3670_v56, %v894_v43  ;;  %531 = vadd.xlane.f32.xlu0 %v530_v44 }
 0x3c1   :  { %v897_v48 = vpop.xlane.xlu1 %896  ;;  %v420_v49 = vsel %vm401_vm12, %v3692_v45, 0.0 }
 0x3c2   :  { %v3697_v50 = vpop.eup %3264  ;;  %3274 = vpow2.f32 %v901_v46  ;;  %v903_v51 = vmul.f32 1.442695, %v899_v47  ;;  %v900_v52 = vsub.f32 %v3673_v60, %v897_v48  ;;  %421 = vadd.xlane.f32.xlu1 %v420_v49  ;;  %v760_v47 = vmul.f32 %v3593_v22, %v3642_v7 }
 0x3c3   :  { %v423_v53 = vsel %vm401_vm12, %v3697_v50, 0.0 }
 0x3c4   :  { %v3702_v54 = vpop.eup %3266  ;;  %3276 = vpow2.f32 %v903_v51  ;;  %v905_v55 = vmul.f32 1.442695, %v900_v52  ;;  %424 = vadd.xlane.f32.xlu0 %v423_v53  ;;  %v764_v51 = vpack.c.bf16 %v760_v47, %v760_v47 }
 0x3c5   :  { %v426_v56 = vsel %vm401_vm12, %v3702_v54, 0.0 }
 0x3c6   :  { %v3706_v57 = vpop.eup %3268  ;;  %3278 = vpow2.f32 %v905_v55  ;;  %427 = vadd.xlane.f32.xlu1 %v426_v56  ;;  %v772_v55 = vsel %vm552_vm11, %v764_v51, 0 }
 0x3c7   :  { %v743_v61 = vsel %vm401_vm12, %v3706_v57, 0.0 }
 0x3c8   :  { %v3710_v60 = vpop.eup %3270  ;;  %744 = vadd.xlane.f32.xlu0 %v743_v61 }
 0x3c9   :  { %v746_v62 = vsel %vm401_vm12, %v3710_v60, 0.0 }
 0x3ca   :  { %v3714_v3 = vpop.eup %3272  ;;  %747 = vadd.xlane.f32.xlu1 %v746_v62 }
 0x3cb   :  { %v749_v4 = vsel %vm401_vm12, %v3714_v3, 0.0 }
 0x3cc   :  { %v3718_v5 = vpop.eup %3274  ;;  %750 = vadd.xlane.f32.xlu0 %v749_v4 }
 0x3cd   :  { %v907_v6 = vsel %vm401_vm12, %v3718_v5, 0.0 }
 0x3ce   :  { %v3722_v8 = vpop.eup %3276  ;;  %908 = vadd.xlane.f32.xlu1 %v907_v6  ;;  %v989_v6 = vld [vmem:[%s4342_s10] sm:$0xff] }
 0x3cf   :  { %v910_v9 = vsel %vm401_vm12, %v3722_v8, 0.0 }
 0x3d0   :  { %v3726_v10 = vpop.eup %3278  ;;  %911 = vadd.xlane.f32.xlu0 %v910_v9  ;;  %v990_v9 = vld [vmem:[%s4342_s10 + $0x8] sm:$0xff] }
 0x3d1   :  { %v913_v11 = vsel %vm401_vm12, %v3726_v10, 0.0 }
 0x3d2   :  { %914 = vadd.xlane.f32.xlu1 %v913_v11 }
 0x449   :  { %v526_v12 = vpop.xlane.xlu0 %525 }
 0x44a   :  { %3280 = vrcp.f32 %v526_v12 }
 0x44b   :  { %v529_v13 = vpop.xlane.xlu1 %528 }
 0x44c   :  { %3282 = vrcp.f32 %v529_v13  ;;  %v992_v13 = vld [vmem:[%s4342_s10 + $0x18] sm:$0xff] }
 0x44d   :  { %v532_v14 = vpop.xlane.xlu0 %531 }
 0x44e   :  { %3284 = vrcp.f32 %v532_v14 }
 0x44f   :  { %v422_v15 = vpop.xlane.xlu1 %421 }
 0x450   :  { %3286 = vrcp.f32 %v422_v15 }
 0x451   :  { %v425_v16 = vpop.xlane.xlu0 %424 }
 0x452   :  { %3288 = vrcp.f32 %v425_v16 }
 0x453   :  { %v428_v17 = vpop.xlane.xlu1 %427 }
 0x454   :  { %v3281_v18 = vpop.eup %3280  ;;  %3290 = vrcp.f32 %v428_v17 }
 0x455   :  { %v745_v19 = vpop.xlane.xlu0 %744  ;;  %v536_v26 = vmul.f32 %v3281_v18, %v3680_v30  ;;  %v441_v30 = vpack.c.bf16 %v437_v32, %v437_v32 }
 0x456   :  { %v3283_v20 = vpop.eup %3282 }
 0x457   :  { %v748_v23 = vpop.xlane.xlu1 %747  ;;  %v537_v27 = vmul.f32 %v3283_v20, %v3684_v35  ;;  %v611_v42 = vsel %vm552_vm11, %v441_v30, 0 }
 0x458   :  { %v3285_v28 = vpop.eup %3284  ;;  %3292 = vrcp.f32 %v748_v23  ;;  %v2737_v23 = vld [vmem:[%s4343_s11] ss:$0 sm:$0xff] }
 0x459   :  { %v538_v29 = vmul.f32 %v3285_v28, %v3688_v40  ;;  %3294 = vrcp.f32 %v745_v19  ;;  %v542_v31 = vpack.c.bf16 %v537_v27, %v536_v26  ;;  %v751_v34 = vpop.xlane.xlu0 %750 }
 0x45a   :  { %v3287_v33 = vpop.eup %3286  ;;  %3296 = vrcp.f32 %v751_v34 }
 0x45b   :  { %2996 = vmatprep.mubr.msk.bf16.mxu1 %vm401_vm12, %v542_v31  ;;  %v543_v36 = vpack.c.bf16 %v538_v29, %v538_v29  ;;  %v432_v35 = vmul.f32 %v3287_v33, %v3692_v45  ;;  %v909_v44 = vpop.xlane.xlu1 %908 }
 0x45c   :  { %v3289_v37 = vpop.eup %3288 }
 0x45d   :  { %2997 = vmatmul.mubr.msk.bf16.vlgmr.msra.gmra.mrb[12].mxu1 %vm401_vm12, %v543_v36  ;;  %v433_v38 = vmul.f32 %v3289_v37, %v3697_v50  ;;  %v912_v41 = vpop.xlane.xlu0 %911 }
 0x45e   :  { %3001 = vmatpush3.bf16.msra.mxu1 %v3623_v58  ;;  %v3291_v40 = vpop.eup %3290  ;;  %3298 = vrcp.f32 %v912_v41 }
 0x45f   :  { %3229 = vmatprep.subr.msk.bf16.mxu1 %vm552_vm11, %v441_v30  ;;  %v438_v39 = vpack.c.bf16 %v433_v38, %v432_v35  ;;  %v434_v45 = vmul.f32 %v3291_v40, %v3702_v54  ;;  %3300 = vrcp.f32 %v909_v44  ;;  %v915_v52 = vpop.xlane.xlu1 %914 }
 0x460   :  { %3302 = vrcp.f32 %v915_v52 }
 0x461   :  { %3004 = vmatprep.mubr.msk.bf16.mxu1 %vm401_vm12, %v438_v39  ;;  %v439_v49 = vpack.c.bf16 %v434_v45, %v434_v45 }
 0x462   :  { %v3293_v43 = vpop.eup %3292  ;;  %3003 = vmatpush3.bf16.msra.mxu1 %v611_v42 }
 0x463   :  { %v3295_v46 = vpop.eup %3294  ;;  %3016 = vmatprep.subr.bf16.mxu1 %v3625_v59  ;;  %v756_v58 = vmul.f32 %v3293_v43, %v3710_v60 }
 0x464   :  { %v755_v48 = vmul.f32 %v3295_v46, %v3706_v57  ;;  %v3297_v53 = vpop.eup %3296 }
 0x465   :  { %v757_v57 = vmul.f32 %v3297_v53, %v3714_v3  ;;  %v1126_v53 = vld [vmem:[%s4344_s14 + $0x18] sm:$0xff] }
 0x466   :  { %v761_v50 = vpack.c.bf16 %v756_v58, %v755_v48 }
 0x467   :  { %v762_v62 = vpack.c.bf16 %v757_v57, %v757_v57 }
 0x468   :  { %v3299_v54 = vpop.eup %3298 }
 0x469   :  { %3005 = vmatmul.mubr.msk.bf16.vlgmr.msra.gmra.mrb[12].mxu1 %vm401_vm12, %v439_v49  ;;  %v3301_v56 = vpop.eup %3300  ;;  %v920_v61 = vmul.f32 %v3299_v54, %v3722_v8  ;;  %v1123_v49 = vld [vmem:[%s4344_s14] sm:$0xff] }
 0x46a   :  { %3017 = vmatpush3.bf16.msra.mxu1 %v3625_v59  ;;  %3020 = vmatprep.mubr.msk.bf16.mxu1 %vm401_vm12, %v761_v50  ;;  %v924_v59 = vmul.f32 %v3597_v25, %v3642_v7  ;;  %v919_v60 = vmul.f32 %v3301_v56, %v3718_v5  ;;  %v995_v7 = vpack.c.bf16 %v990_v9, %v989_v6  ;;  %v3303_v5 = vpop.eup %3302  ;;  %v1124_v50 = vld [vmem:[%s4344_s14 + $0x8] sm:$0xff] }
 0x46b   :  { %3232 = vmatprep.subr.msk.bf16.mxu1 %vm552_vm11, %v764_v51  ;;  %v921_v11 = vmul.f32 %v3303_v5, %v3726_v10  ;;  %v1125_v51 = vld [vmem:[%s4344_s14 + $0x10] sm:$0xff]  ;;  %v1129_v52 = vpack.c.bf16 %v1124_v50, %v1123_v49 }
 0x46c   :  { %v925_v4 = vpack.c.bf16 %v920_v61, %v919_v60  ;;  %v928_v3 = vpack.c.bf16 %v924_v59, %v924_v59  ;;  %v1130_v54 = vpack.c.bf16 %v1126_v53, %v1125_v51 }
 0x46d   :  { %v926_v12 = vpack.c.bf16 %v921_v11, %v921_v11  ;;  %3048 = vmatprep.subr.bf16.mxu0 %v1129_v52 }
 0x46e   :  { %3019 = vmatpush3.bf16.msra.mxu1 %v772_v55  ;;  %v936_v8 = vsel %vm552_vm11, %v928_v3, 0  ;;  %3049 = vmatpush3.bf16.msra.mxu0 %v1129_v52 }
 0x46f   :  { %3032 = vmatprep.subr.bf16.mxu1 %v3630_v63  ;;  %3050 = vmatprep.subr.bf16.mxu0 %v1130_v54 }
 0x472   :  { %3051 = vmatpush3.bf16.msra.mxu0 %v1130_v54 }
 0x475   :  { %3021 = vmatmul.mubr.msk.bf16.vlgmr.msra.gmra.mrb[12].mxu1 %vm401_vm12, %v762_v62 }
 0x476   :  { %3033 = vmatpush3.bf16.msra.mxu1 %v3630_v63  ;;  %3036 = vmatprep.mubr.msk.bf16.mxu1 %vm401_vm12, %v925_v4  ;;  %v991_v63 = vld [vmem:[%s4342_s10 + $0x10] sm:$0xff] }
 0x477   :  { %3235 = vmatprep.subr.msk.bf16.mxu1 %vm552_vm11, %v928_v3  ;;  %v996_v14 = vpack.c.bf16 %v992_v13, %v991_v63  ;;  %v2738_v3 = vld [vmem:[%s4345_s12] ss:$0 sm:$0xff] }
 0x478   :  { %v2739_v63 = vld [vmem:[%s4346_s13] ss:$0 sm:$0xff] }
 0x47a   :  { %3035 = vmatpush3.bf16.msra.mxu1 %v936_v8 }
 0x47b   :  { %3040 = vmatprep.subr.bf16.mxu1 %v995_v7 }
 0x481   :  { %3037 = vmatmul.mubr.msk.bf16.vlgmr.msra.gmra.mrb[12].mxu1 %vm401_vm12, %v926_v12 }
 0x482   :  { %3041 = vmatpush3.bf16.msra.mxu1 %v995_v7 }
 0x483   :  { %3042 = vmatprep.subr.bf16.mxu1 %v996_v14 }
 0x486   :  { %3043 = vmatpush3.bf16.msra.mxu1 %v996_v14 }
 0x554   :  { %v3038_v15 = vpop.f32.mrb[12].mxu1 }
 0x555   :  { %v972_v16 = vpop.f32.mrb[13].mxu1  ;;  %v994_v19 = vpack.c.bf16 %v3038_v15, %v3038_v15 }
 0x556   :  { %v3039_v17 = vpop.f32.mrb[14].mxu1 }
 0x557   :  { %v975_v10 = vpop.f32.mrb[15].mxu1 }
 0x558   :  { %v993_v18 = vpack.c.bf16 %v975_v10, %v972_v16 }
 0x55a   :  { %3044 = vmatprep.mubr.msk.bf16.mxu1 %vm74_vm0, %v993_v18 }
 0x55b   :  { %3045 = vmatmul.mubr.msk.bf16.vlgmr.msra.gmra.mrb[16].mxu1 %vm74_vm0, %v994_v19 }
 0x62e   :  { %v3046_v20 = vpop.f32.mrb[16].mxu1 }
 0x62f   :  { %v1037_v26 = vpop.f32.mrb[17].mxu1  ;;  %v1053_v27 = vadd.f32 %v3046_v20, %v3518_v1  ;;  %v1273_v20 = vld [vmem:[%s4347_s16] sm:$0xff] }
 0x630   :  { %v1051_v28 = vadd.f32 %v1037_v26, %v3513_v0  ;;  %v3047_v29 = vpop.f32.mrb[18].mxu1 }
 0x631   :  { %v1040_v31 = vpop.f32.mrb[19].mxu1  ;;  %v3789_v34 = vadd.f32 %v2737_v23, %v1053_v27  ;;  %v1275_v27 = vld [vmem:[%s4347_s16 + $0x10] sm:$0xff] }
 0x632   :  { %v3786_v32 = vadd.f32 %v2737_v23, %v1051_v28  ;;  %v1052_v33 = vadd.f32 %v1040_v31, %v3523_v2  ;;  %v1276_v28 = vld [vmem:[%s4347_s16 + $0x18] sm:$0xff]  ;;  %v1277_v31 = vld [vmem:[%s4347_s16 + $0x20] sm:$0xff] }
 0x633   :  { %v1072_v0 = vsel %vm74_vm0, %v3789_v34, 0.0  ;;  %v1292_v29 = vpack.c.bf16 %v1276_v28, %v1275_v27 }
 0x634   :  { %v3791_v36 = vadd.f32 %v2737_v23, %v1052_v33  ;;  %v1066_v37 = vsel %vm74_vm0, %v3786_v32, 0.0  ;;  %v1274_v23 = vld [vmem:[%s4347_s16 + $0x8] sm:$0xff] }
 0x635   :  { %1067 = vadd.xlane.f32.xlu0 %v1066_v37  ;;  %v1291_v26 = vpack.c.bf16 %v1274_v23, %v1273_v20  ;;  %v1278_v33 = vld [vmem:[%s4347_s16 + $0x28] sm:$0xff] }
 0x636   :  { %v1069_v30 = vsel %vm74_vm0, %v3791_v36, 0.0  ;;  %v1293_v37 = vpack.c.bf16 %v1278_v33, %v1277_v31 }
 0x637   :  { %1070 = vadd.xlane.f32.xlu1 %v1069_v30  ;;  %3056 = vmatprep.subr.bf16.mxu1 %v1291_v26  ;;  %v1279_v30 = vld [vmem:[%s4347_s16 + $0x30] sm:$0xff] }
 0x638   :  { %3057 = vmatpush3.bf16.msra.mxu1 %v1291_v26 }
 0x639   :  { %1073 = vadd.xlane.f32.xlu0 %v1072_v0  ;;  %3058 = vmatprep.subr.bf16.mxu1 %v1292_v29  ;;  %v1280_v0 = vld [vmem:[%s4347_s16 + $0x38] sm:$0xff] }
 0x63c   :  { %3059 = vmatpush3.bf16.msra.mxu1 %v1292_v29 }
 0x63d   :  { %3060 = vmatprep.subr.bf16.mxu1 %v1293_v37 }
 0x640   :  { %3061 = vmatpush3.bf16.msra.mxu1 %v1293_v37 }
 0x6c2   :  { %v1068_v1 = vpop.xlane.xlu0 %1067 }
 0x6c3   :  { %v1075_v35 = vmul.f32 0.03125, %v1068_v1  ;;  %v1294_v1 = vpack.c.bf16 %v1280_v0, %v1279_v30 }
 0x6c4   :  { %v1071_v38 = vpop.xlane.xlu1 %1070 }
 0x6c5   :  { %v1078_v2 = vsub.f32 %v3786_v32, %v1075_v35  ;;  %v1076_v39 = vmul.f32 0.03125, %v1071_v38  ;;  %3062 = vmatprep.subr.bf16.mxu1 %v1294_v1  ;;  %v1281_v35 = vld [vmem:[%s4347_s16 + $0x40] sm:$0xff]  ;;  %v1282_v38 = vld [vmem:[%s4347_s16 + $0x48] sm:$0xff] }
 0x6c6   :  { %v1074_v40 = vpop.xlane.xlu0 %1073  ;;  %3063 = vmatpush3.bf16.msra.mxu1 %v1294_v1 }
 0x6c7   :  { %v1079_v41 = vsub.f32 %v3791_v36, %v1076_v39  ;;  %v1077_v42 = vmul.f32 0.03125, %v1074_v40  ;;  %v1081_v43 = vmul.f32 %v1078_v2, %v1078_v2  ;;  %v1283_v39 = vld [vmem:[%s4347_s16 + $0x50] sm:$0xff]  ;;  %v1284_v40 = vld [vmem:[%s4347_s16 + $0x58] sm:$0xff] }
 0x6c9   :  { %v1080_v44 = vsub.f32 %v3789_v34, %v1077_v42  ;;  %v1084_v46 = vsel %vm74_vm0, %v1081_v43, 0.0  ;;  %v1082_v45 = vmul.f32 %v1079_v41, %v1079_v41  ;;  %v1285_v42 = vld [vmem:[%s4347_s16 + $0x60] sm:$0xff]  ;;  %v1286_v43 = vld [vmem:[%s4347_s16 + $0x68] sm:$0xff] }
 0x6ca   :  { %1085 = vadd.xlane.f32.xlu1 %v1084_v46  ;;  %v1287_v46 = vld [vmem:[%s4347_s16 + $0x70] sm:$0xff] }
 0x6cb   :  { %v1087_v58 = vsel %vm74_vm0, %v1082_v45, 0.0  ;;  %v1083_v47 = vmul.f32 %v1080_v44, %v1080_v44  ;;  %v1288_v45 = vld [vmem:[%s4347_s16 + $0x78] sm:$0xff] }
 0x6cc   :  { %1088 = vadd.xlane.f32.xlu0 %v1087_v58  ;;  %v1298_v58 = vpack.c.bf16 %v1288_v45, %v1287_v46 }
 0x6cd   :  { %v1090_v48 = vsel %vm74_vm0, %v1083_v47, 0.0  ;;  %v2740_v47 = vld [vmem:[%s4348_s15] ss:$0 sm:$0xff] }
 0x6ce   :  { %1091 = vadd.xlane.f32.xlu1 %v1090_v48 }
 0x757   :  { %v1086_v55 = vpop.xlane.xlu1 %1085 }
 0x758   :  { %v1093_v56 = vmul.f32 0.03125, %v1086_v55 }
 0x759   :  { %v1089_v57 = vpop.xlane.xlu0 %1088 }
 0x75a   :  { %v1096_v61 = vadd.f32 1e-05, %v1093_v56  ;;  %v1094_v59 = vmul.f32 0.03125, %v1089_v57 }
 0x75b   :  { %v1092_v60 = vpop.xlane.xlu1 %1091 }
 0x75c   :  { %3304 = vrsqrt.f32 %v1096_v61  ;;  %v1097_v62 = vadd.f32 1e-05, %v1094_v59  ;;  %v1095_v4 = vmul.f32 0.03125, %v1092_v60 }
 0x75e   :  { %3306 = vrsqrt.f32 %v1097_v62  ;;  %v1098_v6 = vadd.f32 1e-05, %v1095_v4 }
 0x760   :  { %3308 = vrsqrt.f32 %v1098_v6 }
 0x766   :  { %v3305_v9 = vpop.eup %3304 }
 0x767   :  { %v1102_v7 = vmul.f32 %v3305_v9, %v1078_v2  ;;  %v1295_v2 = vpack.c.bf16 %v1282_v38, %v1281_v35 }
 0x768   :  { %v3307_v5 = vpop.eup %3306 }
 0x769   :  { %v1103_v8 = vmul.f32 %v3307_v5, %v1079_v41  ;;  %v1111_v11 = vmul.f32 %v2738_v3, %v1102_v7  ;;  %3064 = vmatprep.subr.bf16.mxu1 %v1295_v2  ;;  %v1296_v41 = vpack.c.bf16 %v1284_v40, %v1283_v39 }
 0x76a   :  { %v3309_v12 = vpop.eup %3308  ;;  %3065 = vmatpush3.bf16.msra.mxu1 %v1295_v2 }
 0x76b   :  { %v1104_v13 = vmul.f32 %v3309_v12, %v1080_v44  ;;  %v1112_v14 = vmul.f32 %v2738_v3, %v1103_v8  ;;  %v1120_v15 = vadd.f32 %v2739_v63, %v1111_v11  ;;  %3066 = vmatprep.subr.bf16.mxu1 %v1296_v41  ;;  %v1297_v44 = vpack.c.bf16 %v1286_v43, %v1285_v42 }
 0x76d   :  { %v1121_v16 = vadd.f32 %v2739_v63, %v1112_v14  ;;  %v1113_v17 = vmul.f32 %v2738_v3, %v1104_v13 }
 0x76e   :  { %3067 = vmatpush3.bf16.msra.mxu1 %v1296_v41 }
 0x76f   :  { %v1127_v10 = vpack.c.bf16 %v1121_v16, %v1120_v15  ;;  %v1122_v18 = vadd.f32 %v2739_v63, %v1113_v17  ;;  %3068 = vmatprep.subr.bf16.mxu1 %v1297_v44 }
 0x771   :  { %3052 = vmatprep.mubr.msk.bf16.mxu0 %vm74_vm0, %v1127_v10  ;;  %v1128_v19 = vpack.c.bf16 %v1122_v18, %v1122_v18 }
 0x772   :  { %3069 = vmatpush3.bf16.msra.mxu1 %v1297_v44 }
 0x773   :  { %3053 = vmatmul.mubr.msk.bf16.vlgmr.msra.gmra.mrb[16].mxu0 %vm74_vm0, %v1128_v19  ;;  %3070 = vmatprep.subr.bf16.mxu1 %v1298_v58 }
 0x776   :  { %3071 = vmatpush3.bf16.msra.mxu1 %v1298_v58 }
 0x846   :  { %v3054_v48 = vpop.f32.mrb[16].mxu0 }
 0x847   :  { %v3876_v49 = vadd.f32 %v3054_v48, %v2740_v47  ;;  %v1178_v50 = vpop.f32.mrb[17].mxu0 }
 0x848   :  { %v3878_v51 = vadd.f32 %v2740_v47, %v1178_v50  ;;  %v3055_v52 = vpop.f32.mrb[18].mxu0 }
 0x849   :  { %v3881_v53 = vmul.f32 0.70710677, %v3876_v49  ;;  %v1181_v54 = vpop.f32.mrb[19].mxu0 }
 0x84a   :  { %v3884_v55 = vmul.f32 0.70710677, %v3878_v51  ;;  %v3886_v56 = vadd.f32 %v2740_v47, %v1181_v54 }
 0x84b   :  { %v1206_v57 = vand.u32 2147483647, %v3881_v53  ;;  %vm1200_vm13 = vcmp.ge.f32.partialorder %v3881_v53, 0.0 }
 0x84c   :  { %v1204_v61 = vand.u32 2147483647, %v3884_v55  ;;  %v3891_v60 = vmul.f32 0.70710677, %v3886_v56  ;;  %vm1198_vm14 = vcmp.ge.f32.partialorder %v3884_v55, 0.0 }
 0x84d   :  { %v1209_v59 = vmul.f32 0.3275911, %v1206_v57  ;;  %v1248_v5 = vsub.f32 0.0, %v1206_v57 }
 0x84e   :  { %v1207_v62 = vmul.f32 0.3275911, %v1204_v61  ;;  %v1205_v6 = vand.u32 2147483647, %v3891_v60  ;;  %v1246_v8 = vsub.f32 0.0, %v1204_v61  ;;  %vm1199_vm15 = vcmp.ge.f32.partialorder %v3891_v60, 0.0 }
 0x84f   :  { %v1212_v4 = vadd.f32 1.0, %v1209_v59  ;;  %v1251_v12 = vmul.f32 %v1248_v5, %v1206_v57 }
 0x850   :  { %v1210_v9 = vadd.f32 1.0, %v1207_v62  ;;  %v1208_v3 = vmul.f32 0.3275911, %v1205_v6  ;;  %v1247_v63 = vsub.f32 0.0, %v1205_v6  ;;  %v1249_v15 = vmul.f32 %v1246_v8, %v1204_v61 }
 0x851   :  { %3310 = vrcp.f32 %v1212_v4  ;;  %v1256_v18 = vmul.f32 1.442695, %v1251_v12  ;;  %v3404_v62 = vmov -1.0  }
 0x852   :  { %3312 = vrcp.f32 %v1210_v9  ;;  %v1211_v7 = vadd.f32 1.0, %v1208_v3  ;;  %v1250_v20 = vmul.f32 %v1247_v63, %v1205_v6  ;;  %v1252_v26 = vmul.f32 1.442695, %v1249_v15 }
 0x853   :  { %v1203_v4 = vsel %vm1200_vm13, 1.0, %v3404_v62  ;;  %v1201_v3 = vsel %vm1198_vm14, 1.0, %v3404_v62  ;;  %v1194_v63 = vmul.f32 0.5, %v3876_v49 }
 0x854   :  { %3314 = vrcp.f32 %v1211_v7  ;;  %v1254_v37 = vmul.f32 1.442695, %v1250_v20  ;;  %v2743_v20 = vld [vmem:[%s4349_s17] ss:$0 sm:$0xff] }
 0x855   :  { %3316 = vpow2.f32 %v1256_v18 }
 0x856   :  { %3318 = vpow2.f32 %v1252_v26 }
 0x857   :  { %3320 = vpow2.f32 %v1254_v37 }
 0x85b   :  { %v3311_v11 = vpop.eup %3310 }
 0x85c   :  { %v3313_v13 = vpop.eup %3312  ;;  %v1221_v14 = vmul.f32 1.0614054, %v3311_v11 }
 0x85d   :  { %v1219_v16 = vmul.f32 1.0614054, %v3313_v13 }
 0x85e   :  { %v1224_v17 = vadd.f32 -1.4531521, %v1221_v14  ;;  %v3315_v10 = vpop.eup %3314  ;;  %v1193_v14 = vmul.f32 0.5, %v3886_v56 }
 0x85f   :  { %v1222_v19 = vadd.f32 -1.4531521, %v1219_v16  ;;  %v1220_v27 = vmul.f32 1.0614054, %v3315_v10  ;;  %v3317_v58 = vpop.eup %3316 }
 0x860   :  { %v1227_v23 = vmul.f32 %v3311_v11, %v1224_v17  ;;  %v3319_v48 = vpop.eup %3318 }
 0x861   :  { %v1225_v28 = vmul.f32 %v3313_v13, %v1222_v19  ;;  %v1223_v31 = vadd.f32 -1.4531521, %v1220_v27  ;;  %v3321_v59 = vpop.eup %3320 }
 0x862   :  { %v1230_v29 = vadd.f32 1.4214138, %v1227_v23 }
 0x863   :  { %v1228_v33 = vadd.f32 1.4214138, %v1225_v28  ;;  %v1226_v0 = vmul.f32 %v3315_v10, %v1223_v31 }
 0x864   :  { %v1233_v30 = vmul.f32 %v3311_v11, %v1230_v29 }
 0x865   :  { %v1231_v1 = vmul.f32 %v3313_v13, %v1228_v33  ;;  %v1229_v38 = vadd.f32 1.4214138, %v1226_v0 }
 0x866   :  { %v1236_v35 = vadd.f32 -0.28449672, %v1233_v30 }
 0x867   :  { %v1234_v2 = vadd.f32 -0.28449672, %v1231_v1  ;;  %v1232_v40 = vmul.f32 %v3315_v10, %v1229_v38 }
 0x868   :  { %v1239_v39 = vmul.f32 %v3311_v11, %v1236_v35 }
 0x869   :  { %v1237_v41 = vmul.f32 %v3313_v13, %v1234_v2  ;;  %v1235_v43 = vadd.f32 -0.28449672, %v1232_v40 }
 0x86a   :  { %v1242_v42 = vadd.f32 0.2548296, %v1239_v39 }
 0x86b   :  { %v1240_v44 = vadd.f32 0.2548296, %v1237_v41  ;;  %v1238_v45 = vmul.f32 %v3315_v10, %v1235_v43 }
 0x86c   :  { %v1245_v46 = vmul.f32 %v3311_v11, %v1242_v42  ;;  %v1202_v11 = vsel %vm1199_vm15, 1.0, %v3404_v62 }
 0x86d   :  { %v1243_v47 = vmul.f32 %v3313_v13, %v1240_v44  ;;  %v1241_v52 = vadd.f32 0.2548296, %v1238_v45  ;;  %v1192_v13 = vmul.f32 0.5, %v3878_v51  ;;  %v2748_v45 = vld [vmem:[%s4364_s28 + $0x20] sm:$0xff] }
 0x86e   :  { %v1260_v50 = vmul.f32 %v3317_v58, %v1245_v46  ;;  %v2749_v58 = vld [vmem:[%s4364_s28 + $0x28] sm:$0xff] }
 0x86f   :  { %v1258_v54 = vmul.f32 %v3319_v48, %v1243_v47  ;;  %v1244_v61 = vmul.f32 %v3315_v10, %v1241_v52  ;;  %v2750_v47 = vld [vmem:[%s4364_s28 + $0x30] sm:$0xff]  ;;  %v1428_v48 = vpack.c.bf16 %v2749_v58, %v2748_v45 }
 0x870   :  { %v1263_v57 = vsub.f32 1.0, %v1260_v50  ;;  %v2751_v50 = vld [vmem:[%s4364_s28 + $0x38] sm:$0xff] }
 0x871   :  { %v1261_v6 = vsub.f32 1.0, %v1258_v54  ;;  %v1259_v7 = vmul.f32 %v3321_v59, %v1244_v61  ;;  %v1429_v52 = vpack.c.bf16 %v2751_v50, %v2750_v47  ;;  %3076 = vmatprep.subr.bf16.mxu0 %v1428_v48  ;;  %v2756_v54 = vld [vmem:[%s4365_s21 + $0x20] sm:$0xff] }
 0x872   :  { %v1266_v9 = vmul.f32 %v1263_v57, %v1203_v4  ;;  %3077 = vmatpush3.bf16.msra.mxu0 %v1428_v48  ;;  %v2757_v57 = vld [vmem:[%s4365_s21 + $0x28] sm:$0xff] }
 0x873   :  { %v1264_v5 = vmul.f32 %v1261_v6, %v1201_v3  ;;  %v1262_v53 = vsub.f32 1.0, %v1259_v7  ;;  %3078 = vmatprep.subr.bf16.mxu0 %v1429_v52  ;;  %v1500_v61 = vpack.c.bf16 %v2757_v57, %v2756_v54 }
 0x874   :  { %v1269_v8 = vadd.f32 1.0, %v1266_v9 }
 0x875   :  { %v1267_v55 = vadd.f32 1.0, %v1264_v5  ;;  %v1265_v12 = vmul.f32 %v1262_v53, %v1202_v11 }
 0x876   :  { %v1272_v16 = vmul.f32 %v1269_v8, %v1194_v63  ;;  %3079 = vmatpush3.bf16.msra.mxu0 %v1429_v52 }
 0x877   :  { %v1268_v15 = vadd.f32 1.0, %v1265_v12  ;;  %v1270_v17 = vmul.f32 %v1267_v55, %v1192_v13  ;;  %3084 = vmatprep.subr.bf16.mxu0 %v1500_v61  ;;  %v2746_v55 = vld [vmem:[%s4367_s6 + $0x1] ss:$0 sm:$0xff] }
 0x878   :  { %v1290_v60 = vpack.c.bf16 %v1272_v16, %v1272_v16  ;;  %v2747_v13 = vld [vmem:[%s4337_s3 + $0x1] ss:$0 sm:$0xff] }
 0x879   :  { %v1271_v10 = vmul.f32 %v1268_v15, %v1193_v14 }
 0x87b   :  { %v1289_v18 = vpack.c.bf16 %v1271_v10, %v1270_v17 }
 0x87d   :  { %3072 = vmatprep.mubr.bf16.mxu1 %v1289_v18 }
 0x87e   :  { %3073 = vmatmul.mubr.bf16.vlgmr.msra.gmra.mrb[20].mxu1 %v1290_v60 }
 0x951   :  { %v3074_v19 = vpop.f32.mrb[20].mxu1 }
 0x952   :  { %v1333_v23 = vpop.f32.mrb[21].mxu1  ;;  %v1349_v49 = vadd.f32 %v3074_v19, %v3789_v34 }
 0x953   :  { %v1347_v51 = vadd.f32 %v1333_v23, %v3786_v32  ;;  %v3075_v26 = vpop.f32.mrb[22].mxu1  ;;  %v2759_v23 = vld [vmem:[%s4365_s21 + $0x38] sm:$0xff] }
 0x954   :  { %v1336_v56 = vpop.f32.mrb[23].mxu1  ;;  %v3911_v29 = vadd.f32 %v2743_v20, %v1349_v49 }
 0x955   :  { %v3908_v27 = vadd.f32 %v2743_v20, %v1347_v51  ;;  %v1348_v28 = vadd.f32 %v1336_v56, %v3791_v36 }
 0x956   :  { %v1370_v32 = vsel %vm74_vm0, %v3911_v29, 0.0 }
 0x957   :  { %v3913_v31 = vadd.f32 %v2743_v20, %v1348_v28  ;;  %v1364_v33 = vsel %vm74_vm0, %v3908_v27, 0.0  ;;  %v2758_v20 = vld [vmem:[%s4365_s21 + $0x30] sm:$0xff]  ;;  %v2764_v28 = vld [vmem:[%s4366_s0 + $0x20] sm:$0xff] }
 0x958   :  { %1365 = vadd.xlane.f32.xlu0 %v1364_v33  ;;  %v1501_v56 = vpack.c.bf16 %v2759_v23, %v2758_v20  ;;  %v2765_v33 = vld [vmem:[%s4366_s0 + $0x28] sm:$0xff] }
 0x959   :  { %v1367_v37 = vsel %vm74_vm0, %v3913_v31, 0.0 }
 0x95a   :  { %1368 = vadd.xlane.f32.xlu1 %v1367_v37  ;;  %v1563_v37 = vpack.c.bf16 %v2765_v33, %v2764_v28 }
 0x95c   :  { %1371 = vadd.xlane.f32.xlu0 %v1370_v32  ;;  %v2766_v32 = vld [vmem:[%s4366_s0 + $0x30] sm:$0xff] }
 0x9e5   :  { %v1366_v34 = vpop.xlane.xlu0 %1365 }
 0x9e6   :  { %v1373_v30 = vmul.f32 0.03125, %v1366_v34  ;;  %v2767_v34 = vld [vmem:[%s4366_s0 + $0x38] sm:$0xff] }
 0x9e7   :  { %v1369_v0 = vpop.xlane.xlu1 %1368 }
 0x9e8   :  { %v1376_v36 = vsub.f32 %v3908_v27, %v1373_v30  ;;  %v1374_v1 = vmul.f32 0.03125, %v1369_v0  ;;  %v1564_v30 = vpack.c.bf16 %v2767_v34, %v2766_v32  ;;  %v2753_v0 = vld [vmem:[%s4338_s5 + $0x1] ss:$0 sm:$0xff] }
 0x9e9   :  { %v1372_v35 = vpop.xlane.xlu0 %1371 }
 0x9ea   :  { %v1377_v38 = vsub.f32 %v3913_v31, %v1374_v1  ;;  %v1375_v2 = vmul.f32 0.03125, %v1372_v35  ;;  %v1379_v39 = vmul.f32 %v1376_v36, %v1376_v36 }
 0x9ec   :  { %v1378_v40 = vsub.f32 %v3911_v29, %v1375_v2  ;;  %v1382_v41 = vsel %vm74_vm0, %v1379_v39, 0.0  ;;  %v1380_v42 = vmul.f32 %v1377_v38, %v1377_v38 }
 0x9ed   :  { %1383 = vadd.xlane.f32.xlu1 %v1382_v41 }
 0x9ee   :  { %v1385_v43 = vsel %vm74_vm0, %v1380_v42, 0.0  ;;  %v1381_v44 = vmul.f32 %v1378_v40, %v1378_v40 }
 0x9ef   :  { %1386 = vadd.xlane.f32.xlu0 %v1385_v43  ;;  %v2761_v43 = vld [vmem:[%s4339_s7 + $0x1] ss:$0 sm:$0xff] }
 0x9f0   :  { %v1388_v46 = vsel %vm74_vm0, %v1381_v44, 0.0 }
 0x9f1   :  { %1389 = vadd.xlane.f32.xlu1 %v1388_v46 }
 0xa7a   :  { %v1384_v59 = vpop.xlane.xlu1 %1383 }
 0xa7b   :  { %v1391_v4 = vmul.f32 0.03125, %v1384_v59 }
 0xa7c   :  { %v1387_v6 = vpop.xlane.xlu0 %1386 }
 0xa7d   :  { %v1394_v9 = vadd.f32 1e-05, %v1391_v4  ;;  %v1392_v3 = vmul.f32 0.03125, %v1387_v6 }
 0xa7e   :  { %v1390_v7 = vpop.xlane.xlu1 %1389 }
 0xa7f   :  { %3322 = vrsqrt.f32 %v1394_v9  ;;  %v1395_v5 = vadd.f32 1e-05, %v1392_v3  ;;  %v1393_v53 = vmul.f32 0.03125, %v1390_v7 }
 0xa81   :  { %3324 = vrsqrt.f32 %v1395_v5  ;;  %v1396_v8 = vadd.f32 1e-05, %v1393_v53 }
 0xa83   :  { %3326 = vrsqrt.f32 %v1396_v8  ;;  %v2769_v8 = vld [vmem:[%s4340_s9 + $0x1] ss:$0 sm:$0xff] }
 0xa89   :  { %v3323_v11 = vpop.eup %3322 }
 0xa8a   :  { %v1400_v12 = vmul.f32 %v3323_v11, %v1376_v36 }
 0xa8b   :  { %v3325_v63 = vpop.eup %3324 }
 0xa8c   :  { %v1401_v14 = vmul.f32 %v3325_v63, %v1377_v38  ;;  %v1409_v15 = vmul.f32 %v2746_v55, %v1400_v12 }
 0xa8d   :  { %v3327_v16 = vpop.eup %3326 }
 0xa8e   :  { %v1402_v17 = vmul.f32 %v3327_v16, %v1378_v40  ;;  %v1410_v10 = vmul.f32 %v2746_v55, %v1401_v14  ;;  %v1418_v18 = vadd.f32 %v2747_v13, %v1409_v15 }
 0xa90   :  { %v1419_v60 = vadd.f32 %v2747_v13, %v1410_v10  ;;  %v1411_v19 = vmul.f32 %v2746_v55, %v1402_v17 }
 0xa92   :  { %v1426_v49 = vpack.c.bf16 %v1419_v60, %v1418_v18  ;;  %v1420_v51 = vadd.f32 %v2747_v13, %v1411_v19 }
 0xa94   :  { %3080 = vmatprep.mubr.msk.bf16.mxu0 %vm74_vm0, %v1426_v49  ;;  %v1427_v26 = vpack.c.bf16 %v1420_v51, %v1420_v51 }
 0xa96   :  { %3081 = vmatmul.mubr.msk.bf16.vlgmr.msra.gmra.mrb[20].mxu0 %vm74_vm0, %v1427_v26 }
 0xa97   :  { %3085 = vmatpush3.bf16.msra.mxu0 %v1500_v61  ;;  %3088 = vmatprep.mubr.msk.bf16.mxu0 %vm74_vm0, %v1426_v49 }
 0xa98   :  { %3086 = vmatprep.subr.bf16.mxu0 %v1501_v56 }
 0xa9b   :  { %3087 = vmatpush3.bf16.msra.mxu0 %v1501_v56 }
 0xa9c   :  { %3092 = vmatprep.subr.bf16.mxu0 %v1563_v37 }
 0xa9e   :  { %3089 = vmatmul.mubr.msk.bf16.vlgmr.msra.gmra.mrb[24].mxu0 %vm74_vm0, %v1427_v26 }
 0xa9f   :  { %3093 = vmatpush3.bf16.msra.mxu0 %v1563_v37  ;;  %3096 = vmatprep.mubr.msk.bf16.mxu0 %vm74_vm0, %v1426_v49 }
 0xaa0   :  { %3094 = vmatprep.subr.bf16.mxu0 %v1564_v30 }
 0xaa3   :  { %3095 = vmatpush3.bf16.msra.mxu0 %v1564_v30 }
 0xaa6   :  { %3097 = vmatmul.mubr.msk.bf16.vlgmr.msra.gmra.mrb[28].mxu0 %vm74_vm0, %v1427_v26 }
 0xb69   :  { %v3082_v36 = vpop.f32.mrb[20].mxu0 }
 0xb6a   :  { %v1478_v1 = vpop.f32.mrb[21].mxu0  ;;  %v1487_v11 = vadd.f32 %v3082_v36, %v2753_v0 }
 0xb6b   :  { %v1479_v35 = vadd.f32 %v2753_v0, %v1478_v1  ;;  %v3083_v38 = vpop.f32.mrb[22].mxu0 }
 0xb6c   :  { %v1481_v2 = vpop.f32.mrb[23].mxu0  ;;  %v1494_v17 = vmul.f32 0.35355338, %v1487_v11 }
 0xb6d   :  { %v1482_v39 = vadd.f32 %v2753_v0, %v1481_v2  ;;  %v1492_v40 = vmul.f32 0.35355338, %v1479_v35 }
 0xb6e   :  { %v1623_v30 = vmul.f32 %v3591_v21, %v1494_v17  ;;  %v1730_v0 = vmul.f32 %v3595_v24, %v1494_v17 }
 0xb6f   :  { %v1493_v41 = vmul.f32 0.35355338, %v1482_v39  ;;  %v1621_v44 = vmul.f32 %v3591_v21, %v1492_v40  ;;  %v1728_v46 = vmul.f32 %v3595_v24, %v1492_v40  ;;  %v3984_v45 = vmul.f32 %v3593_v22, %v1492_v40 }
 0xb70   :  { %v3993_v57 = vmul.f32 %v3597_v25, %v1492_v40  ;;  %v1625_v1 = vpack.c.bf16 %v1623_v30, %v1623_v30  ;;  %v1732_v35 = vpack.c.bf16 %v1730_v0, %v1730_v0  ;;  %v2102_v40 = vmul.f32 %v3597_v25, %v1494_v17 }
 0xb71   :  { %v3090_v42 = vpop.f32.mrb[24].mxu0  ;;  %v1622_v47 = vmul.f32 %v3591_v21, %v1493_v41  ;;  %v1729_v48 = vmul.f32 %v3595_v24, %v1493_v41  ;;  %v1942_v50 = vmul.f32 %v3593_v22, %v1493_v41  ;;  %v3990_v52 = vmul.f32 %v3597_v25, %v1493_v41 }
 0xb72   :  { %v1544_v58 = vpop.f32.mrb[25].mxu0  ;;  %v1553_v61 = vadd.f32 %v3090_v42, %v2761_v43  ;;  %v2104_v41 = vpack.c.bf16 %v2102_v40, %v2102_v40 }
 0xb73   :  { %v3091_v54 = vpop.f32.mrb[26].mxu0  ;;  %v1545_v59 = vadd.f32 %v2761_v43, %v1544_v58  ;;  %v1624_v9 = vpack.c.bf16 %v1622_v47, %v1621_v44  ;;  %v1731_v3 = vpack.c.bf16 %v1729_v48, %v1728_v46  ;;  %v1944_v7 = vpack.c.bf16 %v1942_v50, %v3984_v45  ;;  %v3400_v45 = vld [vmem:[%s4341_s1] sm:$0xff] }
 0xb74   :  { %v1547_v4 = vpop.f32.mrb[27].mxu0  ;;  %v2103_v5 = vpack.c.bf16 %v3990_v52, %v3993_v57  ;;  %v1627_v55 = vpack.c.bf16 %v1553_v61, %v1553_v61  ;;  %v3401_v54 = vld [vmem:[%s4341_s1 + $0x10] sm:$0xff]  ;;  %v3402_v61 = vld [vmem:[%s4341_s1 + $0x8] sm:$0xff] }
 0xb75   :  { %v1548_v6 = vadd.f32 %v2761_v43, %v1547_v4  ;;  %3104 = vmatprep.mubr.msk.bf16.mxu0 %vm74_vm0, %v1624_v9  ;;  %3112 = vmatprep.mubr.msk.bf16.mxu1 %vm74_vm0, %v1731_v3 }
 0xb76   :  { %v1638_v28 = vsel %vm74_vm0, %v1627_v55, 0 }
 0xb77   :  { %v1626_v53 = vpack.c.bf16 %v1548_v6, %v1545_v59 }
 0xb79   :  { %v3098_v12 = vpop.f32.mrb[28].mxu0  ;;  %3236 = vmatprep.subr.msk.bf16.mxu0 %vm74_vm0, %v1626_v53  ;;  %3238 = vmatprep.subr.msk.bf16.mxu1 %vm74_vm0, %v1626_v53  ;;  %v1635_v63 = vsel %vm74_vm0, %v1626_v53, 0 }
 0xb7a   :  { %v1607_v13 = vpop.f32.mrb[29].mxu0  ;;  %3101 = vmatpush3.bf16.xpose.msra.mxu0 %v1635_v63  ;;  %3109 = vmatpush3.bf16.xpose.msra.mxu1 %v1635_v63  ;;  %v4016_v56 = vadd.f32 %v3098_v12, %v2769_v8 }
 0xb7b   :  { %v1608_v14 = vadd.f32 %v2769_v8, %v1607_v13  ;;  %v3099_v15 = vpop.f32.mrb[30].mxu0  ;;  %3237 = vmatprep.subr.msk.bf16.mxu0 %vm74_vm0, %v1627_v55  ;;  %3239 = vmatprep.subr.msk.bf16.mxu1 %vm74_vm0, %v1627_v55 }
 0xb7c   :  { %v1610_v16 = vpop.f32.mrb[31].mxu0  ;;  %v1822_v36 = vmul.f32 %v3595_v24, %v4016_v56 }
 0xb7d   :  { %v1611_v10 = vadd.f32 %v2769_v8, %v1610_v16  ;;  %v1820_v18 = vmul.f32 %v3595_v24, %v1608_v14  ;;  %v1721_v60 = vmul.f32 %v3591_v21, %v1608_v14  ;;  %v2033_v19 = vmul.f32 %v3593_v22, %v1608_v14 }
 0xb7e   :  { %v2192_v20 = vmul.f32 %v3597_v25, %v1608_v14  ;;  %v1826_v38 = vpack.c.bf16 %v1822_v36, %v1822_v36 }
 0xb7f   :  { %v1821_v23 = vmul.f32 %v3595_v24, %v1611_v10  ;;  %v1722_v49 = vmul.f32 %v3591_v21, %v1611_v10  ;;  %v2034_v51 = vmul.f32 %v3593_v22, %v1611_v10  ;;  %v2193_v26 = vmul.f32 %v3597_v25, %v1611_v10 }
 0xb80   :  { %v1834_v2 = vsel %vm552_vm11, %v1826_v38, 0  ;;  %v1943_v24 = vmul.f32 %v3593_v22, %v1494_v17 }
 0xb81   :  { %v1825_v33 = vpack.c.bf16 %v1821_v23, %v1820_v18  ;;  %v4019_v37 = vpack.c.bf16 %v1722_v49, %v1721_v60  ;;  %v4021_v32 = vpack.c.bf16 %v2034_v51, %v2033_v19  ;;  %v4023_v34 = vpack.c.bf16 %v2193_v26, %v2192_v20 }
 0xb82   :  { %3103 = vmatpush3.bf16.xpose.msra.mxu0 %v1638_v28  ;;  %3111 = vmatpush3.bf16.xpose.msra.mxu1 %v1638_v28  ;;  %v1945_v39 = vpack.c.bf16 %v1943_v24, %v1943_v24 }
 0xb83   :  { %3116 = vmatprep.subr.bf16.mxu0 %v1825_v33  ;;  %3242 = vmatprep.subr.msk.bf16.mxu1 %vm74_vm0, %v1626_v53 }
 0xb89   :  { %3105 = vmatmul.mubr.msk.bf16.vlgmr.msra.gmra.mrb[32].mxu0 %vm74_vm0, %v1625_v1  ;;  %3113 = vmatmul.mubr.msk.bf16.vlgmr.msra.gmra.mrb[24].mxu1 %vm74_vm0, %v1732_v35 }
 0xb8a   :  { %3117 = vmatpush3.bf16.msra.mxu0 %v1825_v33  ;;  %3133 = vmatpush3.bf16.xpose.msra.mxu1 %v1635_v63 }
 0xb8b   :  { %3136 = vmatprep.mubr.msk.bf16.mxu1 %vm74_vm0, %v1944_v7  ;;  %3240 = vmatprep.subr.msk.bf16.mxu0 %vm552_vm11, %v1826_v38 }
 0xb8c   :  { %3243 = vmatprep.subr.msk.bf16.mxu1 %vm74_vm0, %v1627_v55 }
 0xb8e   :  { %3119 = vmatpush3.bf16.msra.mxu0 %v1834_v2 }
 0xb8f   :  { %3124 = vmatprep.subr.bf16.mxu0 %v4019_v37 }
 0xb92   :  { %3135 = vmatpush3.bf16.xpose.msra.mxu1 %v1638_v28 }
 0xb93   :  { %3245 = vmatprep.subr.msk.bf16.mxu1 %vm74_vm0, %v1626_v53 }
 0xb99   :  { %3137 = vmatmul.mubr.msk.bf16.vlgmr.msra.gmra.mrb[28].mxu1 %vm74_vm0, %v1945_v39 }
 0xb9a   :  { %3149 = vmatpush3.bf16.xpose.msra.mxu1 %v1635_v63  ;;  %3152 = vmatprep.mubr.msk.bf16.mxu1 %vm74_vm0, %v2103_v5 }
 0xb9b   :  { %3246 = vmatprep.subr.msk.bf16.mxu1 %vm74_vm0, %v1627_v55 }
 0xba2   :  { %3151 = vmatpush3.bf16.xpose.msra.mxu1 %v1638_v28 }
 0xba9   :  { %3153 = vmatmul.mubr.msk.bf16.vlgmr.msra.gmra.mrb[32].mxu1 %vm74_vm0, %v2104_v41 }
 0xc5c   :  { %v3106_v42 = vpop.f32.mrb[32].mxu0  ;;  %v3114_v43 = vpop.f32.mrb[24].mxu1 }
 0xc5d   :  { %v1674_v44 = vpop.f32.mrb[33].mxu0  ;;  %v1773_v46 = vpop.f32.mrb[25].mxu1  ;;  %v1782_v57 = vadd.f32 %v3401_v54, %v3114_v43  ;;  %v1683_v5 = vadd.f32 %v3401_v54, %v3106_v42 }
 0xc5e   :  { %v1774_v58 = vadd.f32 %v3400_v45, %v1773_v46  ;;  %v3107_v47 = vpop.f32.mrb[34].mxu0  ;;  %v3115_v48 = vpop.f32.mrb[26].mxu1  ;;  %v1675_v6 = vadd.f32 %v3400_v45, %v1674_v44 }
 0xc5f   :  { %v1677_v50 = vpop.f32.mrb[35].mxu0  ;;  %v1776_v52 = vpop.f32.mrb[27].mxu1  ;;  %v1793_v7 = vsel %vm401_vm12, %v1782_v57, -inf  ;;  %v1694_v11 = vsel %vm401_vm12, %v1683_v5, -inf }
 0xc60   :  { %v1777_v59 = vadd.f32 %v3402_v61, %v1776_v52  ;;  %v1787_v4 = vsel %vm401_vm12, %v1774_v58, -inf  ;;  %v1678_v3 = vadd.f32 %v3402_v61, %v1677_v50  ;;  %v1688_v53 = vsel %vm401_vm12, %v1675_v6, -inf }
 0xc61   :  { %1788 = vmax.xlane.f32.xlu0 %v1787_v4 }
 0xc62   :  { %v1790_v9 = vsel %vm401_vm12, %v1777_v59, -inf  ;;  %v1691_v8 = vsel %vm401_vm12, %v1678_v3, -inf }
 0xc63   :  { %1791 = vmax.xlane.f32.xlu1 %v1790_v9 }
 0xc65   :  { %1794 = vmax.xlane.f32.xlu0 %v1793_v7 }
 0xc67   :  { %1689 = vmax.xlane.f32.xlu1 %v1688_v53 }
 0xc69   :  { %1692 = vmax.xlane.f32.xlu0 %v1691_v8 }
 0xc6b   :  { %1695 = vmax.xlane.f32.xlu1 %v1694_v11 }
 0xc6c   :  { %v3138_v55 = vpop.f32.mrb[28].mxu1 }
 0xc6d   :  { %v1986_v12 = vpop.f32.mrb[29].mxu1  ;;  %v4059_v15 = vadd.f32 %v3401_v54, %v3138_v55 }
 0xc6e   :  { %v1987_v63 = vadd.f32 %v3400_v45, %v1986_v12  ;;  %v3139_v13 = vpop.f32.mrb[30].mxu1 }
 0xc6f   :  { %v1989_v14 = vpop.f32.mrb[31].mxu1  ;;  %v2006_v18 = vsel %vm401_vm12, %v4059_v15, -inf }
 0xc70   :  { %v1990_v16 = vadd.f32 %v3402_v61, %v1989_v14  ;;  %v2000_v17 = vsel %vm401_vm12, %v1987_v63, -inf }
 0xc71   :  { %2001 = vmax.xlane.f32.xlu0 %v2000_v17 }
 0xc72   :  { %v2003_v10 = vsel %vm401_vm12, %v1990_v16, -inf }
 0xc73   :  { %2004 = vmax.xlane.f32.xlu1 %v2003_v10 }
 0xc75   :  { %2007 = vmax.xlane.f32.xlu0 %v2006_v18 }
 0xc7c   :  { %v3154_v60 = vpop.f32.mrb[32].mxu1 }
 0xc7d   :  { %v2145_v19 = vpop.f32.mrb[33].mxu1  ;;  %v4067_v51 = vadd.f32 %v3401_v54, %v3154_v60 }
 0xc7e   :  { %v4065_v20 = vadd.f32 %v3400_v45, %v2145_v19  ;;  %v3155_v23 = vpop.f32.mrb[34].mxu1 }
 0xc7f   :  { %v2148_v49 = vpop.f32.mrb[35].mxu1  ;;  %v2165_v30 = vsel %vm401_vm12, %v4067_v51, -inf }
 0xc80   :  { %v4069_v26 = vadd.f32 %v3402_v61, %v2148_v49  ;;  %v2159_v28 = vsel %vm401_vm12, %v4065_v20, -inf }
 0xc81   :  { %2160 = vmax.xlane.f32.xlu1 %v2159_v28 }
 0xc82   :  { %v2162_v33 = vsel %vm401_vm12, %v4069_v26, -inf }
 0xc83   :  { %2163 = vmax.xlane.f32.xlu0 %v2162_v33 }
 0xc85   :  { %2166 = vmax.xlane.f32.xlu1 %v2165_v30 }
 0xcee   :  { %v1789_v0 = vpop.xlane.xlu0 %1788 }
 0xcef   :  { %v1796_v36 = vsub.f32 %v1774_v58, %v1789_v0 }
 0xcf0   :  { %v1792_v1 = vpop.xlane.xlu1 %1791 }
 0xcf1   :  { %v1799_v35 = vmul.f32 1.442695, %v1796_v36  ;;  %v1797_v38 = vsub.f32 %v1777_v59, %v1792_v1 }
 0xcf2   :  { %v1795_v2 = vpop.xlane.xlu0 %1794 }
 0xcf3   :  { %3328 = vpow2.f32 %v1799_v35  ;;  %v1801_v24 = vmul.f32 1.442695, %v1797_v38  ;;  %v1798_v39 = vsub.f32 %v1782_v57, %v1795_v2 }
 0xcf4   :  { %v1690_v40 = vpop.xlane.xlu1 %1689 }
 0xcf5   :  { %3330 = vpow2.f32 %v1801_v24  ;;  %v1803_v41 = vmul.f32 1.442695, %v1798_v39  ;;  %v1697_v42 = vsub.f32 %v1675_v6, %v1690_v40 }
 0xcf6   :  { %v1693_v43 = vpop.xlane.xlu0 %1692 }
 0xcf7   :  { %3332 = vpow2.f32 %v1803_v41  ;;  %v1700_v44 = vmul.f32 1.442695, %v1697_v42  ;;  %v1698_v46 = vsub.f32 %v1678_v3, %v1693_v43 }
 0xcf8   :  { %v1696_v45 = vpop.xlane.xlu1 %1695 }
 0xcf9   :  { %3334 = vpow2.f32 %v1700_v44  ;;  %v1702_v47 = vmul.f32 1.442695, %v1698_v46  ;;  %v1699_v48 = vsub.f32 %v1683_v5, %v1696_v45 }
 0xcfb   :  { %3336 = vpow2.f32 %v1702_v47  ;;  %v1704_v58 = vmul.f32 1.442695, %v1699_v48 }
 0xcfd   :  { %v4077_v50 = vpop.eup %3328  ;;  %3338 = vpow2.f32 %v1704_v58 }
 0xcfe   :  { %v2002_v52 = vpop.xlane.xlu0 %2001  ;;  %v1805_v54 = vsel %vm401_vm12, %v4077_v50, 0.0 }
 0xcff   :  { %v4081_v57 = vpop.eup %3330  ;;  %v2009_v61 = vsub.f32 %v1987_v63, %v2002_v52  ;;  %1806 = vadd.xlane.f32.xlu0 %v1805_v54 }
 0xd00   :  { %v2005_v59 = vpop.xlane.xlu1 %2004  ;;  %v1808_v4 = vsel %vm401_vm12, %v4081_v57, 0.0 }
 0xd01   :  { %v4085_v6 = vpop.eup %3332  ;;  %v2012_v9 = vmul.f32 1.442695, %v2009_v61  ;;  %v2010_v3 = vsub.f32 %v1990_v16, %v2005_v59  ;;  %1809 = vadd.xlane.f32.xlu1 %v1808_v4  ;;  %v1723_v59 = vmul.f32 %v3591_v21, %v4016_v56 }
 0xd02   :  { %v2008_v7 = vpop.xlane.xlu0 %2007  ;;  %v1811_v5 = vsel %vm401_vm12, %v4085_v6, 0.0 }
 0xd03   :  { %v4089_v53 = vpop.eup %3334  ;;  %3340 = vpow2.f32 %v2012_v9  ;;  %v2014_v8 = vmul.f32 1.442695, %v2010_v3  ;;  %v2011_v11 = vsub.f32 %v4059_v15, %v2008_v7  ;;  %1812 = vadd.xlane.f32.xlu0 %v1811_v5 }
 0xd04   :  { %v1706_v55 = vsel %vm401_vm12, %v4089_v53, 0.0 }
 0xd05   :  { %v4094_v12 = vpop.eup %3336  ;;  %3342 = vpow2.f32 %v2014_v8  ;;  %v2016_v63 = vmul.f32 1.442695, %v2011_v11  ;;  %1707 = vadd.xlane.f32.xlu1 %v1706_v55 }
 0xd06   :  { %v1709_v13 = vsel %vm401_vm12, %v4094_v12, 0.0 }
 0xd07   :  { %v4098_v14 = vpop.eup %3338  ;;  %3344 = vpow2.f32 %v2016_v63  ;;  %1710 = vadd.xlane.f32.xlu0 %v1709_v13 }
 0xd08   :  { %v1712_v16 = vsel %vm401_vm12, %v4098_v14, 0.0 }
 0xd09   :  { %1713 = vadd.xlane.f32.xlu1 %v1712_v16 }
 0xd0d   :  { %v4102_v15 = vpop.eup %3340 }
 0xd0e   :  { %v2161_v17 = vpop.xlane.xlu1 %2160  ;;  %v2018_v10 = vsel %vm401_vm12, %v4102_v15, 0.0 }
 0xd0f   :  { %v4106_v18 = vpop.eup %3342  ;;  %v2168_v60 = vsub.f32 %v4065_v20, %v2161_v17  ;;  %2019 = vadd.xlane.f32.xlu0 %v2018_v10 }
 0xd10   :  { %v2164_v19 = vpop.xlane.xlu0 %2163  ;;  %v2021_v23 = vsel %vm401_vm12, %v4106_v18, 0.0 }
 0xd11   :  { %v4111_v49 = vpop.eup %3344  ;;  %v2171_v28 = vmul.f32 1.442695, %v2168_v60  ;;  %v2169_v33 = vsub.f32 %v4069_v26, %v2164_v19  ;;  %2022 = vadd.xlane.f32.xlu1 %v2021_v23 }
 0xd12   :  { %v2167_v30 = vpop.xlane.xlu1 %2166  ;;  %v2024_v0 = vsel %vm401_vm12, %v4111_v49, 0.0 }
 0xd13   :  { %3346 = vpow2.f32 %v2171_v28  ;;  %v2173_v36 = vmul.f32 1.442695, %v2169_v33  ;;  %v2170_v1 = vsub.f32 %v4067_v51, %v2167_v30  ;;  %2025 = vadd.xlane.f32.xlu0 %v2024_v0  ;;  %v2788_v33 = vld [vmem:[%s4342_s10 + $0x20] sm:$0xff]  ;;  %v2789_v30 = vld [vmem:[%s4342_s10 + $0x28] sm:$0xff] }
 0xd15   :  { %3348 = vpow2.f32 %v2173_v36  ;;  %v2175_v20 = vmul.f32 1.442695, %v2170_v1 }
 0xd17   :  { %3350 = vpow2.f32 %v2175_v20 }
 0xd1d   :  { %v4117_v35 = vpop.eup %3346 }
 0xd1e   :  { %v2177_v38 = vsel %vm401_vm12, %v4117_v35, 0.0 }
 0xd1f   :  { %v4121_v2 = vpop.eup %3348  ;;  %2178 = vadd.xlane.f32.xlu1 %v2177_v38 }
 0xd20   :  { %v2180_v26 = vsel %vm401_vm12, %v4121_v2, 0.0 }
 0xd21   :  { %v4125_v24 = vpop.eup %3350  ;;  %2181 = vadd.xlane.f32.xlu0 %v2180_v26 }
 0xd22   :  { %v2183_v51 = vsel %vm401_vm12, %v4125_v24, 0.0 }
 0xd23   :  { %2184 = vadd.xlane.f32.xlu1 %v2183_v51 }
 0xd8c   :  { %v1807_v39 = vpop.xlane.xlu0 %1806 }
 0xd8d   :  { %3352 = vrcp.f32 %v1807_v39 }
 0xd8e   :  { %v1810_v40 = vpop.xlane.xlu1 %1809 }
 0xd8f   :  { %3354 = vrcp.f32 %v1810_v40 }
 0xd90   :  { %v1813_v41 = vpop.xlane.xlu0 %1812 }
 0xd91   :  { %3356 = vrcp.f32 %v1813_v41 }
 0xd92   :  { %v1708_v42 = vpop.xlane.xlu1 %1707 }
 0xd93   :  { %3358 = vrcp.f32 %v1708_v42 }
 0xd94   :  { %v1711_v43 = vpop.xlane.xlu0 %1710 }
 0xd95   :  { %3360 = vrcp.f32 %v1711_v43 }
 0xd96   :  { %v1714_v44 = vpop.xlane.xlu1 %1713 }
 0xd97   :  { %v3353_v46 = vpop.eup %3352  ;;  %3362 = vrcp.f32 %v1714_v44 }
 0xd98   :  { %v1817_v47 = vmul.f32 %v3353_v46, %v4077_v50  ;;  %v1727_v50 = vpack.c.bf16 %v1723_v59, %v1723_v59  ;;  %v2795_v46 = vld [vmem:[%s4343_s11 + $0x1] ss:$0 sm:$0xff] }
 0xd99   :  { %v3355_v45 = vpop.eup %3354 }
 0xd9a   :  { %v1818_v48 = vmul.f32 %v3355_v45, %v4081_v57  ;;  %v1891_v11 = vsel %vm552_vm11, %v1727_v50, 0 }
 0xd9b   :  { %v3357_v58 = vpop.eup %3356 }
 0xd9c   :  { %v1819_v52 = vmul.f32 %v3357_v58, %v4085_v6  ;;  %v2020_v54 = vpop.xlane.xlu0 %2019  ;;  %v1823_v61 = vpack.c.bf16 %v1818_v48, %v1817_v47 }
 0xd9d   :  { %v3359_v4 = vpop.eup %3358  ;;  %3364 = vrcp.f32 %v2020_v54 }
 0xd9e   :  { %3120 = vmatprep.mubr.msk.bf16.mxu0 %vm401_vm12, %v1823_v61  ;;  %v2023_v9 = vpop.xlane.xlu1 %2022  ;;  %v1824_v3 = vpack.c.bf16 %v1819_v52, %v1819_v52  ;;  %v1718_v57 = vmul.f32 %v3359_v4, %v4089_v53 }
 0xd9f   :  { %v3361_v7 = vpop.eup %3360  ;;  %3366 = vrcp.f32 %v2023_v9 }
 0xda0   :  { %3121 = vmatmul.mubr.msk.bf16.vlgmr.msra.gmra.mrb[36].mxu0 %vm401_vm12, %v1824_v3  ;;  %v1719_v6 = vmul.f32 %v3361_v7, %v4094_v12  ;;  %v2026_v5 = vpop.xlane.xlu0 %2025  ;;  %v2035_v12 = vmul.f32 %v3593_v22, %v4016_v56 }
 0xda1   :  { %3125 = vmatpush3.bf16.msra.mxu0 %v4019_v37  ;;  %v3363_v8 = vpop.eup %3362  ;;  %3368 = vrcp.f32 %v2026_v5 }
 0xda2   :  { %3241 = vmatprep.subr.msk.bf16.mxu0 %vm552_vm11, %v1727_v50  ;;  %v1724_v21 = vpack.c.bf16 %v1719_v6, %v1718_v57  ;;  %v1720_v55 = vmul.f32 %v3363_v8, %v4098_v14  ;;  %v2039_v10 = vpack.c.bf16 %v2035_v12, %v2035_v12 }
 0xda4   :  { %3128 = vmatprep.mubr.msk.bf16.mxu0 %vm401_vm12, %v1724_v21  ;;  %v1725_v63 = vpack.c.bf16 %v1720_v55, %v1720_v55  ;;  %v2047_v19 = vsel %vm552_vm11, %v2039_v10, 0 }
 0xda5   :  { %3127 = vmatpush3.bf16.msra.mxu0 %v1891_v11 }
 0xda6   :  { %3140 = vmatprep.subr.bf16.mxu0 %v4021_v32 }
 0xda7   :  { %v3365_v53 = vpop.eup %3364 }
 0xda8   :  { %v2030_v13 = vmul.f32 %v3365_v53, %v4102_v15 }
 0xda9   :  { %v3367_v37 = vpop.eup %3366 }
 0xdaa   :  { %v2031_v16 = vmul.f32 %v3367_v37, %v4106_v18 }
 0xdab   :  { %v3369_v22 = vpop.eup %3368 }
 0xdac   :  { %3129 = vmatmul.mubr.msk.bf16.vlgmr.msra.gmra.mrb[36].mxu0 %vm401_vm12, %v1725_v63  ;;  %v2179_v17 = vpop.xlane.xlu1 %2178  ;;  %v2036_v60 = vpack.c.bf16 %v2031_v16, %v2030_v13  ;;  %v2032_v18 = vmul.f32 %v3369_v22, %v4111_v49  ;;  %v2266_v49 = vpack.c.bf16 %v2789_v30, %v2788_v33  ;;  %v2800_v13 = vld [vmem:[%s4344_s14 + $0x20] sm:$0xff]  ;;  %v2801_v16 = vld [vmem:[%s4344_s14 + $0x28] sm:$0xff] }
 0xdad   :  { %3141 = vmatpush3.bf16.msra.mxu0 %v4021_v32  ;;  %3370 = vrcp.f32 %v2179_v17  ;;  %v2194_v32 = vmul.f32 %v3597_v25, %v4016_v56  ;;  %v2802_v17 = vld [vmem:[%s4344_s14 + $0x30] sm:$0xff] }
 0xdae   :  { %3244 = vmatprep.subr.msk.bf16.mxu0 %vm552_vm11, %v2039_v10  ;;  %v2182_v14 = vpop.xlane.xlu0 %2181  ;;  %3144 = vmatprep.mubr.msk.bf16.mxu0 %vm401_vm12, %v2036_v60  ;;  %v2037_v23 = vpack.c.bf16 %v2032_v18, %v2032_v18  ;;  %v2404_v10 = vpack.c.bf16 %v2801_v16, %v2800_v13  ;;  %v2803_v60 = vld [vmem:[%s4344_s14 + $0x38] sm:$0xff] }
 0xdaf   :  { %3372 = vrcp.f32 %v2182_v14  ;;  %v2198_v0 = vpack.c.bf16 %v2194_v32, %v2194_v32  ;;  %v2405_v14 = vpack.c.bf16 %v2803_v60, %v2802_v17 }
 0xdb0   :  { %v2185_v15 = vpop.xlane.xlu1 %2184  ;;  %3172 = vmatprep.subr.bf16.mxu1 %v2404_v10 }
 0xdb1   :  { %3143 = vmatpush3.bf16.msra.mxu0 %v2047_v19  ;;  %3374 = vrcp.f32 %v2185_v15  ;;  %v2206_v20 = vsel %vm552_vm11, %v2198_v0, 0  ;;  %3173 = vmatpush3.bf16.msra.mxu1 %v2404_v10 }
 0xdb2   :  { %3156 = vmatprep.subr.bf16.mxu0 %v4023_v34  ;;  %3174 = vmatprep.subr.bf16.mxu1 %v2405_v14 }
 0xdb5   :  { %3175 = vmatpush3.bf16.msra.mxu1 %v2405_v14 }
 0xdb7   :  { %v3371_v28 = vpop.eup %3370 }
 0xdb8   :  { %3145 = vmatmul.mubr.msk.bf16.vlgmr.msra.gmra.mrb[36].mxu0 %vm401_vm12, %v2037_v23  ;;  %v2189_v25 = vmul.f32 %v3371_v28, %v4117_v35  ;;  %v2791_v35 = vld [vmem:[%s4342_s10 + $0x38] sm:$0xff] }
 0xdb9   :  { %v3373_v36 = vpop.eup %3372  ;;  %3157 = vmatpush3.bf16.msra.mxu0 %v4023_v34  ;;  %v2790_v34 = vld [vmem:[%s4342_s10 + $0x30] sm:$0xff] }
 0xdba   :  { %3247 = vmatprep.subr.msk.bf16.mxu0 %vm552_vm11, %v2198_v0  ;;  %v2190_v56 = vmul.f32 %v3373_v36, %v4121_v2  ;;  %v2267_v2 = vpack.c.bf16 %v2791_v35, %v2790_v34  ;;  %v2798_v36 = vld [vmem:[%s4345_s12 + $0x1] ss:$0 sm:$0xff] }
 0xdbb   :  { %v3375_v1 = vpop.eup %3374 }
 0xdbc   :  { %v2195_v38 = vpack.c.bf16 %v2190_v56, %v2189_v25  ;;  %v2191_v26 = vmul.f32 %v3375_v1, %v4125_v24 }
 0xdbd   :  { %3159 = vmatpush3.bf16.msra.mxu0 %v2206_v20 }
 0xdbe   :  { %3160 = vmatprep.mubr.msk.bf16.mxu0 %vm401_vm12, %v2195_v38  ;;  %3164 = vmatprep.subr.bf16.mxu0 %v2266_v49  ;;  %v2196_v51 = vpack.c.bf16 %v2191_v26, %v2191_v26  ;;  %v2799_v38 = vld [vmem:[%s4346_s13 + $0x1] ss:$0 sm:$0xff] }
 0xdc4   :  { %3161 = vmatmul.mubr.msk.bf16.vlgmr.msra.gmra.mrb[36].mxu0 %vm401_vm12, %v2196_v51 }
 0xdc5   :  { %3165 = vmatpush3.bf16.msra.mxu0 %v2266_v49 }
 0xdc6   :  { %3166 = vmatprep.subr.bf16.mxu0 %v2267_v2 }
 0xdc9   :  { %3167 = vmatpush3.bf16.msra.mxu0 %v2267_v2 }
 0xe97   :  { %v3162_v39 = vpop.f32.mrb[36].mxu0 }
 0xe98   :  { %v2242_v24 = vpop.f32.mrb[37].mxu0  ;;  %v2265_v43 = vpack.c.bf16 %v3162_v39, %v3162_v39 }
 0xe99   :  { %v3163_v40 = vpop.f32.mrb[38].mxu0 }
 0xe9a   :  { %v2245_v41 = vpop.f32.mrb[39].mxu0 }
 0xe9b   :  { %v2264_v42 = vpack.c.bf16 %v2245_v41, %v2242_v24  ;;  %v2808_v41 = vld [vmem:[%s4347_s16 + $0x80] sm:$0xff] }
 0xe9d   :  { %3168 = vmatprep.mubr.msk.bf16.mxu0 %vm74_vm0, %v2264_v42  ;;  %v2809_v42 = vld [vmem:[%s4347_s16 + $0x88] sm:$0xff] }
 0xe9e   :  { %3169 = vmatmul.mubr.msk.bf16.vlgmr.msra.gmra.mrb[40].mxu0 %vm74_vm0, %v2265_v43  ;;  %v2568_v43 = vpack.c.bf16 %v2809_v42, %v2808_v41 }
 0xea0   :  { %3180 = vmatprep.subr.bf16.mxu0 %v2568_v43 }
 0xea1   :  { %3181 = vmatpush3.bf16.msra.mxu0 %v2568_v43 }
 0xf71   :  { %v3170_v44 = vpop.f32.mrb[40].mxu0 }
 0xf72   :  { %v2308_v45 = vpop.f32.mrb[41].mxu0  ;;  %v2324_v47 = vadd.f32 %v3170_v44, %v3911_v29  ;;  %v2810_v44 = vld [vmem:[%s4347_s16 + $0x90] sm:$0xff] }
 0xf73   :  { %v2322_v48 = vadd.f32 %v2308_v45, %v3908_v27  ;;  %v3171_v58 = vpop.f32.mrb[42].mxu0 }
 0xf74   :  { %v2311_v52 = vpop.f32.mrb[43].mxu0  ;;  %v4188_v59 = vadd.f32 %v2795_v46, %v2324_v47  ;;  %v2812_v47 = vld [vmem:[%s4347_s16 + $0xa0] sm:$0xff] }
 0xf75   :  { %v4185_v54 = vadd.f32 %v2795_v46, %v2322_v48  ;;  %v2323_v61 = vadd.f32 %v2311_v52, %v3913_v31  ;;  %v2813_v48 = vld [vmem:[%s4347_s16 + $0xa8] sm:$0xff]  ;;  %v2814_v52 = vld [vmem:[%s4347_s16 + $0xb0] sm:$0xff] }
 0xf76   :  { %v2346_v27 = vsel %vm74_vm0, %v4188_v59, 0.0  ;;  %v2570_v58 = vpack.c.bf16 %v2813_v48, %v2812_v47 }
 0xf77   :  { %v4190_v4 = vadd.f32 %v2795_v46, %v2323_v61  ;;  %v2340_v9 = vsel %vm74_vm0, %v4185_v54, 0.0  ;;  %v2811_v46 = vld [vmem:[%s4347_s16 + $0x98] sm:$0xff] }
 0xf78   :  { %2341 = vadd.xlane.f32.xlu0 %v2340_v9  ;;  %v2569_v45 = vpack.c.bf16 %v2811_v46, %v2810_v44  ;;  %v2815_v61 = vld [vmem:[%s4347_s16 + $0xb8] sm:$0xff] }
 0xf79   :  { %v2343_v3 = vsel %vm74_vm0, %v4190_v4, 0.0  ;;  %v2571_v9 = vpack.c.bf16 %v2815_v61, %v2814_v52 }
 0xf7a   :  { %2344 = vadd.xlane.f32.xlu1 %v2343_v3  ;;  %3182 = vmatprep.subr.bf16.mxu0 %v2569_v45  ;;  %v2816_v3 = vld [vmem:[%s4347_s16 + $0xc0] sm:$0xff] }
 0xf7b   :  { %3183 = vmatpush3.bf16.msra.mxu0 %v2569_v45 }
 0xf7c   :  { %2347 = vadd.xlane.f32.xlu0 %v2346_v27  ;;  %3184 = vmatprep.subr.bf16.mxu0 %v2570_v58  ;;  %v2817_v27 = vld [vmem:[%s4347_s16 + $0xc8] sm:$0xff] }
 0xf7f   :  { %3185 = vmatpush3.bf16.msra.mxu0 %v2570_v58 }
 0xf80   :  { %3186 = vmatprep.subr.bf16.mxu0 %v2571_v9 }
 0xf83   :  { %3187 = vmatpush3.bf16.msra.mxu0 %v2571_v9 }
0x1005   :  { %v2342_v29 = vpop.xlane.xlu0 %2341 }
0x1006   :  { %v2349_v7 = vmul.f32 0.03125, %v2342_v29  ;;  %v2572_v29 = vpack.c.bf16 %v2817_v27, %v2816_v3 }
0x1007   :  { %v2345_v50 = vpop.xlane.xlu1 %2344 }
0x1008   :  { %v2352_v31 = vsub.f32 %v4185_v54, %v2349_v7  ;;  %v2350_v57 = vmul.f32 0.03125, %v2345_v50  ;;  %3188 = vmatprep.subr.bf16.mxu0 %v2572_v29  ;;  %v2818_v7 = vld [vmem:[%s4347_s16 + $0xd0] sm:$0xff]  ;;  %v2819_v50 = vld [vmem:[%s4347_s16 + $0xd8] sm:$0xff] }
0x1009   :  { %v2348_v6 = vpop.xlane.xlu0 %2347  ;;  %3189 = vmatpush3.bf16.msra.mxu0 %v2572_v29 }
0x100a   :  { %v2353_v5 = vsub.f32 %v4190_v4, %v2350_v57  ;;  %v2351_v21 = vmul.f32 0.03125, %v2348_v6  ;;  %v2355_v8 = vmul.f32 %v2352_v31, %v2352_v31  ;;  %v2820_v57 = vld [vmem:[%s4347_s16 + $0xe0] sm:$0xff]  ;;  %v2821_v6 = vld [vmem:[%s4347_s16 + $0xe8] sm:$0xff] }
0x100c   :  { %v2354_v11 = vsub.f32 %v4188_v59, %v2351_v21  ;;  %v2358_v55 = vsel %vm74_vm0, %v2355_v8, 0.0  ;;  %v2356_v53 = vmul.f32 %v2353_v5, %v2353_v5  ;;  %v2822_v21 = vld [vmem:[%s4347_s16 + $0xf0] sm:$0xff]  ;;  %v2823_v8 = vld [vmem:[%s4347_s16 + $0xf8] sm:$0xff] }
0x100d   :  { %2359 = vadd.xlane.f32.xlu1 %v2358_v55  ;;  %v2805_v55 = vld [vmem:[%s4348_s15 + $0x1] ss:$0 sm:$0xff] }
0x100e   :  { %v2361_v12 = vsel %vm74_vm0, %v2356_v53, 0.0  ;;  %v2357_v37 = vmul.f32 %v2354_v11, %v2354_v11 }
0x100f   :  { %2362 = vadd.xlane.f32.xlu0 %v2361_v12 }
0x1010   :  { %v2364_v63 = vsel %vm74_vm0, %v2357_v37, 0.0 }
0x1011   :  { %2365 = vadd.xlane.f32.xlu1 %v2364_v63 }
0x109a   :  { %v2360_v22 = vpop.xlane.xlu1 %2359 }
0x109b   :  { %v2367_v19 = vmul.f32 0.03125, %v2360_v22 }
0x109c   :  { %v2363_v15 = vpop.xlane.xlu0 %2362 }
0x109d   :  { %v2370_v18 = vadd.f32 1e-05, %v2367_v19  ;;  %v2368_v32 = vmul.f32 0.03125, %v2363_v15 }
0x109e   :  { %v2366_v23 = vpop.xlane.xlu1 %2365 }
0x109f   :  { %3376 = vrsqrt.f32 %v2370_v18  ;;  %v2371_v28 = vadd.f32 1e-05, %v2368_v32  ;;  %v2369_v33 = vmul.f32 0.03125, %v2366_v23 }
0x10a1   :  { %3378 = vrsqrt.f32 %v2371_v28  ;;  %v2372_v30 = vadd.f32 1e-05, %v2369_v33 }
0x10a3   :  { %3380 = vrsqrt.f32 %v2372_v30 }
0x10a9   :  { %v3377_v0 = vpop.eup %3376 }
0x10aa   :  { %v2376_v25 = vmul.f32 %v3377_v0, %v2352_v31  ;;  %v2573_v31 = vpack.c.bf16 %v2819_v50, %v2818_v7 }
0x10ab   :  { %v3379_v56 = vpop.eup %3378 }
0x10ac   :  { %v2377_v49 = vmul.f32 %v3379_v56, %v2353_v5  ;;  %v2385_v1 = vmul.f32 %v2798_v36, %v2376_v25  ;;  %3190 = vmatprep.subr.bf16.mxu0 %v2573_v31  ;;  %v2574_v5 = vpack.c.bf16 %v2821_v6, %v2820_v57 }
0x10ad   :  { %v3381_v20 = vpop.eup %3380  ;;  %3191 = vmatpush3.bf16.msra.mxu0 %v2573_v31 }
0x10ae   :  { %v2378_v26 = vmul.f32 %v3381_v20, %v2354_v11  ;;  %v2386_v51 = vmul.f32 %v2798_v36, %v2377_v49  ;;  %v2394_v34 = vadd.f32 %v2799_v38, %v2385_v1  ;;  %3192 = vmatprep.subr.bf16.mxu0 %v2574_v5  ;;  %v2575_v11 = vpack.c.bf16 %v2823_v8, %v2822_v21 }
0x10b0   :  { %v2395_v35 = vadd.f32 %v2799_v38, %v2386_v51  ;;  %v2387_v2 = vmul.f32 %v2798_v36, %v2378_v26 }
0x10b1   :  { %3193 = vmatpush3.bf16.msra.mxu0 %v2574_v5 }
0x10b2   :  { %v2402_v39 = vpack.c.bf16 %v2395_v35, %v2394_v34  ;;  %v2396_v24 = vadd.f32 %v2799_v38, %v2387_v2  ;;  %3194 = vmatprep.subr.bf16.mxu0 %v2575_v11 }
0x10b4   :  { %3176 = vmatprep.mubr.msk.bf16.mxu1 %vm74_vm0, %v2402_v39  ;;  %v2403_v40 = vpack.c.bf16 %v2396_v24, %v2396_v24 }
0x10b5   :  { %3195 = vmatpush3.bf16.msra.mxu0 %v2575_v11 }
0x10b6   :  { %3177 = vmatmul.mubr.msk.bf16.vlgmr.msra.gmra.mrb[36].mxu1 %vm74_vm0, %v2403_v40 }
0x1189   :  { %v3178_v53 = vpop.f32.mrb[36].mxu1 }
0x118a   :  { %v4275_v12 = vadd.f32 %v3178_v53, %v2805_v55  ;;  %v2454_v37 = vpop.f32.mrb[37].mxu1 }
0x118b   :  { %v4277_v63 = vadd.f32 %v2805_v55, %v2454_v37  ;;  %v3179_v13 = vpop.f32.mrb[38].mxu1 }
0x118c   :  { %v4280_v16 = vmul.f32 0.70710677, %v4275_v12  ;;  %v2457_v17 = vpop.f32.mrb[39].mxu1 }
0x118d   :  { %v4283_v10 = vmul.f32 0.70710677, %v4277_v63  ;;  %v4285_v60 = vadd.f32 %v2805_v55, %v2457_v17 }
0x118e   :  { %v2482_v14 = vand.u32 2147483647, %v4280_v16  ;;  %vm2476_vm1 = vcmp.ge.f32.partialorder %v4280_v16, 0.0 }
0x118f   :  { %v2480_v22 = vand.u32 2147483647, %v4283_v10  ;;  %v4290_v15 = vmul.f32 0.70710677, %v4285_v60  ;;  %vm2474_vm2 = vcmp.ge.f32.partialorder %v4283_v10, 0.0 }
0x1190   :  { %v2485_v19 = vmul.f32 0.3275911, %v2482_v14  ;;  %v2524_v0 = vsub.f32 0.0, %v2482_v14 }
0x1191   :  { %v2483_v18 = vmul.f32 0.3275911, %v2480_v22  ;;  %v2481_v23 = vand.u32 2147483647, %v4290_v15  ;;  %v2522_v36 = vsub.f32 0.0, %v2480_v22  ;;  %vm2475_vm3 = vcmp.ge.f32.partialorder %v4290_v15, 0.0 }
0x1192   :  { %v2488_v32 = vadd.f32 1.0, %v2485_v19  ;;  %v2527_v56 = vmul.f32 %v2524_v0, %v2482_v14  ;;  %v2479_v14 = vsel %vm2476_vm1, 1.0, %v3404_v62  ;;  %v2470_v0 = vmul.f32 0.5, %v4275_v12 }
0x1193   :  { %v2486_v28 = vadd.f32 1.0, %v2483_v18  ;;  %v2484_v33 = vmul.f32 0.3275911, %v2481_v23  ;;  %v2523_v49 = vsub.f32 0.0, %v2481_v23  ;;  %v2525_v38 = vmul.f32 %v2522_v36, %v2480_v22 }
0x1194   :  { %3382 = vrcp.f32 %v2488_v32  ;;  %v2532_v35 = vmul.f32 1.442695, %v2527_v56  ;;  %v2477_v18 = vsel %vm2474_vm2, 1.0, %v3404_v62  ;;  %v2468_v36 = vmul.f32 0.5, %v4277_v63 }
0x1195   :  { %3384 = vrcp.f32 %v2486_v28  ;;  %v2487_v30 = vadd.f32 1.0, %v2484_v33  ;;  %v2526_v39 = vmul.f32 %v2523_v49, %v2481_v23  ;;  %v2528_v40 = vmul.f32 1.442695, %v2525_v38 }
0x1196   :  { %v2478_v33 = vsel %vm2475_vm3, 1.0, %v3404_v62  ;;  %v2825_v62 = vld [vmem:[%s4349_s17 + $0x1] ss:$0 sm:$0xff] }
0x1197   :  { %3386 = vrcp.f32 %v2487_v30  ;;  %v2530_v45 = vmul.f32 1.442695, %v2526_v39 }
0x1198   :  { %3388 = vpow2.f32 %v2532_v35 }
0x1199   :  { %3390 = vpow2.f32 %v2528_v40 }
0x119a   :  { %3392 = vpow2.f32 %v2530_v45 }
0x119e   :  { %v3383_v25 = vpop.eup %3382 }
0x119f   :  { %v3385_v1 = vpop.eup %3384  ;;  %v2497_v20 = vmul.f32 1.0614054, %v3383_v25 }
0x11a0   :  { %v2495_v26 = vmul.f32 1.0614054, %v3385_v1 }
0x11a1   :  { %v2500_v51 = vadd.f32 -1.4531521, %v2497_v20  ;;  %v3387_v34 = vpop.eup %3386 }
0x11a2   :  { %v2498_v2 = vadd.f32 -1.4531521, %v2495_v26  ;;  %v2496_v41 = vmul.f32 1.0614054, %v3387_v34  ;;  %v3389_v5 = vpop.eup %3388 }
0x11a3   :  { %v2503_v24 = vmul.f32 %v3383_v25, %v2500_v51  ;;  %v3391_v8 = vpop.eup %3390 }
0x11a4   :  { %v2501_v42 = vmul.f32 %v3385_v1, %v2498_v2  ;;  %v2499_v44 = vadd.f32 -1.4531521, %v2496_v41  ;;  %v3393_v17 = vpop.eup %3392 }
0x11a5   :  { %v2506_v43 = vadd.f32 1.4214138, %v2503_v24 }
0x11a6   :  { %v2504_v46 = vadd.f32 1.4214138, %v2501_v42  ;;  %v2502_v48 = vmul.f32 %v3387_v34, %v2499_v44 }
0x11a7   :  { %v2509_v47 = vmul.f32 %v3383_v25, %v2506_v43 }
0x11a8   :  { %v2507_v58 = vmul.f32 %v3385_v1, %v2504_v46  ;;  %v2505_v61 = vadd.f32 1.4214138, %v2502_v48 }
0x11a9   :  { %v2512_v52 = vadd.f32 -0.28449672, %v2509_v47 }
0x11aa   :  { %v2510_v9 = vadd.f32 -0.28449672, %v2507_v58  ;;  %v2508_v27 = vmul.f32 %v3387_v34, %v2505_v61 }
0x11ab   :  { %v2515_v3 = vmul.f32 %v3383_v25, %v2512_v52 }
0x11ac   :  { %v2513_v29 = vmul.f32 %v3385_v1, %v2510_v9  ;;  %v2511_v50 = vadd.f32 -0.28449672, %v2508_v27 }
0x11ad   :  { %v2518_v7 = vadd.f32 0.2548296, %v2515_v3 }
0x11ae   :  { %v2516_v31 = vadd.f32 0.2548296, %v2513_v29  ;;  %v2514_v6 = vmul.f32 %v3387_v34, %v2511_v50 }
0x11af   :  { %v2521_v57 = vmul.f32 %v3383_v25, %v2518_v7  ;;  %v2469_v25 = vmul.f32 0.5, %v4285_v60 }
0x11b0   :  { %v2519_v21 = vmul.f32 %v3385_v1, %v2516_v31  ;;  %v2517_v55 = vadd.f32 0.2548296, %v2514_v6 }
0x11b1   :  { %v2536_v11 = vmul.f32 %v3389_v5, %v2521_v57 }
0x11b2   :  { %v2534_v53 = vmul.f32 %v3391_v8, %v2519_v21  ;;  %v2520_v13 = vmul.f32 %v3387_v34, %v2517_v55  ;;  %v2826_v55 = vld [vmem:[%s4350_s18] ss:$0 sm:$0xff] }
0x11b3   :  { %v2539_v37 = vsub.f32 1.0, %v2536_v11 }
0x11b4   :  { %v2537_v22 = vsub.f32 1.0, %v2534_v53  ;;  %v2535_v32 = vmul.f32 %v3393_v17, %v2520_v13  ;;  %v2827_v13 = vld [vmem:[%s4351_s19] ss:$0 sm:$0xff] }
0x11b5   :  { %v2542_v19 = vmul.f32 %v2539_v37, %v2479_v14 }
0x11b6   :  { %v2540_v23 = vmul.f32 %v2537_v22, %v2477_v18  ;;  %v2538_v28 = vsub.f32 1.0, %v2535_v32 }
0x11b7   :  { %v2545_v16 = vadd.f32 1.0, %v2542_v19 }
0x11b8   :  { %v2543_v30 = vadd.f32 1.0, %v2540_v23  ;;  %v2541_v10 = vmul.f32 %v2538_v28, %v2478_v33 }
0x11b9   :  { %v2548_v49 = vmul.f32 %v2545_v16, %v2470_v0 }
0x11ba   :  { %v2544_v56 = vadd.f32 1.0, %v2541_v10  ;;  %v2546_v1 = vmul.f32 %v2543_v30, %v2468_v36 }
0x11bb   :  { %v2567_v15 = vpack.c.bf16 %v2548_v49, %v2548_v49 }
0x11bc   :  { %v2547_v20 = vmul.f32 %v2544_v56, %v2469_v25 }
0x11be   :  { %v2566_v38 = vpack.c.bf16 %v2547_v20, %v2546_v1 }
0x11c0   :  { %3196 = vmatprep.mubr.bf16.mxu0 %v2566_v38 }
0x11c1   :  { %3197 = vmatmul.mubr.bf16.vlgmr.msra.gmra.mrb[44].mxu0 %v2567_v15 }
0x1294   :  { %v3198_v26 = vpop.f32.mrb[44].mxu0 }
0x1295   :  { %v2610_v51 = vpop.f32.mrb[45].mxu0  ;;  %v2626_v12 = vadd.f32 %v3198_v26, %v4188_v59 }
0x1296   :  { %v2624_v63 = vadd.f32 %v2610_v51, %v4185_v54  ;;  %v3199_v34 = vpop.f32.mrb[46].mxu0 }
0x1297   :  { %v2613_v60 = vpop.f32.mrb[47].mxu0  ;;  %v2637_v40 = vadd.f32 %v2825_v62, %v2626_v12 }
0x1298   :  { %v2625_v35 = vadd.f32 %v2613_v60, %v4190_v4  ;;  %v2635_v2 = vadd.f32 %v2825_v62, %v2624_v63 }
0x1299   :  { %v2646_v42 = vsel %vm74_vm0, %v2637_v40, 0.0 }
0x129a   :  { %v2640_v39 = vsel %vm74_vm0, %v2635_v2, 0.0  ;;  %v2636_v24 = vadd.f32 %v2825_v62, %v2625_v35 }
0x129b   :  { %2641 = vadd.xlane.f32.xlu0 %v2640_v39 }
0x129c   :  { %v2643_v41 = vsel %vm74_vm0, %v2636_v24, 0.0 }
0x129d   :  { %2644 = vadd.xlane.f32.xlu1 %v2643_v41 }
0x129f   :  { %2647 = vadd.xlane.f32.xlu0 %v2646_v42 }
0x1328   :  { %v2642_v43 = vpop.xlane.xlu0 %2641 }
0x1329   :  { %v2649_v59 = vmul.f32 0.03125, %v2642_v43 }
0x132a   :  { %v2645_v44 = vpop.xlane.xlu1 %2644 }
0x132b   :  { %v2652_v54 = vsub.f32 %v2635_v2, %v2649_v59  ;;  %v2650_v46 = vmul.f32 0.03125, %v2645_v44 }
0x132c   :  { %v2648_v45 = vpop.xlane.xlu0 %2647 }
0x132d   :  { %v2653_v47 = vsub.f32 %v2636_v24, %v2650_v46  ;;  %v2651_v4 = vmul.f32 0.03125, %v2648_v45  ;;  %v2655_v48 = vmul.f32 %v2652_v54, %v2652_v54 }
0x132f   :  { %v2654_v58 = vsub.f32 %v2637_v40, %v2651_v4  ;;  %v2658_v52 = vsel %vm74_vm0, %v2655_v48, 0.0  ;;  %v2656_v61 = vmul.f32 %v2653_v47, %v2653_v47 }
0x1330   :  { %2659 = vadd.xlane.f32.xlu1 %v2658_v52 }
0x1331   :  { %v2661_v9 = vsel %vm74_vm0, %v2656_v61, 0.0  ;;  %v2657_v3 = vmul.f32 %v2654_v58, %v2654_v58 }
0x1332   :  { %2662 = vadd.xlane.f32.xlu0 %v2661_v9 }
0x1333   :  { %v2664_v27 = vsel %vm74_vm0, %v2657_v3, 0.0 }
0x1334   :  { %2665 = vadd.xlane.f32.xlu1 %v2664_v27 }
0x13bd   :  { %v2660_v29 = vpop.xlane.xlu1 %2659 }
0x13be   :  { %v2667_v7 = vmul.f32 0.03125, %v2660_v29 }
0x13bf   :  { %v2663_v50 = vpop.xlane.xlu0 %2662 }
0x13c0   :  { %v2670_v31 = vadd.f32 1e-05, %v2667_v7  ;;  %v2668_v57 = vmul.f32 0.03125, %v2663_v50 }
0x13c1   :  { %v2666_v6 = vpop.xlane.xlu1 %2665 }
0x13c2   :  { %3394 = vrsqrt.f32 %v2670_v31  ;;  %v2671_v5 = vadd.f32 1e-05, %v2668_v57  ;;  %v2669_v21 = vmul.f32 0.03125, %v2666_v6 }
0x13c4   :  { %3396 = vrsqrt.f32 %v2671_v5  ;;  %v2672_v8 = vadd.f32 1e-05, %v2669_v21 }
0x13c6   :  { %3398 = vrsqrt.f32 %v2672_v8 }
0x13cc   :  { %v3395_v11 = vpop.eup %3394 }
0x13cd   :  { %v2676_v53 = vmul.f32 %v3395_v11, %v2652_v54 }
0x13ce   :  { %v3397_v37 = vpop.eup %3396 }
0x13cf   :  { %v2685_v17 = vmul.f32 %v2826_v55, %v2676_v53  ;;  %v2677_v14 = vmul.f32 %v3397_v37, %v2653_v47 }
0x13d0   :  { %v3399_v22 = vpop.eup %3398 }
0x13d1   :  { %v2694_v19 = vadd.f32 %v2827_v13, %v2685_v17  ;;  %v2686_v18 = vmul.f32 %v2826_v55, %v2677_v14  ;;  %v2678_v32 = vmul.f32 %v3399_v22, %v2654_v58 }
0x13d3   :  { %2697 = vst.msk [vmem:[%s4352_s20] sm:$0xff] %vm74_vm0, %v2694_v19  ;;  %v2695_v23 = vadd.f32 %v2827_v13, %v2686_v18  ;;  %v2687_v28 = vmul.f32 %v2826_v55, %v2678_v32 }
0x13d5   :  { %2698 = vst.msk [vmem:[%s4352_s20 + $0x8] sm:$0xff] %vm74_vm0, %v2695_v23  ;;  %v2696_v16 = vadd.f32 %v2827_v13, %v2687_v28 }
0x13d7   :  { %2699 = vst.msk [vmem:[%s4352_s20 + $0x10] sm:$0xff] %vm74_vm0, %v2696_v16 }

// kernel: forward.4
= control target key start
LH: loop header
LB: loop body
LE: loop exit
PB: predicated region body
PF: predicated region fallthrough
CT: control target
= control target key end

     0   :  { %vm55_vm0 = vcmask 259072   ;;  %v1142_v7 = vmov 0.0   ;;  %vm1143_vm1 = vmmov 0   ;;  %vm91_vm2 = vcmask 261120   ;;  %s1451_s0 = inlined_call_operand.vmem [shape: f32[6,32], index: 0, kind: input, shape index: {}]   ;;  %s1452_s4 = inlined_call_operand.vmem [shape: f32[32,32], index: 4, kind: input, shape index: {}]   ;;  %s1453_s5 = inlined_call_operand.vmem [shape: f32[32,32], index: 5, kind: input, shape index: {}]   ;;  %s1454_s2 = inlined_call_operand.vmem [shape: f32[1,32], index: 2, kind: input, shape index: {}]   ;;  %s1455_s3 = inlined_call_operand.vmem [shape: f32[1,32], index: 3, kind: input, shape index: {}]   ;;  %s1456_s6 = inlined_call_operand.vmem [shape: f32[32,32], index: 6, kind: input, shape index: {}]   ;;  %s1457_s1 = inlined_call_operand.vmem [shape: f32[6,6], index: 1, kind: input, shape index: {}]   ;;  %s1458_s7 = inlined_call_operand.vmem [shape: f32[32,32], index: 7, kind: input, shape index: {}]   ;;  %s1459_s8 = inlined_call_operand.vmem [shape: f32[1,32], index: 8, kind: input, shape index: {}]   ;;  %s1460_s11 = inlined_call_operand.vmem [shape: f32[32,64], index: 11, kind: input, shape index: {}]   ;;  %s1461_s9 = inlined_call_operand.vmem [shape: f32[1,32], index: 9, kind: input, shape index: {}]   ;;  %s1462_s10 = inlined_call_operand.vmem [shape: f32[1,32], index: 10, kind: input, shape index: {}]   ;;  %s1463_s13 = inlined_call_operand.vmem [shape: f32[64,32], index: 13, kind: input, shape index: {}]   ;;  %s1464_s12 = inlined_call_operand.vmem [shape: f32[1,64], index: 12, kind: input, shape index: {}]   ;;  %s1465_s14 = inlined_call_operand.vmem [shape: f32[1,32], index: 14, kind: input, shape index: {}]   ;;  %s1466_s15 = inlined_call_operand.vmem [shape: f32[2,32], index: 15, kind: output, shape index: {}]  }
   0x1   :  { %v1228_v0 = vld [vmem:[%s1451_s0] sm:$0x3f]  ;;  %999 = vmatprep.subr.bf16.mxu0 %v1142_v7  ;;  %1007 = vmatprep.subr.bf16.mxu1 %v1142_v7  ;;  %v85_v9 = vld [vmem:[%s1452_s4 + $0x8] sm:$0xff]  ;;  %v86_v13 = vld [vmem:[%s1452_s4 + $0x10] sm:$0xff]  ;;  %v228_v36 = vlaneseq  ;;  %vm367_vm13 = vcmask 1042432   ;;  %vm284_vm14 = vcmask 46080  }
   0x2   :  { %v56_v1 = vsel %vm55_vm0, %v1228_v0, 0.0  ;;  %v84_v8 = vld [vmem:[%s1452_s4] sm:$0xff]  ;;  %v137_v12 = vld [vmem:[%s1453_s5 + $0x8] sm:$0xff]  ;;  %v87_v14 = vld [vmem:[%s1452_s4 + $0x18] sm:$0xff]  ;;  %1003 = vmatprep.mubr.msk.bf16.mxu0 %vm1143_vm1, %v1142_v7  ;;  %1011 = vmatprep.mubr.msk.bf16.mxu1 %vm1143_vm1, %v1142_v7  ;;  %vm363_vm15 = vcmask 48128  }
   0x3   :  { %57 = vadd.xlane.f32.xlu0 %v56_v1  ;;  %v136_v10 = vld [vmem:[%s1453_s5] sm:$0xff]  ;;  %v89_v11 = vpack.c.bf16 %v85_v9, %v84_v8  ;;  %v138_v16 = vld [vmem:[%s1453_s5 + $0x10] sm:$0xff]  ;;  %v139_v17 = vld [vmem:[%s1453_s5 + $0x18] sm:$0xff]  ;;  %v90_v18 = vpack.c.bf16 %v87_v14, %v86_v13  ;;  %v229_v37 = vand.u32 127, %v228_v36 }
   0x4   :  { %v140_v15 = vpack.c.bf16 %v137_v12, %v136_v10  ;;  %v141_v19 = vpack.c.bf16 %v139_v17, %v138_v16  ;;  %v938_v24 = vld [vmem:[%s1454_s2] ss:$0 sm:$0xff]  ;;  %v183_v29 = vld [vmem:[%s1456_s6 + $0x8] sm:$0xff]  ;;  %v184_v33 = vld [vmem:[%s1456_s6 + $0x10] sm:$0xff] }
   0x5   :  { %1000 = vmatpush3.bf16.msra.mxu0 %v89_v11  ;;  %v939_v26 = vld [vmem:[%s1455_s3] ss:$0 sm:$0xff]  ;;  %v185_v34 = vld [vmem:[%s1456_s6 + $0x18] sm:$0xff]  ;;  %vm299_vm3 = vcmp.ge.s32.totalorder %v229_v37, 8  ;;  %vm300_vm4 = vcmp.lt.s32.totalorder %v229_v37, 16  ;;  %vm231_vm5 = vcmp.lt.s32.totalorder %v229_v37, 8 }
   0x6   :  { %1008 = vmatpush3.bf16.msra.mxu1 %v140_v15  ;;  %1001 = vmatprep.subr.bf16.mxu0 %v1142_v7  ;;  %v182_v28 = vld [vmem:[%s1456_s6] sm:$0xff]  ;;  %v187_v35 = vpack.c.bf16 %v185_v34, %v184_v33  ;;  %vm301_vm6 = vmand %vm299_vm3, %vm300_vm4  ;;  %vm457_vm7 = vcmp.ge.s32.totalorder %v229_v37, 16  ;;  %vm458_vm8 = vcmp.lt.s32.totalorder %v229_v37, 24  ;;  %v943_v44 = vsel %vm231_vm5, 1.0, %v1142_v7 }
   0x7   :  { %1009 = vmatprep.subr.bf16.mxu1 %v1142_v7  ;;  %v186_v31 = vpack.c.bf16 %v183_v29, %v182_v28  ;;  %v945_v45 = vsel %vm301_vm6, 1.0, %v1142_v7  ;;  %vm568_vm9 = vcmp.ge.s32.totalorder %v229_v37, 24  ;;  %vm569_vm10 = vcmp.lt.s32.totalorder %v229_v37, 32  ;;  %vm459_vm11 = vmand %vm457_vm7, %vm458_vm8  ;;  %v52_v15 = vld [vmem:[%s1457_s1] sm:$0x3f] }
   0x8   :  { %vm570_vm12 = vmand %vm568_vm9, %vm569_vm10  ;;  %v949_v56 = vsel %vm459_vm11, 1.0, %v1142_v7  ;;  %vm918_vm3 = vcmask 253952  }
   0x9   :  { %1002 = vmatpush3.bf16.msra.mxu0 %v90_v18  ;;  %v952_v57 = vsel %vm570_vm12, 1.0, %v1142_v7 }
   0xa   :  { %1010 = vmatpush3.bf16.msra.mxu1 %v141_v19  ;;  %1015 = vmatprep.subr.bf16.mxu0 %v1142_v7 }
   0xb   :  { %1023 = vmatprep.subr.bf16.mxu1 %v1142_v7 }
  0x90   :  { %v58_v2 = vpop.xlane.xlu0 %57 }
  0x91   :  { %v60_v3 = vmul.f32 0.03125, %v58_v2 }
  0x93   :  { %v61_v4 = vsub.f32 %v1228_v0, %v60_v3 }
  0x95   :  { %v62_v5 = vmul.f32 %v61_v4, %v61_v4 }
  0x97   :  { %v63_v6 = vsel %vm55_vm0, %v62_v5, 0.0 }
  0x98   :  { %64 = vadd.xlane.f32.xlu0 %v63_v6 }
 0x125   :  { %v65_v20 = vpop.xlane.xlu0 %64 }
 0x126   :  { %v66_v21 = vmul.f32 0.03125, %v65_v20 }
 0x128   :  { %v67_v22 = vadd.f32 1e-05, %v66_v21 }
 0x12a   :  { %1114 = vrsqrt.f32 %v67_v22 }
 0x134   :  { %v1115_v23 = vpop.eup %1114 }
 0x135   :  { %v69_v25 = vmul.f32 %v1115_v23, %v61_v4 }
 0x137   :  { %v76_v27 = vmul.f32 %v938_v24, %v69_v25 }
 0x139   :  { %v83_v30 = vadd.f32 %v939_v26, %v76_v27 }
 0x13b   :  { %v88_v32 = vpack.c.bf16 %v83_v30, %v83_v30 }
 0x13d   :  { %1004 = vmatmul.mubr.msk.bf16.vlgmr.msra.gmra.mrb[0].mxu0 %vm91_vm2, %v88_v32  ;;  %1012 = vmatmul.mubr.msk.bf16.vlgmr.msra.gmra.mrb[0].mxu1 %vm91_vm2, %v88_v32 }
 0x13e   :  { %1016 = vmatpush3.bf16.msra.mxu0 %v186_v31  ;;  %1019 = vmatprep.mubr.msk.bf16.mxu0 %vm1143_vm1, %v1142_v7 }
 0x13f   :  { %1017 = vmatprep.subr.bf16.mxu0 %v1142_v7  ;;  %1025 = vmatprep.mubr.msk.bf16.mxu1 %vm1143_vm1, %v1142_v7 }
 0x142   :  { %1018 = vmatpush3.bf16.msra.mxu0 %v187_v35 }
 0x143   :  { %1029 = vmatprep.subr.bf16.mxu0 %v1142_v7 }
 0x145   :  { %1020 = vmatmul.mubr.msk.bf16.vlgmr.msra.gmra.mrb[4].mxu0 %vm91_vm2, %v88_v32 }
 0x146   :  { %1031 = vmatprep.mubr.msk.bf16.mxu0 %vm1143_vm1, %v1142_v7 }
 0x210   :  { %v129_v38 = vpop.f32.mrb[0].mxu0  ;;  %v176_v39 = vpop.f32.mrb[0].mxu1 }
 0x211   :  { %v135_v40 = vmul.f32 0.35355338, %v129_v38  ;;  %v237_v41 = vpack.c.bf16 %v176_v39, %v176_v39  ;;  %v1005_v42 = vpop.f32.mrb[1].mxu0  ;;  %v1013_v43 = vpop.f32.mrb[1].mxu1 }
 0x212   :  { %v132_v46 = vpop.f32.mrb[2].mxu0  ;;  %v179_v47 = vpop.f32.mrb[2].mxu1 }
 0x213   :  { %v242_v48 = vsel %vm91_vm2, %v237_v41, 0  ;;  %v1006_v49 = vpop.f32.mrb[3].mxu0  ;;  %v1014_v50 = vpop.f32.mrb[3].mxu1  ;;  %v235_v51 = vmul.f32 %v943_v44, %v135_v40  ;;  %v304_v52 = vmul.f32 %v945_v45, %v135_v40  ;;  %v462_v6 = vmul.f32 %v949_v56, %v135_v40 }
 0x214   :  { %1024 = vmatpush3.bf16.xpose.msra.mxu1 %v242_v48  ;;  %1030 = vmatpush3.bf16.xpose.msra.mxu0 %v242_v48  ;;  %v573_v13 = vmul.f32 %v952_v57, %v135_v40 }
 0x215   :  { %1047 = vmatprep.subr.bf16.mxu0 %v1142_v7  ;;  %1035 = vmatprep.subr.bf16.mxu1 %v1142_v7  ;;  %v236_v54 = vpack.c.bf16 %v235_v51, %v235_v51  ;;  %v305_v55 = vpack.c.bf16 %v304_v52, %v304_v52  ;;  %v463_v12 = vpack.c.bf16 %v462_v6, %v462_v6 }
 0x216   :  { %v574_v14 = vpack.c.bf16 %v573_v13, %v573_v13 }
 0x218   :  { %v222_v53 = vpop.f32.mrb[4].mxu0 }
 0x219   :  { %v296_v58 = vmul.f32 %v943_v44, %v222_v53  ;;  %v360_v59 = vmul.f32 %v945_v45, %v222_v53  ;;  %v518_v60 = vmul.f32 %v949_v56, %v222_v53  ;;  %v629_v61 = vmul.f32 %v952_v57, %v222_v53  ;;  %v1021_v62 = vpop.f32.mrb[5].mxu0 }
 0x21a   :  { %v225_v63 = vpop.f32.mrb[6].mxu0 }
 0x21b   :  { %v1022_v1 = vpop.f32.mrb[7].mxu0  ;;  %1026 = vmatmul.mubr.msk.bf16.vlgmr.msra.gmra.mrb[4].mxu1 %vm91_vm2, %v236_v54  ;;  %1032 = vmatmul.mubr.msk.bf16.vlgmr.msra.gmra.mrb[8].mxu0 %vm91_vm2, %v305_v55  ;;  %v362_v2 = vpack.c.bf16 %v360_v59, %v360_v59  ;;  %v298_v3 = vpack.c.bf16 %v296_v58, %v296_v58  ;;  %v520_v4 = vpack.c.bf16 %v518_v60, %v518_v60  ;;  %v679_v60 = vld [vmem:[%s1458_s7] sm:$0xff] }
 0x21c   :  { %1048 = vmatpush3.bf16.xpose.msra.mxu0 %v242_v48  ;;  %1049 = vmatprep.mubr.msk.bf16.mxu0 %vm1143_vm1, %v1142_v7  ;;  %v631_v5 = vpack.c.bf16 %v629_v61, %v629_v61  ;;  %v680_v61 = vld [vmem:[%s1458_s7 + $0x8] sm:$0xff] }
 0x21d   :  { %v369_v8 = vsel %vm367_vm13, %v362_v2, 0  ;;  %1059 = vmatprep.subr.bf16.mxu0 %v1142_v7  ;;  %1037 = vmatprep.mubr.msk.bf16.mxu1 %vm1143_vm1, %v1142_v7  ;;  %v1315_v9 = vsel %vm367_vm13, %v298_v3, 0  ;;  %v1318_v10 = vsel %vm367_vm13, %v520_v4, 0  ;;  %v684_v62 = vpack.c.bf16 %v680_v61, %v679_v60  ;;  %v856_v60 = vld [vmem:[%s1463_s13 + $0x28] sm:$0xff] }
 0x21e   :  { %1036 = vmatpush3.bf16.msra.mxu1 %v369_v8  ;;  %v1321_v11 = vsel %vm367_vm13, %v631_v5, 0 }
 0x21f   :  { %1041 = vmatprep.subr.bf16.mxu1 %v1142_v7 }
 0x223   :  { %1050 = vmatmul.mubr.msk.bf16.vlgmr.msra.gmra.mrb[12].mxu0 %vm91_vm2, %v463_v12 }
 0x224   :  { %1060 = vmatpush3.bf16.xpose.msra.mxu0 %v242_v48  ;;  %1061 = vmatprep.mubr.msk.bf16.mxu0 %vm1143_vm1, %v1142_v7 }
 0x225   :  { %1071 = vmatprep.subr.bf16.mxu0 %v1142_v7 }
 0x22b   :  { %1062 = vmatmul.mubr.msk.bf16.vlgmr.msra.gmra.mrb[16].mxu0 %vm91_vm2, %v574_v14 }
 0x22c   :  { %1075 = vmatprep.mubr.msk.bf16.mxu0 %vm1143_vm1, %v1142_v7  ;;  %1072 = vmatpush3.bf16.msra.mxu0 %v684_v62  ;;  %v857_v62 = vld [vmem:[%s1463_s13 + $0x30] sm:$0xff] }
 0x22d   :  { %1073 = vmatprep.subr.bf16.mxu0 %v1142_v7 }
 0x2ee   :  { %v278_v16 = vpop.f32.mrb[4].mxu1  ;;  %v343_v17 = vpop.f32.mrb[8].mxu0 }
 0x2ef   :  { %v344_v18 = vadd.f32 %v343_v17, %v52_v15  ;;  %v1027_v19 = vpop.f32.mrb[5].mxu1  ;;  %v1033_v20 = vpop.f32.mrb[9].mxu0  ;;  %v279_v23 = vadd.f32 %v278_v16, %v52_v15 }
 0x2f0   :  { %v281_v21 = vpop.f32.mrb[6].mxu1  ;;  %v346_v22 = vpop.f32.mrb[10].mxu0 }
 0x2f1   :  { %v1028_v24 = vpop.f32.mrb[7].mxu1  ;;  %v1034_v25 = vpop.f32.mrb[11].mxu0  ;;  %v349_v26 = vsel %vm284_vm14, %v344_v18, -inf  ;;  %v285_v27 = vsel %vm284_vm14, %v279_v23, -inf }
 0x2f2   :  { %350 = vmax.xlane.f32.xlu1 %v349_v26  ;;  %v956_v26 = vld [vmem:[%s1459_s8] ss:$0 sm:$0xff] }
 0x2f6   :  { %286 = vmax.xlane.f32.xlu1 %v285_v27  ;;  %v501_v28 = vpop.f32.mrb[12].mxu0 }
 0x2f7   :  { %v502_v29 = vadd.f32 %v501_v28, %v52_v15  ;;  %v1051_v30 = vpop.f32.mrb[13].mxu0 }
 0x2f8   :  { %v504_v31 = vpop.f32.mrb[14].mxu0 }
 0x2f9   :  { %v1052_v32 = vpop.f32.mrb[15].mxu0  ;;  %v507_v33 = vsel %vm284_vm14, %v502_v29, -inf }
 0x2fa   :  { %508 = vmax.xlane.f32.xlu0 %v507_v33 }
 0x2fe   :  { %v612_v34 = vpop.f32.mrb[16].mxu0 }
 0x2ff   :  { %v613_v35 = vadd.f32 %v612_v34, %v52_v15  ;;  %v1063_v36 = vpop.f32.mrb[17].mxu0 }
 0x300   :  { %v615_v37 = vpop.f32.mrb[18].mxu0 }
 0x301   :  { %v1064_v38 = vpop.f32.mrb[19].mxu0  ;;  %v618_v39 = vsel %vm284_vm14, %v613_v35, -inf }
 0x302   :  { %619 = vmax.xlane.f32.xlu1 %v618_v39  ;;  %v768_v38 = vld [vmem:[%s1460_s11 + $0x8] sm:$0xff] }
 0x37f   :  { %v351_v40 = vpop.xlane.xlu1 %350 }
 0x380   :  { %v352_v41 = vsub.f32 %v344_v18, %v351_v40  ;;  %v681_v18 = vld [vmem:[%s1458_s7 + $0x10] sm:$0xff] }
 0x381   :  { %v769_v40 = vld [vmem:[%s1460_s11 + $0x10] sm:$0xff] }
 0x382   :  { %v353_v42 = vmul.f32 1.442695, %v352_v41  ;;  %v770_v41 = vld [vmem:[%s1460_s11 + $0x18] sm:$0xff] }
 0x383   :  { %v287_v43 = vpop.xlane.xlu1 %286 }
 0x384   :  { %1116 = vpow2.f32 %v353_v42  ;;  %v288_v44 = vsub.f32 %v279_v23, %v287_v43  ;;  %v773_v42 = vpack.c.bf16 %v770_v41, %v769_v40 }
 0x386   :  { %v289_v45 = vmul.f32 1.442695, %v288_v44 }
 0x387   :  { %v509_v46 = vpop.xlane.xlu0 %508 }
 0x388   :  { %1118 = vpow2.f32 %v289_v45  ;;  %v510_v47 = vsub.f32 %v502_v29, %v509_v46 }
 0x38a   :  { %v511_v48 = vmul.f32 1.442695, %v510_v47  ;;  %v957_v47 = vld [vmem:[%s1461_s9] ss:$0 sm:$0xff] }
 0x38c   :  { %1120 = vpow2.f32 %v511_v48 }
 0x38e   :  { %v1117_v49 = vpop.eup %1116 }
 0x38f   :  { %v620_v50 = vpop.xlane.xlu1 %619  ;;  %v355_v51 = vsel %vm284_vm14, %v1117_v49, 0.0 }
 0x390   :  { %v621_v52 = vsub.f32 %v613_v35, %v620_v50  ;;  %356 = vadd.xlane.f32.xlu0 %v355_v51 }
 0x392   :  { %v1119_v53 = vpop.eup %1118  ;;  %v622_v54 = vmul.f32 1.442695, %v621_v52 }
 0x393   :  { %v291_v55 = vsel %vm284_vm14, %v1119_v53, 0.0 }
 0x394   :  { %1122 = vpow2.f32 %v622_v54  ;;  %292 = vadd.xlane.f32.xlu1 %v291_v55  ;;  %v852_v54 = vld [vmem:[%s1463_s13 + $0x8] sm:$0xff] }
 0x396   :  { %v1121_v56 = vpop.eup %1120 }
 0x397   :  { %v513_v57 = vsel %vm284_vm14, %v1121_v56, 0.0 }
 0x398   :  { %514 = vadd.xlane.f32.xlu0 %v513_v57  ;;  %v854_v57 = vld [vmem:[%s1463_s13 + $0x18] sm:$0xff] }
 0x39e   :  { %v1123_v58 = vpop.eup %1122 }
 0x39f   :  { %v624_v59 = vsel %vm284_vm14, %v1123_v58, 0.0 }
 0x3a0   :  { %625 = vadd.xlane.f32.xlu1 %v624_v59  ;;  %v855_v59 = vld [vmem:[%s1463_s13 + $0x20] sm:$0xff] }
 0x3a1   :  { %v862_v61 = vpack.c.bf16 %v856_v60, %v855_v59 }
 0x41d   :  { %v357_v63 = vpop.xlane.xlu0 %356 }
 0x41e   :  { %1124 = vrcp.f32 %v357_v63  ;;  %v858_v63 = vld [vmem:[%s1463_s13 + $0x38] sm:$0xff] }
 0x421   :  { %v293_v1 = vpop.xlane.xlu1 %292 }
 0x422   :  { %1126 = vrcp.f32 %v293_v1  ;;  %v863_v1 = vpack.c.bf16 %v858_v63, %v857_v62 }
 0x425   :  { %v515_v5 = vpop.xlane.xlu0 %514 }
 0x426   :  { %1128 = vrcp.f32 %v515_v5 }
 0x428   :  { %v1125_v2 = vpop.eup %1124 }
 0x429   :  { %v359_v3 = vmul.f32 %v1125_v2, %v1117_v49  ;;  %v958_v49 = vld [vmem:[%s1462_s10] ss:$0 sm:$0xff] }
 0x42a   :  { %v959_v2 = vld [vmem:[%s1464_s12] ss:$0 sm:$0xff] }
 0x42b   :  { %v361_v4 = vpack.c.bf16 %v359_v3, %v359_v3 }
 0x42c   :  { %v1127_v6 = vpop.eup %1126 }
 0x42d   :  { %1038 = vmatmul.mubr.msk.bf16.vlgmr.msra.gmra.mrb[8].mxu1 %vm363_vm15, %v361_v4  ;;  %v295_v8 = vmul.f32 %v1127_v6, %v1119_v53  ;;  %v626_v13 = vpop.xlane.xlu1 %625  ;;  %v851_v53 = vld [vmem:[%s1463_s13] sm:$0xff] }
 0x42e   :  { %1042 = vmatpush3.bf16.msra.mxu1 %v1315_v9  ;;  %1043 = vmatprep.mubr.msk.bf16.mxu1 %vm1143_vm1, %v1142_v7  ;;  %1130 = vrcp.f32 %v626_v13  ;;  %v860_v55 = vpack.c.bf16 %v852_v54, %v851_v53 }
 0x42f   :  { %1053 = vmatprep.subr.bf16.mxu1 %v1142_v7  ;;  %v297_v12 = vpack.c.bf16 %v295_v8, %v295_v8 }
 0x430   :  { %v1129_v9 = vpop.eup %1128 }
 0x431   :  { %v517_v14 = vmul.f32 %v1129_v9, %v1121_v56  ;;  %v853_v56 = vld [vmem:[%s1463_s13 + $0x10] sm:$0xff] }
 0x433   :  { %v519_v15 = vpack.c.bf16 %v517_v14, %v517_v14 }
 0x439   :  { %1044 = vmatmul.mubr.msk.bf16.vlgmr.msra.gmra.mrb[8].mxu1 %vm363_vm15, %v297_v12 }
 0x43a   :  { %1054 = vmatpush3.bf16.msra.mxu1 %v1318_v10  ;;  %1055 = vmatprep.mubr.msk.bf16.mxu1 %vm1143_vm1, %v1142_v7  ;;  %v1131_v10 = vpop.eup %1130 }
 0x43b   :  { %1065 = vmatprep.subr.bf16.mxu1 %v1142_v7  ;;  %v628_v16 = vmul.f32 %v1131_v10, %v1123_v58  ;;  %v861_v58 = vpack.c.bf16 %v854_v57, %v853_v56 }
 0x43d   :  { %v630_v17 = vpack.c.bf16 %v628_v16, %v628_v16 }
 0x445   :  { %1056 = vmatmul.mubr.msk.bf16.vlgmr.msra.gmra.mrb[8].mxu1 %vm363_vm15, %v519_v15 }
 0x446   :  { %1066 = vmatpush3.bf16.msra.mxu1 %v1321_v11  ;;  %1067 = vmatprep.mubr.msk.bf16.mxu1 %vm1143_vm1, %v1142_v7  ;;  %v682_v11 = vld [vmem:[%s1458_s7 + $0x18] sm:$0xff] }
 0x447   :  { %1087 = vmatprep.subr.bf16.mxu1 %v1142_v7  ;;  %v685_v19 = vpack.c.bf16 %v682_v11, %v681_v18 }
 0x449   :  { %1074 = vmatpush3.bf16.msra.mxu0 %v685_v19 }
 0x44a   :  { %1079 = vmatprep.subr.bf16.mxu0 %v1142_v7 }
 0x451   :  { %1068 = vmatmul.mubr.msk.bf16.vlgmr.msra.gmra.mrb[8].mxu1 %vm363_vm15, %v630_v17 }
 0x452   :  { %1095 = vmatprep.mubr.msk.bf16.mxu1 %vm1143_vm1, %v1142_v7  ;;  %1088 = vmatpush3.bf16.msra.mxu1 %v860_v55 }
 0x453   :  { %1089 = vmatprep.subr.bf16.mxu1 %v1142_v7 }
 0x456   :  { %1090 = vmatpush3.bf16.msra.mxu1 %v861_v58 }
 0x457   :  { %1091 = vmatprep.subr.bf16.mxu1 %v1142_v7 }
 0x45a   :  { %1092 = vmatpush3.bf16.msra.mxu1 %v862_v61 }
 0x45b   :  { %1093 = vmatprep.subr.bf16.mxu1 %v1142_v7 }
 0x45e   :  { %1094 = vmatpush3.bf16.msra.mxu1 %v863_v1 }
 0x524   :  { %v672_v20 = vpop.f32.mrb[8].mxu1 }
 0x525   :  { %v683_v21 = vpack.c.bf16 %v672_v20, %v672_v20  ;;  %v1069_v22 = vpop.f32.mrb[9].mxu1 }
 0x526   :  { %v675_v23 = vpop.f32.mrb[10].mxu1 }
 0x527   :  { %v1070_v24 = vpop.f32.mrb[11].mxu1  ;;  %1076 = vmatmul.mubr.msk.bf16.vlgmr.msra.gmra.mrb[20].mxu0 %vm91_vm2, %v683_v21 }
 0x528   :  { %1083 = vmatprep.mubr.msk.bf16.mxu0 %vm1143_vm1, %v1142_v7  ;;  %vm864_vm1 = vcmask 523264  }
 0x5fa   :  { %v723_v25 = vpop.f32.mrb[20].mxu0 }
 0x5fb   :  { %v729_v27 = vadd.f32 %v723_v25, %v1228_v0  ;;  %v1077_v28 = vpop.f32.mrb[21].mxu0  ;;  %v767_v0 = vld [vmem:[%s1460_s11] sm:$0xff] }
 0x5fc   :  { %v726_v29 = vpop.f32.mrb[22].mxu0  ;;  %v772_v39 = vpack.c.bf16 %v768_v38, %v767_v0  ;;  %v1144_v28 = vmov -1.0  }
 0x5fd   :  { %v1381_v30 = vadd.f32 %v956_v26, %v729_v27  ;;  %v1078_v31 = vpop.f32.mrb[23].mxu0 }
 0x5fe   :  { %1080 = vmatpush3.bf16.msra.mxu0 %v772_v39 }
 0x5ff   :  { %v740_v32 = vsel %vm55_vm0, %v1381_v30, 0.0  ;;  %1081 = vmatprep.subr.bf16.mxu0 %v1142_v7 }
 0x600   :  { %741 = vadd.xlane.f32.xlu0 %v740_v32 }
 0x602   :  { %1082 = vmatpush3.bf16.msra.mxu0 %v773_v42 }
 0x68d   :  { %v742_v33 = vpop.xlane.xlu0 %741 }
 0x68e   :  { %v743_v34 = vmul.f32 0.03125, %v742_v33 }
 0x690   :  { %v744_v35 = vsub.f32 %v1381_v30, %v743_v34 }
 0x692   :  { %v745_v36 = vmul.f32 %v744_v35, %v744_v35 }
 0x694   :  { %v746_v37 = vsel %vm55_vm0, %v745_v36, 0.0 }
 0x695   :  { %747 = vadd.xlane.f32.xlu1 %v746_v37  ;;  %v962_v37 = vld [vmem:[%s1465_s14] ss:$0 sm:$0xff] }
 0x722   :  { %v748_v43 = vpop.xlane.xlu1 %747 }
 0x723   :  { %v749_v44 = vmul.f32 0.03125, %v748_v43 }
 0x725   :  { %v750_v45 = vadd.f32 1e-05, %v749_v44 }
 0x727   :  { %1132 = vrsqrt.f32 %v750_v45 }
 0x731   :  { %v1133_v46 = vpop.eup %1132 }
 0x732   :  { %v752_v48 = vmul.f32 %v1133_v46, %v744_v35 }
 0x734   :  { %v759_v50 = vmul.f32 %v957_v47, %v752_v48 }
 0x736   :  { %v766_v51 = vadd.f32 %v958_v49, %v759_v50 }
 0x738   :  { %v771_v52 = vpack.c.bf16 %v766_v51, %v766_v51 }
 0x73a   :  { %1084 = vmatmul.mubr.msk.bf16.vlgmr.msra.gmra.mrb[24].mxu0 %vm91_vm2, %v771_v52  ;;  %vm926_vm2 = vcmask 257027  }
 0x80d   :  { %v818_v3 = vpop.f32.mrb[24].mxu0 }
 0x80e   :  { %v819_v4 = vadd.f32 %v959_v2, %v818_v3  ;;  %v1085_v5 = vpop.f32.mrb[25].mxu0 }
 0x80f   :  { %v821_v6 = vpop.f32.mrb[26].mxu0 }
 0x810   :  { %v825_v8 = vmul.f32 0.70710677, %v819_v4  ;;  %v1086_v7 = vpop.f32.mrb[27].mxu0  ;;  %v824_v32 = vmul.f32 0.5, %v819_v4 }
 0x812   :  { %v828_v12 = vand.u32 2147483647, %v825_v8  ;;  %vm826_vm0 = vcmp.ge.f32.partialorder %v825_v8, 0.0 }
 0x813   :  { %v827_v29 = vsel %vm826_vm0, 1.0, %v1144_v28 }
 0x814   :  { %v829_v13 = vmul.f32 0.3275911, %v828_v12  ;;  %v842_v14 = vsub.f32 0.0, %v828_v12 }
 0x816   :  { %v830_v9 = vadd.f32 1.0, %v829_v13  ;;  %v843_v10 = vmul.f32 %v842_v14, %v828_v12 }
 0x818   :  { %1134 = vrcp.f32 %v830_v9  ;;  %v844_v18 = vmul.f32 1.442695, %v843_v10 }
 0x81a   :  { %1136 = vpow2.f32 %v844_v18 }
 0x822   :  { %v1135_v15 = vpop.eup %1134 }
 0x823   :  { %v833_v16 = vmul.f32 1.0614054, %v1135_v15 }
 0x824   :  { %v1137_v25 = vpop.eup %1136 }
 0x825   :  { %v834_v17 = vadd.f32 -1.4531521, %v833_v16 }
 0x827   :  { %v835_v11 = vmul.f32 %v1135_v15, %v834_v17 }
 0x829   :  { %v836_v19 = vadd.f32 1.4214138, %v835_v11 }
 0x82b   :  { %v837_v20 = vmul.f32 %v1135_v15, %v836_v19 }
 0x82d   :  { %v838_v21 = vadd.f32 -0.28449672, %v837_v20 }
 0x82f   :  { %v839_v22 = vmul.f32 %v1135_v15, %v838_v21 }
 0x831   :  { %v840_v23 = vadd.f32 0.2548296, %v839_v22 }
 0x833   :  { %v841_v24 = vmul.f32 %v1135_v15, %v840_v23 }
 0x835   :  { %v846_v26 = vmul.f32 %v1137_v25, %v841_v24 }
 0x837   :  { %v847_v27 = vsub.f32 1.0, %v846_v26 }
 0x839   :  { %v848_v31 = vmul.f32 %v847_v27, %v827_v29 }
 0x83b   :  { %v849_v33 = vadd.f32 1.0, %v848_v31 }
 0x83d   :  { %v850_v34 = vmul.f32 %v849_v33, %v824_v32 }
 0x83f   :  { %v859_v35 = vpack.c.bf16 %v850_v34, %v850_v34 }
 0x841   :  { %1096 = vmatmul.mubr.msk.bf16.vlgmr.msra.gmra.mrb[12].mxu1 %vm864_vm1, %v859_v35 }
 0x914   :  { %v902_v36 = vpop.f32.mrb[12].mxu1 }
 0x915   :  { %v908_v0 = vadd.f32 %v902_v36, %v1381_v30  ;;  %v1097_v38 = vpop.f32.mrb[13].mxu1 }
 0x916   :  { %v905_v39 = vpop.f32.mrb[14].mxu1 }
 0x917   :  { %v916_v40 = vadd.f32 %v962_v37, %v908_v0  ;;  %v1098_v41 = vpop.f32.mrb[15].mxu1 }
 0x919   :  { %v917_v42 = vmul.f32 %v916_v40, %v916_v40 }
 0x91b   :  { %v927_v43 = vsel %vm926_vm2, %v917_v42, 0.0  ;;  %v919_v44 = vsel %vm918_vm3, %v917_v42, 0.0 }
 0x91c   :  { %928 = vadd.xlane.f32.xlu1 %v927_v43  ;;  %920 = vadd.xlane.f32.xlu0 %v919_v44 }
 0x9a9   :  { %v929_v45 = vpop.xlane.xlu1 %928  ;;  %v921_v46 = vpop.xlane.xlu0 %920 }
 0x9aa   :  { %v930_v47 = vmax.f32 %v929_v45, 1e-24  ;;  %v922_v48 = vmax.f32 %v921_v46, 1e-24 }
 0x9ac   :  { %1138 = vrsqrt.f32 %v930_v47 }
 0x9ad   :  { %1140 = vrsqrt.f32 %v922_v48 }
 0x9b6   :  { %v1139_v30 = vpop.eup %1138 }
 0x9b7   :  { %v1141_v49 = vpop.eup %1140  ;;  %v932_v50 = vmul.f32 %v1139_v30, %v916_v40 }
 0x9b8   :  { %v924_v51 = vmul.f32 %v1141_v49, %v916_v40 }
 0x9b9   :  { %933 = vst.msk [vmem:[%s1466_s15 - $0x2] sm:$0x8] %vm926_vm2, %v932_v50 }
 0x9ba   :  { %925 = vst.msk [vmem:[%s1466_s15] sm:$0x1] %vm918_vm3, %v924_v51 }

// kernel: forward.5
= control target key start
LH: loop header
LB: loop body
LE: loop exit
PB: predicated region body
PF: predicated region fallthrough
CT: control target
= control target key end

     0   :  { %vm65_vm0 = vcmask 130048   ;;  %v2240_v7 = vmov 0.0   ;;  %vm2241_vm1 = vmmov 0   ;;  %vm149_vm2 = vcmask 261120   ;;  %s2777_s0 = inlined_call_operand.vmem [shape: f32[8,16], index: 0, kind: input, shape index: {}]   ;;  %s2778_s6 = inlined_call_operand.vmem [shape: f32[2,32,8], index: 6, kind: input, shape index: {}]   ;;  %s2779_s5 = inlined_call_operand.vmem [shape: f32[2,16,8], index: 5, kind: input, shape index: {}]   ;;  %s2780_s1 = inlined_call_operand.vmem [shape: f32[2,32], index: 1, kind: input, shape index: {}]   ;;  %s2781_s3 = inlined_call_operand.vmem [shape: f32[2,1,16], index: 3, kind: input, shape index: {}]   ;;  %s2782_s4 = inlined_call_operand.vmem [shape: f32[2,1,16], index: 4, kind: input, shape index: {}]   ;;  %s2783_s7 = inlined_call_operand.vmem [shape: f32[2,32,8], index: 7, kind: input, shape index: {}]   ;;  %s2784_s2 = inlined_call_operand.vmem [shape: f32[8,2], index: 2, kind: input, shape index: {}]   ;;  %s2785_s8 = inlined_call_operand.vmem [shape: f32[2,8,16], index: 8, kind: input, shape index: {}]   ;;  %s2786_s9 = inlined_call_operand.vmem [shape: f32[2,1,16], index: 9, kind: input, shape index: {}]   ;;  %s2787_s12 = inlined_call_operand.vmem [shape: f32[2,16,64], index: 12, kind: input, shape index: {}]   ;;  %s2788_s10 = inlined_call_operand.vmem [shape: f32[2,1,16], index: 10, kind: input, shape index: {}]   ;;  %s2789_s11 = inlined_call_operand.vmem [shape: f32[2,1,16], index: 11, kind: input, shape index: {}]   ;;  %s2790_s14 = inlined_call_operand.vmem [shape: f32[2,64,16], index: 14, kind: input, shape index: {}]   ;;  %s2791_s13 = inlined_call_operand.vmem [shape: f32[2,1,64], index: 13, kind: input, shape index: {}]   ;;  %s2792_s15 = inlined_call_operand.vmem [shape: f32[2,1,16], index: 15, kind: input, shape index: {}]   ;;  %s2793_s16 = inlined_call_operand.vmem [shape: f32[16,192], index: 16, kind: input, shape index: {}]   ;;  %s2794_s17 = inlined_call_operand.vmem [shape: f32[1,192], index: 17, kind: input, shape index: {}]   ;;  %s2795_s18 = inlined_call_operand.vmem [shape: f32[8,192], index: 18, kind: output, shape index: {}]  }
   0x1   :  { %2798 = sst [smem:[#allocation2_spill]] %s2777_s0  ;;  %1982 = vmatprep.subr.bf16.mxu1 %v2240_v7  ;;  %1986 = vmatprep.mubr.msk.bf16.mxu1 %vm2241_vm1, %v2240_v7  ;;  %v61_v16 = vld [vmem:[%s2780_s1] sm:$0x3]  ;;  %v194_v28 = vld [vmem:[%s2783_s7 + $0x8] sm:$0xff]  ;;  %v195_v32 = vld [vmem:[%s2783_s7 + $0x10] sm:$0xff]  ;;  %vm249_vm3 = vcmask 64512   ;;  %v239_v41 = vlaneseq }
   0x2   :  { %2799 = sst [smem:[#allocation3_spill]] %s2778_s6  ;;  %s2801_s29 = sld [smem:[#allocation2_spill]]  ;;  %1976 = vmatprep.subr.bf16.mxu0 %v2240_v7  ;;  %1978 = vmatprep.mubr.msk.bf16.mxu0 %vm2241_vm1, %v2240_v7  ;;  %v2376_v18 = vpack.c.bf16 %v61_v16, %v61_v16  ;;  %v1835_v23 = vld [vmem:[%s2781_s3] ss:$0 sm:$0xff]  ;;  %v196_v33 = vld [vmem:[%s2783_s7 + $0x18] sm:$0xff]  ;;  %vm378_vm13 = vcmask 1040384  }
   0x3   :  { %2800 = sst [smem:[#allocation4_spill]] %s2779_s5  ;;  %s2802_s19 = sld [smem:[#allocation3_spill]]  ;;  %v1836_v25 = vld [vmem:[%s2782_s4] ss:$0 sm:$0xff]  ;;  %v198_v34 = vpack.c.bf16 %v196_v33, %v195_v32  ;;  %v240_v42 = vand.u32 127, %v239_v41  ;;  %vm296_vm15 = vcmask 15360  }
   0x4   :  { %s2803_s26 = sld [smem:[#allocation4_spill]]  ;;  %v193_v27 = vld [vmem:[%s2783_s7] sm:$0xff] }
   0x5   :  { %v197_v30 = vpack.c.bf16 %v194_v28, %v193_v27  ;;  %vm311_vm4 = vcmp.ge.s32.totalorder %v240_v42, 2  ;;  %vm312_vm5 = vcmp.lt.s32.totalorder %v240_v42, 4  ;;  %vm242_vm6 = vcmp.lt.s32.totalorder %v240_v42, 2 }
   0x6   :  { %vm313_vm7 = vmand %vm311_vm4, %vm312_vm5  ;;  %v2416_v44 = vsel %vm242_vm6, 1.0, %v2240_v7  ;;  %vm468_vm8 = vcmp.ge.s32.totalorder %v240_v42, 4  ;;  %vm469_vm9 = vcmp.lt.s32.totalorder %v240_v42, 6  ;;  %vm579_vm11 = vcmp.ge.s32.totalorder %v240_v42, 6 }
   0x7   :  { %v2419_v45 = vsel %vm313_vm7, 1.0, %v2240_v7  ;;  %vm470_vm10 = vmand %vm468_vm8, %vm469_vm9  ;;  %vm580_vm12 = vcmp.lt.s32.totalorder %v240_v42, 8  ;;  %vm696_vm4 = vcmask 1043456   ;;  %vm872_vm6 = vcmask 523264  }
   0x8   :  { %v2342_v0 = vld [vmem:[%s2801_s29] sm:$0xff]  ;;  %v2424_v54 = vsel %vm470_vm10, 1.0, %v2240_v7  ;;  %vm581_vm14 = vmand %vm579_vm11, %vm580_vm12 }
   0x9   :  { %v66_v1 = vsel %vm65_vm0, %v2342_v0, 0.0  ;;  %v142_v8 = vld [vmem:[%s2802_s19] sm:$0xff]  ;;  %v143_v9 = vld [vmem:[%s2802_s19 + $0x8] sm:$0xff]  ;;  %v144_v10 = vld [vmem:[%s2802_s19 + $0x10] sm:$0xff] }
   0xa   :  { %67 = vadd.xlane.f32.xlu0 %v66_v1  ;;  %v147_v11 = vpack.c.bf16 %v143_v9, %v142_v8  ;;  %v145_v12 = vld [vmem:[%s2802_s19 + $0x18] sm:$0xff]  ;;  %v94_v13 = vld [vmem:[%s2803_s26] sm:$0xff]  ;;  %v95_v14 = vld [vmem:[%s2803_s26 + $0x8] sm:$0xff]  ;;  %v2440_v1 = vsel %vm581_vm14, 1.0, %v2240_v7 }
   0xb   :  { %v148_v15 = vpack.c.bf16 %v145_v12, %v144_v10  ;;  %v97_v17 = vpack.c.bf16 %v95_v14, %v94_v13 }
   0xc   :  { %1983 = vmatpush3.bf16.msra.mxu1 %v147_v11 }
   0xd   :  { %1984 = vmatprep.subr.bf16.mxu1 %v2240_v7  ;;  %1977 = vmatpush3.bf16.msra.mxu0 %v97_v17 }
   0xe   :  { %1990 = vmatprep.subr.bf16.mxu0 %v2240_v7 }
  0x10   :  { %1985 = vmatpush3.bf16.msra.mxu1 %v148_v15 }
  0x11   :  { %1998 = vmatprep.subr.bf16.mxu1 %v2240_v7 }
  0x13   :  { %1987 = vmatmul.mubr.msk.bf16.vlgmr.msra.gmra.mrb[0].mxu1 %vm149_vm2, %v2376_v18 }
  0x14   :  { %2000 = vmatprep.mubr.msk.bf16.mxu1 %vm2241_vm1, %v2240_v7 }
  0x97   :  { %v68_v2 = vpop.xlane.xlu0 %67 }
  0x98   :  { %v70_v3 = vmul.f32 0.0625, %v68_v2 }
  0x9a   :  { %v71_v4 = vsub.f32 %v2342_v0, %v70_v3 }
  0x9c   :  { %v72_v5 = vmul.f32 %v71_v4, %v71_v4 }
  0x9e   :  { %v73_v6 = vsel %vm65_vm0, %v72_v5, 0.0 }
  0x9f   :  { %74 = vadd.xlane.f32.xlu0 %v73_v6 }
  0xe6   :  { %v187_v35 = vpop.f32.mrb[0].mxu1 }
  0xe7   :  { %v248_v36 = vpack.c.bf16 %v187_v35, %v187_v35  ;;  %v1988_v37 = vpop.f32.mrb[1].mxu1 }
  0xe8   :  { %v190_v38 = vpop.f32.mrb[2].mxu1 }
  0xe9   :  { %v254_v39 = vsel %vm249_vm3, %v248_v36, 0  ;;  %v1989_v40 = vpop.f32.mrb[3].mxu1 }
  0xea   :  { %1999 = vmatpush3.bf16.xpose.msra.mxu1 %v254_v39 }
  0xeb   :  { %2010 = vmatprep.subr.bf16.mxu1 %v2240_v7 }
 0x12c   :  { %v75_v19 = vpop.xlane.xlu0 %74 }
 0x12d   :  { %v76_v20 = vmul.f32 0.0625, %v75_v19 }
 0x12f   :  { %v77_v21 = vadd.f32 1e-05, %v76_v20 }
 0x131   :  { %2192 = vrsqrt.f32 %v77_v21 }
 0x13b   :  { %v2193_v22 = vpop.eup %2192 }
 0x13c   :  { %v79_v24 = vmul.f32 %v2193_v22, %v71_v4  ;;  %v2454_v4 = vld [vmem:[%s2784_s2] sm:$0xff] }
 0x13e   :  { %v86_v26 = vmul.f32 %v1835_v23, %v79_v24 }
 0x140   :  { %v93_v29 = vadd.f32 %v1836_v25, %v86_v26 }
 0x142   :  { %v96_v31 = vpack.c.bf16 %v93_v29, %v93_v29 }
 0x144   :  { %1979 = vmatmul.mubr.msk.bf16.vlgmr.msra.gmra.mrb[0].mxu0 %vm65_vm0, %v96_v31 }
 0x145   :  { %1991 = vmatpush3.bf16.msra.mxu0 %v197_v30  ;;  %1994 = vmatprep.mubr.msk.bf16.mxu0 %vm2241_vm1, %v2240_v7 }
 0x146   :  { %1992 = vmatprep.subr.bf16.mxu0 %v2240_v7 }
 0x149   :  { %1993 = vmatpush3.bf16.msra.mxu0 %v198_v34 }
 0x14a   :  { %2004 = vmatprep.subr.bf16.mxu0 %v2240_v7 }
 0x14c   :  { %1995 = vmatmul.mubr.msk.bf16.vlgmr.msra.gmra.mrb[4].mxu0 %vm149_vm2, %v2376_v18 }
 0x14d   :  { %2006 = vmatprep.mubr.msk.bf16.mxu0 %vm2241_vm1, %v2240_v7 }
 0x152   :  { %2005 = vmatpush3.bf16.xpose.msra.mxu0 %v254_v39 }
 0x153   :  { %2022 = vmatprep.subr.bf16.mxu0 %v2240_v7 }
 0x217   :  { %v135_v43 = vpop.f32.mrb[0].mxu0 }
 0x218   :  { %v141_v46 = vmul.f32 0.70710677, %v135_v43  ;;  %v1980_v47 = vpop.f32.mrb[1].mxu0 }
 0x219   :  { %v138_v48 = vpop.f32.mrb[2].mxu0 }
 0x21a   :  { %v246_v49 = vmul.f32 %v2416_v44, %v141_v46  ;;  %v316_v50 = vmul.f32 %v2419_v45, %v141_v46  ;;  %v1981_v51 = vpop.f32.mrb[3].mxu0  ;;  %v473_v56 = vmul.f32 %v2424_v54, %v141_v46  ;;  %v584_v2 = vmul.f32 %v2440_v1, %v141_v46 }
 0x21c   :  { %v247_v52 = vpack.c.bf16 %v246_v49, %v246_v49  ;;  %v317_v53 = vpack.c.bf16 %v316_v50, %v316_v50  ;;  %v474_v62 = vpack.c.bf16 %v473_v56, %v473_v56  ;;  %v585_v3 = vpack.c.bf16 %v584_v2, %v584_v2  ;;  %v690_v56 = vld [vmem:[%s2785_s8] sm:$0xff] }
 0x21e   :  { %2001 = vmatmul.mubr.msk.bf16.vlgmr.msra.gmra.mrb[4].mxu1 %vm249_vm3, %v247_v52  ;;  %2007 = vmatmul.mubr.msk.bf16.vlgmr.msra.gmra.mrb[8].mxu0 %vm249_vm3, %v317_v53 }
 0x21f   :  { %2023 = vmatpush3.bf16.xpose.msra.mxu0 %v254_v39  ;;  %2024 = vmatprep.mubr.msk.bf16.mxu0 %vm2241_vm1, %v2240_v7  ;;  %v2430_v55 = vpop.f32.mrb[4].mxu0 }
 0x220   :  { %2034 = vmatprep.subr.bf16.mxu0 %v2240_v7  ;;  %v372_v57 = vmul.f32 %v2419_v45, %v2430_v55  ;;  %v1996_v58 = vpop.f32.mrb[5].mxu0  ;;  %2012 = vmatprep.mubr.msk.bf16.mxu1 %vm2241_vm1, %v2240_v7 }
 0x221   :  { %v236_v59 = vpop.f32.mrb[6].mxu0 }
 0x222   :  { %v1997_v60 = vpop.f32.mrb[7].mxu0  ;;  %v374_v61 = vpack.c.bf16 %v372_v57, %v372_v57  ;;  %v692_v57 = vpack.c.bf16 %v690_v56, %v690_v56 }
 0x224   :  { %v380_v63 = vsel %vm378_vm13, %v374_v61, 0  ;;  %v698_v58 = vsel %vm696_vm4, %v692_v57, 0  ;;  %v308_v61 = vmul.f32 %v2416_v44, %v2430_v55 }
 0x225   :  { %2011 = vmatpush3.bf16.msra.mxu1 %v380_v63 }
 0x226   :  { %2025 = vmatmul.mubr.msk.bf16.vlgmr.msra.gmra.mrb[12].mxu0 %vm249_vm3, %v474_v62  ;;  %2016 = vmatprep.subr.bf16.mxu1 %v2240_v7  ;;  %v310_v2 = vpack.c.bf16 %v308_v61, %v308_v61 }
 0x227   :  { %2035 = vmatpush3.bf16.xpose.msra.mxu0 %v254_v39  ;;  %2036 = vmatprep.mubr.msk.bf16.mxu0 %vm2241_vm1, %v2240_v7 }
 0x228   :  { %2046 = vmatprep.subr.bf16.mxu0 %v2240_v7 }
 0x22e   :  { %2037 = vmatmul.mubr.msk.bf16.vlgmr.msra.gmra.mrb[16].mxu0 %vm249_vm3, %v585_v3 }
 0x22f   :  { %2048 = vmatprep.mubr.msk.bf16.mxu0 %vm2241_vm1, %v2240_v7  ;;  %2047 = vmatpush3.bf16.msra.mxu0 %v698_v58 }
 0x230   :  { %2052 = vmatprep.subr.bf16.mxu0 %v2240_v7 }
 0x2f1   :  { %v290_v5 = vpop.f32.mrb[4].mxu1  ;;  %v355_v6 = vpop.f32.mrb[8].mxu0 }
 0x2f2   :  { %v356_v8 = vadd.f32 %v355_v6, %v2454_v4  ;;  %v2002_v9 = vpop.f32.mrb[5].mxu1  ;;  %v2008_v10 = vpop.f32.mrb[9].mxu0  ;;  %v291_v13 = vadd.f32 %v290_v5, %v2454_v4  ;;  %v426_v5 = vsel %vm378_vm13, %v310_v2, 0 }
 0x2f3   :  { %v293_v11 = vpop.f32.mrb[6].mxu1  ;;  %v358_v12 = vpop.f32.mrb[10].mxu0  ;;  %v529_v9 = vmul.f32 %v2424_v54, %v2430_v55 }
 0x2f4   :  { %v2003_v14 = vpop.f32.mrb[7].mxu1  ;;  %v2009_v15 = vpop.f32.mrb[11].mxu0  ;;  %v361_v16 = vsel %vm296_vm15, %v356_v8, -inf  ;;  %v297_v17 = vsel %vm296_vm15, %v291_v13, -inf }
 0x2f5   :  { %362 = vmax.xlane.f32.xlu1 %v361_v16  ;;  %v531_v11 = vpack.c.bf16 %v529_v9, %v529_v9  ;;  %v640_v16 = vmul.f32 %v2440_v1, %v2430_v55  ;;  %v866_v9 = vld [vmem:[%s2790_s14 + $0x38] sm:$0xff] }
 0x2f9   :  { %298 = vmax.xlane.f32.xlu1 %v297_v17  ;;  %v512_v19 = vpop.f32.mrb[12].mxu0 }
 0x2fa   :  { %v513_v20 = vadd.f32 %v512_v19, %v2454_v4  ;;  %v2026_v21 = vpop.f32.mrb[13].mxu0  ;;  %v642_v19 = vpack.c.bf16 %v640_v16, %v640_v16 }
 0x2fb   :  { %v515_v22 = vpop.f32.mrb[14].mxu0 }
 0x2fc   :  { %v2027_v23 = vpop.f32.mrb[15].mxu0  ;;  %v518_v24 = vsel %vm296_vm15, %v513_v20, -inf  ;;  %v647_v21 = vsel %vm378_vm13, %v642_v19, 0 }
 0x2fd   :  { %519 = vmax.xlane.f32.xlu0 %v518_v24 }
 0x301   :  { %v623_v25 = vpop.f32.mrb[16].mxu0 }
 0x302   :  { %v624_v26 = vadd.f32 %v623_v25, %v2454_v4  ;;  %v2038_v27 = vpop.f32.mrb[17].mxu0 }
 0x303   :  { %v626_v28 = vpop.f32.mrb[18].mxu0 }
 0x304   :  { %v2039_v29 = vpop.f32.mrb[19].mxu0  ;;  %v629_v30 = vsel %vm296_vm15, %v624_v26, -inf }
 0x305   :  { %630 = vmax.xlane.f32.xlu1 %v629_v30  ;;  %v1853_v30 = vld [vmem:[%s2786_s9] ss:$0 sm:$0xff] }
 0x382   :  { %v363_v31 = vpop.xlane.xlu1 %362 }
 0x383   :  { %v364_v32 = vsub.f32 %v356_v8, %v363_v31 }
 0x385   :  { %v365_v33 = vmul.f32 1.442695, %v364_v32 }
 0x386   :  { %v299_v34 = vpop.xlane.xlu1 %298 }
 0x387   :  { %2194 = vpow2.f32 %v365_v33  ;;  %v300_v35 = vsub.f32 %v291_v13, %v299_v34  ;;  %v536_v13 = vsel %vm378_vm13, %v531_v11, 0  ;;  %v1856_v11 = vld [vmem:[%s2791_s13] ss:$0 sm:$0xff] }
 0x389   :  { %v301_v36 = vmul.f32 1.442695, %v300_v35 }
 0x38a   :  { %v520_v37 = vpop.xlane.xlu0 %519 }
 0x38b   :  { %2196 = vpow2.f32 %v301_v36  ;;  %v521_v38 = vsub.f32 %v513_v20, %v520_v37 }
 0x38d   :  { %v522_v39 = vmul.f32 1.442695, %v521_v38 }
 0x38f   :  { %2198 = vpow2.f32 %v522_v39 }
 0x391   :  { %v2195_v40 = vpop.eup %2194 }
 0x392   :  { %v631_v42 = vpop.xlane.xlu1 %630  ;;  %v367_v43 = vsel %vm296_vm15, %v2195_v40, 0.0 }
 0x393   :  { %v632_v46 = vsub.f32 %v624_v26, %v631_v42  ;;  %368 = vadd.xlane.f32.xlu0 %v367_v43  ;;  %v779_v43 = vld [vmem:[%s2787_s12 + $0x8] sm:$0xff] }
 0x395   :  { %v2197_v47 = vpop.eup %2196  ;;  %v633_v48 = vmul.f32 1.442695, %v632_v46 }
 0x396   :  { %v303_v49 = vsel %vm296_vm15, %v2197_v47, 0.0 }
 0x397   :  { %2200 = vpow2.f32 %v633_v48  ;;  %304 = vadd.xlane.f32.xlu1 %v303_v49 }
 0x399   :  { %v2199_v50 = vpop.eup %2198 }
 0x39a   :  { %v524_v51 = vsel %vm296_vm15, %v2199_v50, 0.0 }
 0x39b   :  { %525 = vadd.xlane.f32.xlu0 %v524_v51  ;;  %v1854_v51 = vld [vmem:[%s2788_s10] ss:$0 sm:$0xff] }
 0x3a1   :  { %v2201_v52 = vpop.eup %2200 }
 0x3a2   :  { %v635_v53 = vsel %vm296_vm15, %v2201_v52, 0.0 }
 0x3a3   :  { %636 = vadd.xlane.f32.xlu1 %v635_v53  ;;  %v1855_v53 = vld [vmem:[%s2789_s11] ss:$0 sm:$0xff] }
 0x420   :  { %v369_v59 = vpop.xlane.xlu0 %368 }
 0x421   :  { %2202 = vrcp.f32 %v369_v59  ;;  %v859_v59 = vld [vmem:[%s2790_s14] sm:$0xff] }
 0x424   :  { %v305_v60 = vpop.xlane.xlu1 %304 }
 0x425   :  { %2204 = vrcp.f32 %v305_v60  ;;  %v860_v60 = vld [vmem:[%s2790_s14 + $0x8] sm:$0xff] }
 0x426   :  { %v868_v61 = vpack.c.bf16 %v860_v60, %v859_v59 }
 0x428   :  { %v526_v6 = vpop.xlane.xlu0 %525 }
 0x429   :  { %2206 = vrcp.f32 %v526_v6 }
 0x42b   :  { %v2203_v62 = vpop.eup %2202 }
 0x42c   :  { %v371_v63 = vmul.f32 %v2203_v62, %v2195_v40  ;;  %v861_v62 = vld [vmem:[%s2790_s14 + $0x10] sm:$0xff] }
 0x42e   :  { %v373_v3 = vpack.c.bf16 %v371_v63, %v371_v63  ;;  %v862_v63 = vld [vmem:[%s2790_s14 + $0x18] sm:$0xff] }
 0x42f   :  { %v2205_v8 = vpop.eup %2204  ;;  %v869_v2 = vpack.c.bf16 %v862_v63, %v861_v62  ;;  %v1865_v62 = vld [vmem:[%s2803_s26 + $0x18] sm:$0xff] }
 0x430   :  { %2013 = vmatmul.mubr.msk.bf16.vlgmr.msra.gmra.mrb[8].mxu1 %vm296_vm15, %v373_v3  ;;  %v307_v10 = vmul.f32 %v2205_v8, %v2197_v47  ;;  %v637_v14 = vpop.xlane.xlu1 %636  ;;  %v863_v3 = vld [vmem:[%s2790_s14 + $0x20] sm:$0xff]  ;;  %v865_v8 = vld [vmem:[%s2790_s14 + $0x30] sm:$0xff] }
 0x431   :  { %2017 = vmatpush3.bf16.msra.mxu1 %v426_v5  ;;  %2018 = vmatprep.mubr.msk.bf16.mxu1 %vm2241_vm1, %v2240_v7  ;;  %2208 = vrcp.f32 %v637_v14  ;;  %v864_v5 = vld [vmem:[%s2790_s14 + $0x28] sm:$0xff] }
 0x432   :  { %2028 = vmatprep.subr.bf16.mxu1 %v2240_v7  ;;  %v309_v12 = vpack.c.bf16 %v307_v10, %v307_v10  ;;  %v870_v6 = vpack.c.bf16 %v864_v5, %v863_v3  ;;  %v871_v10 = vpack.c.bf16 %v866_v9, %v865_v8  ;;  %v1873_v3 = vld [vmem:[%s2783_s7 + $0x28] sm:$0xff] }
 0x433   :  { %v2207_v15 = vpop.eup %2206 }
 0x434   :  { %v528_v17 = vmul.f32 %v2207_v15, %v2199_v50 }
 0x436   :  { %v530_v20 = vpack.c.bf16 %v528_v17, %v528_v17 }
 0x43b   :  { %v2209_v22 = vpop.eup %2208 }
 0x43c   :  { %2019 = vmatmul.mubr.msk.bf16.vlgmr.msra.gmra.mrb[8].mxu1 %vm296_vm15, %v309_v12  ;;  %v639_v23 = vmul.f32 %v2209_v22, %v2201_v52 }
 0x43d   :  { %2029 = vmatpush3.bf16.msra.mxu1 %v536_v13  ;;  %2030 = vmatprep.mubr.msk.bf16.mxu1 %vm2241_vm1, %v2240_v7 }
 0x43e   :  { %2040 = vmatprep.subr.bf16.mxu1 %v2240_v7  ;;  %v641_v24 = vpack.c.bf16 %v639_v23, %v639_v23 }
 0x448   :  { %2031 = vmatmul.mubr.msk.bf16.vlgmr.msra.gmra.mrb[8].mxu1 %vm296_vm15, %v530_v20 }
 0x449   :  { %2041 = vmatpush3.bf16.msra.mxu1 %v647_v21  ;;  %2042 = vmatprep.mubr.msk.bf16.mxu1 %vm2241_vm1, %v2240_v7 }
 0x44a   :  { %2058 = vmatprep.subr.bf16.mxu1 %v2240_v7 }
 0x454   :  { %2043 = vmatmul.mubr.msk.bf16.vlgmr.msra.gmra.mrb[8].mxu1 %vm296_vm15, %v641_v24 }
 0x455   :  { %2066 = vmatprep.mubr.msk.bf16.mxu1 %vm2241_vm1, %v2240_v7  ;;  %2059 = vmatpush3.bf16.msra.mxu1 %v868_v61 }
 0x456   :  { %2060 = vmatprep.subr.bf16.mxu1 %v2240_v7 }
 0x459   :  { %2061 = vmatpush3.bf16.msra.mxu1 %v869_v2  ;;  %v1872_v2 = vld [vmem:[%s2783_s7 + $0x20] sm:$0xff] }
 0x45a   :  { %2062 = vmatprep.subr.bf16.mxu1 %v2240_v7  ;;  %v1057_v5 = vpack.c.bf16 %v1873_v3, %v1872_v2 }
 0x45d   :  { %2063 = vmatpush3.bf16.msra.mxu1 %v870_v6 }
 0x45e   :  { %2064 = vmatprep.subr.bf16.mxu1 %v2240_v7 }
 0x461   :  { %2065 = vmatpush3.bf16.msra.mxu1 %v871_v10 }
 0x462   :  { %2084 = vmatprep.subr.bf16.mxu1 %v2240_v7 }
 0x527   :  { %v683_v55 = vpop.f32.mrb[8].mxu1 }
 0x528   :  { %v691_v25 = vpack.c.bf16 %v683_v55, %v683_v55  ;;  %v2044_v26 = vpop.f32.mrb[9].mxu1 }
 0x529   :  { %v686_v27 = vpop.f32.mrb[10].mxu1 }
 0x52a   :  { %v2045_v28 = vpop.f32.mrb[11].mxu1  ;;  %2049 = vmatmul.mubr.msk.bf16.vlgmr.msra.gmra.mrb[20].mxu0 %vm249_vm3, %v691_v25 }
 0x52b   :  { %2054 = vmatprep.mubr.msk.bf16.mxu0 %vm2241_vm1, %v2240_v7 }
 0x5fd   :  { %v734_v29 = vpop.f32.mrb[20].mxu0 }
 0x5fe   :  { %v740_v31 = vadd.f32 %v734_v29, %v2342_v0  ;;  %v2050_v32 = vpop.f32.mrb[21].mxu0  ;;  %v778_v0 = vld [vmem:[%s2787_s12] sm:$0xff] }
 0x5ff   :  { %v737_v33 = vpop.f32.mrb[22].mxu0  ;;  %v781_v46 = vpack.c.bf16 %v779_v43, %v778_v0 }
 0x600   :  { %v2504_v34 = vadd.f32 %v1853_v30, %v740_v31  ;;  %v2051_v35 = vpop.f32.mrb[23].mxu0 }
 0x601   :  { %2053 = vmatpush3.bf16.msra.mxu0 %v781_v46 }
 0x602   :  { %v751_v36 = vsel %vm65_vm0, %v2504_v34, 0.0  ;;  %2070 = vmatprep.subr.bf16.mxu0 %v2240_v7 }
 0x603   :  { %752 = vadd.xlane.f32.xlu0 %v751_v36 }
 0x690   :  { %v753_v37 = vpop.xlane.xlu0 %752 }
 0x691   :  { %v754_v38 = vmul.f32 0.0625, %v753_v37 }
 0x693   :  { %v755_v39 = vsub.f32 %v2504_v34, %v754_v38  ;;  %v2242_v38 = vmov -1.0  }
 0x695   :  { %v756_v40 = vmul.f32 %v755_v39, %v755_v39 }
 0x697   :  { %v757_v42 = vsel %vm65_vm0, %v756_v40, 0.0 }
 0x698   :  { %758 = vadd.xlane.f32.xlu1 %v757_v42 }
 0x725   :  { %v759_v47 = vpop.xlane.xlu1 %758 }
 0x726   :  { %v760_v48 = vmul.f32 0.0625, %v759_v47 }
 0x728   :  { %v761_v49 = vadd.f32 1e-05, %v760_v48  ;;  %v1859_v48 = vld [vmem:[%s2792_s15] ss:$0 sm:$0xff] }
 0x72a   :  { %2210 = vrsqrt.f32 %v761_v49 }
 0x734   :  { %v2211_v50 = vpop.eup %2210 }
 0x735   :  { %v763_v52 = vmul.f32 %v2211_v50, %v755_v39 }
 0x737   :  { %v770_v56 = vmul.f32 %v1854_v51, %v763_v52 }
 0x739   :  { %v777_v57 = vadd.f32 %v1855_v53, %v770_v56 }
 0x73b   :  { %v780_v58 = vpack.c.bf16 %v777_v57, %v777_v57 }
 0x73d   :  { %2055 = vmatmul.mubr.msk.bf16.vlgmr.msra.gmra.mrb[24].mxu0 %vm65_vm0, %v780_v58 }
 0x73e   :  { %2072 = vmatprep.mubr.msk.bf16.mxu0 %vm2241_vm1, %v2240_v7 }
 0x810   :  { %v826_v12 = vpop.f32.mrb[24].mxu0 }
 0x811   :  { %v827_v13 = vadd.f32 %v1856_v11, %v826_v12  ;;  %v2056_v14 = vpop.f32.mrb[25].mxu0  ;;  %v1862_v11 = vld [vmem:[%s2781_s3 + $0x1] ss:$0 sm:$0xff] }
 0x812   :  { %v829_v15 = vpop.f32.mrb[26].mxu0 }
 0x813   :  { %v833_v16 = vmul.f32 0.70710677, %v827_v13  ;;  %v2057_v17 = vpop.f32.mrb[27].mxu0  ;;  %v832_v42 = vmul.f32 0.5, %v827_v13  ;;  %v1863_v13 = vld [vmem:[%s2782_s4 + $0x1] ss:$0 sm:$0xff] }
 0x814   :  { %v1867_v15 = vld [vmem:[%s2802_s19 + $0x20] sm:$0xff] }
 0x815   :  { %v836_v19 = vand.u32 2147483647, %v833_v16  ;;  %vm834_vm5 = vcmp.ge.f32.partialorder %v833_v16, 0.0  ;;  %v1868_v16 = vld [vmem:[%s2802_s19 + $0x28] sm:$0xff] }
 0x816   :  { %v835_v39 = vsel %vm834_vm5, 1.0, %v2242_v38 }
 0x817   :  { %v837_v20 = vmul.f32 0.3275911, %v836_v19  ;;  %v850_v22 = vsub.f32 0.0, %v836_v19 }
 0x819   :  { %v838_v21 = vadd.f32 1.0, %v837_v20  ;;  %v851_v24 = vmul.f32 %v850_v22, %v836_v19  ;;  %v1010_v19 = vpack.c.bf16 %v1868_v16, %v1867_v15  ;;  %v1870_v22 = vld [vmem:[%s2802_s19 + $0x38] sm:$0xff] }
 0x81b   :  { %2212 = vrcp.f32 %v838_v21  ;;  %v852_v26 = vmul.f32 1.442695, %v851_v24  ;;  %v1869_v21 = vld [vmem:[%s2802_s19 + $0x30] sm:$0xff] }
 0x81c   :  { %v1874_v24 = vld [vmem:[%s2783_s7 + $0x30] sm:$0xff] }
 0x81d   :  { %2214 = vpow2.f32 %v852_v26 }
 0x825   :  { %v2213_v23 = vpop.eup %2212 }
 0x826   :  { %v841_v55 = vmul.f32 1.0614054, %v2213_v23 }
 0x827   :  { %v2215_v35 = vpop.eup %2214 }
 0x828   :  { %v842_v25 = vadd.f32 -1.4531521, %v841_v55  ;;  %v1875_v55 = vld [vmem:[%s2783_s7 + $0x38] sm:$0xff] }
 0x82a   :  { %v843_v27 = vmul.f32 %v2213_v23, %v842_v25  ;;  %v1058_v25 = vpack.c.bf16 %v1875_v55, %v1874_v24 }
 0x82c   :  { %v844_v28 = vadd.f32 1.4214138, %v843_v27 }
 0x82e   :  { %v845_v29 = vmul.f32 %v2213_v23, %v844_v28 }
 0x830   :  { %v846_v30 = vadd.f32 -0.28449672, %v845_v29 }
 0x832   :  { %v847_v31 = vmul.f32 %v2213_v23, %v846_v30 }
 0x834   :  { %v848_v32 = vadd.f32 0.2548296, %v847_v31 }
 0x836   :  { %v849_v33 = vmul.f32 %v2213_v23, %v848_v32  ;;  %v1011_v23 = vpack.c.bf16 %v1870_v22, %v1869_v21 }
 0x838   :  { %v854_v36 = vmul.f32 %v2215_v35, %v849_v33 }
 0x83a   :  { %v855_v37 = vsub.f32 1.0, %v854_v36 }
 0x83c   :  { %v856_v40 = vmul.f32 %v855_v37, %v835_v39 }
 0x83e   :  { %v857_v0 = vadd.f32 1.0, %v856_v40 }
 0x840   :  { %v858_v43 = vmul.f32 %v857_v0, %v832_v42 }
 0x842   :  { %v867_v46 = vpack.c.bf16 %v858_v43, %v858_v43 }
 0x844   :  { %2067 = vmatmul.mubr.msk.bf16.vlgmr.msra.gmra.mrb[12].mxu1 %vm872_vm6, %v867_v46 }
 0x845   :  { %2088 = vmatprep.mubr.msk.bf16.mxu1 %vm2241_vm1, %v2240_v7  ;;  %2085 = vmatpush3.bf16.msra.mxu1 %v1057_v5 }
 0x846   :  { %2086 = vmatprep.subr.bf16.mxu1 %v2240_v7 }
 0x849   :  { %2087 = vmatpush3.bf16.msra.mxu1 %v1058_v25 }
 0x84a   :  { %2098 = vmatprep.subr.bf16.mxu1 %v2240_v7 }
 0x84c   :  { %2089 = vmatmul.mubr.msk.bf16.vlgmr.msra.gmra.mrb[16].mxu1 %vm149_vm2, %v2376_v18 }
 0x84d   :  { %2100 = vmatprep.mubr.msk.bf16.mxu1 %vm2241_vm1, %v2240_v7 }
 0x917   :  { %v910_v47 = vpop.f32.mrb[12].mxu1 }
 0x918   :  { %v916_v49 = vadd.f32 %v910_v47, %v2504_v34  ;;  %v2068_v50 = vpop.f32.mrb[13].mxu1  ;;  %v1864_v34 = vld [vmem:[%s2803_s26 + $0x10] sm:$0xff] }
 0x919   :  { %v913_v51 = vpop.f32.mrb[14].mxu1  ;;  %v960_v63 = vpack.c.bf16 %v1865_v62, %v1864_v34 }
 0x91a   :  { %v2565_v52 = vadd.f32 %v1859_v48, %v916_v49  ;;  %v2069_v53 = vpop.f32.mrb[15].mxu1 }
 0x91b   :  { %2071 = vmatpush3.bf16.msra.mxu0 %v960_v63 }
 0x91c   :  { %v929_v56 = vsel %vm65_vm0, %v2565_v52, 0.0  ;;  %2076 = vmatprep.subr.bf16.mxu0 %v2240_v7 }
 0x91d   :  { %930 = vadd.xlane.f32.xlu0 %v929_v56 }
 0x91f   :  { %v2644_v48 = vpop.f32.mrb[16].mxu1 }
 0x920   :  { %v1218_v49 = vmul.f32 %v2419_v45, %v2644_v48  ;;  %v2090_v50 = vpop.f32.mrb[17].mxu1 }
 0x921   :  { %v1096_v51 = vpop.f32.mrb[18].mxu1 }
 0x922   :  { %v2091_v53 = vpop.f32.mrb[19].mxu1  ;;  %v1220_v56 = vpack.c.bf16 %v1218_v49, %v1218_v49 }
 0x9aa   :  { %v931_v57 = vpop.xlane.xlu0 %930 }
 0x9ab   :  { %v932_v58 = vmul.f32 0.0625, %v931_v57  ;;  %v1225_v57 = vsel %vm378_vm13, %v1220_v56, 0 }
 0x9ad   :  { %v933_v59 = vsub.f32 %v2565_v52, %v932_v58 }
 0x9af   :  { %v934_v60 = vmul.f32 %v933_v59, %v933_v59 }
 0x9b1   :  { %v935_v61 = vsel %vm65_vm0, %v934_v60, 0.0 }
 0x9b2   :  { %936 = vadd.xlane.f32.xlu1 %v935_v61 }
 0xa3f   :  { %v937_v6 = vpop.xlane.xlu1 %936 }
 0xa40   :  { %v938_v8 = vmul.f32 0.0625, %v937_v6 }
 0xa42   :  { %v939_v9 = vadd.f32 1e-05, %v938_v8 }
 0xa44   :  { %2216 = vrsqrt.f32 %v939_v9 }
 0xa4e   :  { %v2217_v10 = vpop.eup %2216 }
 0xa4f   :  { %v941_v12 = vmul.f32 %v2217_v10, %v933_v59 }
 0xa51   :  { %v948_v14 = vmul.f32 %v1862_v11, %v941_v12 }
 0xa53   :  { %v955_v17 = vadd.f32 %v1863_v13, %v948_v14 }
 0xa55   :  { %v959_v20 = vpack.c.bf16 %v955_v17, %v955_v17 }
 0xa57   :  { %2073 = vmatmul.mubr.msk.bf16.vlgmr.msra.gmra.mrb[28].mxu0 %vm65_vm0, %v959_v20 }
 0xa58   :  { %2077 = vmatpush3.bf16.msra.mxu0 %v1010_v19  ;;  %2080 = vmatprep.mubr.msk.bf16.mxu0 %vm2241_vm1, %v2240_v7 }
 0xa59   :  { %2078 = vmatprep.subr.bf16.mxu0 %v2240_v7 }
 0xa5c   :  { %2079 = vmatpush3.bf16.msra.mxu0 %v1011_v23 }
 0xa5d   :  { %2092 = vmatprep.subr.bf16.mxu0 %v2240_v7 }
 0xa5f   :  { %2081 = vmatmul.mubr.msk.bf16.vlgmr.msra.gmra.mrb[32].mxu0 %vm149_vm2, %v2376_v18 }
 0xa60   :  { %2094 = vmatprep.mubr.msk.bf16.mxu0 %vm2241_vm1, %v2240_v7 }
 0xb2a   :  { %v998_v26 = vpop.f32.mrb[28].mxu0 }
 0xb2b   :  { %v2074_v27 = vpop.f32.mrb[29].mxu0  ;;  %v1004_v31 = vmul.f32 0.70710677, %v998_v26 }
 0xb2c   :  { %v1001_v28 = vpop.f32.mrb[30].mxu0 }
 0xb2d   :  { %v2075_v29 = vpop.f32.mrb[31].mxu0  ;;  %v1099_v39 = vmul.f32 %v2416_v44, %v1004_v31  ;;  %v1162_v18 = vmul.f32 %v2419_v45, %v1004_v31  ;;  %v1313_v0 = vmul.f32 %v2424_v54, %v1004_v31  ;;  %v1419_v46 = vmul.f32 %v2440_v1, %v1004_v31 }
 0xb2f   :  { %v1100_v40 = vpack.c.bf16 %v1099_v39, %v1099_v39  ;;  %v1163_v42 = vpack.c.bf16 %v1162_v18, %v1162_v18  ;;  %v1314_v43 = vpack.c.bf16 %v1313_v0, %v1313_v0  ;;  %v1420_v47 = vpack.c.bf16 %v1419_v46, %v1419_v46 }
 0xb32   :  { %v1046_v30 = vpop.f32.mrb[32].mxu0 }
 0xb33   :  { %v1101_v32 = vpack.c.bf16 %v1046_v30, %v1046_v30  ;;  %v2082_v33 = vpop.f32.mrb[33].mxu0 }
 0xb34   :  { %v1049_v35 = vpop.f32.mrb[34].mxu0 }
 0xb35   :  { %v1106_v36 = vsel %vm249_vm3, %v1101_v32, 0  ;;  %v2083_v37 = vpop.f32.mrb[35].mxu0 }
 0xb36   :  { %2093 = vmatpush3.bf16.xpose.msra.mxu0 %v1106_v36  ;;  %2099 = vmatpush3.bf16.xpose.msra.mxu1 %v1106_v36 }
 0xb37   :  { %2116 = vmatprep.subr.bf16.mxu1 %v2240_v7  ;;  %2104 = vmatprep.subr.bf16.mxu0 %v2240_v7 }
 0xb3d   :  { %2095 = vmatmul.mubr.msk.bf16.vlgmr.msra.gmra.mrb[36].mxu0 %vm249_vm3, %v1100_v40  ;;  %2101 = vmatmul.mubr.msk.bf16.vlgmr.msra.gmra.mrb[20].mxu1 %vm249_vm3, %v1163_v42  ;;  %v1885_v40 = vld [vmem:[%s2785_s8 + $0x8] sm:$0xff] }
 0xb3e   :  { %2117 = vmatpush3.bf16.xpose.msra.mxu1 %v1106_v36  ;;  %2118 = vmatprep.mubr.msk.bf16.mxu1 %vm2241_vm1, %v2240_v7  ;;  %v1528_v42 = vpack.c.bf16 %v1885_v40, %v1885_v40 }
 0xb3f   :  { %2128 = vmatprep.subr.bf16.mxu1 %v2240_v7  ;;  %2106 = vmatprep.mubr.msk.bf16.mxu0 %vm2241_vm1, %v2240_v7 }
 0xb40   :  { %2105 = vmatpush3.bf16.msra.mxu0 %v1225_v57  ;;  %v1533_v0 = vsel %vm696_vm4, %v1528_v42, 0  ;;  %v1900_v42 = vld [vmem:[%s2790_s14 + $0x50] sm:$0xff] }
 0xb41   :  { %2110 = vmatprep.subr.bf16.mxu0 %v2240_v7 }
 0xb45   :  { %2119 = vmatmul.mubr.msk.bf16.vlgmr.msra.gmra.mrb[24].mxu1 %vm249_vm3, %v1314_v43 }
 0xb46   :  { %2129 = vmatpush3.bf16.xpose.msra.mxu1 %v1106_v36  ;;  %2130 = vmatprep.mubr.msk.bf16.mxu1 %vm2241_vm1, %v2240_v7 }
 0xb47   :  { %2140 = vmatprep.subr.bf16.mxu1 %v2240_v7 }
 0xb4d   :  { %2131 = vmatmul.mubr.msk.bf16.vlgmr.msra.gmra.mrb[28].mxu1 %vm249_vm3, %v1420_v47  ;;  %v1159_v47 = vmul.f32 %v2416_v44, %v2644_v48  ;;  %v1369_v44 = vmul.f32 %v2424_v54, %v2644_v48 }
 0xb4e   :  { %2142 = vmatprep.mubr.msk.bf16.mxu1 %vm2241_vm1, %v2240_v7  ;;  %2141 = vmatpush3.bf16.msra.mxu1 %v1533_v0  ;;  %v1901_v0 = vld [vmem:[%s2790_s14 + $0x58] sm:$0xff] }
 0xb4f   :  { %2146 = vmatprep.subr.bf16.mxu1 %v2240_v7  ;;  %v1161_v51 = vpack.c.bf16 %v1159_v47, %v1159_v47  ;;  %v1903_v47 = vld [vmem:[%s2790_s14 + $0x68] sm:$0xff] }
 0xb51   :  { %v1271_v56 = vsel %vm378_vm13, %v1161_v51, 0  ;;  %v1905_v51 = vld [vmem:[%s2790_s14 + $0x78] sm:$0xff] }
 0xc10   :  { %v1142_v58 = vpop.f32.mrb[36].mxu0  ;;  %v1201_v59 = vpop.f32.mrb[20].mxu1 }
 0xc11   :  { %v1143_v60 = vadd.f32 %v1142_v58, %v2454_v4  ;;  %v1202_v61 = vadd.f32 %v1201_v59, %v2454_v4  ;;  %v2096_v34 = vpop.f32.mrb[37].mxu0  ;;  %v2102_v62 = vpop.f32.mrb[21].mxu1 }
 0xc12   :  { %v1145_v63 = vpop.f32.mrb[38].mxu0  ;;  %v1204_v2 = vpop.f32.mrb[22].mxu1 }
 0xc13   :  { %v2097_v45 = vpop.f32.mrb[39].mxu0  ;;  %v2103_v3 = vpop.f32.mrb[23].mxu1  ;;  %v1207_v5 = vsel %vm296_vm15, %v1202_v61, -inf  ;;  %v1148_v6 = vsel %vm296_vm15, %v1143_v60, -inf  ;;  %v1475_v2 = vmul.f32 %v2440_v1, %v2644_v48 }
 0xc14   :  { %1208 = vmax.xlane.f32.xlu0 %v1207_v5  ;;  %1149 = vmax.xlane.f32.xlu1 %v1148_v6 }
 0xc15   :  { %v1477_v45 = vpack.c.bf16 %v1475_v2, %v1475_v2 }
 0xc17   :  { %v1482_v5 = vsel %vm378_vm13, %v1477_v45, 0 }
 0xc18   :  { %v1352_v8 = vpop.f32.mrb[24].mxu1 }
 0xc19   :  { %v1353_v9 = vadd.f32 %v1352_v8, %v2454_v4  ;;  %v2120_v10 = vpop.f32.mrb[25].mxu1 }
 0xc1a   :  { %v1355_v11 = vpop.f32.mrb[26].mxu1 }
 0xc1b   :  { %v2121_v12 = vpop.f32.mrb[27].mxu1  ;;  %v1358_v13 = vsel %vm296_vm15, %v1353_v9, -inf }
 0xc1c   :  { %1359 = vmax.xlane.f32.xlu0 %v1358_v13 }
 0xc20   :  { %v1458_v14 = vpop.f32.mrb[28].mxu1 }
 0xc21   :  { %v1459_v15 = vadd.f32 %v1458_v14, %v2454_v4  ;;  %v2132_v16 = vpop.f32.mrb[29].mxu1  ;;  %v1888_v14 = vld [vmem:[%s2786_s9 + $0x1] ss:$0 sm:$0xff] }
 0xc22   :  { %v1461_v17 = vpop.f32.mrb[30].mxu1 }
 0xc23   :  { %v2133_v19 = vpop.f32.mrb[31].mxu1  ;;  %v1464_v20 = vsel %vm296_vm15, %v1459_v15, -inf }
 0xc24   :  { %1465 = vmax.xlane.f32.xlu1 %v1464_v20 }
 0xca1   :  { %v1209_v21 = vpop.xlane.xlu0 %1208  ;;  %v1150_v22 = vpop.xlane.xlu1 %1149 }
 0xca2   :  { %v1210_v23 = vsub.f32 %v1202_v61, %v1209_v21  ;;  %v1151_v24 = vsub.f32 %v1143_v60, %v1150_v22  ;;  %v1371_v60 = vpack.c.bf16 %v1369_v44, %v1369_v44 }
 0xca4   :  { %v1211_v55 = vmul.f32 1.442695, %v1210_v23  ;;  %v1152_v25 = vmul.f32 1.442695, %v1151_v24  ;;  %v1376_v34 = vsel %vm378_vm13, %v1371_v60, 0 }
 0xca6   :  { %2218 = vpow2.f32 %v1211_v55 }
 0xca7   :  { %2220 = vpow2.f32 %v1152_v25 }
 0xca9   :  { %v1360_v26 = vpop.xlane.xlu0 %1359 }
 0xcaa   :  { %v1361_v27 = vsub.f32 %v1353_v9, %v1360_v26  ;;  %v1894_v26 = vld [vmem:[%s2787_s12 + $0x18] sm:$0xff] }
 0xcac   :  { %v1362_v28 = vmul.f32 1.442695, %v1361_v27 }
 0xcae   :  { %2222 = vpow2.f32 %v1362_v28 }
 0xcb0   :  { %v2219_v29 = vpop.eup %2218 }
 0xcb1   :  { %v2221_v4 = vpop.eup %2220  ;;  %v1466_v30 = vpop.xlane.xlu1 %1465  ;;  %v1213_v31 = vsel %vm296_vm15, %v2219_v29, 0.0 }
 0xcb2   :  { %v1467_v32 = vsub.f32 %v1459_v15, %v1466_v30  ;;  %1214 = vadd.xlane.f32.xlu0 %v1213_v31  ;;  %v1154_v33 = vsel %vm296_vm15, %v2221_v4, 0.0  ;;  %v1891_v31 = vld [vmem:[%s2788_s10 + $0x1] ss:$0 sm:$0xff] }
 0xcb3   :  { %1155 = vadd.xlane.f32.xlu1 %v1154_v33  ;;  %v1892_v33 = vld [vmem:[%s2789_s11 + $0x1] ss:$0 sm:$0xff] }
 0xcb4   :  { %v1468_v35 = vmul.f32 1.442695, %v1467_v32 }
 0xcb6   :  { %2224 = vpow2.f32 %v1468_v35 }
 0xcb8   :  { %v2223_v36 = vpop.eup %2222 }
 0xcb9   :  { %v1364_v37 = vsel %vm296_vm15, %v2223_v36, 0.0 }
 0xcba   :  { %1365 = vadd.xlane.f32.xlu0 %v1364_v37 }
 0xcc0   :  { %v2225_v39 = vpop.eup %2224 }
 0xcc1   :  { %v1470_v18 = vsel %vm296_vm15, %v2225_v39, 0.0 }
 0xcc2   :  { %1471 = vadd.xlane.f32.xlu1 %v1470_v18  ;;  %v1899_v18 = vld [vmem:[%s2790_s14 + $0x48] sm:$0xff] }
 0xd3f   :  { %v1215_v43 = vpop.xlane.xlu0 %1214 }
 0xd40   :  { %2226 = vrcp.f32 %v1215_v43  ;;  %v1156_v46 = vpop.xlane.xlu1 %1155  ;;  %v1710_v43 = vpack.c.bf16 %v1901_v0, %v1900_v42 }
 0xd41   :  { %2228 = vrcp.f32 %v1156_v46  ;;  %v1902_v46 = vld [vmem:[%s2790_s14 + $0x60] sm:$0xff] }
 0xd47   :  { %v1366_v57 = vpop.xlane.xlu0 %1365 }
 0xd48   :  { %2230 = vrcp.f32 %v1366_v57  ;;  %v1769_v57 = vld [vmem:[%s2793_s16 + $0x18] sm:$0xff] }
 0xd4a   :  { %v2227_v49 = vpop.eup %2226 }
 0xd4b   :  { %v1217_v50 = vmul.f32 %v2227_v49, %v2219_v29  ;;  %v2229_v58 = vpop.eup %2228  ;;  %v1711_v49 = vpack.c.bf16 %v1903_v47, %v1902_v46 }
 0xd4c   :  { %v1158_v59 = vmul.f32 %v2229_v58, %v2221_v4 }
 0xd4d   :  { %v1219_v53 = vpack.c.bf16 %v1217_v50, %v1217_v50  ;;  %v1904_v50 = vld [vmem:[%s2790_s14 + $0x70] sm:$0xff] }
 0xd4e   :  { %v1160_v61 = vpack.c.bf16 %v1158_v59, %v1158_v59 }
 0xd4f   :  { %2107 = vmatmul.mubr.msk.bf16.vlgmr.msra.gmra.mrb[40].mxu0 %vm296_vm15, %v1219_v53  ;;  %v1472_v62 = vpop.xlane.xlu1 %1471  ;;  %v1712_v53 = vpack.c.bf16 %v1905_v51, %v1904_v50 }
 0xd50   :  { %2111 = vmatpush3.bf16.msra.mxu0 %v1271_v56  ;;  %2112 = vmatprep.mubr.msk.bf16.mxu0 %vm2241_vm1, %v2240_v7  ;;  %2232 = vrcp.f32 %v1472_v62  ;;  %v1767_v56 = vld [vmem:[%s2793_s16 + $0x8] sm:$0xff] }
 0xd51   :  { %2122 = vmatprep.subr.bf16.mxu0 %v2240_v7  ;;  %v1772_v58 = vpack.c.bf16 %v1769_v57, %v1767_v56 }
 0xd52   :  { %v2231_v63 = vpop.eup %2230 }
 0xd53   :  { %v1368_v54 = vmul.f32 %v2231_v63, %v2223_v36 }
 0xd55   :  { %v1370_v3 = vpack.c.bf16 %v1368_v54, %v1368_v54 }
 0xd5a   :  { %v2233_v6 = vpop.eup %2232 }
 0xd5b   :  { %2113 = vmatmul.mubr.msk.bf16.vlgmr.msra.gmra.mrb[40].mxu0 %vm296_vm15, %v1160_v61  ;;  %v1474_v8 = vmul.f32 %v2233_v6, %v2225_v39  ;;  %v1898_v39 = vld [vmem:[%s2790_s14 + $0x40] sm:$0xff] }
 0xd5c   :  { %2123 = vmatpush3.bf16.msra.mxu0 %v1376_v34  ;;  %2124 = vmatprep.mubr.msk.bf16.mxu0 %vm2241_vm1, %v2240_v7  ;;  %v1709_v40 = vpack.c.bf16 %v1899_v18, %v1898_v39 }
 0xd5d   :  { %2134 = vmatprep.subr.bf16.mxu0 %v2240_v7  ;;  %v1476_v9 = vpack.c.bf16 %v1474_v8, %v1474_v8 }
 0xd67   :  { %2125 = vmatmul.mubr.msk.bf16.vlgmr.msra.gmra.mrb[40].mxu0 %vm296_vm15, %v1370_v3 }
 0xd68   :  { %2135 = vmatpush3.bf16.msra.mxu0 %v1482_v5  ;;  %2136 = vmatprep.mubr.msk.bf16.mxu0 %vm2241_vm1, %v2240_v7 }
 0xd69   :  { %2152 = vmatprep.subr.bf16.mxu0 %v2240_v7 }
 0xd73   :  { %2137 = vmatmul.mubr.msk.bf16.vlgmr.msra.gmra.mrb[40].mxu0 %vm296_vm15, %v1476_v9 }
 0xd74   :  { %2160 = vmatprep.mubr.msk.bf16.mxu0 %vm2241_vm1, %v2240_v7  ;;  %2153 = vmatpush3.bf16.msra.mxu0 %v1709_v40 }
 0xd75   :  { %2154 = vmatprep.subr.bf16.mxu0 %v2240_v7 }
 0xd78   :  { %2155 = vmatpush3.bf16.msra.mxu0 %v1710_v43 }
 0xd79   :  { %2156 = vmatprep.subr.bf16.mxu0 %v2240_v7 }
 0xd7c   :  { %2157 = vmatpush3.bf16.msra.mxu0 %v1711_v49 }
 0xd7d   :  { %2158 = vmatprep.subr.bf16.mxu0 %v2240_v7 }
 0xd80   :  { %2159 = vmatpush3.bf16.msra.mxu0 %v1712_v53 }
 0xe46   :  { %v1518_v1 = vpop.f32.mrb[40].mxu0 }
 0xe47   :  { %v1527_v48 = vpack.c.bf16 %v1518_v1, %v1518_v1  ;;  %v2138_v10 = vpop.f32.mrb[41].mxu0 }
 0xe48   :  { %v1521_v11 = vpop.f32.mrb[42].mxu0 }
 0xe49   :  { %v2139_v12 = vpop.f32.mrb[43].mxu0  ;;  %2143 = vmatmul.mubr.msk.bf16.vlgmr.msra.gmra.mrb[32].mxu1 %vm249_vm3, %v1527_v48 }
 0xe4a   :  { %2148 = vmatprep.mubr.msk.bf16.mxu1 %vm2241_vm1, %v2240_v7  ;;  %v1896_v7 = vld [vmem:[%s2791_s13 + $0x1] ss:$0 sm:$0xff] }
 0xf1c   :  { %v1569_v13 = vpop.f32.mrb[32].mxu1 }
 0xf1d   :  { %v1575_v15 = vadd.f32 %v1569_v13, %v2565_v52  ;;  %v2144_v16 = vpop.f32.mrb[33].mxu1  ;;  %v1893_v52 = vld [vmem:[%s2787_s12 + $0x10] sm:$0xff] }
 0xf1e   :  { %v1572_v17 = vpop.f32.mrb[34].mxu1  ;;  %v1620_v27 = vpack.c.bf16 %v1894_v26, %v1893_v52  ;;  %v1768_v52 = vld [vmem:[%s2793_s16 + $0x10] sm:$0xff] }
 0xf1f   :  { %v2698_v19 = vadd.f32 %v1888_v14, %v1575_v15  ;;  %v2145_v20 = vpop.f32.mrb[35].mxu1 }
 0xf20   :  { %2147 = vmatpush3.bf16.msra.mxu1 %v1620_v27  ;;  %v2243_v27 = vmov 0  }
 0xf21   :  { %v1589_v21 = vsel %vm65_vm0, %v2698_v19, 0.0  ;;  %1788 = vmatprep.subr.bf16.mxu1 %v1772_v58 }
 0xf22   :  { %1590 = vadd.xlane.f32.xlu0 %v1589_v21 }
 0xfaf   :  { %v1591_v22 = vpop.xlane.xlu0 %1590 }
 0xfb0   :  { %v1592_v23 = vmul.f32 0.0625, %v1591_v22 }
 0xfb2   :  { %v1593_v24 = vsub.f32 %v2698_v19, %v1592_v23 }
 0xfb4   :  { %v1594_v55 = vmul.f32 %v1593_v24, %v1593_v24 }
 0xfb6   :  { %v1595_v25 = vsel %vm65_vm0, %v1594_v55, 0.0 }
 0xfb7   :  { %1596 = vadd.xlane.f32.xlu1 %v1595_v25  ;;  %v1766_v25 = vld [vmem:[%s2793_s16] sm:$0xff] }
 0xfb8   :  { %v1771_v26 = vpack.c.bf16 %v1768_v52, %v1766_v25 }
0x1044   :  { %v1597_v28 = vpop.xlane.xlu1 %1596 }
0x1045   :  { %v1598_v29 = vmul.f32 0.0625, %v1597_v28  ;;  %v1908_v28 = vld [vmem:[%s2792_s15 + $0x1] ss:$0 sm:$0xff] }
0x1047   :  { %v1599_v4 = vadd.f32 1e-05, %v1598_v29 }
0x1049   :  { %2234 = vrsqrt.f32 %v1599_v4 }
0x1053   :  { %v2235_v30 = vpop.eup %2234 }
0x1054   :  { %v1601_v32 = vmul.f32 %v2235_v30, %v1593_v24 }
0x1056   :  { %v1608_v35 = vmul.f32 %v1891_v31, %v1601_v32 }
0x1058   :  { %v1615_v36 = vadd.f32 %v1892_v33, %v1608_v35  ;;  %v1776_v35 = vshrl.u32 %v239_v41, 7 }
0x105a   :  { %v1619_v37 = vpack.c.bf16 %v1615_v36, %v1615_v36  ;;  %v1777_v36 = vsub.s32 0, %v1776_v35  ;;  %v1781_v39 = vsub.s32 1, %v1776_v35 }
0x105c   :  { %2149 = vmatmul.mubr.msk.bf16.vlgmr.msra.gmra.mrb[36].mxu1 %vm65_vm0, %v1619_v37  ;;  %v1773_v37 = vld [vmem:[%s2794_s17] sm:$0x3] }
0x105d   :  { %1789 = vmatpush1.bf16.msra.mxu1 %v1771_v26  ;;  %1820 = vmatprep.mubr.bf16.mxu1 %v2243_v27  ;;  %v1778_v18 = vrot.slane %v1773_v37, %v1777_v36  ;;  %v1782_v40 = vrot.slane %v1773_v37, %v1781_v39 }
0x112f   :  { %v1666_v44 = vpop.f32.mrb[36].mxu1 }
0x1130   :  { %v1667_v59 = vadd.f32 %v1896_v7, %v1666_v44  ;;  %v2150_v60 = vpop.f32.mrb[37].mxu1 }
0x1131   :  { %v1669_v61 = vpop.f32.mrb[38].mxu1 }
0x1132   :  { %v1673_v34 = vmul.f32 0.70710677, %v1667_v59  ;;  %v2151_v62 = vpop.f32.mrb[39].mxu1  ;;  %v1672_v22 = vmul.f32 0.5, %v1667_v59 }
0x1134   :  { %v1676_v63 = vand.u32 2147483647, %v1673_v34  ;;  %vm1674_vm1 = vcmp.ge.f32.partialorder %v1673_v34, 0.0 }
0x1135   :  { %v1675_v20 = vsel %vm1674_vm1, 1.0, %v2242_v38 }
0x1136   :  { %v1677_v2 = vmul.f32 0.3275911, %v1676_v63  ;;  %v1690_v45 = vsub.f32 0.0, %v1676_v63 }
0x1138   :  { %v1678_v54 = vadd.f32 1.0, %v1677_v2  ;;  %v1691_v5 = vmul.f32 %v1690_v45, %v1676_v63 }
0x113a   :  { %2236 = vrcp.f32 %v1678_v54  ;;  %v1692_v9 = vmul.f32 1.442695, %v1691_v5 }
0x113c   :  { %2238 = vpow2.f32 %v1692_v9 }
0x1144   :  { %v2237_v3 = vpop.eup %2236 }
0x1145   :  { %v1681_v6 = vmul.f32 1.0614054, %v2237_v3 }
0x1146   :  { %v2239_v15 = vpop.eup %2238 }
0x1147   :  { %v1682_v8 = vadd.f32 -1.4531521, %v1681_v6 }
0x1149   :  { %v1683_v1 = vmul.f32 %v2237_v3, %v1682_v8 }
0x114b   :  { %v1684_v48 = vadd.f32 1.4214138, %v1683_v1 }
0x114d   :  { %v1685_v10 = vmul.f32 %v2237_v3, %v1684_v48 }
0x114f   :  { %v1686_v11 = vadd.f32 -0.28449672, %v1685_v10 }
0x1151   :  { %v1687_v12 = vmul.f32 %v2237_v3, %v1686_v11 }
0x1153   :  { %v1688_v13 = vadd.f32 0.2548296, %v1687_v12 }
0x1155   :  { %v1689_v14 = vmul.f32 %v2237_v3, %v1688_v13 }
0x1157   :  { %v1694_v16 = vmul.f32 %v2239_v15, %v1689_v14 }
0x1159   :  { %v1695_v17 = vsub.f32 1.0, %v1694_v16 }
0x115b   :  { %v1696_v21 = vmul.f32 %v1695_v17, %v1675_v20 }
0x115d   :  { %v1697_v23 = vadd.f32 1.0, %v1696_v21 }
0x115f   :  { %v1698_v24 = vmul.f32 %v1697_v23, %v1672_v22 }
0x1161   :  { %v1708_v55 = vpack.c.bf16 %v1698_v24, %v1698_v24 }
0x1163   :  { %2161 = vmatmul.mubr.msk.bf16.vlgmr.msra.gmra.mrb[44].mxu0 %vm872_vm6, %v1708_v55 }
0x1236   :  { %v1750_v38 = vpop.f32.mrb[44].mxu0 }
0x1237   :  { %v1756_v29 = vadd.f32 %v1750_v38, %v2698_v19  ;;  %v2162_v4 = vpop.f32.mrb[45].mxu0 }
0x1238   :  { %v1753_v30 = vpop.f32.mrb[46].mxu0 }
0x1239   :  { %v1765_v31 = vadd.f32 %v1908_v28, %v1756_v29  ;;  %v2163_v32 = vpop.f32.mrb[47].mxu0 }
0x123b   :  { %v1770_v33 = vpack.c.bf16 %v1765_v31, %v1765_v31 }
0x123d   :  { %1909 = vmatmul.mubr.msk.bf16.vlgmr.msra.gmra.mrb[40].mxu1 %vm65_vm0, %v1770_v33 }
0x1310   :  { %v1822_v42 = vpop.f32.mrb[40].mxu1 }
0x1311   :  { %v1823_v0 = vadd.f32 %v1822_v42, %v1778_v18  ;;  %v1824_v19 = vpop.f32.mrb[41].mxu1 }
0x1312   :  { %v1825_v43 = vadd.f32 %v1824_v19, %v1782_v40  ;;  %v1826_v46 = vpop.f32.mrb[42].mxu1 }
0x1313   :  { %1829 = vst [vmem:[%s2795_s18] sm:$0xff] %v1823_v0  ;;  %v1827_v47 = vpop.f32.mrb[43].mxu1 }
0x1314   :  { %1830 = vst.msk [vmem:[%s2795_s18 + $0x8] sm:$0xff] %vm872_vm6, %v1825_v43 }

</bundles_post_ra>
